<compile_context>
chip_gen: v5e
topology: v5e:2x2
jax: 0.10.0
libtpu: 0.0.40
codegen_flags: <defaults>
</compile_context>

<pallas_src>
import functools

import numpy as np
import jax
import jax.numpy as jnp
from jax import lax
from jax.experimental import pallas as pl
from jax.experimental.pallas import tpu as pltpu

VMEM = pltpu.MemorySpace.VMEM
SMEM = pltpu.MemorySpace.SMEM

_TAPS = tuple((dy, dx) for dy in (-1, 0, 1) for dx in (-1, 0, 1))


def _vspec():
    return pl.BlockSpec(memory_space=VMEM)


def _sspec():
    return pl.BlockSpec(memory_space=SMEM)


# --------------------------------------------------------------------------------------
# In-kernel helpers (trace-time Python, operate on values / refs)
# --------------------------------------------------------------------------------------

def _expand_body(p0, p1, sr, si):
    # out[c] = sMaps[c] * (p0 + i*p1)      p0/p1: [H,W], sr/si: [C,H,W]
    kr = sr * p0[None] - si * p1[None]
    ki = sr * p1[None] + si * p0[None]
    return kr, ki


def _combine_body(kr, ki, sr, si):
    # sum_c conj(sMaps[c]) * k[c]          -> ([H,W], [H,W])
    pr = jnp.sum(sr * kr + si * ki, axis=0)
    pi = jnp.sum(sr * ki - si * kr, axis=0)
    return pr, pi


def _dwt_fwd_inplace(buf_ref, th2_ref, twt_ref, levels, H, W):
    # Forward orthonormal Haar DWT, all levels, in place on buf_ref [2,H,W].
    # Both channels are batched per level via a block-diagonal row matrix.
    for l in range(levels):
        h, w = H >> l, W >> l
        Th2 = th2_ref[l, :2 * h, :2 * h]
        TwT = twt_ref[l, :w, :w]
        s = jnp.concatenate([buf_ref[0, :h, :w], buf_ref[1, :h, :w]], axis=0)
        res = jnp.dot(jnp.dot(Th2, s, preferred_element_type=jnp.float32),
                      TwT, preferred_element_type=jnp.float32)
        buf_ref[0, :h, :w] = res[:h]
        buf_ref[1, :h, :w] = res[h:]


def _dwt_inv_inplace(buf_ref, tht2_ref, tw_ref, levels, H, W):
    for l in reversed(range(levels)):
        h, w = H >> l, W >> l
        ThT2 = tht2_ref[l, :2 * h, :2 * h]
        Tw = tw_ref[l, :w, :w]
        s = jnp.concatenate([buf_ref[0, :h, :w], buf_ref[1, :h, :w]], axis=0)
        res = jnp.dot(jnp.dot(ThT2, s, preferred_element_type=jnp.float32),
                      Tw, preferred_element_type=jnp.float32)
        buf_ref[0, :h, :w] = res[:h]
        buf_ref[1, :h, :w] = res[h:]


# --------------------------------------------------------------------------------------
# Pallas kernels
# --------------------------------------------------------------------------------------

def _dwt_kernel(levels, H, W, inverse, x_ref, a_ref, b_ref, o_ref):
    # Standalone DWT (forward or inverse), in place on the output tile.
    o_ref[...] = x_ref[...]
    if inverse:
        _dwt_inv_inplace(o_ref, a_ref, b_ref, levels, H, W)
    else:
        _dwt_fwd_inplace(o_ref, a_ref, b_ref, levels, H, W)


def _dwtinv_expand_kernel(levels, H, W, x_ref, tht2_ref, tw_ref, sr_ref, si_ref,
                          kr_ref, ki_ref, buf_ref):
    # Fused W^{-1} (inverse DWT) + coil expand S.
    buf_ref[...] = x_ref[...]
    _dwt_inv_inplace(buf_ref, tht2_ref, tw_ref, levels, H, W)
    kr, ki = _expand_body(buf_ref[0], buf_ref[1], sr_ref[...], si_ref[...])
    kr_ref[...] = kr
    ki_ref[...] = ki


def _expand_kernel(x_ref, sr_ref, si_ref, kr_ref, ki_ref):
    # Plain coil expand (prox applies S directly to wavelet coefficients,
    # matching the PyTorch module).
    kr, ki = _expand_body(x_ref[0], x_ref[1], sr_ref[...], si_ref[...])
    kr_ref[...] = kr
    ki_ref[...] = ki


def _residual_kernel(fr_ref, fi_ref, br_ref, bi_ref, m_ref, r0r_ref, r0i_ref):
    # r0 = M*Fx - b.
    # PRECONDITION: b is pre-masked (b = M*b), so M*r0 == r0 and the adjoint
    # path consumes r0 directly (no M*r0 outputs).
    m = m_ref[...]
    r0r_ref[...] = m * fr_ref[...] - br_ref[...]
    r0i_ref[...] = m * fi_ref[...] - bi_ref[...]


def _combine_dwtfwd_kernel(levels, H, W, kr_ref, ki_ref, sr_ref, si_ref,
                           th2_ref, twt_ref, o_ref, g_ref):
    # Fused S^H (coil combine) + forward DWT; also emits ||gx||^2 for the
    # line search (gx already lives in VMEM here).
    pr, pi = _combine_body(kr_ref[...], ki_ref[...], sr_ref[...], si_ref[...])
    o_ref[0] = pr
    o_ref[1] = pi
    _dwt_fwd_inplace(o_ref, th2_ref, twt_ref, levels, H, W)
    g = o_ref[...]
    g_ref[0, 0] = jnp.sum(g * g)


def _combine_dwtinv_kernel(levels, H, W, kr_ref, ki_ref, sr_ref, si_ref,
                           tht2_ref, tw_ref, o_ref):
    # Fused S^H (coil combine) + inverse DWT (prox output -> UNet input).
    pr, pi = _combine_body(kr_ref[...], ki_ref[...], sr_ref[...], si_ref[...])
    o_ref[0] = pr
    o_ref[1] = pi
    _dwt_inv_inplace(o_ref, tht2_ref, tw_ref, levels, H, W)


def _combine_kernel(kr_ref, ki_ref, sr_ref, si_ref, o_ref):
    pr, pi = _combine_body(kr_ref[...], ki_ref[...], sr_ref[...], si_ref[...])
    o_ref[0] = pr
    o_ref[1] = pi


def _ls_reduce_kernel(r0r_ref, r0i_ref, fgr_ref, fgi_ref, m_ref, o_ref):
    # Line-search statistics: o[0,0]=Re<r0, M*Fgx>   o[0,1]=||M*Fgx||^2
    m = m_ref[...]
    agr = m * fgr_ref[...]
    agi = m * fgi_ref[...]
    o_ref[0, 0] = jnp.sum(r0r_ref[...] * agr + r0i_ref[...] * agi)
    o_ref[0, 1] = jnp.sum(agr * agr + agi * agi)


def _dc_kernel(kr_ref, ki_ref, br_ref, bi_ref, m_ref, dr_ref, di_ref):
    # out[..., mask, :] = b  (mask over ky lines); subsumes the mask apply.
    m = m_ref[...]
    dr_ref[...] = m * br_ref[...] + (1.0 - m) * kr_ref[...]
    di_ref[...] = m * bi_ref[...] + (1.0 - m) * ki_ref[...]


def _unet_kernel(H, W, x_ref, tm_ref, w1_ref, b1_ref, w2_ref, b2_ref,
                 w3_ref, b3_ref, o_ref):
    # Fused 3-layer 3x3 CNN on lane-dense [C, H*W] activations.  Each 3x3 tap
    # is a pltpu.roll on the flat lane axis + boundary-validity mask, and the
    # channel mixing is a per-tap accumulated GEMM [Cout,Cin]@[Cin,HW] — no
    # [9*Cin, HW] im2col concat is ever materialized.
    HW = H * W

    def conv3x3(a, w_ref, b_ref):
        acc = None
        for t, (dy, dx) in enumerate(_TAPS):
            d = dy * W + dx
            s = a if d == 0 else pltpu.roll(a, shift=(-d) % HW, axis=1)
            s = s * tm_ref[t:t + 1, :]
            contrib = jnp.dot(w_ref[t], s, preferred_element_type=jnp.float32)
            acc = contrib if acc is None else acc + contrib
        return acc + b_ref[...]

    h = jnp.maximum(conv3x3(x_ref[...], w1_ref, b1_ref), 0.0)
    h = jnp.maximum(conv3x3(h, w2_ref, b2_ref), 0.0)
    o_ref[...] = conv3x3(h, w3_ref, b3_ref)


# --------------------------------------------------------------------------------------
# Trace-time constant builders (numpy; shapes are static)
# --------------------------------------------------------------------------------------

def _haar_matrix(n):
    T = np.zeros((n, n), np.float32)
    s = np.float32(1.0 / np.sqrt(2.0))
    half = n // 2
    for i in range(half):
        T[i, 2 * i] = s
        T[i, 2 * i + 1] = s
        T[half + i, 2 * i] = s
        T[half + i, 2 * i + 1] = -s
    return T


def _haar_stacks(n, levels):
    T = np.zeros((levels, n, n), np.float32)
    for l in range(levels):
        m = n >> l
        T[l, :m, :m] = _haar_matrix(m)
    return T


def _haar_blockdiag_stacks(n, levels):
    # block_diag(Th, Th) per level: batches both (re,im) channels per matmul.
    T = np.zeros((levels, 2 * n, 2 * n), np.float32)
    for l in range(levels):
        m = n >> l
        hm = _haar_matrix(m)
        T[l, :m, :m] = hm
        T[l, m:2 * m, m:2 * m] = hm
    return T


def _tap_masks(H, W):
    y, x = np.mgrid[0:H, 0:W]
    masks = []
    for dy, dx in _TAPS:
        valid = (y + dy >= 0) & (y + dy < H) & (x + dx >= 0) & (x + dx < W)
        masks.append(valid.reshape(-1))
    return np.stack(masks, axis=0).astype(np.float32)


# --------------------------------------------------------------------------------------
# Fourier operators (cornerOrigin = False).  jnp.fft (no Pallas FFT primitive).
# --------------------------------------------------------------------------------------

def applyF(x):
    return jnp.fft.fftshift(
        jnp.fft.fft2(jnp.fft.ifftshift(x, axes=(-2, -1)), axes=(-2, -1), norm='ortho'),
        axes=(-2, -1))


def applyF_T(x):
    return jnp.fft.fftshift(
        jnp.fft.ifft2(jnp.fft.ifftshift(x, axes=(-2, -1)), axes=(-2, -1), norm='ortho'),
        axes=(-2, -1))


# --------------------------------------------------------------------------------------
# UNet stand-in parameters
# --------------------------------------------------------------------------------------

def init_unet_params(key, cin=2, cmid=8):
    ks = jax.random.split(key, 3)

    def cp(k, ci, co):
        w = jax.random.normal(k, (co, ci, 3, 3), jnp.float32) / jnp.sqrt(ci * 9.0)
        return (w, jnp.zeros((co,), jnp.float32))

    return (cp(ks[0], cin, cmid), cp(ks[1], cmid, cmid), cp(ks[2], cmid, cin))


def _conv_tap_params(unet_params):
    # Convert [Cout, Cin, 3, 3] weights to tap-major [9, Cout, Cin] matrices
    # (tap order matches _TAPS).
    out = []
    for w, bvec in unet_params:
        co, ci, kh, kw = w.shape
        wt = jnp.transpose(w, (2, 3, 0, 1)).reshape(kh * kw, co, ci).astype(jnp.float32)
        out.append((wt, bvec.reshape(co, 1).astype(jnp.float32)))
    return out


# --------------------------------------------------------------------------------------
# Unrolled network forward pass
# --------------------------------------------------------------------------------------

def zs_unrolled_network_onenet(x, mask, b, sMaps, unet_params, n=2, dc=True, levels=4):
    """Forward pass matching ZS_Unrolled_Network_onenet (cornerOrigin=False)."""
    H, W = x.shape[-2], x.shape[-1]
    HW = H * W
    C = sMaps.shape[-1]
    f32 = jnp.float32

    # ---- static constants (trace time) -------------------------------------
    TH2 = jnp.asarray(_haar_blockdiag_stacks(H, levels))      # [L,2H,2H] row analysis
    THT2 = jnp.transpose(TH2, (0, 2, 1))                      # [L,2H,2H] row synthesis
    TW = jnp.asarray(_haar_stacks(W, levels))                  # [L,W,W]  col synthesis
    TWT = jnp.transpose(TW, (0, 2, 1))                         # [L,W,W]  col analysis
    tapm = jnp.asarray(_tap_masks(H, W))                        # [9, HW]
    (w1t, b1t), (w2t, b2t), (w3t, b3t) = _conv_tap_params(unet_params)

    # ---- float32 planes (reused everywhere) ----------------------------------
    x0 = jnp.stack([jnp.real(x[0, 0]), jnp.imag(x[0, 0])]).astype(f32)       # [2,H,W]
    bc = jnp.transpose(b[0, 0], (2, 0, 1))                                    # [C,H,W]
    br = jnp.real(bc).astype(f32)
    bi = jnp.imag(bc).astype(f32)
    sm = jnp.transpose(sMaps, (2, 0, 1))                                      # [C,H,W]
    smr = jnp.real(sm).astype(f32)
    smi = jnp.imag(sm).astype(f32)
    m3 = jnp.broadcast_to(mask.astype(f32)[None, :], (H, W))[None]            # [1,H,W]

    def _vs(k):
        return [_vspec()] * k

    # ---- pallas_call wrappers ------------------------------------------------

    def dwtinv_expand(planes):
        return pl.pallas_call(
            functools.partial(_dwtinv_expand_kernel, levels, H, W),
            out_shape=(jax.ShapeDtypeStruct((C, H, W), f32),) * 2,
            in_specs=_vs(5),
            out_specs=(_vspec(), _vspec()),
            scratch_shapes=[pltpu.VMEM((2, H, W), f32)],
        )(planes, THT2, TW, smr, smi)

    def expand(planes):
        return pl.pallas_call(
            _expand_kernel,
            out_shape=(jax.ShapeDtypeStruct((C, H, W), f32),) * 2,
            in_specs=_vs(3),
            out_specs=(_vspec(), _vspec()),
        )(planes, smr, smi)

    def residual(fr, fi):
        return pl.pallas_call(
            _residual_kernel,
            out_shape=(jax.ShapeDtypeStruct((C, H, W), f32),) * 2,
            in_specs=_vs(5),
            out_specs=(_vspec(), _vspec()),
        )(fr, fi, br, bi, m3)

    def combine_dwtfwd(kr, ki):
        return pl.pallas_call(
            functools.partial(_combine_dwtfwd_kernel, levels, H, W),
            out_shape=(jax.ShapeDtypeStruct((2, H, W), f32),
                       jax.ShapeDtypeStruct((1, 1), f32)),
            in_specs=_vs(6),
            out_specs=(_vspec(), _sspec()),
        )(kr, ki, smr, smi, TH2, TWT)

    def combine_dwtinv(kr, ki):
        return pl.pallas_call(
            functools.partial(_combine_dwtinv_kernel, levels, H, W),
            out_shape=jax.ShapeDtypeStruct((2, H, W), f32),
            in_specs=_vs(6),
            out_specs=_vspec(),
        )(kr, ki, smr, smi, THT2, TW)

    def combine(kr, ki):
        return pl.pallas_call(
            _combine_kernel,
            out_shape=jax.ShapeDtypeStruct((2, H, W), f32),
            in_specs=_vs(4),
            out_specs=_vspec(),
        )(kr, ki, smr, smi)

    def ls_reduce(r0r, r0i, fgr, fgi):
        return pl.pallas_call(
            _ls_reduce_kernel,
            out_shape=jax.ShapeDtypeStruct((1, 2), f32),
            in_specs=_vs(5),
            out_specs=_sspec(),
        )(r0r, r0i, fgr, fgi, m3)

    def dc_replace(kr, ki):
        return pl.pallas_call(
            _dc_kernel,
            out_shape=(jax.ShapeDtypeStruct((C, H, W), f32),) * 2,
            in_specs=_vs(5),
            out_specs=(_vspec(), _vspec()),
        )(kr, ki, br, bi, m3)

    def dwt_inv(planes):
        return pl.pallas_call(
            functools.partial(_dwt_kernel, levels, H, W, True),
            out_shape=jax.ShapeDtypeStruct((2, H, W), f32),
            in_specs=_vs(3),
            out_specs=_vspec(),
        )(planes, THT2, TW)

    def dwt_fwd(planes):
        return pl.pallas_call(
            functools.partial(_dwt_kernel, levels, H, W, False),
            out_shape=jax.ShapeDtypeStruct((2, H, W), f32),
            in_specs=_vs(3),
            out_specs=_vspec(),
        )(planes, TH2, TWT)

    def unet_apply(planes):
        out = pl.pallas_call(
            functools.partial(_unet_kernel, H, W),
            out_shape=jax.ShapeDtypeStruct((2, HW), f32),
            in_specs=_vs(8),
            out_specs=_vspec(),
        )(planes.reshape(2, HW), tapm, w1t, b1t, w2t, b2t, w3t, b3t)
        return out.reshape(2, H, W)

    # ---- unrolled blocks -----------------------------------------------------

    def grad_desc(xp):
        # A = M F S W^{-1}; one gradient step with Armijo backtracking.
        kr, ki = dwtinv_expand(xp)
        Fx = applyF(lax.complex(kr, ki))
        r0r, r0i = residual(jnp.real(Fx), jnp.imag(Fx))          # r0 = A x - b
        img = applyF_T(lax.complex(r0r, r0i))                    # M*r0 == r0 (b pre-masked)
        gx, gnorm = combine_dwtfwd(jnp.real(img), jnp.imag(img))  # gx = A^T r0, ||gx||^2
        gkr, gki = dwtinv_expand(gx)
        Fg = applyF(lax.complex(gkr, gki))
        stats = ls_reduce(r0r, r0i, jnp.real(Fg), jnp.imag(Fg))
        ip = stats[0, 0]          # Re<r0, A gx>
        n_ag = stats[0, 1]        # ||A gx||^2
        gn = gnorm[0, 0]          # ||gx||^2

        # Closed-form backtracking: accept alpha iff
        #   0.5*(||r0||^2 - 2a*ip + a^2*n_ag) < 0.5*||r0||^2 - a*c*gn
        # i.e. a < a_max = 2*(ip - c*gn)/n_ag.  alpha_used = 0.5*rho^k with k the
        # smallest k >= 0 satisfying this, capped at 249 (matching the 250-iter
        # loop of the reference, including the never-accepted case).
        c = f32(0.9)
        rho = f32(0.9)
        eps = f32(1e-30)
        d = ip - c * gn
        a_max = 2.0 * d / jnp.maximum(n_ag, eps)
        t = jnp.log(jnp.maximum(a_max / 0.5, eps)) / jnp.log(rho)
        k = jnp.maximum(jnp.ceil(t), 0.0)
        k = jnp.where(0.5 * rho ** k >= a_max, k + 1.0, k)        # strictness / FP guard
        k = jnp.where(jnp.logical_and(n_ag <= 0.0, d > 0.0), 0.0, k)
        k = jnp.where(d <= 0.0, 249.0, k)
        k = jnp.clip(k, 0.0, 249.0)
        alpha = f32(0.5) * rho ** k
        return xp - alpha * gx

    out = x0
    for _ in range(n):
        out = grad_desc(out)
        if dc:
            # prox: S -> F -> DC replace -> F^-1 -> S^H, applied directly to the
            # wavelet coefficients (matching the PyTorch module), then fused with
            # the inverse DWT that feeds the UNet.
            kr, ki = expand(out)
            ksp = applyF(lax.complex(kr, ki))
            dr, di = dc_replace(jnp.real(ksp), jnp.imag(ksp))
            img = applyF_T(lax.complex(dr, di))
            img_planes = combine_dwtinv(jnp.real(img), jnp.imag(img))
        else:
            img_planes = dwt_inv(out)
        out = dwt_fwd(unet_apply(img_planes))

    if dc:   # prox_block
        kr, ki = dwtinv_expand(out)
        ksp = applyF(lax.complex(kr, ki))
        dr, di = dc_replace(jnp.real(ksp), jnp.imag(ksp))
        img = applyF_T(lax.complex(dr, di))
        out = combine(jnp.real(img), jnp.imag(img))
    else:    # final_block_nodc
        out = dwt_inv(out)
    return lax.complex(out[0], out[1])[None, None]


if __name__ == "__main__":
    key = jax.random.PRNGKey(0)
    H = W = 32
    C = 4
    k1, k2, k3, k4, k5, k6 = jax.random.split(key, 6)

    x = (jax.random.normal(k1, (1, 1, H, W)) +
         1j * jax.random.normal(k2, (1, 1, H, W))).astype(jnp.complex64)
    sMaps = ((jax.random.normal(k3, (H, W, C)) +
              1j * jax.random.normal(k4, (H, W, C))) * 0.5).astype(jnp.complex64)

    ky = jnp.arange(W)
    mask = (ky % 2 == 0) | ((ky >= W // 2 - 4) & (ky < W // 2 + 4))   # [W] bool

    b = (jax.random.normal(k5, (1, 1, H, W, C)) +
         1j * jax.random.normal(k6, (1, 1, H, W, C))).astype(jnp.complex64)
    # PRECONDITION (relied on by the kernels): b only contains sampled lines.
    b = b * mask[None, None, None, :, None].astype(jnp.complex64)

    unet_params = init_unet_params(jax.random.PRNGKey(42))

    fwd = jax.jit(functools.partial(zs_unrolled_network_onenet, n=2, dc=True, levels=4))
    out = fwd(x, mask, b, sMaps, unet_params)
    out = jax.block_until_ready(out)

    assert out.shape == (1, 1, H, W)
    assert bool(jnp.all(jnp.isfinite(out.real)) & jnp.all(jnp.isfinite(out.imag)))
    print("KERNEL_OK")
</pallas_src>

<mosaic_0001>
module attributes {stable_mosaic.version = 11 : i64} {
  func.func @_dwtinv_expand_kernel(%arg0: memref<2x32x32xf32, #tpu.memory_space<vmem>>, %arg1: memref<4x64x64xf32, #tpu.memory_space<vmem>>, %arg2: memref<4x32x32xf32, #tpu.memory_space<vmem>>, %arg3: memref<4x32x32xf32, #tpu.memory_space<vmem>>, %arg4: memref<4x32x32xf32, #tpu.memory_space<vmem>>, %arg5: memref<4x32x32xf32, #tpu.memory_space<vmem>>, %arg6: memref<4x32x32xf32, #tpu.memory_space<vmem>>, %arg7: memref<2x32x32xf32, #tpu.memory_space<vmem>>) attributes {dimension_semantics = [], scalar_prefetch = 0 : i64, scratch_operands = 1 : i64, tpu.core_type = #tpu.core_type<tc>} {
    %c0 = arith.constant 0 : index
    %c0_0 = arith.constant 0 : index
    %c0_1 = arith.constant 0 : index
    %0 = vector.load %arg0[%c0, %c0_0, %c0_1] : memref<2x32x32xf32, #tpu.memory_space<vmem>>, vector<2x32x32xf32>
    %c0_2 = arith.constant 0 : index
    %c0_3 = arith.constant 0 : index
    %c0_4 = arith.constant 0 : index
    %1 = vector.load %arg7[%c0_2, %c0_3, %c0_4] : memref<2x32x32xf32, #tpu.memory_space<vmem>>, vector<2x32x32xf32>
    tpu.vector_store %arg7[%c0_2, %c0_3, %c0_4], %0 {strides = array<i32>} : memref<2x32x32xf32, #tpu.memory_space<vmem>>, vector<2x32x32xf32>,
    %c3 = arith.constant 3 : index
    %c0_5 = arith.constant 0 : index
    %c0_6 = arith.constant 0 : index
    %2 = vector.load %arg1[%c3, %c0_5, %c0_6] : memref<4x64x64xf32, #tpu.memory_space<vmem>>, vector<1x8x8xf32>
    %3 = vector.shape_cast %2 : vector<1x8x8xf32> to vector<8x8xf32>
    %c3_7 = arith.constant 3 : index
    %c0_8 = arith.constant 0 : index
    %c0_9 = arith.constant 0 : index
    %4 = vector.load %arg2[%c3_7, %c0_8, %c0_9] : memref<4x32x32xf32, #tpu.memory_space<vmem>>, vector<1x4x4xf32>
    %5 = vector.shape_cast %4 : vector<1x4x4xf32> to vector<4x4xf32>
    %c0_10 = arith.constant 0 : index
    %c0_11 = arith.constant 0 : index
    %c0_12 = arith.constant 0 : index
    %6 = vector.load %arg7[%c0_10, %c0_11, %c0_12] : memref<2x32x32xf32, #tpu.memory_space<vmem>>, vector<1x4x4xf32>
    %7 = vector.shape_cast %6 : vector<1x4x4xf32> to vector<4x4xf32>
    %c1 = arith.constant 1 : index
    %c0_13 = arith.constant 0 : index
    %c0_14 = arith.constant 0 : index
    %8 = vector.load %arg7[%c1, %c0_13, %c0_14] : memref<2x32x32xf32, #tpu.memory_space<vmem>>, vector<1x4x4xf32>
    %9 = vector.shape_cast %8 : vector<1x4x4xf32> to vector<4x4xf32>
    %10 = tpu.concatenate %7, %9 in 0 : vector<4x4xf32>, vector<4x4xf32> -> vector<8x4xf32>
    %cst = arith.constant dense<0.000000e+00> : vector<8x4xf32>
    %11 = tpu.matmul %3, %10, %cst {dimension_numbers = #tpu.dot_dimension_numbers<[1], [0], [0], [1], [0, 0, 1, 1], [], []>} : vector<8x8xf32>, vector<8x4xf32>, vector<8x4xf32> -> vector<8x4xf32>
    %cst_15 = arith.constant dense<0.000000e+00> : vector<8x4xf32>
    %12 = tpu.matmul %11, %5, %cst_15 {dimension_numbers = #tpu.dot_dimension_numbers<[1], [0], [0], [1], [0, 0, 1, 1], [], []>} : vector<8x4xf32>, vector<4x4xf32>, vector<8x4xf32> -> vector<8x4xf32>
    %13 = vector.extract_strided_slice %12 {offsets = [0, 0], sizes = [4, 4], strides = [1, 1]} : vector<8x4xf32> to vector<4x4xf32>
    %c0_16 = arith.constant 0 : index
    %c0_17 = arith.constant 0 : index
    %c0_18 = arith.constant 0 : index
    %14 = vector.load %arg7[%c0_16, %c0_17, %c0_18] : memref<2x32x32xf32, #tpu.memory_space<vmem>>, vector<1x4x4xf32>
    %15 = vector.shape_cast %14 : vector<1x4x4xf32> to vector<4x4xf32>
    %16 = vector.shape_cast %13 : vector<4x4xf32> to vector<1x4x4xf32>
    tpu.vector_store %arg7[%c0_16, %c0_17, %c0_18], %16 {strides = array<i32>} : memref<2x32x32xf32, #tpu.memory_space<vmem>>, vector<1x4x4xf32>,
    %17 = vector.extract_strided_slice %12 {offsets = [4, 0], sizes = [4, 4], strides = [1, 1]} : vector<8x4xf32> to vector<4x4xf32>
    %c1_19 = arith.constant 1 : index
    %c0_20 = arith.constant 0 : index
    %c0_21 = arith.constant 0 : index
    %18 = vector.load %arg7[%c1_19, %c0_20, %c0_21] : memref<2x32x32xf32, #tpu.memory_space<vmem>>, vector<1x4x4xf32>
    %19 = vector.shape_cast %18 : vector<1x4x4xf32> to vector<4x4xf32>
    %20 = vector.shape_cast %17 : vector<4x4xf32> to vector<1x4x4xf32>
    tpu.vector_store %arg7[%c1_19, %c0_20, %c0_21], %20 {strides = array<i32>} : memref<2x32x32xf32, #tpu.memory_space<vmem>>, vector<1x4x4xf32>,
    %c2 = arith.constant 2 : index
    %c0_22 = arith.constant 0 : index
    %c0_23 = arith.constant 0 : index
    %21 = vector.load %arg1[%c2, %c0_22, %c0_23] : memref<4x64x64xf32, #tpu.memory_space<vmem>>, vector<1x16x16xf32>
    %22 = vector.shape_cast %21 : vector<1x16x16xf32> to vector<16x16xf32>
    %c2_24 = arith.constant 2 : index
    %c0_25 = arith.constant 0 : index
    %c0_26 = arith.constant 0 : index
    %23 = vector.load %arg2[%c2_24, %c0_25, %c0_26] : memref<4x32x32xf32, #tpu.memory_space<vmem>>, vector<1x8x8xf32>
    %24 = vector.shape_cast %23 : vector<1x8x8xf32> to vector<8x8xf32>
    %c0_27 = arith.constant 0 : index
    %c0_28 = arith.constant 0 : index
    %c0_29 = arith.constant 0 : index
    %25 = vector.load %arg7[%c0_27, %c0_28, %c0_29] : memref<2x32x32xf32, #tpu.memory_space<vmem>>, vector<1x8x8xf32>
    %26 = vector.shape_cast %25 : vector<1x8x8xf32> to vector<8x8xf32>
    %c1_30 = arith.constant 1 : index
    %c0_31 = arith.constant 0 : index
    %c0_32 = arith.constant 0 : index
    %27 = vector.load %arg7[%c1_30, %c0_31, %c0_32] : memref<2x32x32xf32, #tpu.memory_space<vmem>>, vector<1x8x8xf32>
    %28 = vector.shape_cast %27 : vector<1x8x8xf32> to vector<8x8xf32>
    %29 = tpu.concatenate %26, %28 in 0 : vector<8x8xf32>, vector<8x8xf32> -> vector<16x8xf32>
    %cst_33 = arith.constant dense<0.000000e+00> : vector<16x8xf32>
    %30 = tpu.matmul %22, %29, %cst_33 {dimension_numbers = #tpu.dot_dimension_numbers<[1], [0], [0], [1], [0, 0, 1, 1], [], []>} : vector<16x16xf32>, vector<16x8xf32>, vector<16x8xf32> -> vector<16x8xf32>
    %cst_34 = arith.constant dense<0.000000e+00> : vector<16x8xf32>
    %31 = tpu.matmul %30, %24, %cst_34 {dimension_numbers = #tpu.dot_dimension_numbers<[1], [0], [0], [1], [0, 0, 1, 1], [], []>} : vector<16x8xf32>, vector<8x8xf32>, vector<16x8xf32> -> vector<16x8xf32>
    %32 = vector.extract_strided_slice %31 {offsets = [0, 0], sizes = [8, 8], strides = [1, 1]} : vector<16x8xf32> to vector<8x8xf32>
    %c0_35 = arith.constant 0 : index
    %c0_36 = arith.constant 0 : index
    %c0_37 = arith.constant 0 : index
    %33 = vector.load %arg7[%c0_35, %c0_36, %c0_37] : memref<2x32x32xf32, #tpu.memory_space<vmem>>, vector<1x8x8xf32>
    %34 = vector.shape_cast %33 : vector<1x8x8xf32> to vector<8x8xf32>
    %35 = vector.shape_cast %32 : vector<8x8xf32> to vector<1x8x8xf32>
    tpu.vector_store %arg7[%c0_35, %c0_36, %c0_37], %35 {strides = array<i32>} : memref<2x32x32xf32, #tpu.memory_space<vmem>>, vector<1x8x8xf32>,
    %36 = vector.extract_strided_slice %31 {offsets = [8, 0], sizes = [8, 8], strides = [1, 1]} : vector<16x8xf32> to vector<8x8xf32>
    %c1_38 = arith.constant 1 : index
    %c0_39 = arith.constant 0 : index
    %c0_40 = arith.constant 0 : index
    %37 = vector.load %arg7[%c1_38, %c0_39, %c0_40] : memref<2x32x32xf32, #tpu.memory_space<vmem>>, vector<1x8x8xf32>
    %38 = vector.shape_cast %37 : vector<1x8x8xf32> to vector<8x8xf32>
    %39 = vector.shape_cast %36 : vector<8x8xf32> to vector<1x8x8xf32>
    tpu.vector_store %arg7[%c1_38, %c0_39, %c0_40], %39 {strides = array<i32>} : memref<2x32x32xf32, #tpu.memory_space<vmem>>, vector<1x8x8xf32>,
    %c1_41 = arith.constant 1 : index
    %c0_42 = arith.constant 0 : index
    %c0_43 = arith.constant 0 : index
    %40 = vector.load %arg1[%c1_41, %c0_42, %c0_43] : memref<4x64x64xf32, #tpu.memory_space<vmem>>, vector<1x32x32xf32>
    %41 = vector.shape_cast %40 : vector<1x32x32xf32> to vector<32x32xf32>
    %c1_44 = arith.constant 1 : index
    %c0_45 = arith.constant 0 : index
    %c0_46 = arith.constant 0 : index
    %42 = vector.load %arg2[%c1_44, %c0_45, %c0_46] : memref<4x32x32xf32, #tpu.memory_space<vmem>>, vector<1x16x16xf32>
    %43 = vector.shape_cast %42 : vector<1x16x16xf32> to vector<16x16xf32>
    %c0_47 = arith.constant 0 : index
    %c0_48 = arith.constant 0 : index
    %c0_49 = arith.constant 0 : index
    %44 = vector.load %arg7[%c0_47, %c0_48, %c0_49] : memref<2x32x32xf32, #tpu.memory_space<vmem>>, vector<1x16x16xf32>
    %45 = vector.shape_cast %44 : vector<1x16x16xf32> to vector<16x16xf32>
    %c1_50 = arith.constant 1 : index
    %c0_51 = arith.constant 0 : index
    %c0_52 = arith.constant 0 : index
    %46 = vector.load %arg7[%c1_50, %c0_51, %c0_52] : memref<2x32x32xf32, #tpu.memory_space<vmem>>, vector<1x16x16xf32>
    %47 = vector.shape_cast %46 : vector<1x16x16xf32> to vector<16x16xf32>
    %48 = tpu.concatenate %45, %47 in 0 : vector<16x16xf32>, vector<16x16xf32> -> vector<32x16xf32>
    %cst_53 = arith.constant dense<0.000000e+00> : vector<32x16xf32>
    %49 = tpu.matmul %41, %48, %cst_53 {dimension_numbers = #tpu.dot_dimension_numbers<[1], [0], [0], [1], [0, 0, 1, 1], [], []>} : vector<32x32xf32>, vector<32x16xf32>, vector<32x16xf32> -> vector<32x16xf32>
    %cst_54 = arith.constant dense<0.000000e+00> : vector<32x16xf32>
    %50 = tpu.matmul %49, %43, %cst_54 {dimension_numbers = #tpu.dot_dimension_numbers<[1], [0], [0], [1], [0, 0, 1, 1], [], []>} : vector<32x16xf32>, vector<16x16xf32>, vector<32x16xf32> -> vector<32x16xf32>
    %51 = vector.extract_strided_slice %50 {offsets = [0, 0], sizes = [16, 16], strides = [1, 1]} : vector<32x16xf32> to vector<16x16xf32>
    %c0_55 = arith.constant 0 : index
    %c0_56 = arith.constant 0 : index
    %c0_57 = arith.constant 0 : index
    %52 = vector.load %arg7[%c0_55, %c0_56, %c0_57] : memref<2x32x32xf32, #tpu.memory_space<vmem>>, vector<1x16x16xf32>
    %53 = vector.shape_cast %52 : vector<1x16x16xf32> to vector<16x16xf32>
    %54 = vector.shape_cast %51 : vector<16x16xf32> to vector<1x16x16xf32>
    tpu.vector_store %arg7[%c0_55, %c0_56, %c0_57], %54 {strides = array<i32>} : memref<2x32x32xf32, #tpu.memory_space<vmem>>, vector<1x16x16xf32>,
    %55 = vector.extract_strided_slice %50 {offsets = [16, 0], sizes = [16, 16], strides = [1, 1]} : vector<32x16xf32> to vector<16x16xf32>
    %c1_58 = arith.constant 1 : index
    %c0_59 = arith.constant 0 : index
    %c0_60 = arith.constant 0 : index
    %56 = vector.load %arg7[%c1_58, %c0_59, %c0_60] : memref<2x32x32xf32, #tpu.memory_space<vmem>>, vector<1x16x16xf32>
    %57 = vector.shape_cast %56 : vector<1x16x16xf32> to vector<16x16xf32>
    %58 = vector.shape_cast %55 : vector<16x16xf32> to vector<1x16x16xf32>
    tpu.vector_store %arg7[%c1_58, %c0_59, %c0_60], %58 {strides = array<i32>} : memref<2x32x32xf32, #tpu.memory_space<vmem>>, vector<1x16x16xf32>,
    %c0_61 = arith.constant 0 : index
    %c0_62 = arith.constant 0 : index
    %c0_63 = arith.constant 0 : index
    %59 = vector.load %arg1[%c0_61, %c0_62, %c0_63] : memref<4x64x64xf32, #tpu.memory_space<vmem>>, vector<1x64x64xf32>
    %60 = vector.shape_cast %59 : vector<1x64x64xf32> to vector<64x64xf32>
    %c0_64 = arith.constant 0 : index
    %c0_65 = arith.constant 0 : index
    %c0_66 = arith.constant 0 : index
    %61 = vector.load %arg2[%c0_64, %c0_65, %c0_66] : memref<4x32x32xf32, #tpu.memory_space<vmem>>, vector<1x32x32xf32>
    %62 = vector.shape_cast %61 : vector<1x32x32xf32> to vector<32x32xf32>
    %c0_67 = arith.constant 0 : index
    %c0_68 = arith.constant 0 : index
    %c0_69 = arith.constant 0 : index
    %63 = vector.load %arg7[%c0_67, %c0_68, %c0_69] : memref<2x32x32xf32, #tpu.memory_space<vmem>>, vector<1x32x32xf32>
    %64 = vector.shape_cast %63 : vector<1x32x32xf32> to vector<32x32xf32>
    %c1_70 = arith.constant 1 : index
    %c0_71 = arith.constant 0 : index
    %c0_72 = arith.constant 0 : index
    %65 = vector.load %arg7[%c1_70, %c0_71, %c0_72] : memref<2x32x32xf32, #tpu.memory_space<vmem>>, vector<1x32x32xf32>
    %66 = vector.shape_cast %65 : vector<1x32x32xf32> to vector<32x32xf32>
    %67 = tpu.concatenate %64, %66 in 0 : vector<32x32xf32>, vector<32x32xf32> -> vector<64x32xf32>
    %cst_73 = arith.constant dense<0.000000e+00> : vector<64x32xf32>
    %68 = tpu.matmul %60, %67, %cst_73 {dimension_numbers = #tpu.dot_dimension_numbers<[1], [0], [0], [1], [0, 0, 1, 1], [], []>} : vector<64x64xf32>, vector<64x32xf32>, vector<64x32xf32> -> vector<64x32xf32>
    %cst_74 = arith.constant dense<0.000000e+00> : vector<64x32xf32>
    %69 = tpu.matmul %68, %62, %cst_74 {dimension_numbers = #tpu.dot_dimension_numbers<[1], [0], [0], [1], [0, 0, 1, 1], [], []>} : vector<64x32xf32>, vector<32x32xf32>, vector<64x32xf32> -> vector<64x32xf32>
    %70 = vector.extract_strided_slice %69 {offsets = [0, 0], sizes = [32, 32], strides = [1, 1]} : vector<64x32xf32> to vector<32x32xf32>
    %c0_75 = arith.constant 0 : index
    %c0_76 = arith.constant 0 : index
    %c0_77 = arith.constant 0 : index
    %71 = vector.load %arg7[%c0_75, %c0_76, %c0_77] : memref<2x32x32xf32, #tpu.memory_space<vmem>>, vector<1x32x32xf32>
    %72 = vector.shape_cast %71 : vector<1x32x32xf32> to vector<32x32xf32>
    %73 = vector.shape_cast %70 : vector<32x32xf32> to vector<1x32x32xf32>
    tpu.vector_store %arg7[%c0_75, %c0_76, %c0_77], %73 {strides = array<i32>} : memref<2x32x32xf32, #tpu.memory_space<vmem>>, vector<1x32x32xf32>,
    %74 = vector.extract_strided_slice %69 {offsets = [32, 0], sizes = [32, 32], strides = [1, 1]} : vector<64x32xf32> to vector<32x32xf32>
    %c1_78 = arith.constant 1 : index
    %c0_79 = arith.constant 0 : index
    %c0_80 = arith.constant 0 : index
    %75 = vector.load %arg7[%c1_78, %c0_79, %c0_80] : memref<2x32x32xf32, #tpu.memory_space<vmem>>, vector<1x32x32xf32>
    %76 = vector.shape_cast %75 : vector<1x32x32xf32> to vector<32x32xf32>
    %77 = vector.shape_cast %74 : vector<32x32xf32> to vector<1x32x32xf32>
    tpu.vector_store %arg7[%c1_78, %c0_79, %c0_80], %77 {strides = array<i32>} : memref<2x32x32xf32, #tpu.memory_space<vmem>>, vector<1x32x32xf32>,
    %c0_81 = arith.constant 0 : index
    %c0_82 = arith.constant 0 : index
    %c0_83 = arith.constant 0 : index
    %78 = vector.load %arg7[%c0_81, %c0_82, %c0_83] : memref<2x32x32xf32, #tpu.memory_space<vmem>>, vector<1x32x32xf32>
    %79 = vector.shape_cast %78 : vector<1x32x32xf32> to vector<32x32xf32>
    %c1_84 = arith.constant 1 : index
    %c0_85 = arith.constant 0 : index
    %c0_86 = arith.constant 0 : index
    %80 = vector.load %arg7[%c1_84, %c0_85, %c0_86] : memref<2x32x32xf32, #tpu.memory_space<vmem>>, vector<1x32x32xf32>
    %81 = vector.shape_cast %80 : vector<1x32x32xf32> to vector<32x32xf32>
    %c0_87 = arith.constant 0 : index
    %c0_88 = arith.constant 0 : index
    %c0_89 = arith.constant 0 : index
    %82 = vector.load %arg3[%c0_87, %c0_88, %c0_89] : memref<4x32x32xf32, #tpu.memory_space<vmem>>, vector<4x32x32xf32>
    %c0_90 = arith.constant 0 : index
    %c0_91 = arith.constant 0 : index
    %c0_92 = arith.constant 0 : index
    %83 = vector.load %arg4[%c0_90, %c0_91, %c0_92] : memref<4x32x32xf32, #tpu.memory_space<vmem>>, vector<4x32x32xf32>
    %84 = vector.shape_cast %79 : vector<32x32xf32> to vector<1x32x32xf32>
    %85 = vector.broadcast %84 : vector<1x32x32xf32> to vector<4x32x32xf32>
    %86 = arith.mulf %82, %85 : vector<4x32x32xf32>
    %87 = vector.shape_cast %81 : vector<32x32xf32> to vector<1x32x32xf32>
    %88 = vector.broadcast %87 : vector<1x32x32xf32> to vector<4x32x32xf32>
    %89 = arith.mulf %83, %88 : vector<4x32x32xf32>
    %90 = arith.subf %86, %89 : vector<4x32x32xf32>
    %91 = vector.shape_cast %81 : vector<32x32xf32> to vector<1x32x32xf32>
    %92 = vector.broadcast %91 : vector<1x32x32xf32> to vector<4x32x32xf32>
    %93 = arith.mulf %82, %92 : vector<4x32x32xf32>
    %94 = vector.shape_cast %79 : vector<32x32xf32> to vector<1x32x32xf32>
    %95 = vector.broadcast %94 : vector<1x32x32xf32> to vector<4x32x32xf32>
    %96 = arith.mulf %83, %95 : vector<4x32x32xf32>
    %97 = arith.addf %93, %96 : vector<4x32x32xf32>
    %c0_93 = arith.constant 0 : index
    %c0_94 = arith.constant 0 : index
    %c0_95 = arith.constant 0 : index
    %98 = vector.load %arg5[%c0_93, %c0_94, %c0_95] : memref<4x32x32xf32, #tpu.memory_space<vmem>>, vector<4x32x32xf32>
    tpu.vector_store %arg5[%c0_93, %c0_94, %c0_95], %90 {strides = array<i32>} : memref<4x32x32xf32, #tpu.memory_space<vmem>>, vector<4x32x32xf32>,
    %c0_96 = arith.constant 0 : index
    %c0_97 = arith.constant 0 : index
    %c0_98 = arith.constant 0 : index
    %99 = vector.load %arg6[%c0_96, %c0_97, %c0_98] : memref<4x32x32xf32, #tpu.memory_space<vmem>>, vector<4x32x32xf32>
    tpu.vector_store %arg6[%c0_96, %c0_97, %c0_98], %97 {strides = array<i32>} : memref<4x32x32xf32, #tpu.memory_space<vmem>>, vector<4x32x32xf32>,
    return
  }
}

module attributes {stable_mosaic.version = 11 : i64} {
  func.func @_residual_kernel(%arg0: memref<4x32x32xf32, #tpu.memory_space<vmem>>, %arg1: memref<4x32x32xf32, #tpu.memory_space<vmem>>, %arg2: memref<4x32x32xf32, #tpu.memory_space<vmem>>, %arg3: memref<4x32x32xf32, #tpu.memory_space<vmem>>, %arg4: memref<1x32x32xf32, #tpu.memory_space<vmem>>, %arg5: memref<4x32x32xf32, #tpu.memory_space<vmem>>, %arg6: memref<4x32x32xf32, #tpu.memory_space<vmem>>) attributes {dimension_semantics = [], scalar_prefetch = 0 : i64, scratch_operands = 0 : i64, tpu.core_type = #tpu.core_type<tc>} {
    %c0 = arith.constant 0 : index
    %c0_0 = arith.constant 0 : index
    %c0_1 = arith.constant 0 : index
    %0 = vector.load %arg4[%c0, %c0_0, %c0_1] : memref<1x32x32xf32, #tpu.memory_space<vmem>>, vector<1x32x32xf32>
    %c0_2 = arith.constant 0 : index
    %c0_3 = arith.constant 0 : index
    %c0_4 = arith.constant 0 : index
    %1 = vector.load %arg0[%c0_2, %c0_3, %c0_4] : memref<4x32x32xf32, #tpu.memory_space<vmem>>, vector<4x32x32xf32>
    %2 = vector.broadcast %0 : vector<1x32x32xf32> to vector<4x32x32xf32>
    %3 = arith.mulf %2, %1 : vector<4x32x32xf32>
    %c0_5 = arith.constant 0 : index
    %c0_6 = arith.constant 0 : index
    %c0_7 = arith.constant 0 : index
    %4 = vector.load %arg2[%c0_5, %c0_6, %c0_7] : memref<4x32x32xf32, #tpu.memory_space<vmem>>, vector<4x32x32xf32>
    %5 = arith.subf %3, %4 : vector<4x32x32xf32>
    %c0_8 = arith.constant 0 : index
    %c0_9 = arith.constant 0 : index
    %c0_10 = arith.constant 0 : index
    %6 = vector.load %arg5[%c0_8, %c0_9, %c0_10] : memref<4x32x32xf32, #tpu.memory_space<vmem>>, vector<4x32x32xf32>
    tpu.vector_store %arg5[%c0_8, %c0_9, %c0_10], %5 {strides = array<i32>} : memref<4x32x32xf32, #tpu.memory_space<vmem>>, vector<4x32x32xf32>,
    %c0_11 = arith.constant 0 : index
    %c0_12 = arith.constant 0 : index
    %c0_13 = arith.constant 0 : index
    %7 = vector.load %arg1[%c0_11, %c0_12, %c0_13] : memref<4x32x32xf32, #tpu.memory_space<vmem>>, vector<4x32x32xf32>
    %8 = vector.broadcast %0 : vector<1x32x32xf32> to vector<4x32x32xf32>
    %9 = arith.mulf %8, %7 : vector<4x32x32xf32>
    %c0_14 = arith.constant 0 : index
    %c0_15 = arith.constant 0 : index
    %c0_16 = arith.constant 0 : index
    %10 = vector.load %arg3[%c0_14, %c0_15, %c0_16] : memref<4x32x32xf32, #tpu.memory_space<vmem>>, vector<4x32x32xf32>
    %11 = arith.subf %9, %10 : vector<4x32x32xf32>
    %c0_17 = arith.constant 0 : index
    %c0_18 = arith.constant 0 : index
    %c0_19 = arith.constant 0 : index
    %12 = vector.load %arg6[%c0_17, %c0_18, %c0_19] : memref<4x32x32xf32, #tpu.memory_space<vmem>>, vector<4x32x32xf32>
    tpu.vector_store %arg6[%c0_17, %c0_18, %c0_19], %11 {strides = array<i32>} : memref<4x32x32xf32, #tpu.memory_space<vmem>>, vector<4x32x32xf32>,
    return
  }
}

module attributes {stable_mosaic.version = 11 : i64} {
  func.func @_combine_dwtfwd_kernel(%arg0: memref<4x32x32xf32, #tpu.memory_space<vmem>>, %arg1: memref<4x32x32xf32, #tpu.memory_space<vmem>>, %arg2: memref<4x32x32xf32, #tpu.memory_space<vmem>>, %arg3: memref<4x32x32xf32, #tpu.memory_space<vmem>>, %arg4: memref<4x64x64xf32, #tpu.memory_space<vmem>>, %arg5: memref<4x32x32xf32, #tpu.memory_space<vmem>>, %arg6: memref<2x32x32xf32, #tpu.memory_space<vmem>>, %arg7: memref<1x1xf32, #tpu.memory_space<smem>>) attributes {dimension_semantics = [], scalar_prefetch = 0 : i64, scratch_operands = 0 : i64, tpu.core_type = #tpu.core_type<tc>} {
    %c0 = arith.constant 0 : index
    %c0_0 = arith.constant 0 : index
    %c0_1 = arith.constant 0 : index
    %0 = vector.load %arg0[%c0, %c0_0, %c0_1] : memref<4x32x32xf32, #tpu.memory_space<vmem>>, vector<4x32x32xf32>
    %c0_2 = arith.constant 0 : index
    %c0_3 = arith.constant 0 : index
    %c0_4 = arith.constant 0 : index
    %1 = vector.load %arg1[%c0_2, %c0_3, %c0_4] : memref<4x32x32xf32, #tpu.memory_space<vmem>>, vector<4x32x32xf32>
    %c0_5 = arith.constant 0 : index
    %c0_6 = arith.constant 0 : index
    %c0_7 = arith.constant 0 : index
    %2 = vector.load %arg2[%c0_5, %c0_6, %c0_7] : memref<4x32x32xf32, #tpu.memory_space<vmem>>, vector<4x32x32xf32>
    %c0_8 = arith.constant 0 : index
    %c0_9 = arith.constant 0 : index
    %c0_10 = arith.constant 0 : index
    %3 = vector.load %arg3[%c0_8, %c0_9, %c0_10] : memref<4x32x32xf32, #tpu.memory_space<vmem>>, vector<4x32x32xf32>
    %4 = arith.mulf %2, %0 : vector<4x32x32xf32>
    %5 = arith.mulf %3, %1 : vector<4x32x32xf32>
    %6 = arith.addf %4, %5 : vector<4x32x32xf32>
    %cst = arith.constant dense<0.000000e+00> : vector<32x32xf32>
    %7 = vector.multi_reduction <add>, %6, %cst [0] : vector<4x32x32xf32> to vector<32x32xf32>
    %8 = arith.mulf %2, %1 : vector<4x32x32xf32>
    %9 = arith.mulf %3, %0 : vector<4x32x32xf32>
    %10 = arith.subf %8, %9 : vector<4x32x32xf32>
    %cst_11 = arith.constant dense<0.000000e+00> : vector<32x32xf32>
    %11 = vector.multi_reduction <add>, %10, %cst_11 [0] : vector<4x32x32xf32> to vector<32x32xf32>
    %c0_12 = arith.constant 0 : index
    %c0_13 = arith.constant 0 : index
    %c0_14 = arith.constant 0 : index
    %12 = vector.load %arg6[%c0_12, %c0_13, %c0_14] : memref<2x32x32xf32, #tpu.memory_space<vmem>>, vector<1x32x32xf32>
    %13 = vector.shape_cast %12 : vector<1x32x32xf32> to vector<32x32xf32>
    %14 = vector.shape_cast %7 : vector<32x32xf32> to vector<1x32x32xf32>
    tpu.vector_store %arg6[%c0_12, %c0_13, %c0_14], %14 {strides = array<i32>} : memref<2x32x32xf32, #tpu.memory_space<vmem>>, vector<1x32x32xf32>,
    %c1 = arith.constant 1 : index
    %c0_15 = arith.constant 0 : index
    %c0_16 = arith.constant 0 : index
    %15 = vector.load %arg6[%c1, %c0_15, %c0_16] : memref<2x32x32xf32, #tpu.memory_space<vmem>>, vector<1x32x32xf32>
    %16 = vector.shape_cast %15 : vector<1x32x32xf32> to vector<32x32xf32>
    %17 = vector.shape_cast %11 : vector<32x32xf32> to vector<1x32x32xf32>
    tpu.vector_store %arg6[%c1, %c0_15, %c0_16], %17 {strides = array<i32>} : memref<2x32x32xf32, #tpu.memory_space<vmem>>, vector<1x32x32xf32>,
    %c0_17 = arith.constant 0 : index
    %c0_18 = arith.constant 0 : index
    %c0_19 = arith.constant 0 : index
    %18 = vector.load %arg4[%c0_17, %c0_18, %c0_19] : memref<4x64x64xf32, #tpu.memory_space<vmem>>, vector<1x64x64xf32>
    %19 = vector.shape_cast %18 : vector<1x64x64xf32> to vector<64x64xf32>
    %c0_20 = arith.constant 0 : index
    %c0_21 = arith.constant 0 : index
    %c0_22 = arith.constant 0 : index
    %20 = vector.load %arg5[%c0_20, %c0_21, %c0_22] : memref<4x32x32xf32, #tpu.memory_space<vmem>>, vector<1x32x32xf32>
    %21 = vector.shape_cast %20 : vector<1x32x32xf32> to vector<32x32xf32>
    %c0_23 = arith.constant 0 : index
    %c0_24 = arith.constant 0 : index
    %c0_25 = arith.constant 0 : index
    %22 = vector.load %arg6[%c0_23, %c0_24, %c0_25] : memref<2x32x32xf32, #tpu.memory_space<vmem>>, vector<1x32x32xf32>
    %23 = vector.shape_cast %22 : vector<1x32x32xf32> to vector<32x32xf32>
    %c1_26 = arith.constant 1 : index
    %c0_27 = arith.constant 0 : index
    %c0_28 = arith.constant 0 : index
    %24 = vector.load %arg6[%c1_26, %c0_27, %c0_28] : memref<2x32x32xf32, #tpu.memory_space<vmem>>, vector<1x32x32xf32>
    %25 = vector.shape_cast %24 : vector<1x32x32xf32> to vector<32x32xf32>
    %26 = tpu.concatenate %23, %25 in 0 : vector<32x32xf32>, vector<32x32xf32> -> vector<64x32xf32>
    %cst_29 = arith.constant dense<0.000000e+00> : vector<64x32xf32>
    %27 = tpu.matmul %19, %26, %cst_29 {dimension_numbers = #tpu.dot_dimension_numbers<[1], [0], [0], [1], [0, 0, 1, 1], [], []>} : vector<64x64xf32>, vector<64x32xf32>, vector<64x32xf32> -> vector<64x32xf32>
    %cst_30 = arith.constant dense<0.000000e+00> : vector<64x32xf32>
    %28 = tpu.matmul %27, %21, %cst_30 {dimension_numbers = #tpu.dot_dimension_numbers<[1], [0], [0], [1], [0, 0, 1, 1], [], []>} : vector<64x32xf32>, vector<32x32xf32>, vector<64x32xf32> -> vector<64x32xf32>
    %29 = vector.extract_strided_slice %28 {offsets = [0, 0], sizes = [32, 32], strides = [1, 1]} : vector<64x32xf32> to vector<32x32xf32>
    %c0_31 = arith.constant 0 : index
    %c0_32 = arith.constant 0 : index
    %c0_33 = arith.constant 0 : index
    %30 = vector.load %arg6[%c0_31, %c0_32, %c0_33] : memref<2x32x32xf32, #tpu.memory_space<vmem>>, vector<1x32x32xf32>
    %31 = vector.shape_cast %30 : vector<1x32x32xf32> to vector<32x32xf32>
    %32 = vector.shape_cast %29 : vector<32x32xf32> to vector<1x32x32xf32>
    tpu.vector_store %arg6[%c0_31, %c0_32, %c0_33], %32 {strides = array<i32>} : memref<2x32x32xf32, #tpu.memory_space<vmem>>, vector<1x32x32xf32>,
    %33 = vector.extract_strided_slice %28 {offsets = [32, 0], sizes = [32, 32], strides = [1, 1]} : vector<64x32xf32> to vector<32x32xf32>
    %c1_34 = arith.constant 1 : index
    %c0_35 = arith.constant 0 : index
    %c0_36 = arith.constant 0 : index
    %34 = vector.load %arg6[%c1_34, %c0_35, %c0_36] : memref<2x32x32xf32, #tpu.memory_space<vmem>>, vector<1x32x32xf32>
    %35 = vector.shape_cast %34 : vector<1x32x32xf32> to vector<32x32xf32>
    %36 = vector.shape_cast %33 : vector<32x32xf32> to vector<1x32x32xf32>
    tpu.vector_store %arg6[%c1_34, %c0_35, %c0_36], %36 {strides = array<i32>} : memref<2x32x32xf32, #tpu.memory_space<vmem>>, vector<1x32x32xf32>,
    %c1_37 = arith.constant 1 : index
    %c0_38 = arith.constant 0 : index
    %c0_39 = arith.constant 0 : index
    %37 = vector.load %arg4[%c1_37, %c0_38, %c0_39] : memref<4x64x64xf32, #tpu.memory_space<vmem>>, vector<1x32x32xf32>
    %38 = vector.shape_cast %37 : vector<1x32x32xf32> to vector<32x32xf32>
    %c1_40 = arith.constant 1 : index
    %c0_41 = arith.constant 0 : index
    %c0_42 = arith.constant 0 : index
    %39 = vector.load %arg5[%c1_40, %c0_41, %c0_42] : memref<4x32x32xf32, #tpu.memory_space<vmem>>, vector<1x16x16xf32>
    %40 = vector.shape_cast %39 : vector<1x16x16xf32> to vector<16x16xf32>
    %c0_43 = arith.constant 0 : index
    %c0_44 = arith.constant 0 : index
    %c0_45 = arith.constant 0 : index
    %41 = vector.load %arg6[%c0_43, %c0_44, %c0_45] : memref<2x32x32xf32, #tpu.memory_space<vmem>>, vector<1x16x16xf32>
    %42 = vector.shape_cast %41 : vector<1x16x16xf32> to vector<16x16xf32>
    %c1_46 = arith.constant 1 : index
    %c0_47 = arith.constant 0 : index
    %c0_48 = arith.constant 0 : index
    %43 = vector.load %arg6[%c1_46, %c0_47, %c0_48] : memref<2x32x32xf32, #tpu.memory_space<vmem>>, vector<1x16x16xf32>
    %44 = vector.shape_cast %43 : vector<1x16x16xf32> to vector<16x16xf32>
    %45 = tpu.concatenate %42, %44 in 0 : vector<16x16xf32>, vector<16x16xf32> -> vector<32x16xf32>
    %cst_49 = arith.constant dense<0.000000e+00> : vector<32x16xf32>
    %46 = tpu.matmul %38, %45, %cst_49 {dimension_numbers = #tpu.dot_dimension_numbers<[1], [0], [0], [1], [0, 0, 1, 1], [], []>} : vector<32x32xf32>, vector<32x16xf32>, vector<32x16xf32> -> vector<32x16xf32>
    %cst_50 = arith.constant dense<0.000000e+00> : vector<32x16xf32>
    %47 = tpu.matmul %46, %40, %cst_50 {dimension_numbers = #tpu.dot_dimension_numbers<[1], [0], [0], [1], [0, 0, 1, 1], [], []>} : vector<32x16xf32>, vector<16x16xf32>, vector<32x16xf32> -> vector<32x16xf32>
    %48 = vector.extract_strided_slice %47 {offsets = [0, 0], sizes = [16, 16], strides = [1, 1]} : vector<32x16xf32> to vector<16x16xf32>
    %c0_51 = arith.constant 0 : index
    %c0_52 = arith.constant 0 : index
    %c0_53 = arith.constant 0 : index
    %49 = vector.load %arg6[%c0_51, %c0_52, %c0_53] : memref<2x32x32xf32, #tpu.memory_space<vmem>>, vector<1x16x16xf32>
    %50 = vector.shape_cast %49 : vector<1x16x16xf32> to vector<16x16xf32>
    %51 = vector.shape_cast %48 : vector<16x16xf32> to vector<1x16x16xf32>
    tpu.vector_store %arg6[%c0_51, %c0_52, %c0_53], %51 {strides = array<i32>} : memref<2x32x32xf32, #tpu.memory_space<vmem>>, vector<1x16x16xf32>,
    %52 = vector.extract_strided_slice %47 {offsets = [16, 0], sizes = [16, 16], strides = [1, 1]} : vector<32x16xf32> to vector<16x16xf32>
    %c1_54 = arith.constant 1 : index
    %c0_55 = arith.constant 0 : index
    %c0_56 = arith.constant 0 : index
    %53 = vector.load %arg6[%c1_54, %c0_55, %c0_56] : memref<2x32x32xf32, #tpu.memory_space<vmem>>, vector<1x16x16xf32>
    %54 = vector.shape_cast %53 : vector<1x16x16xf32> to vector<16x16xf32>
    %55 = vector.shape_cast %52 : vector<16x16xf32> to vector<1x16x16xf32>
    tpu.vector_store %arg6[%c1_54, %c0_55, %c0_56], %55 {strides = array<i32>} : memref<2x32x32xf32, #tpu.memory_space<vmem>>, vector<1x16x16xf32>,
    %c2 = arith.constant 2 : index
    %c0_57 = arith.constant 0 : index
    %c0_58 = arith.constant 0 : index
    %56 = vector.load %arg4[%c2, %c0_57, %c0_58] : memref<4x64x64xf32, #tpu.memory_space<vmem>>, vector<1x16x16xf32>
    %57 = vector.shape_cast %56 : vector<1x16x16xf32> to vector<16x16xf32>
    %c2_59 = arith.constant 2 : index
    %c0_60 = arith.constant 0 : index
    %c0_61 = arith.constant 0 : index
    %58 = vector.load %arg5[%c2_59, %c0_60, %c0_61] : memref<4x32x32xf32, #tpu.memory_space<vmem>>, vector<1x8x8xf32>
    %59 = vector.shape_cast %58 : vector<1x8x8xf32> to vector<8x8xf32>
    %c0_62 = arith.constant 0 : index
    %c0_63 = arith.constant 0 : index
    %c0_64 = arith.constant 0 : index
    %60 = vector.load %arg6[%c0_62, %c0_63, %c0_64] : memref<2x32x32xf32, #tpu.memory_space<vmem>>, vector<1x8x8xf32>
    %61 = vector.shape_cast %60 : vector<1x8x8xf32> to vector<8x8xf32>
    %c1_65 = arith.constant 1 : index
    %c0_66 = arith.constant 0 : index
    %c0_67 = arith.constant 0 : index
    %62 = vector.load %arg6[%c1_65, %c0_66, %c0_67] : memref<2x32x32xf32, #tpu.memory_space<vmem>>, vector<1x8x8xf32>
    %63 = vector.shape_cast %62 : vector<1x8x8xf32> to vector<8x8xf32>
    %64 = tpu.concatenate %61, %63 in 0 : vector<8x8xf32>, vector<8x8xf32> -> vector<16x8xf32>
    %cst_68 = arith.constant dense<0.000000e+00> : vector<16x8xf32>
    %65 = tpu.matmul %57, %64, %cst_68 {dimension_numbers = #tpu.dot_dimension_numbers<[1], [0], [0], [1], [0, 0, 1, 1], [], []>} : vector<16x16xf32>, vector<16x8xf32>, vector<16x8xf32> -> vector<16x8xf32>
    %cst_69 = arith.constant dense<0.000000e+00> : vector<16x8xf32>
    %66 = tpu.matmul %65, %59, %cst_69 {dimension_numbers = #tpu.dot_dimension_numbers<[1], [0], [0], [1], [0, 0, 1, 1], [], []>} : vector<16x8xf32>, vector<8x8xf32>, vector<16x8xf32> -> vector<16x8xf32>
    %67 = vector.extract_strided_slice %66 {offsets = [0, 0], sizes = [8, 8], strides = [1, 1]} : vector<16x8xf32> to vector<8x8xf32>
    %c0_70 = arith.constant 0 : index
    %c0_71 = arith.constant 0 : index
    %c0_72 = arith.constant 0 : index
    %68 = vector.load %arg6[%c0_70, %c0_71, %c0_72] : memref<2x32x32xf32, #tpu.memory_space<vmem>>, vector<1x8x8xf32>
    %69 = vector.shape_cast %68 : vector<1x8x8xf32> to vector<8x8xf32>
    %70 = vector.shape_cast %67 : vector<8x8xf32> to vector<1x8x8xf32>
    tpu.vector_store %arg6[%c0_70, %c0_71, %c0_72], %70 {strides = array<i32>} : memref<2x32x32xf32, #tpu.memory_space<vmem>>, vector<1x8x8xf32>,
    %71 = vector.extract_strided_slice %66 {offsets = [8, 0], sizes = [8, 8], strides = [1, 1]} : vector<16x8xf32> to vector<8x8xf32>
    %c1_73 = arith.constant 1 : index
    %c0_74 = arith.constant 0 : index
    %c0_75 = arith.constant 0 : index
    %72 = vector.load %arg6[%c1_73, %c0_74, %c0_75] : memref<2x32x32xf32, #tpu.memory_space<vmem>>, vector<1x8x8xf32>
    %73 = vector.shape_cast %72 : vector<1x8x8xf32> to vector<8x8xf32>
    %74 = vector.shape_cast %71 : vector<8x8xf32> to vector<1x8x8xf32>
    tpu.vector_store %arg6[%c1_73, %c0_74, %c0_75], %74 {strides = array<i32>} : memref<2x32x32xf32, #tpu.memory_space<vmem>>, vector<1x8x8xf32>,
    %c3 = arith.constant 3 : index
    %c0_76 = arith.constant 0 : index
    %c0_77 = arith.constant 0 : index
    %75 = vector.load %arg4[%c3, %c0_76, %c0_77] : memref<4x64x64xf32, #tpu.memory_space<vmem>>, vector<1x8x8xf32>
    %76 = vector.shape_cast %75 : vector<1x8x8xf32> to vector<8x8xf32>
    %c3_78 = arith.constant 3 : index
    %c0_79 = arith.constant 0 : index
    %c0_80 = arith.constant 0 : index
    %77 = vector.load %arg5[%c3_78, %c0_79, %c0_80] : memref<4x32x32xf32, #tpu.memory_space<vmem>>, vector<1x4x4xf32>
    %78 = vector.shape_cast %77 : vector<1x4x4xf32> to vector<4x4xf32>
    %c0_81 = arith.constant 0 : index
    %c0_82 = arith.constant 0 : index
    %c0_83 = arith.constant 0 : index
    %79 = vector.load %arg6[%c0_81, %c0_82, %c0_83] : memref<2x32x32xf32, #tpu.memory_space<vmem>>, vector<1x4x4xf32>
    %80 = vector.shape_cast %79 : vector<1x4x4xf32> to vector<4x4xf32>
    %c1_84 = arith.constant 1 : index
    %c0_85 = arith.constant 0 : index
    %c0_86 = arith.constant 0 : index
    %81 = vector.load %arg6[%c1_84, %c0_85, %c0_86] : memref<2x32x32xf32, #tpu.memory_space<vmem>>, vector<1x4x4xf32>
    %82 = vector.shape_cast %81 : vector<1x4x4xf32> to vector<4x4xf32>
    %83 = tpu.concatenate %80, %82 in 0 : vector<4x4xf32>, vector<4x4xf32> -> vector<8x4xf32>
    %cst_87 = arith.constant dense<0.000000e+00> : vector<8x4xf32>
    %84 = tpu.matmul %76, %83, %cst_87 {dimension_numbers = #tpu.dot_dimension_numbers<[1], [0], [0], [1], [0, 0, 1, 1], [], []>} : vector<8x8xf32>, vector<8x4xf32>, vector<8x4xf32> -> vector<8x4xf32>
    %cst_88 = arith.constant dense<0.000000e+00> : vector<8x4xf32>
    %85 = tpu.matmul %84, %78, %cst_88 {dimension_numbers = #tpu.dot_dimension_numbers<[1], [0], [0], [1], [0, 0, 1, 1], [], []>} : vector<8x4xf32>, vector<4x4xf32>, vector<8x4xf32> -> vector<8x4xf32>
    %86 = vector.extract_strided_slice %85 {offsets = [0, 0], sizes = [4, 4], strides = [1, 1]} : vector<8x4xf32> to vector<4x4xf32>
    %c0_89 = arith.constant 0 : index
    %c0_90 = arith.constant 0 : index
    %c0_91 = arith.constant 0 : index
    %87 = vector.load %arg6[%c0_89, %c0_90, %c0_91] : memref<2x32x32xf32, #tpu.memory_space<vmem>>, vector<1x4x4xf32>
    %88 = vector.shape_cast %87 : vector<1x4x4xf32> to vector<4x4xf32>
    %89 = vector.shape_cast %86 : vector<4x4xf32> to vector<1x4x4xf32>
    tpu.vector_store %arg6[%c0_89, %c0_90, %c0_91], %89 {strides = array<i32>} : memref<2x32x32xf32, #tpu.memory_space<vmem>>, vector<1x4x4xf32>,
    %90 = vector.extract_strided_slice %85 {offsets = [4, 0], sizes = [4, 4], strides = [1, 1]} : vector<8x4xf32> to vector<4x4xf32>
    %c1_92 = arith.constant 1 : index
    %c0_93 = arith.constant 0 : index
    %c0_94 = arith.constant 0 : index
    %91 = vector.load %arg6[%c1_92, %c0_93, %c0_94] : memref<2x32x32xf32, #tpu.memory_space<vmem>>, vector<1x4x4xf32>
    %92 = vector.shape_cast %91 : vector<1x4x4xf32> to vector<4x4xf32>
    %93 = vector.shape_cast %90 : vector<4x4xf32> to vector<1x4x4xf32>
    tpu.vector_store %arg6[%c1_92, %c0_93, %c0_94], %93 {strides = array<i32>} : memref<2x32x32xf32, #tpu.memory_space<vmem>>, vector<1x4x4xf32>,
    %c0_95 = arith.constant 0 : index
    %c0_96 = arith.constant 0 : index
    %c0_97 = arith.constant 0 : index
    %94 = vector.load %arg6[%c0_95, %c0_96, %c0_97] : memref<2x32x32xf32, #tpu.memory_space<vmem>>, vector<2x32x32xf32>
    %95 = arith.mulf %94, %94 : vector<2x32x32xf32>
    %96 = vector.shape_cast %95 : vector<2x32x32xf32> to vector<1x2x32x32xf32>
    %cst_98 = arith.constant dense<0.000000e+00> : vector<1xf32>
    %97 = vector.multi_reduction <add>, %96, %cst_98 [1, 2, 3] : vector<1x2x32x32xf32> to vector<1xf32>
    %98 = vector.shape_cast %97 : vector<1xf32> to vector<1x1x1x1xf32>
    %99 = vector.extract %98[0, 0, 0, 0] : f32 from vector<1x1x1x1xf32>
    %c0_99 = arith.constant 0 : index
    %c0_100 = arith.constant 0 : index
    %100 = memref.load %arg7[%c0_99, %c0_100] : memref<1x1xf32, #tpu.memory_space<smem>>
    memref.store %99, %arg7[%c0_99, %c0_100] : memref<1x1xf32, #tpu.memory_space<smem>>
    return
  }
}

module attributes {stable_mosaic.version = 11 : i64} {
  func.func @_ls_reduce_kernel(%arg0: memref<4x32x32xf32, #tpu.memory_space<vmem>>, %arg1: memref<4x32x32xf32, #tpu.memory_space<vmem>>, %arg2: memref<4x32x32xf32, #tpu.memory_space<vmem>>, %arg3: memref<4x32x32xf32, #tpu.memory_space<vmem>>, %arg4: memref<1x32x32xf32, #tpu.memory_space<vmem>>, %arg5: memref<1x2xf32, #tpu.memory_space<smem>>) attributes {dimension_semantics = [], scalar_prefetch = 0 : i64, scratch_operands = 0 : i64, tpu.core_type = #tpu.core_type<tc>} {
    %c0 = arith.constant 0 : index
    %c0_0 = arith.constant 0 : index
    %c0_1 = arith.constant 0 : index
    %0 = vector.load %arg4[%c0, %c0_0, %c0_1] : memref<1x32x32xf32, #tpu.memory_space<vmem>>, vector<1x32x32xf32>
    %c0_2 = arith.constant 0 : index
    %c0_3 = arith.constant 0 : index
    %c0_4 = arith.constant 0 : index
    %1 = vector.load %arg2[%c0_2, %c0_3, %c0_4] : memref<4x32x32xf32, #tpu.memory_space<vmem>>, vector<4x32x32xf32>
    %2 = vector.broadcast %0 : vector<1x32x32xf32> to vector<4x32x32xf32>
    %3 = arith.mulf %2, %1 : vector<4x32x32xf32>
    %c0_5 = arith.constant 0 : index
    %c0_6 = arith.constant 0 : index
    %c0_7 = arith.constant 0 : index
    %4 = vector.load %arg3[%c0_5, %c0_6, %c0_7] : memref<4x32x32xf32, #tpu.memory_space<vmem>>, vector<4x32x32xf32>
    %5 = vector.broadcast %0 : vector<1x32x32xf32> to vector<4x32x32xf32>
    %6 = arith.mulf %5, %4 : vector<4x32x32xf32>
    %c0_8 = arith.constant 0 : index
    %c0_9 = arith.constant 0 : index
    %c0_10 = arith.constant 0 : index
    %7 = vector.load %arg0[%c0_8, %c0_9, %c0_10] : memref<4x32x32xf32, #tpu.memory_space<vmem>>, vector<4x32x32xf32>
    %8 = arith.mulf %7, %3 : vector<4x32x32xf32>
    %c0_11 = arith.constant 0 : index
    %c0_12 = arith.constant 0 : index
    %c0_13 = arith.constant 0 : index
    %9 = vector.load %arg1[%c0_11, %c0_12, %c0_13] : memref<4x32x32xf32, #tpu.memory_space<vmem>>, vector<4x32x32xf32>
    %10 = arith.mulf %9, %6 : vector<4x32x32xf32>
    %11 = arith.addf %8, %10 : vector<4x32x32xf32>
    %12 = vector.shape_cast %11 : vector<4x32x32xf32> to vector<1x4x32x32xf32>
    %cst = arith.constant dense<0.000000e+00> : vector<1xf32>
    %13 = vector.multi_reduction <add>, %12, %cst [1, 2, 3] : vector<1x4x32x32xf32> to vector<1xf32>
    %14 = vector.shape_cast %13 : vector<1xf32> to vector<1x1x1x1xf32>
    %15 = vector.extract %14[0, 0, 0, 0] : f32 from vector<1x1x1x1xf32>
    %c0_14 = arith.constant 0 : index
    %c0_15 = arith.constant 0 : index
    %16 = memref.load %arg5[%c0_14, %c0_15] : memref<1x2xf32, #tpu.memory_space<smem>>
    memref.store %15, %arg5[%c0_14, %c0_15] : memref<1x2xf32, #tpu.memory_space<smem>>
    %17 = arith.mulf %3, %3 : vector<4x32x32xf32>
    %18 = arith.mulf %6, %6 : vector<4x32x32xf32>
    %19 = arith.addf %17, %18 : vector<4x32x32xf32>
    %20 = vector.shape_cast %19 : vector<4x32x32xf32> to vector<1x4x32x32xf32>
    %cst_16 = arith.constant dense<0.000000e+00> : vector<1xf32>
    %21 = vector.multi_reduction <add>, %20, %cst_16 [1, 2, 3] : vector<1x4x32x32xf32> to vector<1xf32>
    %22 = vector.shape_cast %21 : vector<1xf32> to vector<1x1x1x1xf32>
    %23 = vector.extract %22[0, 0, 0, 0] : f32 from vector<1x1x1x1xf32>
    %c0_17 = arith.constant 0 : index
    %c1 = arith.constant 1 : index
    %24 = memref.load %arg5[%c0_17, %c1] : memref<1x2xf32, #tpu.memory_space<smem>>
    memref.store %23, %arg5[%c0_17, %c1] : memref<1x2xf32, #tpu.memory_space<smem>>
    return
  }
}

module attributes {stable_mosaic.version = 11 : i64} {
  func.func @_dc_kernel(%arg0: memref<4x32x32xf32, #tpu.memory_space<vmem>>, %arg1: memref<4x32x32xf32, #tpu.memory_space<vmem>>, %arg2: memref<4x32x32xf32, #tpu.memory_space<vmem>>, %arg3: memref<4x32x32xf32, #tpu.memory_space<vmem>>, %arg4: memref<1x32x32xf32, #tpu.memory_space<vmem>>, %arg5: memref<4x32x32xf32, #tpu.memory_space<vmem>>, %arg6: memref<4x32x32xf32, #tpu.memory_space<vmem>>) attributes {dimension_semantics = [], scalar_prefetch = 0 : i64, scratch_operands = 0 : i64, tpu.core_type = #tpu.core_type<tc>} {
    %c0 = arith.constant 0 : index
    %c0_0 = arith.constant 0 : index
    %c0_1 = arith.constant 0 : index
    %0 = vector.load %arg4[%c0, %c0_0, %c0_1] : memref<1x32x32xf32, #tpu.memory_space<vmem>>, vector<1x32x32xf32>
    %c0_2 = arith.constant 0 : index
    %c0_3 = arith.constant 0 : index
    %c0_4 = arith.constant 0 : index
    %1 = vector.load %arg2[%c0_2, %c0_3, %c0_4] : memref<4x32x32xf32, #tpu.memory_space<vmem>>, vector<4x32x32xf32>
    %2 = vector.broadcast %0 : vector<1x32x32xf32> to vector<4x32x32xf32>
    %3 = arith.mulf %2, %1 : vector<4x32x32xf32>
    %cst = arith.constant 1.000000e+00 : f32
    %4 = vector.broadcast %cst : f32 to vector<1x32x32xf32>
    %5 = arith.subf %4, %0 : vector<1x32x32xf32>
    %c0_5 = arith.constant 0 : index
    %c0_6 = arith.constant 0 : index
    %c0_7 = arith.constant 0 : index
    %6 = vector.load %arg0[%c0_5, %c0_6, %c0_7] : memref<4x32x32xf32, #tpu.memory_space<vmem>>, vector<4x32x32xf32>
    %7 = vector.broadcast %5 : vector<1x32x32xf32> to vector<4x32x32xf32>
    %8 = arith.mulf %7, %6 : vector<4x32x32xf32>
    %9 = arith.addf %3, %8 : vector<4x32x32xf32>
    %c0_8 = arith.constant 0 : index
    %c0_9 = arith.constant 0 : index
    %c0_10 = arith.constant 0 : index
    %10 = vector.load %arg5[%c0_8, %c0_9, %c0_10] : memref<4x32x32xf32, #tpu.memory_space<vmem>>, vector<4x32x32xf32>
    tpu.vector_store %arg5[%c0_8, %c0_9, %c0_10], %9 {strides = array<i32>} : memref<4x32x32xf32, #tpu.memory_space<vmem>>, vector<4x32x32xf32>,
    %c0_11 = arith.constant 0 : index
    %c0_12 = arith.constant 0 : index
    %c0_13 = arith.constant 0 : index
    %11 = vector.load %arg3[%c0_11, %c0_12, %c0_13] : memref<4x32x32xf32, #tpu.memory_space<vmem>>, vector<4x32x32xf32>
    %12 = vector.broadcast %0 : vector<1x32x32xf32> to vector<4x32x32xf32>
    %13 = arith.mulf %12, %11 : vector<4x32x32xf32>
    %cst_14 = arith.constant 1.000000e+00 : f32
    %14 = vector.broadcast %cst_14 : f32 to vector<1x32x32xf32>
    %15 = arith.subf %14, %0 : vector<1x32x32xf32>
    %c0_15 = arith.constant 0 : index
    %c0_16 = arith.constant 0 : index
    %c0_17 = arith.constant 0 : index
    %16 = vector.load %arg1[%c0_15, %c0_16, %c0_17] : memref<4x32x32xf32, #tpu.memory_space<vmem>>, vector<4x32x32xf32>
    %17 = vector.broadcast %15 : vector<1x32x32xf32> to vector<4x32x32xf32>
    %18 = arith.mulf %17, %16 : vector<4x32x32xf32>
    %19 = arith.addf %13, %18 : vector<4x32x32xf32>
    %c0_18 = arith.constant 0 : index
    %c0_19 = arith.constant 0 : index
    %c0_20 = arith.constant 0 : index
    %20 = vector.load %arg6[%c0_18, %c0_19, %c0_20] : memref<4x32x32xf32, #tpu.memory_space<vmem>>, vector<4x32x32xf32>
    tpu.vector_store %arg6[%c0_18, %c0_19, %c0_20], %19 {strides = array<i32>} : memref<4x32x32xf32, #tpu.memory_space<vmem>>, vector<4x32x32xf32>,
    return
  }
}

module attributes {stable_mosaic.version = 11 : i64} {
  func.func @_expand_kernel(%arg0: memref<2x32x32xf32, #tpu.memory_space<vmem>>, %arg1: memref<4x32x32xf32, #tpu.memory_space<vmem>>, %arg2: memref<4x32x32xf32, #tpu.memory_space<vmem>>, %arg3: memref<4x32x32xf32, #tpu.memory_space<vmem>>, %arg4: memref<4x32x32xf32, #tpu.memory_space<vmem>>) attributes {dimension_semantics = [], scalar_prefetch = 0 : i64, scratch_operands = 0 : i64, tpu.core_type = #tpu.core_type<tc>} {
    %c0 = arith.constant 0 : index
    %c0_0 = arith.constant 0 : index
    %c0_1 = arith.constant 0 : index
    %0 = vector.load %arg0[%c0, %c0_0, %c0_1] : memref<2x32x32xf32, #tpu.memory_space<vmem>>, vector<1x32x32xf32>
    %1 = vector.shape_cast %0 : vector<1x32x32xf32> to vector<32x32xf32>
    %c1 = arith.constant 1 : index
    %c0_2 = arith.constant 0 : index
    %c0_3 = arith.constant 0 : index
    %2 = vector.load %arg0[%c1, %c0_2, %c0_3] : memref<2x32x32xf32, #tpu.memory_space<vmem>>, vector<1x32x32xf32>
    %3 = vector.shape_cast %2 : vector<1x32x32xf32> to vector<32x32xf32>
    %c0_4 = arith.constant 0 : index
    %c0_5 = arith.constant 0 : index
    %c0_6 = arith.constant 0 : index
    %4 = vector.load %arg1[%c0_4, %c0_5, %c0_6] : memref<4x32x32xf32, #tpu.memory_space<vmem>>, vector<4x32x32xf32>
    %c0_7 = arith.constant 0 : index
    %c0_8 = arith.constant 0 : index
    %c0_9 = arith.constant 0 : index
    %5 = vector.load %arg2[%c0_7, %c0_8, %c0_9] : memref<4x32x32xf32, #tpu.memory_space<vmem>>, vector<4x32x32xf32>
    %6 = vector.shape_cast %1 : vector<32x32xf32> to vector<1x32x32xf32>
    %7 = vector.broadcast %6 : vector<1x32x32xf32> to vector<4x32x32xf32>
    %8 = arith.mulf %4, %7 : vector<4x32x32xf32>
    %9 = vector.shape_cast %3 : vector<32x32xf32> to vector<1x32x32xf32>
    %10 = vector.broadcast %9 : vector<1x32x32xf32> to vector<4x32x32xf32>
    %11 = arith.mulf %5, %10 : vector<4x32x32xf32>
    %12 = arith.subf %8, %11 : vector<4x32x32xf32>
    %13 = vector.shape_cast %3 : vector<32x32xf32> to vector<1x32x32xf32>
    %14 = vector.broadcast %13 : vector<1x32x32xf32> to vector<4x32x32xf32>
    %15 = arith.mulf %4, %14 : vector<4x32x32xf32>
    %16 = vector.shape_cast %1 : vector<32x32xf32> to vector<1x32x32xf32>
    %17 = vector.broadcast %16 : vector<1x32x32xf32> to vector<4x32x32xf32>
    %18 = arith.mulf %5, %17 : vector<4x32x32xf32>
    %19 = arith.addf %15, %18 : vector<4x32x32xf32>
    %c0_10 = arith.constant 0 : index
    %c0_11 = arith.constant 0 : index
    %c0_12 = arith.constant 0 : index
    %20 = vector.load %arg3[%c0_10, %c0_11, %c0_12] : memref<4x32x32xf32, #tpu.memory_space<vmem>>, vector<4x32x32xf32>
    tpu.vector_store %arg3[%c0_10, %c0_11, %c0_12], %12 {strides = array<i32>} : memref<4x32x32xf32, #tpu.memory_space<vmem>>, vector<4x32x32xf32>,
    %c0_13 = arith.constant 0 : index
    %c0_14 = arith.constant 0 : index
    %c0_15 = arith.constant 0 : index
    %21 = vector.load %arg4[%c0_13, %c0_14, %c0_15] : memref<4x32x32xf32, #tpu.memory_space<vmem>>, vector<4x32x32xf32>
    tpu.vector_store %arg4[%c0_13, %c0_14, %c0_15], %19 {strides = array<i32>} : memref<4x32x32xf32, #tpu.memory_space<vmem>>, vector<4x32x32xf32>,
    return
  }
}

module attributes {stable_mosaic.version = 11 : i64} {
  func.func @_combine_dwtinv_kernel(%arg0: memref<4x32x32xf32, #tpu.memory_space<vmem>>, %arg1: memref<4x32x32xf32, #tpu.memory_space<vmem>>, %arg2: memref<4x32x32xf32, #tpu.memory_space<vmem>>, %arg3: memref<4x32x32xf32, #tpu.memory_space<vmem>>, %arg4: memref<4x64x64xf32, #tpu.memory_space<vmem>>, %arg5: memref<4x32x32xf32, #tpu.memory_space<vmem>>, %arg6: memref<2x32x32xf32, #tpu.memory_space<vmem>>) attributes {dimension_semantics = [], scalar_prefetch = 0 : i64, scratch_operands = 0 : i64, tpu.core_type = #tpu.core_type<tc>} {
    %c0 = arith.constant 0 : index
    %c0_0 = arith.constant 0 : index
    %c0_1 = arith.constant 0 : index
    %0 = vector.load %arg0[%c0, %c0_0, %c0_1] : memref<4x32x32xf32, #tpu.memory_space<vmem>>, vector<4x32x32xf32>
    %c0_2 = arith.constant 0 : index
    %c0_3 = arith.constant 0 : index
    %c0_4 = arith.constant 0 : index
    %1 = vector.load %arg1[%c0_2, %c0_3, %c0_4] : memref<4x32x32xf32, #tpu.memory_space<vmem>>, vector<4x32x32xf32>
    %c0_5 = arith.constant 0 : index
    %c0_6 = arith.constant 0 : index
    %c0_7 = arith.constant 0 : index
    %2 = vector.load %arg2[%c0_5, %c0_6, %c0_7] : memref<4x32x32xf32, #tpu.memory_space<vmem>>, vector<4x32x32xf32>
    %c0_8 = arith.constant 0 : index
    %c0_9 = arith.constant 0 : index
    %c0_10 = arith.constant 0 : index
    %3 = vector.load %arg3[%c0_8, %c0_9, %c0_10] : memref<4x32x32xf32, #tpu.memory_space<vmem>>, vector<4x32x32xf32>
    %4 = arith.mulf %2, %0 : vector<4x32x32xf32>
    %5 = arith.mulf %3, %1 : vector<4x32x32xf32>
    %6 = arith.addf %4, %5 : vector<4x32x32xf32>
    %cst = arith.constant dense<0.000000e+00> : vector<32x32xf32>
    %7 = vector.multi_reduction <add>, %6, %cst [0] : vector<4x32x32xf32> to vector<32x32xf32>
    %8 = arith.mulf %2, %1 : vector<4x32x32xf32>
    %9 = arith.mulf %3, %0 : vector<4x32x32xf32>
    %10 = arith.subf %8, %9 : vector<4x32x32xf32>
    %cst_11 = arith.constant dense<0.000000e+00> : vector<32x32xf32>
    %11 = vector.multi_reduction <add>, %10, %cst_11 [0] : vector<4x32x32xf32> to vector<32x32xf32>
    %c0_12 = arith.constant 0 : index
    %c0_13 = arith.constant 0 : index
    %c0_14 = arith.constant 0 : index
    %12 = vector.load %arg6[%c0_12, %c0_13, %c0_14] : memref<2x32x32xf32, #tpu.memory_space<vmem>>, vector<1x32x32xf32>
    %13 = vector.shape_cast %12 : vector<1x32x32xf32> to vector<32x32xf32>
    %14 = vector.shape_cast %7 : vector<32x32xf32> to vector<1x32x32xf32>
    tpu.vector_store %arg6[%c0_12, %c0_13, %c0_14], %14 {strides = array<i32>} : memref<2x32x32xf32, #tpu.memory_space<vmem>>, vector<1x32x32xf32>,
    %c1 = arith.constant 1 : index
    %c0_15 = arith.constant 0 : index
    %c0_16 = arith.constant 0 : index
    %15 = vector.load %arg6[%c1, %c0_15, %c0_16] : memref<2x32x32xf32, #tpu.memory_space<vmem>>, vector<1x32x32xf32>
    %16 = vector.shape_cast %15 : vector<1x32x32xf32> to vector<32x32xf32>
    %17 = vector.shape_cast %11 : vector<32x32xf32> to vector<1x32x32xf32>
    tpu.vector_store %arg6[%c1, %c0_15, %c0_16], %17 {strides = array<i32>} : memref<2x32x32xf32, #tpu.memory_space<vmem>>, vector<1x32x32xf32>,
    %c3 = arith.constant 3 : index
    %c0_17 = arith.constant 0 : index
    %c0_18 = arith.constant 0 : index
    %18 = vector.load %arg4[%c3, %c0_17, %c0_18] : memref<4x64x64xf32, #tpu.memory_space<vmem>>, vector<1x8x8xf32>
    %19 = vector.shape_cast %18 : vector<1x8x8xf32> to vector<8x8xf32>
    %c3_19 = arith.constant 3 : index
    %c0_20 = arith.constant 0 : index
    %c0_21 = arith.constant 0 : index
    %20 = vector.load %arg5[%c3_19, %c0_20, %c0_21] : memref<4x32x32xf32, #tpu.memory_space<vmem>>, vector<1x4x4xf32>
    %21 = vector.shape_cast %20 : vector<1x4x4xf32> to vector<4x4xf32>
    %c0_22 = arith.constant 0 : index
    %c0_23 = arith.constant 0 : index
    %c0_24 = arith.constant 0 : index
    %22 = vector.load %arg6[%c0_22, %c0_23, %c0_24] : memref<2x32x32xf32, #tpu.memory_space<vmem>>, vector<1x4x4xf32>
    %23 = vector.shape_cast %22 : vector<1x4x4xf32> to vector<4x4xf32>
    %c1_25 = arith.constant 1 : index
    %c0_26 = arith.constant 0 : index
    %c0_27 = arith.constant 0 : index
    %24 = vector.load %arg6[%c1_25, %c0_26, %c0_27] : memref<2x32x32xf32, #tpu.memory_space<vmem>>, vector<1x4x4xf32>
    %25 = vector.shape_cast %24 : vector<1x4x4xf32> to vector<4x4xf32>
    %26 = tpu.concatenate %23, %25 in 0 : vector<4x4xf32>, vector<4x4xf32> -> vector<8x4xf32>
    %cst_28 = arith.constant dense<0.000000e+00> : vector<8x4xf32>
    %27 = tpu.matmul %19, %26, %cst_28 {dimension_numbers = #tpu.dot_dimension_numbers<[1], [0], [0], [1], [0, 0, 1, 1], [], []>} : vector<8x8xf32>, vector<8x4xf32>, vector<8x4xf32> -> vector<8x4xf32>
    %cst_29 = arith.constant dense<0.000000e+00> : vector<8x4xf32>
    %28 = tpu.matmul %27, %21, %cst_29 {dimension_numbers = #tpu.dot_dimension_numbers<[1], [0], [0], [1], [0, 0, 1, 1], [], []>} : vector<8x4xf32>, vector<4x4xf32>, vector<8x4xf32> -> vector<8x4xf32>
    %29 = vector.extract_strided_slice %28 {offsets = [0, 0], sizes = [4, 4], strides = [1, 1]} : vector<8x4xf32> to vector<4x4xf32>
    %c0_30 = arith.constant 0 : index
    %c0_31 = arith.constant 0 : index
    %c0_32 = arith.constant 0 : index
    %30 = vector.load %arg6[%c0_30, %c0_31, %c0_32] : memref<2x32x32xf32, #tpu.memory_space<vmem>>, vector<1x4x4xf32>
    %31 = vector.shape_cast %30 : vector<1x4x4xf32> to vector<4x4xf32>
    %32 = vector.shape_cast %29 : vector<4x4xf32> to vector<1x4x4xf32>
    tpu.vector_store %arg6[%c0_30, %c0_31, %c0_32], %32 {strides = array<i32>} : memref<2x32x32xf32, #tpu.memory_space<vmem>>, vector<1x4x4xf32>,
    %33 = vector.extract_strided_slice %28 {offsets = [4, 0], sizes = [4, 4], strides = [1, 1]} : vector<8x4xf32> to vector<4x4xf32>
    %c1_33 = arith.constant 1 : index
    %c0_34 = arith.constant 0 : index
    %c0_35 = arith.constant 0 : index
    %34 = vector.load %arg6[%c1_33, %c0_34, %c0_35] : memref<2x32x32xf32, #tpu.memory_space<vmem>>, vector<1x4x4xf32>
    %35 = vector.shape_cast %34 : vector<1x4x4xf32> to vector<4x4xf32>
    %36 = vector.shape_cast %33 : vector<4x4xf32> to vector<1x4x4xf32>
    tpu.vector_store %arg6[%c1_33, %c0_34, %c0_35], %36 {strides = array<i32>} : memref<2x32x32xf32, #tpu.memory_space<vmem>>, vector<1x4x4xf32>,
    %c2 = arith.constant 2 : index
    %c0_36 = arith.constant 0 : index
    %c0_37 = arith.constant 0 : index
    %37 = vector.load %arg4[%c2, %c0_36, %c0_37] : memref<4x64x64xf32, #tpu.memory_space<vmem>>, vector<1x16x16xf32>
    %38 = vector.shape_cast %37 : vector<1x16x16xf32> to vector<16x16xf32>
    %c2_38 = arith.constant 2 : index
    %c0_39 = arith.constant 0 : index
    %c0_40 = arith.constant 0 : index
    %39 = vector.load %arg5[%c2_38, %c0_39, %c0_40] : memref<4x32x32xf32, #tpu.memory_space<vmem>>, vector<1x8x8xf32>
    %40 = vector.shape_cast %39 : vector<1x8x8xf32> to vector<8x8xf32>
    %c0_41 = arith.constant 0 : index
    %c0_42 = arith.constant 0 : index
    %c0_43 = arith.constant 0 : index
    %41 = vector.load %arg6[%c0_41, %c0_42, %c0_43] : memref<2x32x32xf32, #tpu.memory_space<vmem>>, vector<1x8x8xf32>
    %42 = vector.shape_cast %41 : vector<1x8x8xf32> to vector<8x8xf32>
    %c1_44 = arith.constant 1 : index
    %c0_45 = arith.constant 0 : index
    %c0_46 = arith.constant 0 : index
    %43 = vector.load %arg6[%c1_44, %c0_45, %c0_46] : memref<2x32x32xf32, #tpu.memory_space<vmem>>, vector<1x8x8xf32>
    %44 = vector.shape_cast %43 : vector<1x8x8xf32> to vector<8x8xf32>
    %45 = tpu.concatenate %42, %44 in 0 : vector<8x8xf32>, vector<8x8xf32> -> vector<16x8xf32>
    %cst_47 = arith.constant dense<0.000000e+00> : vector<16x8xf32>
    %46 = tpu.matmul %38, %45, %cst_47 {dimension_numbers = #tpu.dot_dimension_numbers<[1], [0], [0], [1], [0, 0, 1, 1], [], []>} : vector<16x16xf32>, vector<16x8xf32>, vector<16x8xf32> -> vector<16x8xf32>
    %cst_48 = arith.constant dense<0.000000e+00> : vector<16x8xf32>
    %47 = tpu.matmul %46, %40, %cst_48 {dimension_numbers = #tpu.dot_dimension_numbers<[1], [0], [0], [1], [0, 0, 1, 1], [], []>} : vector<16x8xf32>, vector<8x8xf32>, vector<16x8xf32> -> vector<16x8xf32>
    %48 = vector.extract_strided_slice %47 {offsets = [0, 0], sizes = [8, 8], strides = [1, 1]} : vector<16x8xf32> to vector<8x8xf32>
    %c0_49 = arith.constant 0 : index
    %c0_50 = arith.constant 0 : index
    %c0_51 = arith.constant 0 : index
    %49 = vector.load %arg6[%c0_49, %c0_50, %c0_51] : memref<2x32x32xf32, #tpu.memory_space<vmem>>, vector<1x8x8xf32>
    %50 = vector.shape_cast %49 : vector<1x8x8xf32> to vector<8x8xf32>
    %51 = vector.shape_cast %48 : vector<8x8xf32> to vector<1x8x8xf32>
    tpu.vector_store %arg6[%c0_49, %c0_50, %c0_51], %51 {strides = array<i32>} : memref<2x32x32xf32, #tpu.memory_space<vmem>>, vector<1x8x8xf32>,
    %52 = vector.extract_strided_slice %47 {offsets = [8, 0], sizes = [8, 8], strides = [1, 1]} : vector<16x8xf32> to vector<8x8xf32>
    %c1_52 = arith.constant 1 : index
    %c0_53 = arith.constant 0 : index
    %c0_54 = arith.constant 0 : index
    %53 = vector.load %arg6[%c1_52, %c0_53, %c0_54] : memref<2x32x32xf32, #tpu.memory_space<vmem>>, vector<1x8x8xf32>
    %54 = vector.shape_cast %53 : vector<1x8x8xf32> to vector<8x8xf32>
    %55 = vector.shape_cast %52 : vector<8x8xf32> to vector<1x8x8xf32>
    tpu.vector_store %arg6[%c1_52, %c0_53, %c0_54], %55 {strides = array<i32>} : memref<2x32x32xf32, #tpu.memory_space<vmem>>, vector<1x8x8xf32>,
    %c1_55 = arith.constant 1 : index
    %c0_56 = arith.constant 0 : index
    %c0_57 = arith.constant 0 : index
    %56 = vector.load %arg4[%c1_55, %c0_56, %c0_57] : memref<4x64x64xf32, #tpu.memory_space<vmem>>, vector<1x32x32xf32>
    %57 = vector.shape_cast %56 : vector<1x32x32xf32> to vector<32x32xf32>
    %c1_58 = arith.constant 1 : index
    %c0_59 = arith.constant 0 : index
    %c0_60 = arith.constant 0 : index
    %58 = vector.load %arg5[%c1_58, %c0_59, %c0_60] : memref<4x32x32xf32, #tpu.memory_space<vmem>>, vector<1x16x16xf32>
    %59 = vector.shape_cast %58 : vector<1x16x16xf32> to vector<16x16xf32>
    %c0_61 = arith.constant 0 : index
    %c0_62 = arith.constant 0 : index
    %c0_63 = arith.constant 0 : index
    %60 = vector.load %arg6[%c0_61, %c0_62, %c0_63] : memref<2x32x32xf32, #tpu.memory_space<vmem>>, vector<1x16x16xf32>
    %61 = vector.shape_cast %60 : vector<1x16x16xf32> to vector<16x16xf32>
    %c1_64 = arith.constant 1 : index
    %c0_65 = arith.constant 0 : index
    %c0_66 = arith.constant 0 : index
    %62 = vector.load %arg6[%c1_64, %c0_65, %c0_66] : memref<2x32x32xf32, #tpu.memory_space<vmem>>, vector<1x16x16xf32>
    %63 = vector.shape_cast %62 : vector<1x16x16xf32> to vector<16x16xf32>
    %64 = tpu.concatenate %61, %63 in 0 : vector<16x16xf32>, vector<16x16xf32> -> vector<32x16xf32>
    %cst_67 = arith.constant dense<0.000000e+00> : vector<32x16xf32>
    %65 = tpu.matmul %57, %64, %cst_67 {dimension_numbers = #tpu.dot_dimension_numbers<[1], [0], [0], [1], [0, 0, 1, 1], [], []>} : vector<32x32xf32>, vector<32x16xf32>, vector<32x16xf32> -> vector<32x16xf32>
    %cst_68 = arith.constant dense<0.000000e+00> : vector<32x16xf32>
    %66 = tpu.matmul %65, %59, %cst_68 {dimension_numbers = #tpu.dot_dimension_numbers<[1], [0], [0], [1], [0, 0, 1, 1], [], []>} : vector<32x16xf32>, vector<16x16xf32>, vector<32x16xf32> -> vector<32x16xf32>
    %67 = vector.extract_strided_slice %66 {offsets = [0, 0], sizes = [16, 16], strides = [1, 1]} : vector<32x16xf32> to vector<16x16xf32>
    %c0_69 = arith.constant 0 : index
    %c0_70 = arith.constant 0 : index
    %c0_71 = arith.constant 0 : index
    %68 = vector.load %arg6[%c0_69, %c0_70, %c0_71] : memref<2x32x32xf32, #tpu.memory_space<vmem>>, vector<1x16x16xf32>
    %69 = vector.shape_cast %68 : vector<1x16x16xf32> to vector<16x16xf32>
    %70 = vector.shape_cast %67 : vector<16x16xf32> to vector<1x16x16xf32>
    tpu.vector_store %arg6[%c0_69, %c0_70, %c0_71], %70 {strides = array<i32>} : memref<2x32x32xf32, #tpu.memory_space<vmem>>, vector<1x16x16xf32>,
    %71 = vector.extract_strided_slice %66 {offsets = [16, 0], sizes = [16, 16], strides = [1, 1]} : vector<32x16xf32> to vector<16x16xf32>
    %c1_72 = arith.constant 1 : index
    %c0_73 = arith.constant 0 : index
    %c0_74 = arith.constant 0 : index
    %72 = vector.load %arg6[%c1_72, %c0_73, %c0_74] : memref<2x32x32xf32, #tpu.memory_space<vmem>>, vector<1x16x16xf32>
    %73 = vector.shape_cast %72 : vector<1x16x16xf32> to vector<16x16xf32>
    %74 = vector.shape_cast %71 : vector<16x16xf32> to vector<1x16x16xf32>
    tpu.vector_store %arg6[%c1_72, %c0_73, %c0_74], %74 {strides = array<i32>} : memref<2x32x32xf32, #tpu.memory_space<vmem>>, vector<1x16x16xf32>,
    %c0_75 = arith.constant 0 : index
    %c0_76 = arith.constant 0 : index
    %c0_77 = arith.constant 0 : index
    %75 = vector.load %arg4[%c0_75, %c0_76, %c0_77] : memref<4x64x64xf32, #tpu.memory_space<vmem>>, vector<1x64x64xf32>
    %76 = vector.shape_cast %75 : vector<1x64x64xf32> to vector<64x64xf32>
    %c0_78 = arith.constant 0 : index
    %c0_79 = arith.constant 0 : index
    %c0_80 = arith.constant 0 : index
    %77 = vector.load %arg5[%c0_78, %c0_79, %c0_80] : memref<4x32x32xf32, #tpu.memory_space<vmem>>, vector<1x32x32xf32>
    %78 = vector.shape_cast %77 : vector<1x32x32xf32> to vector<32x32xf32>
    %c0_81 = arith.constant 0 : index
    %c0_82 = arith.constant 0 : index
    %c0_83 = arith.constant 0 : index
    %79 = vector.load %arg6[%c0_81, %c0_82, %c0_83] : memref<2x32x32xf32, #tpu.memory_space<vmem>>, vector<1x32x32xf32>
    %80 = vector.shape_cast %79 : vector<1x32x32xf32> to vector<32x32xf32>
    %c1_84 = arith.constant 1 : index
    %c0_85 = arith.constant 0 : index
    %c0_86 = arith.constant 0 : index
    %81 = vector.load %arg6[%c1_84, %c0_85, %c0_86] : memref<2x32x32xf32, #tpu.memory_space<vmem>>, vector<1x32x32xf32>
    %82 = vector.shape_cast %81 : vector<1x32x32xf32> to vector<32x32xf32>
    %83 = tpu.concatenate %80, %82 in 0 : vector<32x32xf32>, vector<32x32xf32> -> vector<64x32xf32>
    %cst_87 = arith.constant dense<0.000000e+00> : vector<64x32xf32>
    %84 = tpu.matmul %76, %83, %cst_87 {dimension_numbers = #tpu.dot_dimension_numbers<[1], [0], [0], [1], [0, 0, 1, 1], [], []>} : vector<64x64xf32>, vector<64x32xf32>, vector<64x32xf32> -> vector<64x32xf32>
    %cst_88 = arith.constant dense<0.000000e+00> : vector<64x32xf32>
    %85 = tpu.matmul %84, %78, %cst_88 {dimension_numbers = #tpu.dot_dimension_numbers<[1], [0], [0], [1], [0, 0, 1, 1], [], []>} : vector<64x32xf32>, vector<32x32xf32>, vector<64x32xf32> -> vector<64x32xf32>
    %86 = vector.extract_strided_slice %85 {offsets = [0, 0], sizes = [32, 32], strides = [1, 1]} : vector<64x32xf32> to vector<32x32xf32>
    %c0_89 = arith.constant 0 : index
    %c0_90 = arith.constant 0 : index
    %c0_91 = arith.constant 0 : index
    %87 = vector.load %arg6[%c0_89, %c0_90, %c0_91] : memref<2x32x32xf32, #tpu.memory_space<vmem>>, vector<1x32x32xf32>
    %88 = vector.shape_cast %87 : vector<1x32x32xf32> to vector<32x32xf32>
    %89 = vector.shape_cast %86 : vector<32x32xf32> to vector<1x32x32xf32>
    tpu.vector_store %arg6[%c0_89, %c0_90, %c0_91], %89 {strides = array<i32>} : memref<2x32x32xf32, #tpu.memory_space<vmem>>, vector<1x32x32xf32>,
    %90 = vector.extract_strided_slice %85 {offsets = [32, 0], sizes = [32, 32], strides = [1, 1]} : vector<64x32xf32> to vector<32x32xf32>
    %c1_92 = arith.constant 1 : index
    %c0_93 = arith.constant 0 : index
    %c0_94 = arith.constant 0 : index
    %91 = vector.load %arg6[%c1_92, %c0_93, %c0_94] : memref<2x32x32xf32, #tpu.memory_space<vmem>>, vector<1x32x32xf32>
    %92 = vector.shape_cast %91 : vector<1x32x32xf32> to vector<32x32xf32>
    %93 = vector.shape_cast %90 : vector<32x32xf32> to vector<1x32x32xf32>
    tpu.vector_store %arg6[%c1_92, %c0_93, %c0_94], %93 {strides = array<i32>} : memref<2x32x32xf32, #tpu.memory_space<vmem>>, vector<1x32x32xf32>,
    return
  }
}

module attributes {stable_mosaic.version = 11 : i64} {
  func.func @_dwt_kernel(%arg0: memref<2x32x32xf32, #tpu.memory_space<vmem>>, %arg1: memref<4x64x64xf32, #tpu.memory_space<vmem>>, %arg2: memref<4x32x32xf32, #tpu.memory_space<vmem>>, %arg3: memref<2x32x32xf32, #tpu.memory_space<vmem>>) attributes {dimension_semantics = [], scalar_prefetch = 0 : i64, scratch_operands = 0 : i64, tpu.core_type = #tpu.core_type<tc>} {
    %c0 = arith.constant 0 : index
    %c0_0 = arith.constant 0 : index
    %c0_1 = arith.constant 0 : index
    %0 = vector.load %arg0[%c0, %c0_0, %c0_1] : memref<2x32x32xf32, #tpu.memory_space<vmem>>, vector<2x32x32xf32>
    %c0_2 = arith.constant 0 : index
    %c0_3 = arith.constant 0 : index
    %c0_4 = arith.constant 0 : index
    %1 = vector.load %arg3[%c0_2, %c0_3, %c0_4] : memref<2x32x32xf32, #tpu.memory_space<vmem>>, vector<2x32x32xf32>
    tpu.vector_store %arg3[%c0_2, %c0_3, %c0_4], %0 {strides = array<i32>} : memref<2x32x32xf32, #tpu.memory_space<vmem>>, vector<2x32x32xf32>,
    %c0_5 = arith.constant 0 : index
    %c0_6 = arith.constant 0 : index
    %c0_7 = arith.constant 0 : index
    %2 = vector.load %arg1[%c0_5, %c0_6, %c0_7] : memref<4x64x64xf32, #tpu.memory_space<vmem>>, vector<1x64x64xf32>
    %3 = vector.shape_cast %2 : vector<1x64x64xf32> to vector<64x64xf32>
    %c0_8 = arith.constant 0 : index
    %c0_9 = arith.constant 0 : index
    %c0_10 = arith.constant 0 : index
    %4 = vector.load %arg2[%c0_8, %c0_9, %c0_10] : memref<4x32x32xf32, #tpu.memory_space<vmem>>, vector<1x32x32xf32>
    %5 = vector.shape_cast %4 : vector<1x32x32xf32> to vector<32x32xf32>
    %c0_11 = arith.constant 0 : index
    %c0_12 = arith.constant 0 : index
    %c0_13 = arith.constant 0 : index
    %6 = vector.load %arg3[%c0_11, %c0_12, %c0_13] : memref<2x32x32xf32, #tpu.memory_space<vmem>>, vector<1x32x32xf32>
    %7 = vector.shape_cast %6 : vector<1x32x32xf32> to vector<32x32xf32>
    %c1 = arith.constant 1 : index
    %c0_14 = arith.constant 0 : index
    %c0_15 = arith.constant 0 : index
    %8 = vector.load %arg3[%c1, %c0_14, %c0_15] : memref<2x32x32xf32, #tpu.memory_space<vmem>>, vector<1x32x32xf32>
    %9 = vector.shape_cast %8 : vector<1x32x32xf32> to vector<32x32xf32>
    %10 = tpu.concatenate %7, %9 in 0 : vector<32x32xf32>, vector<32x32xf32> -> vector<64x32xf32>
    %cst = arith.constant dense<0.000000e+00> : vector<64x32xf32>
    %11 = tpu.matmul %3, %10, %cst {dimension_numbers = #tpu.dot_dimension_numbers<[1], [0], [0], [1], [0, 0, 1, 1], [], []>} : vector<64x64xf32>, vector<64x32xf32>, vector<64x32xf32> -> vector<64x32xf32>
    %cst_16 = arith.constant dense<0.000000e+00> : vector<64x32xf32>
    %12 = tpu.matmul %11, %5, %cst_16 {dimension_numbers = #tpu.dot_dimension_numbers<[1], [0], [0], [1], [0, 0, 1, 1], [], []>} : vector<64x32xf32>, vector<32x32xf32>, vector<64x32xf32> -> vector<64x32xf32>
    %13 = vector.extract_strided_slice %12 {offsets = [0, 0], sizes = [32, 32], strides = [1, 1]} : vector<64x32xf32> to vector<32x32xf32>
    %c0_17 = arith.constant 0 : index
    %c0_18 = arith.constant 0 : index
    %c0_19 = arith.constant 0 : index
    %14 = vector.load %arg3[%c0_17, %c0_18, %c0_19] : memref<2x32x32xf32, #tpu.memory_space<vmem>>, vector<1x32x32xf32>
    %15 = vector.shape_cast %14 : vector<1x32x32xf32> to vector<32x32xf32>
    %16 = vector.shape_cast %13 : vector<32x32xf32> to vector<1x32x32xf32>
    tpu.vector_store %arg3[%c0_17, %c0_18, %c0_19], %16 {strides = array<i32>} : memref<2x32x32xf32, #tpu.memory_space<vmem>>, vector<1x32x32xf32>,
    %17 = vector.extract_strided_slice %12 {offsets = [32, 0], sizes = [32, 32], strides = [1, 1]} : vector<64x32xf32> to vector<32x32xf32>
    %c1_20 = arith.constant 1 : index
    %c0_21 = arith.constant 0 : index
    %c0_22 = arith.constant 0 : index
    %18 = vector.load %arg3[%c1_20, %c0_21, %c0_22] : memref<2x32x32xf32, #tpu.memory_space<vmem>>, vector<1x32x32xf32>
    %19 = vector.shape_cast %18 : vector<1x32x32xf32> to vector<32x32xf32>
    %20 = vector.shape_cast %17 : vector<32x32xf32> to vector<1x32x32xf32>
    tpu.vector_store %arg3[%c1_20, %c0_21, %c0_22], %20 {strides = array<i32>} : memref<2x32x32xf32, #tpu.memory_space<vmem>>, vector<1x32x32xf32>,
    %c1_23 = arith.constant 1 : index
    %c0_24 = arith.constant 0 : index
    %c0_25 = arith.constant 0 : index
    %21 = vector.load %arg1[%c1_23, %c0_24, %c0_25] : memref<4x64x64xf32, #tpu.memory_space<vmem>>, vector<1x32x32xf32>
    %22 = vector.shape_cast %21 : vector<1x32x32xf32> to vector<32x32xf32>
    %c1_26 = arith.constant 1 : index
    %c0_27 = arith.constant 0 : index
    %c0_28 = arith.constant 0 : index
    %23 = vector.load %arg2[%c1_26, %c0_27, %c0_28] : memref<4x32x32xf32, #tpu.memory_space<vmem>>, vector<1x16x16xf32>
    %24 = vector.shape_cast %23 : vector<1x16x16xf32> to vector<16x16xf32>
    %c0_29 = arith.constant 0 : index
    %c0_30 = arith.constant 0 : index
    %c0_31 = arith.constant 0 : index
    %25 = vector.load %arg3[%c0_29, %c0_30, %c0_31] : memref<2x32x32xf32, #tpu.memory_space<vmem>>, vector<1x16x16xf32>
    %26 = vector.shape_cast %25 : vector<1x16x16xf32> to vector<16x16xf32>
    %c1_32 = arith.constant 1 : index
    %c0_33 = arith.constant 0 : index
    %c0_34 = arith.constant 0 : index
    %27 = vector.load %arg3[%c1_32, %c0_33, %c0_34] : memref<2x32x32xf32, #tpu.memory_space<vmem>>, vector<1x16x16xf32>
    %28 = vector.shape_cast %27 : vector<1x16x16xf32> to vector<16x16xf32>
    %29 = tpu.concatenate %26, %28 in 0 : vector<16x16xf32>, vector<16x16xf32> -> vector<32x16xf32>
    %cst_35 = arith.constant dense<0.000000e+00> : vector<32x16xf32>
    %30 = tpu.matmul %22, %29, %cst_35 {dimension_numbers = #tpu.dot_dimension_numbers<[1], [0], [0], [1], [0, 0, 1, 1], [], []>} : vector<32x32xf32>, vector<32x16xf32>, vector<32x16xf32> -> vector<32x16xf32>
    %cst_36 = arith.constant dense<0.000000e+00> : vector<32x16xf32>
    %31 = tpu.matmul %30, %24, %cst_36 {dimension_numbers = #tpu.dot_dimension_numbers<[1], [0], [0], [1], [0, 0, 1, 1], [], []>} : vector<32x16xf32>, vector<16x16xf32>, vector<32x16xf32> -> vector<32x16xf32>
    %32 = vector.extract_strided_slice %31 {offsets = [0, 0], sizes = [16, 16], strides = [1, 1]} : vector<32x16xf32> to vector<16x16xf32>
    %c0_37 = arith.constant 0 : index
    %c0_38 = arith.constant 0 : index
    %c0_39 = arith.constant 0 : index
    %33 = vector.load %arg3[%c0_37, %c0_38, %c0_39] : memref<2x32x32xf32, #tpu.memory_space<vmem>>, vector<1x16x16xf32>
    %34 = vector.shape_cast %33 : vector<1x16x16xf32> to vector<16x16xf32>
    %35 = vector.shape_cast %32 : vector<16x16xf32> to vector<1x16x16xf32>
    tpu.vector_store %arg3[%c0_37, %c0_38, %c0_39], %35 {strides = array<i32>} : memref<2x32x32xf32, #tpu.memory_space<vmem>>, vector<1x16x16xf32>,
    %36 = vector.extract_strided_slice %31 {offsets = [16, 0], sizes = [16, 16], strides = [1, 1]} : vector<32x16xf32> to vector<16x16xf32>
    %c1_40 = arith.constant 1 : index
    %c0_41 = arith.constant 0 : index
    %c0_42 = arith.constant 0 : index
    %37 = vector.load %arg3[%c1_40, %c0_41, %c0_42] : memref<2x32x32xf32, #tpu.memory_space<vmem>>, vector<1x16x16xf32>
    %38 = vector.shape_cast %37 : vector<1x16x16xf32> to vector<16x16xf32>
    %39 = vector.shape_cast %36 : vector<16x16xf32> to vector<1x16x16xf32>
    tpu.vector_store %arg3[%c1_40, %c0_41, %c0_42], %39 {strides = array<i32>} : memref<2x32x32xf32, #tpu.memory_space<vmem>>, vector<1x16x16xf32>,
    %c2 = arith.constant 2 : index
    %c0_43 = arith.constant 0 : index
    %c0_44 = arith.constant 0 : index
    %40 = vector.load %arg1[%c2, %c0_43, %c0_44] : memref<4x64x64xf32, #tpu.memory_space<vmem>>, vector<1x16x16xf32>
    %41 = vector.shape_cast %40 : vector<1x16x16xf32> to vector<16x16xf32>
    %c2_45 = arith.constant 2 : index
    %c0_46 = arith.constant 0 : index
    %c0_47 = arith.constant 0 : index
    %42 = vector.load %arg2[%c2_45, %c0_46, %c0_47] : memref<4x32x32xf32, #tpu.memory_space<vmem>>, vector<1x8x8xf32>
    %43 = vector.shape_cast %42 : vector<1x8x8xf32> to vector<8x8xf32>
    %c0_48 = arith.constant 0 : index
    %c0_49 = arith.constant 0 : index
    %c0_50 = arith.constant 0 : index
    %44 = vector.load %arg3[%c0_48, %c0_49, %c0_50] : memref<2x32x32xf32, #tpu.memory_space<vmem>>, vector<1x8x8xf32>
    %45 = vector.shape_cast %44 : vector<1x8x8xf32> to vector<8x8xf32>
    %c1_51 = arith.constant 1 : index
    %c0_52 = arith.constant 0 : index
    %c0_53 = arith.constant 0 : index
    %46 = vector.load %arg3[%c1_51, %c0_52, %c0_53] : memref<2x32x32xf32, #tpu.memory_space<vmem>>, vector<1x8x8xf32>
    %47 = vector.shape_cast %46 : vector<1x8x8xf32> to vector<8x8xf32>
    %48 = tpu.concatenate %45, %47 in 0 : vector<8x8xf32>, vector<8x8xf32> -> vector<16x8xf32>
    %cst_54 = arith.constant dense<0.000000e+00> : vector<16x8xf32>
    %49 = tpu.matmul %41, %48, %cst_54 {dimension_numbers = #tpu.dot_dimension_numbers<[1], [0], [0], [1], [0, 0, 1, 1], [], []>} : vector<16x16xf32>, vector<16x8xf32>, vector<16x8xf32> -> vector<16x8xf32>
    %cst_55 = arith.constant dense<0.000000e+00> : vector<16x8xf32>
    %50 = tpu.matmul %49, %43, %cst_55 {dimension_numbers = #tpu.dot_dimension_numbers<[1], [0], [0], [1], [0, 0, 1, 1], [], []>} : vector<16x8xf32>, vector<8x8xf32>, vector<16x8xf32> -> vector<16x8xf32>
    %51 = vector.extract_strided_slice %50 {offsets = [0, 0], sizes = [8, 8], strides = [1, 1]} : vector<16x8xf32> to vector<8x8xf32>
    %c0_56 = arith.constant 0 : index
    %c0_57 = arith.constant 0 : index
    %c0_58 = arith.constant 0 : index
    %52 = vector.load %arg3[%c0_56, %c0_57, %c0_58] : memref<2x32x32xf32, #tpu.memory_space<vmem>>, vector<1x8x8xf32>
    %53 = vector.shape_cast %52 : vector<1x8x8xf32> to vector<8x8xf32>
    %54 = vector.shape_cast %51 : vector<8x8xf32> to vector<1x8x8xf32>
    tpu.vector_store %arg3[%c0_56, %c0_57, %c0_58], %54 {strides = array<i32>} : memref<2x32x32xf32, #tpu.memory_space<vmem>>, vector<1x8x8xf32>,
    %55 = vector.extract_strided_slice %50 {offsets = [8, 0], sizes = [8, 8], strides = [1, 1]} : vector<16x8xf32> to vector<8x8xf32>
    %c1_59 = arith.constant 1 : index
    %c0_60 = arith.constant 0 : index
    %c0_61 = arith.constant 0 : index
    %56 = vector.load %arg3[%c1_59, %c0_60, %c0_61] : memref<2x32x32xf32, #tpu.memory_space<vmem>>, vector<1x8x8xf32>
    %57 = vector.shape_cast %56 : vector<1x8x8xf32> to vector<8x8xf32>
    %58 = vector.shape_cast %55 : vector<8x8xf32> to vector<1x8x8xf32>
    tpu.vector_store %arg3[%c1_59, %c0_60, %c0_61], %58 {strides = array<i32>} : memref<2x32x32xf32, #tpu.memory_space<vmem>>, vector<1x8x8xf32>,
    %c3 = arith.constant 3 : index
    %c0_62 = arith.constant 0 : index
    %c0_63 = arith.constant 0 : index
    %59 = vector.load %arg1[%c3, %c0_62, %c0_63] : memref<4x64x64xf32, #tpu.memory_space<vmem>>, vector<1x8x8xf32>
    %60 = vector.shape_cast %59 : vector<1x8x8xf32> to vector<8x8xf32>
    %c3_64 = arith.constant 3 : index
    %c0_65 = arith.constant 0 : index
    %c0_66 = arith.constant 0 : index
    %61 = vector.load %arg2[%c3_64, %c0_65, %c0_66] : memref<4x32x32xf32, #tpu.memory_space<vmem>>, vector<1x4x4xf32>
    %62 = vector.shape_cast %61 : vector<1x4x4xf32> to vector<4x4xf32>
    %c0_67 = arith.constant 0 : index
    %c0_68 = arith.constant 0 : index
    %c0_69 = arith.constant 0 : index
    %63 = vector.load %arg3[%c0_67, %c0_68, %c0_69] : memref<2x32x32xf32, #tpu.memory_space<vmem>>, vector<1x4x4xf32>
    %64 = vector.shape_cast %63 : vector<1x4x4xf32> to vector<4x4xf32>
    %c1_70 = arith.constant 1 : index
    %c0_71 = arith.constant 0 : index
    %c0_72 = arith.constant 0 : index
    %65 = vector.load %arg3[%c1_70, %c0_71, %c0_72] : memref<2x32x32xf32, #tpu.memory_space<vmem>>, vector<1x4x4xf32>
    %66 = vector.shape_cast %65 : vector<1x4x4xf32> to vector<4x4xf32>
    %67 = tpu.concatenate %64, %66 in 0 : vector<4x4xf32>, vector<4x4xf32> -> vector<8x4xf32>
    %cst_73 = arith.constant dense<0.000000e+00> : vector<8x4xf32>
    %68 = tpu.matmul %60, %67, %cst_73 {dimension_numbers = #tpu.dot_dimension_numbers<[1], [0], [0], [1], [0, 0, 1, 1], [], []>} : vector<8x8xf32>, vector<8x4xf32>, vector<8x4xf32> -> vector<8x4xf32>
    %cst_74 = arith.constant dense<0.000000e+00> : vector<8x4xf32>
    %69 = tpu.matmul %68, %62, %cst_74 {dimension_numbers = #tpu.dot_dimension_numbers<[1], [0], [0], [1], [0, 0, 1, 1], [], []>} : vector<8x4xf32>, vector<4x4xf32>, vector<8x4xf32> -> vector<8x4xf32>
    %70 = vector.extract_strided_slice %69 {offsets = [0, 0], sizes = [4, 4], strides = [1, 1]} : vector<8x4xf32> to vector<4x4xf32>
    %c0_75 = arith.constant 0 : index
    %c0_76 = arith.constant 0 : index
    %c0_77 = arith.constant 0 : index
    %71 = vector.load %arg3[%c0_75, %c0_76, %c0_77] : memref<2x32x32xf32, #tpu.memory_space<vmem>>, vector<1x4x4xf32>
    %72 = vector.shape_cast %71 : vector<1x4x4xf32> to vector<4x4xf32>
    %73 = vector.shape_cast %70 : vector<4x4xf32> to vector<1x4x4xf32>
    tpu.vector_store %arg3[%c0_75, %c0_76, %c0_77], %73 {strides = array<i32>} : memref<2x32x32xf32, #tpu.memory_space<vmem>>, vector<1x4x4xf32>,
    %74 = vector.extract_strided_slice %69 {offsets = [4, 0], sizes = [4, 4], strides = [1, 1]} : vector<8x4xf32> to vector<4x4xf32>
    %c1_78 = arith.constant 1 : index
    %c0_79 = arith.constant 0 : index
    %c0_80 = arith.constant 0 : index
    %75 = vector.load %arg3[%c1_78, %c0_79, %c0_80] : memref<2x32x32xf32, #tpu.memory_space<vmem>>, vector<1x4x4xf32>
    %76 = vector.shape_cast %75 : vector<1x4x4xf32> to vector<4x4xf32>
    %77 = vector.shape_cast %74 : vector<4x4xf32> to vector<1x4x4xf32>
    tpu.vector_store %arg3[%c1_78, %c0_79, %c0_80], %77 {strides = array<i32>} : memref<2x32x32xf32, #tpu.memory_space<vmem>>, vector<1x4x4xf32>,
    return
  }
}

module attributes {stable_mosaic.version = 11 : i64} {
  func.func @_combine_kernel(%arg0: memref<4x32x32xf32, #tpu.memory_space<vmem>>, %arg1: memref<4x32x32xf32, #tpu.memory_space<vmem>>, %arg2: memref<4x32x32xf32, #tpu.memory_space<vmem>>, %arg3: memref<4x32x32xf32, #tpu.memory_space<vmem>>, %arg4: memref<2x32x32xf32, #tpu.memory_space<vmem>>) attributes {dimension_semantics = [], scalar_prefetch = 0 : i64, scratch_operands = 0 : i64, tpu.core_type = #tpu.core_type<tc>} {
    %c0 = arith.constant 0 : index
    %c0_0 = arith.constant 0 : index
    %c0_1 = arith.constant 0 : index
    %0 = vector.load %arg0[%c0, %c0_0, %c0_1] : memref<4x32x32xf32, #tpu.memory_space<vmem>>, vector<4x32x32xf32>
    %c0_2 = arith.constant 0 : index
    %c0_3 = arith.constant 0 : index
    %c0_4 = arith.constant 0 : index
    %1 = vector.load %arg1[%c0_2, %c0_3, %c0_4] : memref<4x32x32xf32, #tpu.memory_space<vmem>>, vector<4x32x32xf32>
    %c0_5 = arith.constant 0 : index
    %c0_6 = arith.constant 0 : index
    %c0_7 = arith.constant 0 : index
    %2 = vector.load %arg2[%c0_5, %c0_6, %c0_7] : memref<4x32x32xf32, #tpu.memory_space<vmem>>, vector<4x32x32xf32>
    %c0_8 = arith.constant 0 : index
    %c0_9 = arith.constant 0 : index
    %c0_10 = arith.constant 0 : index
    %3 = vector.load %arg3[%c0_8, %c0_9, %c0_10] : memref<4x32x32xf32, #tpu.memory_space<vmem>>, vector<4x32x32xf32>
    %4 = arith.mulf %2, %0 : vector<4x32x32xf32>
    %5 = arith.mulf %3, %1 : vector<4x32x32xf32>
    %6 = arith.addf %4, %5 : vector<4x32x32xf32>
    %cst = arith.constant dense<0.000000e+00> : vector<32x32xf32>
    %7 = vector.multi_reduction <add>, %6, %cst [0] : vector<4x32x32xf32> to vector<32x32xf32>
    %8 = arith.mulf %2, %1 : vector<4x32x32xf32>
    %9 = arith.mulf %3, %0 : vector<4x32x32xf32>
    %10 = arith.subf %8, %9 : vector<4x32x32xf32>
    %cst_11 = arith.constant dense<0.000000e+00> : vector<32x32xf32>
    %11 = vector.multi_reduction <add>, %10, %cst_11 [0] : vector<4x32x32xf32> to vector<32x32xf32>
    %c0_12 = arith.constant 0 : index
    %c0_13 = arith.constant 0 : index
    %c0_14 = arith.constant 0 : index
    %12 = vector.load %arg4[%c0_12, %c0_13, %c0_14] : memref<2x32x32xf32, #tpu.memory_space<vmem>>, vector<1x32x32xf32>
    %13 = vector.shape_cast %12 : vector<1x32x32xf32> to vector<32x32xf32>
    %14 = vector.shape_cast %7 : vector<32x32xf32> to vector<1x32x32xf32>
    tpu.vector_store %arg4[%c0_12, %c0_13, %c0_14], %14 {strides = array<i32>} : memref<2x32x32xf32, #tpu.memory_space<vmem>>, vector<1x32x32xf32>,
    %c1 = arith.constant 1 : index
    %c0_15 = arith.constant 0 : index
    %c0_16 = arith.constant 0 : index
    %15 = vector.load %arg4[%c1, %c0_15, %c0_16] : memref<2x32x32xf32, #tpu.memory_space<vmem>>, vector<1x32x32xf32>
    %16 = vector.shape_cast %15 : vector<1x32x32xf32> to vector<32x32xf32>
    %17 = vector.shape_cast %11 : vector<32x32xf32> to vector<1x32x32xf32>
    tpu.vector_store %arg4[%c1, %c0_15, %c0_16], %17 {strides = array<i32>} : memref<2x32x32xf32, #tpu.memory_space<vmem>>, vector<1x32x32xf32>,
    return
  }
}

module attributes {stable_mosaic.version = 11 : i64} {
  func.func @_unet_kernel(%arg0: memref<2x1024xf32, #tpu.memory_space<vmem>>, %arg1: memref<9x1024xf32, #tpu.memory_space<vmem>>, %arg2: memref<9x8x2xf32, #tpu.memory_space<vmem>>, %arg3: memref<8x1xf32, #tpu.memory_space<vmem>>, %arg4: memref<9x8x8xf32, #tpu.memory_space<vmem>>, %arg5: memref<8x1xf32, #tpu.memory_space<vmem>>, %arg6: memref<9x2x8xf32, #tpu.memory_space<vmem>>, %arg7: memref<2x1xf32, #tpu.memory_space<vmem>>, %arg8: memref<2x1024xf32, #tpu.memory_space<vmem>>) attributes {dimension_semantics = [], scalar_prefetch = 0 : i64, scratch_operands = 0 : i64, tpu.core_type = #tpu.core_type<tc>} {
    %c0 = arith.constant 0 : index
    %c0_0 = arith.constant 0 : index
    %0 = vector.load %arg0[%c0, %c0_0] : memref<2x1024xf32, #tpu.memory_space<vmem>>, vector<2x1024xf32>
    %c33_i32 = arith.constant 33 : i32
    %1 = tpu.dynamic_rotate %0 by %c33_i32 dim 1 : vector<2x1024xf32>, i32 -> vector<2x1024xf32>
    %c0_1 = arith.constant 0 : index
    %c0_2 = arith.constant 0 : index
    %2 = vector.load %arg1[%c0_1, %c0_2] : memref<9x1024xf32, #tpu.memory_space<vmem>>, vector<1x1024xf32>
    %3 = vector.broadcast %2 : vector<1x1024xf32> to vector<2x1024xf32>
    %4 = arith.mulf %1, %3 : vector<2x1024xf32>
    %c0_3 = arith.constant 0 : index
    %c0_4 = arith.constant 0 : index
    %c0_5 = arith.constant 0 : index
    %5 = vector.load %arg2[%c0_3, %c0_4, %c0_5] : memref<9x8x2xf32, #tpu.memory_space<vmem>>, vector<1x8x2xf32>
    %6 = vector.shape_cast %5 : vector<1x8x2xf32> to vector<8x2xf32>
    %cst = arith.constant dense<0.000000e+00> : vector<8x1024xf32>
    %7 = tpu.matmul %6, %4, %cst {dimension_numbers = #tpu.dot_dimension_numbers<[1], [0], [0], [1], [0, 0, 1, 1], [], []>} : vector<8x2xf32>, vector<2x1024xf32>, vector<8x1024xf32> -> vector<8x1024xf32>
    %c32_i32 = arith.constant 32 : i32
    %8 = tpu.dynamic_rotate %0 by %c32_i32 dim 1 : vector<2x1024xf32>, i32 -> vector<2x1024xf32>
    %c1 = arith.constant 1 : index
    %c0_6 = arith.constant 0 : index
    %9 = vector.load %arg1[%c1, %c0_6] : memref<9x1024xf32, #tpu.memory_space<vmem>>, vector<1x1024xf32>
    %10 = vector.broadcast %9 : vector<1x1024xf32> to vector<2x1024xf32>
    %11 = arith.mulf %8, %10 : vector<2x1024xf32>
    %c1_7 = arith.constant 1 : index
    %c0_8 = arith.constant 0 : index
    %c0_9 = arith.constant 0 : index
    %12 = vector.load %arg2[%c1_7, %c0_8, %c0_9] : memref<9x8x2xf32, #tpu.memory_space<vmem>>, vector<1x8x2xf32>
    %13 = vector.shape_cast %12 : vector<1x8x2xf32> to vector<8x2xf32>
    %cst_10 = arith.constant dense<0.000000e+00> : vector<8x1024xf32>
    %14 = tpu.matmul %13, %11, %cst_10 {dimension_numbers = #tpu.dot_dimension_numbers<[1], [0], [0], [1], [0, 0, 1, 1], [], []>} : vector<8x2xf32>, vector<2x1024xf32>, vector<8x1024xf32> -> vector<8x1024xf32>
    %15 = arith.addf %7, %14 : vector<8x1024xf32>
    %c31_i32 = arith.constant 31 : i32
    %16 = tpu.dynamic_rotate %0 by %c31_i32 dim 1 : vector<2x1024xf32>, i32 -> vector<2x1024xf32>
    %c2 = arith.constant 2 : index
    %c0_11 = arith.constant 0 : index
    %17 = vector.load %arg1[%c2, %c0_11] : memref<9x1024xf32, #tpu.memory_space<vmem>>, vector<1x1024xf32>
    %18 = vector.broadcast %17 : vector<1x1024xf32> to vector<2x1024xf32>
    %19 = arith.mulf %16, %18 : vector<2x1024xf32>
    %c2_12 = arith.constant 2 : index
    %c0_13 = arith.constant 0 : index
    %c0_14 = arith.constant 0 : index
    %20 = vector.load %arg2[%c2_12, %c0_13, %c0_14] : memref<9x8x2xf32, #tpu.memory_space<vmem>>, vector<1x8x2xf32>
    %21 = vector.shape_cast %20 : vector<1x8x2xf32> to vector<8x2xf32>
    %cst_15 = arith.constant dense<0.000000e+00> : vector<8x1024xf32>
    %22 = tpu.matmul %21, %19, %cst_15 {dimension_numbers = #tpu.dot_dimension_numbers<[1], [0], [0], [1], [0, 0, 1, 1], [], []>} : vector<8x2xf32>, vector<2x1024xf32>, vector<8x1024xf32> -> vector<8x1024xf32>
    %23 = arith.addf %15, %22 : vector<8x1024xf32>
    %c1_i32 = arith.constant 1 : i32
    %24 = tpu.dynamic_rotate %0 by %c1_i32 dim 1 : vector<2x1024xf32>, i32 -> vector<2x1024xf32>
    %c3 = arith.constant 3 : index
    %c0_16 = arith.constant 0 : index
    %25 = vector.load %arg1[%c3, %c0_16] : memref<9x1024xf32, #tpu.memory_space<vmem>>, vector<1x1024xf32>
    %26 = vector.broadcast %25 : vector<1x1024xf32> to vector<2x1024xf32>
    %27 = arith.mulf %24, %26 : vector<2x1024xf32>
    %c3_17 = arith.constant 3 : index
    %c0_18 = arith.constant 0 : index
    %c0_19 = arith.constant 0 : index
    %28 = vector.load %arg2[%c3_17, %c0_18, %c0_19] : memref<9x8x2xf32, #tpu.memory_space<vmem>>, vector<1x8x2xf32>
    %29 = vector.shape_cast %28 : vector<1x8x2xf32> to vector<8x2xf32>
    %cst_20 = arith.constant dense<0.000000e+00> : vector<8x1024xf32>
    %30 = tpu.matmul %29, %27, %cst_20 {dimension_numbers = #tpu.dot_dimension_numbers<[1], [0], [0], [1], [0, 0, 1, 1], [], []>} : vector<8x2xf32>, vector<2x1024xf32>, vector<8x1024xf32> -> vector<8x1024xf32>
    %31 = arith.addf %23, %30 : vector<8x1024xf32>
    %c4 = arith.constant 4 : index
    %c0_21 = arith.constant 0 : index
    %32 = vector.load %arg1[%c4, %c0_21] : memref<9x1024xf32, #tpu.memory_space<vmem>>, vector<1x1024xf32>
    %33 = vector.broadcast %32 : vector<1x1024xf32> to vector<2x1024xf32>
    %34 = arith.mulf %0, %33 : vector<2x1024xf32>
    %c4_22 = arith.constant 4 : index
    %c0_23 = arith.constant 0 : index
    %c0_24 = arith.constant 0 : index
    %35 = vector.load %arg2[%c4_22, %c0_23, %c0_24] : memref<9x8x2xf32, #tpu.memory_space<vmem>>, vector<1x8x2xf32>
    %36 = vector.shape_cast %35 : vector<1x8x2xf32> to vector<8x2xf32>
    %cst_25 = arith.constant dense<0.000000e+00> : vector<8x1024xf32>
    %37 = tpu.matmul %36, %34, %cst_25 {dimension_numbers = #tpu.dot_dimension_numbers<[1], [0], [0], [1], [0, 0, 1, 1], [], []>} : vector<8x2xf32>, vector<2x1024xf32>, vector<8x1024xf32> -> vector<8x1024xf32>
    %38 = arith.addf %31, %37 : vector<8x1024xf32>
    %c1023_i32 = arith.constant 1023 : i32
    %39 = tpu.dynamic_rotate %0 by %c1023_i32 dim 1 : vector<2x1024xf32>, i32 -> vector<2x1024xf32>
    %c5 = arith.constant 5 : index
    %c0_26 = arith.constant 0 : index
    %40 = vector.load %arg1[%c5, %c0_26] : memref<9x1024xf32, #tpu.memory_space<vmem>>, vector<1x1024xf32>
    %41 = vector.broadcast %40 : vector<1x1024xf32> to vector<2x1024xf32>
    %42 = arith.mulf %39, %41 : vector<2x1024xf32>
    %c5_27 = arith.constant 5 : index
    %c0_28 = arith.constant 0 : index
    %c0_29 = arith.constant 0 : index
    %43 = vector.load %arg2[%c5_27, %c0_28, %c0_29] : memref<9x8x2xf32, #tpu.memory_space<vmem>>, vector<1x8x2xf32>
    %44 = vector.shape_cast %43 : vector<1x8x2xf32> to vector<8x2xf32>
    %cst_30 = arith.constant dense<0.000000e+00> : vector<8x1024xf32>
    %45 = tpu.matmul %44, %42, %cst_30 {dimension_numbers = #tpu.dot_dimension_numbers<[1], [0], [0], [1], [0, 0, 1, 1], [], []>} : vector<8x2xf32>, vector<2x1024xf32>, vector<8x1024xf32> -> vector<8x1024xf32>
    %46 = arith.addf %38, %45 : vector<8x1024xf32>
    %c993_i32 = arith.constant 993 : i32
    %47 = tpu.dynamic_rotate %0 by %c993_i32 dim 1 : vector<2x1024xf32>, i32 -> vector<2x1024xf32>
    %c6 = arith.constant 6 : index
    %c0_31 = arith.constant 0 : index
    %48 = vector.load %arg1[%c6, %c0_31] : memref<9x1024xf32, #tpu.memory_space<vmem>>, vector<1x1024xf32>
    %49 = vector.broadcast %48 : vector<1x1024xf32> to vector<2x1024xf32>
    %50 = arith.mulf %47, %49 : vector<2x1024xf32>
    %c6_32 = arith.constant 6 : index
    %c0_33 = arith.constant 0 : index
    %c0_34 = arith.constant 0 : index
    %51 = vector.load %arg2[%c6_32, %c0_33, %c0_34] : memref<9x8x2xf32, #tpu.memory_space<vmem>>, vector<1x8x2xf32>
    %52 = vector.shape_cast %51 : vector<1x8x2xf32> to vector<8x2xf32>
    %cst_35 = arith.constant dense<0.000000e+00> : vector<8x1024xf32>
    %53 = tpu.matmul %52, %50, %cst_35 {dimension_numbers = #tpu.dot_dimension_numbers<[1], [0], [0], [1], [0, 0, 1, 1], [], []>} : vector<8x2xf32>, vector<2x1024xf32>, vector<8x1024xf32> -> vector<8x1024xf32>
    %54 = arith.addf %46, %53 : vector<8x1024xf32>
    %c992_i32 = arith.constant 992 : i32
    %55 = tpu.dynamic_rotate %0 by %c992_i32 dim 1 : vector<2x1024xf32>, i32 -> vector<2x1024xf32>
    %c7 = arith.constant 7 : index
    %c0_36 = arith.constant 0 : index
    %56 = vector.load %arg1[%c7, %c0_36] : memref<9x1024xf32, #tpu.memory_space<vmem>>, vector<1x1024xf32>
    %57 = vector.broadcast %56 : vector<1x1024xf32> to vector<2x1024xf32>
    %58 = arith.mulf %55, %57 : vector<2x1024xf32>
    %c7_37 = arith.constant 7 : index
    %c0_38 = arith.constant 0 : index
    %c0_39 = arith.constant 0 : index
    %59 = vector.load %arg2[%c7_37, %c0_38, %c0_39] : memref<9x8x2xf32, #tpu.memory_space<vmem>>, vector<1x8x2xf32>
    %60 = vector.shape_cast %59 : vector<1x8x2xf32> to vector<8x2xf32>
    %cst_40 = arith.constant dense<0.000000e+00> : vector<8x1024xf32>
    %61 = tpu.matmul %60, %58, %cst_40 {dimension_numbers = #tpu.dot_dimension_numbers<[1], [0], [0], [1], [0, 0, 1, 1], [], []>} : vector<8x2xf32>, vector<2x1024xf32>, vector<8x1024xf32> -> vector<8x1024xf32>
    %62 = arith.addf %54, %61 : vector<8x1024xf32>
    %c991_i32 = arith.constant 991 : i32
    %63 = tpu.dynamic_rotate %0 by %c991_i32 dim 1 : vector<2x1024xf32>, i32 -> vector<2x1024xf32>
    %c8 = arith.constant 8 : index
    %c0_41 = arith.constant 0 : index
    %64 = vector.load %arg1[%c8, %c0_41] : memref<9x1024xf32, #tpu.memory_space<vmem>>, vector<1x1024xf32>
    %65 = vector.broadcast %64 : vector<1x1024xf32> to vector<2x1024xf32>
    %66 = arith.mulf %63, %65 : vector<2x1024xf32>
    %c8_42 = arith.constant 8 : index
    %c0_43 = arith.constant 0 : index
    %c0_44 = arith.constant 0 : index
    %67 = vector.load %arg2[%c8_42, %c0_43, %c0_44] : memref<9x8x2xf32, #tpu.memory_space<vmem>>, vector<1x8x2xf32>
    %68 = vector.shape_cast %67 : vector<1x8x2xf32> to vector<8x2xf32>
    %cst_45 = arith.constant dense<0.000000e+00> : vector<8x1024xf32>
    %69 = tpu.matmul %68, %66, %cst_45 {dimension_numbers = #tpu.dot_dimension_numbers<[1], [0], [0], [1], [0, 0, 1, 1], [], []>} : vector<8x2xf32>, vector<2x1024xf32>, vector<8x1024xf32> -> vector<8x1024xf32>
    %70 = arith.addf %62, %69 : vector<8x1024xf32>
    %c0_46 = arith.constant 0 : index
    %c0_47 = arith.constant 0 : index
    %71 = vector.load %arg3[%c0_46, %c0_47] : memref<8x1xf32, #tpu.memory_space<vmem>>, vector<8x1xf32>
    %72 = vector.broadcast %71 : vector<8x1xf32> to vector<8x1024xf32>
    %73 = arith.addf %70, %72 : vector<8x1024xf32>
    %cst_48 = arith.constant 0.000000e+00 : f32
    %74 = vector.broadcast %cst_48 : f32 to vector<8x1024xf32>
    %75 = arith.maximumf %73, %74 : vector<8x1024xf32>
    %c33_i32_49 = arith.constant 33 : i32
    %76 = tpu.dynamic_rotate %75 by %c33_i32_49 dim 1 : vector<8x1024xf32>, i32 -> vector<8x1024xf32>
    %c0_50 = arith.constant 0 : index
    %c0_51 = arith.constant 0 : index
    %77 = vector.load %arg1[%c0_50, %c0_51] : memref<9x1024xf32, #tpu.memory_space<vmem>>, vector<1x1024xf32>
    %78 = vector.broadcast %77 : vector<1x1024xf32> to vector<8x1024xf32>
    %79 = arith.mulf %76, %78 : vector<8x1024xf32>
    %c0_52 = arith.constant 0 : index
    %c0_53 = arith.constant 0 : index
    %c0_54 = arith.constant 0 : index
    %80 = vector.load %arg4[%c0_52, %c0_53, %c0_54] : memref<9x8x8xf32, #tpu.memory_space<vmem>>, vector<1x8x8xf32>
    %81 = vector.shape_cast %80 : vector<1x8x8xf32> to vector<8x8xf32>
    %cst_55 = arith.constant dense<0.000000e+00> : vector<8x1024xf32>
    %82 = tpu.matmul %81, %79, %cst_55 {dimension_numbers = #tpu.dot_dimension_numbers<[1], [0], [0], [1], [0, 0, 1, 1], [], []>} : vector<8x8xf32>, vector<8x1024xf32>, vector<8x1024xf32> -> vector<8x1024xf32>
    %c32_i32_56 = arith.constant 32 : i32
    %83 = tpu.dynamic_rotate %75 by %c32_i32_56 dim 1 : vector<8x1024xf32>, i32 -> vector<8x1024xf32>
    %c1_57 = arith.constant 1 : index
    %c0_58 = arith.constant 0 : index
    %84 = vector.load %arg1[%c1_57, %c0_58] : memref<9x1024xf32, #tpu.memory_space<vmem>>, vector<1x1024xf32>
    %85 = vector.broadcast %84 : vector<1x1024xf32> to vector<8x1024xf32>
    %86 = arith.mulf %83, %85 : vector<8x1024xf32>
    %c1_59 = arith.constant 1 : index
    %c0_60 = arith.constant 0 : index
    %c0_61 = arith.constant 0 : index
    %87 = vector.load %arg4[%c1_59, %c0_60, %c0_61] : memref<9x8x8xf32, #tpu.memory_space<vmem>>, vector<1x8x8xf32>
    %88 = vector.shape_cast %87 : vector<1x8x8xf32> to vector<8x8xf32>
    %cst_62 = arith.constant dense<0.000000e+00> : vector<8x1024xf32>
    %89 = tpu.matmul %88, %86, %cst_62 {dimension_numbers = #tpu.dot_dimension_numbers<[1], [0], [0], [1], [0, 0, 1, 1], [], []>} : vector<8x8xf32>, vector<8x1024xf32>, vector<8x1024xf32> -> vector<8x1024xf32>
    %90 = arith.addf %82, %89 : vector<8x1024xf32>
    %c31_i32_63 = arith.constant 31 : i32
    %91 = tpu.dynamic_rotate %75 by %c31_i32_63 dim 1 : vector<8x1024xf32>, i32 -> vector<8x1024xf32>
    %c2_64 = arith.constant 2 : index
    %c0_65 = arith.constant 0 : index
    %92 = vector.load %arg1[%c2_64, %c0_65] : memref<9x1024xf32, #tpu.memory_space<vmem>>, vector<1x1024xf32>
    %93 = vector.broadcast %92 : vector<1x1024xf32> to vector<8x1024xf32>
    %94 = arith.mulf %91, %93 : vector<8x1024xf32>
    %c2_66 = arith.constant 2 : index
    %c0_67 = arith.constant 0 : index
    %c0_68 = arith.constant 0 : index
    %95 = vector.load %arg4[%c2_66, %c0_67, %c0_68] : memref<9x8x8xf32, #tpu.memory_space<vmem>>, vector<1x8x8xf32>
    %96 = vector.shape_cast %95 : vector<1x8x8xf32> to vector<8x8xf32>
    %cst_69 = arith.constant dense<0.000000e+00> : vector<8x1024xf32>
    %97 = tpu.matmul %96, %94, %cst_69 {dimension_numbers = #tpu.dot_dimension_numbers<[1], [0], [0], [1], [0, 0, 1, 1], [], []>} : vector<8x8xf32>, vector<8x1024xf32>, vector<8x1024xf32> -> vector<8x1024xf32>
    %98 = arith.addf %90, %97 : vector<8x1024xf32>
    %c1_i32_70 = arith.constant 1 : i32
    %99 = tpu.dynamic_rotate %75 by %c1_i32_70 dim 1 : vector<8x1024xf32>, i32 -> vector<8x1024xf32>
    %c3_71 = arith.constant 3 : index
    %c0_72 = arith.constant 0 : index
    %100 = vector.load %arg1[%c3_71, %c0_72] : memref<9x1024xf32, #tpu.memory_space<vmem>>, vector<1x1024xf32>
    %101 = vector.broadcast %100 : vector<1x1024xf32> to vector<8x1024xf32>
    %102 = arith.mulf %99, %101 : vector<8x1024xf32>
    %c3_73 = arith.constant 3 : index
    %c0_74 = arith.constant 0 : index
    %c0_75 = arith.constant 0 : index
    %103 = vector.load %arg4[%c3_73, %c0_74, %c0_75] : memref<9x8x8xf32, #tpu.memory_space<vmem>>, vector<1x8x8xf32>
    %104 = vector.shape_cast %103 : vector<1x8x8xf32> to vector<8x8xf32>
    %cst_76 = arith.constant dense<0.000000e+00> : vector<8x1024xf32>
    %105 = tpu.matmul %104, %102, %cst_76 {dimension_numbers = #tpu.dot_dimension_numbers<[1], [0], [0], [1], [0, 0, 1, 1], [], []>} : vector<8x8xf32>, vector<8x1024xf32>, vector<8x1024xf32> -> vector<8x1024xf32>
    %106 = arith.addf %98, %105 : vector<8x1024xf32>
    %c4_77 = arith.constant 4 : index
    %c0_78 = arith.constant 0 : index
    %107 = vector.load %arg1[%c4_77, %c0_78] : memref<9x1024xf32, #tpu.memory_space<vmem>>, vector<1x1024xf32>
    %108 = vector.broadcast %107 : vector<1x1024xf32> to vector<8x1024xf32>
    %109 = arith.mulf %75, %108 : vector<8x1024xf32>
    %c4_79 = arith.constant 4 : index
    %c0_80 = arith.constant 0 : index
    %c0_81 = arith.constant 0 : index
    %110 = vector.load %arg4[%c4_79, %c0_80, %c0_81] : memref<9x8x8xf32, #tpu.memory_space<vmem>>, vector<1x8x8xf32>
    %111 = vector.shape_cast %110 : vector<1x8x8xf32> to vector<8x8xf32>
    %cst_82 = arith.constant dense<0.000000e+00> : vector<8x1024xf32>
    %112 = tpu.matmul %111, %109, %cst_82 {dimension_numbers = #tpu.dot_dimension_numbers<[1], [0], [0], [1], [0, 0, 1, 1], [], []>} : vector<8x8xf32>, vector<8x1024xf32>, vector<8x1024xf32> -> vector<8x1024xf32>
    %113 = arith.addf %106, %112 : vector<8x1024xf32>
    %c1023_i32_83 = arith.constant 1023 : i32
    %114 = tpu.dynamic_rotate %75 by %c1023_i32_83 dim 1 : vector<8x1024xf32>, i32 -> vector<8x1024xf32>
    %c5_84 = arith.constant 5 : index
    %c0_85 = arith.constant 0 : index
    %115 = vector.load %arg1[%c5_84, %c0_85] : memref<9x1024xf32, #tpu.memory_space<vmem>>, vector<1x1024xf32>
    %116 = vector.broadcast %115 : vector<1x1024xf32> to vector<8x1024xf32>
    %117 = arith.mulf %114, %116 : vector<8x1024xf32>
    %c5_86 = arith.constant 5 : index
    %c0_87 = arith.constant 0 : index
    %c0_88 = arith.constant 0 : index
    %118 = vector.load %arg4[%c5_86, %c0_87, %c0_88] : memref<9x8x8xf32, #tpu.memory_space<vmem>>, vector<1x8x8xf32>
    %119 = vector.shape_cast %118 : vector<1x8x8xf32> to vector<8x8xf32>
    %cst_89 = arith.constant dense<0.000000e+00> : vector<8x1024xf32>
    %120 = tpu.matmul %119, %117, %cst_89 {dimension_numbers = #tpu.dot_dimension_numbers<[1], [0], [0], [1], [0, 0, 1, 1], [], []>} : vector<8x8xf32>, vector<8x1024xf32>, vector<8x1024xf32> -> vector<8x1024xf32>
    %121 = arith.addf %113, %120 : vector<8x1024xf32>
    %c993_i32_90 = arith.constant 993 : i32
    %122 = tpu.dynamic_rotate %75 by %c993_i32_90 dim 1 : vector<8x1024xf32>, i32 -> vector<8x1024xf32>
    %c6_91 = arith.constant 6 : index
    %c0_92 = arith.constant 0 : index
    %123 = vector.load %arg1[%c6_91, %c0_92] : memref<9x1024xf32, #tpu.memory_space<vmem>>, vector<1x1024xf32>
    %124 = vector.broadcast %123 : vector<1x1024xf32> to vector<8x1024xf32>
    %125 = arith.mulf %122, %124 : vector<8x1024xf32>
    %c6_93 = arith.constant 6 : index
    %c0_94 = arith.constant 0 : index
    %c0_95 = arith.constant 0 : index
    %126 = vector.load %arg4[%c6_93, %c0_94, %c0_95] : memref<9x8x8xf32, #tpu.memory_space<vmem>>, vector<1x8x8xf32>
    %127 = vector.shape_cast %126 : vector<1x8x8xf32> to vector<8x8xf32>
    %cst_96 = arith.constant dense<0.000000e+00> : vector<8x1024xf32>
    %128 = tpu.matmul %127, %125, %cst_96 {dimension_numbers = #tpu.dot_dimension_numbers<[1], [0], [0], [1], [0, 0, 1, 1], [], []>} : vector<8x8xf32>, vector<8x1024xf32>, vector<8x1024xf32> -> vector<8x1024xf32>
    %129 = arith.addf %121, %128 : vector<8x1024xf32>
    %c992_i32_97 = arith.constant 992 : i32
    %130 = tpu.dynamic_rotate %75 by %c992_i32_97 dim 1 : vector<8x1024xf32>, i32 -> vector<8x1024xf32>
    %c7_98 = arith.constant 7 : index
    %c0_99 = arith.constant 0 : index
    %131 = vector.load %arg1[%c7_98, %c0_99] : memref<9x1024xf32, #tpu.memory_space<vmem>>, vector<1x1024xf32>
    %132 = vector.broadcast %131 : vector<1x1024xf32> to vector<8x1024xf32>
    %133 = arith.mulf %130, %132 : vector<8x1024xf32>
    %c7_100 = arith.constant 7 : index
    %c0_101 = arith.constant 0 : index
    %c0_102 = arith.constant 0 : index
    %134 = vector.load %arg4[%c7_100, %c0_101, %c0_102] : memref<9x8x8xf32, #tpu.memory_space<vmem>>, vector<1x8x8xf32>
    %135 = vector.shape_cast %134 : vector<1x8x8xf32> to vector<8x8xf32>
    %cst_103 = arith.constant dense<0.000000e+00> : vector<8x1024xf32>
    %136 = tpu.matmul %135, %133, %cst_103 {dimension_numbers = #tpu.dot_dimension_numbers<[1], [0], [0], [1], [0, 0, 1, 1], [], []>} : vector<8x8xf32>, vector<8x1024xf32>, vector<8x1024xf32> -> vector<8x1024xf32>
    %137 = arith.addf %129, %136 : vector<8x1024xf32>
    %c991_i32_104 = arith.constant 991 : i32
    %138 = tpu.dynamic_rotate %75 by %c991_i32_104 dim 1 : vector<8x1024xf32>, i32 -> vector<8x1024xf32>
    %c8_105 = arith.constant 8 : index
    %c0_106 = arith.constant 0 : index
    %139 = vector.load %arg1[%c8_105, %c0_106] : memref<9x1024xf32, #tpu.memory_space<vmem>>, vector<1x1024xf32>
    %140 = vector.broadcast %139 : vector<1x1024xf32> to vector<8x1024xf32>
    %141 = arith.mulf %138, %140 : vector<8x1024xf32>
    %c8_107 = arith.constant 8 : index
    %c0_108 = arith.constant 0 : index
    %c0_109 = arith.constant 0 : index
    %142 = vector.load %arg4[%c8_107, %c0_108, %c0_109] : memref<9x8x8xf32, #tpu.memory_space<vmem>>, vector<1x8x8xf32>
    %143 = vector.shape_cast %142 : vector<1x8x8xf32> to vector<8x8xf32>
    %cst_110 = arith.constant dense<0.000000e+00> : vector<8x1024xf32>
    %144 = tpu.matmul %143, %141, %cst_110 {dimension_numbers = #tpu.dot_dimension_numbers<[1], [0], [0], [1], [0, 0, 1, 1], [], []>} : vector<8x8xf32>, vector<8x1024xf32>, vector<8x1024xf32> -> vector<8x1024xf32>
    %145 = arith.addf %137, %144 : vector<8x1024xf32>
    %c0_111 = arith.constant 0 : index
    %c0_112 = arith.constant 0 : index
    %146 = vector.load %arg5[%c0_111, %c0_112] : memref<8x1xf32, #tpu.memory_space<vmem>>, vector<8x1xf32>
    %147 = vector.broadcast %146 : vector<8x1xf32> to vector<8x1024xf32>
    %148 = arith.addf %145, %147 : vector<8x1024xf32>
    %cst_113 = arith.constant 0.000000e+00 : f32
    %149 = vector.broadcast %cst_113 : f32 to vector<8x1024xf32>
    %150 = arith.maximumf %148, %149 : vector<8x1024xf32>
    %c33_i32_114 = arith.constant 33 : i32
    %151 = tpu.dynamic_rotate %150 by %c33_i32_114 dim 1 : vector<8x1024xf32>, i32 -> vector<8x1024xf32>
    %c0_115 = arith.constant 0 : index
    %c0_116 = arith.constant 0 : index
    %152 = vector.load %arg1[%c0_115, %c0_116] : memref<9x1024xf32, #tpu.memory_space<vmem>>, vector<1x1024xf32>
    %153 = vector.broadcast %152 : vector<1x1024xf32> to vector<8x1024xf32>
    %154 = arith.mulf %151, %153 : vector<8x1024xf32>
    %c0_117 = arith.constant 0 : index
    %c0_118 = arith.constant 0 : index
    %c0_119 = arith.constant 0 : index
    %155 = vector.load %arg6[%c0_117, %c0_118, %c0_119] : memref<9x2x8xf32, #tpu.memory_space<vmem>>, vector<1x2x8xf32>
    %156 = vector.shape_cast %155 : vector<1x2x8xf32> to vector<2x8xf32>
    %cst_120 = arith.constant dense<0.000000e+00> : vector<2x1024xf32>
    %157 = tpu.matmul %156, %154, %cst_120 {dimension_numbers = #tpu.dot_dimension_numbers<[1], [0], [0], [1], [0, 0, 1, 1], [], []>} : vector<2x8xf32>, vector<8x1024xf32>, vector<2x1024xf32> -> vector<2x1024xf32>
    %c32_i32_121 = arith.constant 32 : i32
    %158 = tpu.dynamic_rotate %150 by %c32_i32_121 dim 1 : vector<8x1024xf32>, i32 -> vector<8x1024xf32>
    %c1_122 = arith.constant 1 : index
    %c0_123 = arith.constant 0 : index
    %159 = vector.load %arg1[%c1_122, %c0_123] : memref<9x1024xf32, #tpu.memory_space<vmem>>, vector<1x1024xf32>
    %160 = vector.broadcast %159 : vector<1x1024xf32> to vector<8x1024xf32>
    %161 = arith.mulf %158, %160 : vector<8x1024xf32>
    %c1_124 = arith.constant 1 : index
    %c0_125 = arith.constant 0 : index
    %c0_126 = arith.constant 0 : index
    %162 = vector.load %arg6[%c1_124, %c0_125, %c0_126] : memref<9x2x8xf32, #tpu.memory_space<vmem>>, vector<1x2x8xf32>
    %163 = vector.shape_cast %162 : vector<1x2x8xf32> to vector<2x8xf32>
    %cst_127 = arith.constant dense<0.000000e+00> : vector<2x1024xf32>
    %164 = tpu.matmul %163, %161, %cst_127 {dimension_numbers = #tpu.dot_dimension_numbers<[1], [0], [0], [1], [0, 0, 1, 1], [], []>} : vector<2x8xf32>, vector<8x1024xf32>, vector<2x1024xf32> -> vector<2x1024xf32>
    %165 = arith.addf %157, %164 : vector<2x1024xf32>
    %c31_i32_128 = arith.constant 31 : i32
    %166 = tpu.dynamic_rotate %150 by %c31_i32_128 dim 1 : vector<8x1024xf32>, i32 -> vector<8x1024xf32>
    %c2_129 = arith.constant 2 : index
    %c0_130 = arith.constant 0 : index
    %167 = vector.load %arg1[%c2_129, %c0_130] : memref<9x1024xf32, #tpu.memory_space<vmem>>, vector<1x1024xf32>
    %168 = vector.broadcast %167 : vector<1x1024xf32> to vector<8x1024xf32>
    %169 = arith.mulf %166, %168 : vector<8x1024xf32>
    %c2_131 = arith.constant 2 : index
    %c0_132 = arith.constant 0 : index
    %c0_133 = arith.constant 0 : index
    %170 = vector.load %arg6[%c2_131, %c0_132, %c0_133] : memref<9x2x8xf32, #tpu.memory_space<vmem>>, vector<1x2x8xf32>
    %171 = vector.shape_cast %170 : vector<1x2x8xf32> to vector<2x8xf32>
    %cst_134 = arith.constant dense<0.000000e+00> : vector<2x1024xf32>
    %172 = tpu.matmul %171, %169, %cst_134 {dimension_numbers = #tpu.dot_dimension_numbers<[1], [0], [0], [1], [0, 0, 1, 1], [], []>} : vector<2x8xf32>, vector<8x1024xf32>, vector<2x1024xf32> -> vector<2x1024xf32>
    %173 = arith.addf %165, %172 : vector<2x1024xf32>
    %c1_i32_135 = arith.constant 1 : i32
    %174 = tpu.dynamic_rotate %150 by %c1_i32_135 dim 1 : vector<8x1024xf32>, i32 -> vector<8x1024xf32>
    %c3_136 = arith.constant 3 : index
    %c0_137 = arith.constant 0 : index
    %175 = vector.load %arg1[%c3_136, %c0_137] : memref<9x1024xf32, #tpu.memory_space<vmem>>, vector<1x1024xf32>
    %176 = vector.broadcast %175 : vector<1x1024xf32> to vector<8x1024xf32>
    %177 = arith.mulf %174, %176 : vector<8x1024xf32>
    %c3_138 = arith.constant 3 : index
    %c0_139 = arith.constant 0 : index
    %c0_140 = arith.constant 0 : index
    %178 = vector.load %arg6[%c3_138, %c0_139, %c0_140] : memref<9x2x8xf32, #tpu.memory_space<vmem>>, vector<1x2x8xf32>
    %179 = vector.shape_cast %178 : vector<1x2x8xf32> to vector<2x8xf32>
    %cst_141 = arith.constant dense<0.000000e+00> : vector<2x1024xf32>
    %180 = tpu.matmul %179, %177, %cst_141 {dimension_numbers = #tpu.dot_dimension_numbers<[1], [0], [0], [1], [0, 0, 1, 1], [], []>} : vector<2x8xf32>, vector<8x1024xf32>, vector<2x1024xf32> -> vector<2x1024xf32>
    %181 = arith.addf %173, %180 : vector<2x1024xf32>
    %c4_142 = arith.constant 4 : index
    %c0_143 = arith.constant 0 : index
    %182 = vector.load %arg1[%c4_142, %c0_143] : memref<9x1024xf32, #tpu.memory_space<vmem>>, vector<1x1024xf32>
    %183 = vector.broadcast %182 : vector<1x1024xf32> to vector<8x1024xf32>
    %184 = arith.mulf %150, %183 : vector<8x1024xf32>
    %c4_144 = arith.constant 4 : index
    %c0_145 = arith.constant 0 : index
    %c0_146 = arith.constant 0 : index
    %185 = vector.load %arg6[%c4_144, %c0_145, %c0_146] : memref<9x2x8xf32, #tpu.memory_space<vmem>>, vector<1x2x8xf32>
    %186 = vector.shape_cast %185 : vector<1x2x8xf32> to vector<2x8xf32>
    %cst_147 = arith.constant dense<0.000000e+00> : vector<2x1024xf32>
    %187 = tpu.matmul %186, %184, %cst_147 {dimension_numbers = #tpu.dot_dimension_numbers<[1], [0], [0], [1], [0, 0, 1, 1], [], []>} : vector<2x8xf32>, vector<8x1024xf32>, vector<2x1024xf32> -> vector<2x1024xf32>
    %188 = arith.addf %181, %187 : vector<2x1024xf32>
    %c1023_i32_148 = arith.constant 1023 : i32
    %189 = tpu.dynamic_rotate %150 by %c1023_i32_148 dim 1 : vector<8x1024xf32>, i32 -> vector<8x1024xf32>
    %c5_149 = arith.constant 5 : index
    %c0_150 = arith.constant 0 : index
    %190 = vector.load %arg1[%c5_149, %c0_150] : memref<9x1024xf32, #tpu.memory_space<vmem>>, vector<1x1024xf32>
    %191 = vector.broadcast %190 : vector<1x1024xf32> to vector<8x1024xf32>
    %192 = arith.mulf %189, %191 : vector<8x1024xf32>
    %c5_151 = arith.constant 5 : index
    %c0_152 = arith.constant 0 : index
    %c0_153 = arith.constant 0 : index
    %193 = vector.load %arg6[%c5_151, %c0_152, %c0_153] : memref<9x2x8xf32, #tpu.memory_space<vmem>>, vector<1x2x8xf32>
    %194 = vector.shape_cast %193 : vector<1x2x8xf32> to vector<2x8xf32>
    %cst_154 = arith.constant dense<0.000000e+00> : vector<2x1024xf32>
    %195 = tpu.matmul %194, %192, %cst_154 {dimension_numbers = #tpu.dot_dimension_numbers<[1], [0], [0], [1], [0, 0, 1, 1], [], []>} : vector<2x8xf32>, vector<8x1024xf32>, vector<2x1024xf32> -> vector<2x1024xf32>
    %196 = arith.addf %188, %195 : vector<2x1024xf32>
    %c993_i32_155 = arith.constant 993 : i32
    %197 = tpu.dynamic_rotate %150 by %c993_i32_155 dim 1 : vector<8x1024xf32>, i32 -> vector<8x1024xf32>
    %c6_156 = arith.constant 6 : index
    %c0_157 = arith.constant 0 : index
    %198 = vector.load %arg1[%c6_156, %c0_157] : memref<9x1024xf32, #tpu.memory_space<vmem>>, vector<1x1024xf32>
    %199 = vector.broadcast %198 : vector<1x1024xf32> to vector<8x1024xf32>
    %200 = arith.mulf %197, %199 : vector<8x1024xf32>
    %c6_158 = arith.constant 6 : index
    %c0_159 = arith.constant 0 : index
    %c0_160 = arith.constant 0 : index
    %201 = vector.load %arg6[%c6_158, %c0_159, %c0_160] : memref<9x2x8xf32, #tpu.memory_space<vmem>>, vector<1x2x8xf32>
    %202 = vector.shape_cast %201 : vector<1x2x8xf32> to vector<2x8xf32>
    %cst_161 = arith.constant dense<0.000000e+00> : vector<2x1024xf32>
    %203 = tpu.matmul %202, %200, %cst_161 {dimension_numbers = #tpu.dot_dimension_numbers<[1], [0], [0], [1], [0, 0, 1, 1], [], []>} : vector<2x8xf32>, vector<8x1024xf32>, vector<2x1024xf32> -> vector<2x1024xf32>
    %204 = arith.addf %196, %203 : vector<2x1024xf32>
    %c992_i32_162 = arith.constant 992 : i32
    %205 = tpu.dynamic_rotate %150 by %c992_i32_162 dim 1 : vector<8x1024xf32>, i32 -> vector<8x1024xf32>
    %c7_163 = arith.constant 7 : index
    %c0_164 = arith.constant 0 : index
    %206 = vector.load %arg1[%c7_163, %c0_164] : memref<9x1024xf32, #tpu.memory_space<vmem>>, vector<1x1024xf32>
    %207 = vector.broadcast %206 : vector<1x1024xf32> to vector<8x1024xf32>
    %208 = arith.mulf %205, %207 : vector<8x1024xf32>
    %c7_165 = arith.constant 7 : index
    %c0_166 = arith.constant 0 : index
    %c0_167 = arith.constant 0 : index
    %209 = vector.load %arg6[%c7_165, %c0_166, %c0_167] : memref<9x2x8xf32, #tpu.memory_space<vmem>>, vector<1x2x8xf32>
    %210 = vector.shape_cast %209 : vector<1x2x8xf32> to vector<2x8xf32>
    %cst_168 = arith.constant dense<0.000000e+00> : vector<2x1024xf32>
    %211 = tpu.matmul %210, %208, %cst_168 {dimension_numbers = #tpu.dot_dimension_numbers<[1], [0], [0], [1], [0, 0, 1, 1], [], []>} : vector<2x8xf32>, vector<8x1024xf32>, vector<2x1024xf32> -> vector<2x1024xf32>
    %212 = arith.addf %204, %211 : vector<2x1024xf32>
    %c991_i32_169 = arith.constant 991 : i32
    %213 = tpu.dynamic_rotate %150 by %c991_i32_169 dim 1 : vector<8x1024xf32>, i32 -> vector<8x1024xf32>
    %c8_170 = arith.constant 8 : index
    %c0_171 = arith.constant 0 : index
    %214 = vector.load %arg1[%c8_170, %c0_171] : memref<9x1024xf32, #tpu.memory_space<vmem>>, vector<1x1024xf32>
    %215 = vector.broadcast %214 : vector<1x1024xf32> to vector<8x1024xf32>
    %216 = arith.mulf %213, %215 : vector<8x1024xf32>
    %c8_172 = arith.constant 8 : index
    %c0_173 = arith.constant 0 : index
    %c0_174 = arith.constant 0 : index
    %217 = vector.load %arg6[%c8_172, %c0_173, %c0_174] : memref<9x2x8xf32, #tpu.memory_space<vmem>>, vector<1x2x8xf32>
    %218 = vector.shape_cast %217 : vector<1x2x8xf32> to vector<2x8xf32>
    %cst_175 = arith.constant dense<0.000000e+00> : vector<2x1024xf32>
    %219 = tpu.matmul %218, %216, %cst_175 {dimension_numbers = #tpu.dot_dimension_numbers<[1], [0], [0], [1], [0, 0, 1, 1], [], []>} : vector<2x8xf32>, vector<8x1024xf32>, vector<2x1024xf32> -> vector<2x1024xf32>
    %220 = arith.addf %212, %219 : vector<2x1024xf32>
    %c0_176 = arith.constant 0 : index
    %c0_177 = arith.constant 0 : index
    %221 = vector.load %arg7[%c0_176, %c0_177] : memref<2x1xf32, #tpu.memory_space<vmem>>, vector<2x1xf32>
    %222 = vector.broadcast %221 : vector<2x1xf32> to vector<2x1024xf32>
    %223 = arith.addf %220, %222 : vector<2x1024xf32>
    %c0_178 = arith.constant 0 : index
    %c0_179 = arith.constant 0 : index
    %224 = vector.load %arg8[%c0_178, %c0_179] : memref<2x1024xf32, #tpu.memory_space<vmem>>, vector<2x1024xf32>
    tpu.vector_store %arg8[%c0_178, %c0_179], %223 {strides = array<i32>} : memref<2x1024xf32, #tpu.memory_space<vmem>>, vector<2x1024xf32>,
    return
  }
}

</mosaic_0001>

<bundles_post_ra>
// kernel: custom-call.1
= control target key start
LH: loop header
LB: loop body
LE: loop exit
PB: predicated region body
PF: predicated region fallthrough
CT: control target
= control target key end

     0   :  { %s56_s0 = inlined_call_operand.hbm [shape: c64[1,1,32,32], index: 0, kind: input, shape index: {}]   ;;  %s57_s1 = inlined_call_operand.vmem [shape: f32[1,1,32,32], index: 1, kind: output, shape index: {}]  }
   0x1   :  { %s2_s8 = scalar_lea.hbm %s56_s0, 32 }
   0x2   :  { %3 = vsyncpa [#allocation0], 0  ;;  %s5_s9 = sshll.u32 %s2_s8, 4  ;;  %s7_s12 = sshll.u32 %s57_s1, 4  ;;  %s6_s9 = int_to_ptr.hbm [resolvable:$true] %s5_s9  ;;  %s8_s12 = int_to_ptr.vmem [resolvable:$true] %s7_s12 }
   0x3   :  { %10 = dma.hbm_to_vmem [thread:$0]  %s6_s9, 512, %s8_s12, [#allocation0] }
   0x4   :  { %38 = dma.done.wait [#allocation0], 512  }
   0x5   :  { %39 = vsyncadd [#allocation0], 4294966784 }
   0x6   :  { %13 = vsyncpa [#allocation0], 1 }

// kernel: custom-call
= control target key start
LH: loop header
LB: loop body
LE: loop exit
PB: predicated region body
PF: predicated region fallthrough
CT: control target
= control target key end

     0   :  { %2 = vsyncpa [#allocation0], 0  ;;  %s55_s0 = inlined_call_operand.hbm [shape: c64[1,1,32,32], index: 0, kind: input, shape index: {}]   ;;  %s56_s1 = inlined_call_operand.vmem [shape: f32[1,1,32,32], index: 1, kind: output, shape index: {}]  }
   0x1   :  { %s4_s8 = sshll.u32 %s55_s0, 4  ;;  %s6_s11 = sshll.u32 %s56_s1, 4  ;;  %s5_s8 = int_to_ptr.hbm [resolvable:$true] %s4_s8  ;;  %s7_s11 = int_to_ptr.vmem [resolvable:$true] %s6_s11 }
   0x2   :  { %9 = dma.hbm_to_vmem [thread:$0]  %s5_s8, 512, %s7_s11, [#allocation0] }
   0x3   :  { %37 = dma.done.wait [#allocation0], 512  }
   0x4   :  { %38 = vsyncadd [#allocation0], 4294966784 }
   0x5   :  { %12 = vsyncpa [#allocation0], 1 }

// kernel: custom-call.3
= control target key start
LH: loop header
LB: loop body
LE: loop exit
PB: predicated region body
PF: predicated region fallthrough
CT: control target
= control target key end

     0   :  { %s217_s0 = inlined_call_operand.vmem [shape: c64[32,32,4], index: 0, kind: input, shape index: {}]   ;;  %s218_s1 = inlined_call_operand.vmem [shape: f32[32,32,4], index: 1, kind: output, shape index: {}]  }
   0x1   :  { %v80_v0 = vld [vmem:[%s217_s0 + $0x80] sm:$0xff]  ;;  %v81_v1 = vld [vmem:[%s217_s0 + $0x88] sm:$0xff]  ;;  %v83_v2 = vld [vmem:[%s217_s0 + $0x90] sm:$0xff] }
   0x2   :  { %4 = vst [vmem:[%s218_s1] sm:$0xff] %v80_v0  ;;  %v85_v3 = vld [vmem:[%s217_s0 + $0x98] sm:$0xff]  ;;  %v87_v4 = vld [vmem:[%s217_s0 + $0xa0] sm:$0xff]  ;;  %v89_v5 = vld [vmem:[%s217_s0 + $0xa8] sm:$0xff] }
   0x3   :  { %82 = vst [vmem:[%s218_s1 + $0x8] sm:$0xff] %v81_v1  ;;  %v91_v6 = vld [vmem:[%s217_s0 + $0xb0] sm:$0xff]  ;;  %v93_v7 = vld [vmem:[%s217_s0 + $0xb8] sm:$0xff]  ;;  %v95_v8 = vld [vmem:[%s217_s0 + $0xc0] sm:$0xff] }
   0x4   :  { %84 = vst [vmem:[%s218_s1 + $0x10] sm:$0xff] %v83_v2  ;;  %v97_v9 = vld [vmem:[%s217_s0 + $0xc8] sm:$0xff]  ;;  %v99_v10 = vld [vmem:[%s217_s0 + $0xd0] sm:$0xff]  ;;  %v101_v11 = vld [vmem:[%s217_s0 + $0xd8] sm:$0xff] }
   0x5   :  { %86 = vst [vmem:[%s218_s1 + $0x18] sm:$0xff] %v85_v3  ;;  %v103_v12 = vld [vmem:[%s217_s0 + $0xe0] sm:$0xff]  ;;  %v105_v13 = vld [vmem:[%s217_s0 + $0xe8] sm:$0xff]  ;;  %v107_v14 = vld [vmem:[%s217_s0 + $0xf0] sm:$0xff] }
   0x6   :  { %88 = vst [vmem:[%s218_s1 + $0x20] sm:$0xff] %v87_v4  ;;  %v109_v15 = vld [vmem:[%s217_s0 + $0xf8] sm:$0xff] }
   0x7   :  { %90 = vst [vmem:[%s218_s1 + $0x28] sm:$0xff] %v89_v5 }
   0x8   :  { %92 = vst [vmem:[%s218_s1 + $0x30] sm:$0xff] %v91_v6 }
   0x9   :  { %94 = vst [vmem:[%s218_s1 + $0x38] sm:$0xff] %v93_v7 }
   0xa   :  { %96 = vst [vmem:[%s218_s1 + $0x40] sm:$0xff] %v95_v8 }
   0xb   :  { %98 = vst [vmem:[%s218_s1 + $0x48] sm:$0xff] %v97_v9 }
   0xc   :  { %100 = vst [vmem:[%s218_s1 + $0x50] sm:$0xff] %v99_v10 }
   0xd   :  { %102 = vst [vmem:[%s218_s1 + $0x58] sm:$0xff] %v101_v11 }
   0xe   :  { %104 = vst [vmem:[%s218_s1 + $0x60] sm:$0xff] %v103_v12 }
   0xf   :  { %106 = vst [vmem:[%s218_s1 + $0x68] sm:$0xff] %v105_v13 }
  0x10   :  { %108 = vst [vmem:[%s218_s1 + $0x70] sm:$0xff] %v107_v14 }
  0x11   :  { %110 = vst [vmem:[%s218_s1 + $0x78] sm:$0xff] %v109_v15 }

// kernel: custom-call.2
= control target key start
LH: loop header
LB: loop body
LE: loop exit
PB: predicated region body
PF: predicated region fallthrough
CT: control target
= control target key end

     0   :  { %s200_s0 = inlined_call_operand.vmem [shape: c64[32,32,4], index: 0, kind: input, shape index: {}]   ;;  %s201_s1 = inlined_call_operand.vmem [shape: f32[32,32,4], index: 1, kind: output, shape index: {}]  }
   0x1   :  { %v2_v0 = vld [vmem:[%s200_s0] sm:$0xff]  ;;  %v64_v1 = vld [vmem:[%s200_s0 + $0x8] sm:$0xff]  ;;  %v66_v2 = vld [vmem:[%s200_s0 + $0x10] sm:$0xff] }
   0x2   :  { %3 = vst [vmem:[%s201_s1] sm:$0xff] %v2_v0  ;;  %v68_v3 = vld [vmem:[%s200_s0 + $0x18] sm:$0xff]  ;;  %v70_v4 = vld [vmem:[%s200_s0 + $0x20] sm:$0xff]  ;;  %v72_v5 = vld [vmem:[%s200_s0 + $0x28] sm:$0xff] }
   0x3   :  { %65 = vst [vmem:[%s201_s1 + $0x8] sm:$0xff] %v64_v1  ;;  %v74_v6 = vld [vmem:[%s200_s0 + $0x30] sm:$0xff]  ;;  %v76_v7 = vld [vmem:[%s200_s0 + $0x38] sm:$0xff]  ;;  %v78_v8 = vld [vmem:[%s200_s0 + $0x40] sm:$0xff] }
   0x4   :  { %67 = vst [vmem:[%s201_s1 + $0x10] sm:$0xff] %v66_v2  ;;  %v80_v9 = vld [vmem:[%s200_s0 + $0x48] sm:$0xff]  ;;  %v82_v10 = vld [vmem:[%s200_s0 + $0x50] sm:$0xff]  ;;  %v84_v11 = vld [vmem:[%s200_s0 + $0x58] sm:$0xff] }
   0x5   :  { %69 = vst [vmem:[%s201_s1 + $0x18] sm:$0xff] %v68_v3  ;;  %v86_v12 = vld [vmem:[%s200_s0 + $0x60] sm:$0xff]  ;;  %v88_v13 = vld [vmem:[%s200_s0 + $0x68] sm:$0xff]  ;;  %v90_v14 = vld [vmem:[%s200_s0 + $0x70] sm:$0xff] }
   0x6   :  { %71 = vst [vmem:[%s201_s1 + $0x20] sm:$0xff] %v70_v4  ;;  %v92_v15 = vld [vmem:[%s200_s0 + $0x78] sm:$0xff] }
   0x7   :  { %73 = vst [vmem:[%s201_s1 + $0x28] sm:$0xff] %v72_v5 }
   0x8   :  { %75 = vst [vmem:[%s201_s1 + $0x30] sm:$0xff] %v74_v6 }
   0x9   :  { %77 = vst [vmem:[%s201_s1 + $0x38] sm:$0xff] %v76_v7 }
   0xa   :  { %79 = vst [vmem:[%s201_s1 + $0x40] sm:$0xff] %v78_v8 }
   0xb   :  { %81 = vst [vmem:[%s201_s1 + $0x48] sm:$0xff] %v80_v9 }
   0xc   :  { %83 = vst [vmem:[%s201_s1 + $0x50] sm:$0xff] %v82_v10 }
   0xd   :  { %85 = vst [vmem:[%s201_s1 + $0x58] sm:$0xff] %v84_v11 }
   0xe   :  { %87 = vst [vmem:[%s201_s1 + $0x60] sm:$0xff] %v86_v12 }
   0xf   :  { %89 = vst [vmem:[%s201_s1 + $0x68] sm:$0xff] %v88_v13 }
  0x10   :  { %91 = vst [vmem:[%s201_s1 + $0x70] sm:$0xff] %v90_v14 }
  0x11   :  { %93 = vst [vmem:[%s201_s1 + $0x78] sm:$0xff] %v92_v15 }

// kernel: zs_unrolled_network_onenet.23
= control target key start
LH: loop header
LB: loop body
LE: loop exit
PB: predicated region body
PF: predicated region fallthrough
CT: control target
= control target key end

     0   :  { %vm30_vm0 = vcmask 261120   ;;  %vm49_vm1 = vcmask 1043456   ;;  %vm51_vm2 = vcmask 64512   ;;  %vm75_vm3 = vcmask 31744   ;;  %s1066_s0 = inlined_call_operand.vmem [shape: f32[2,32,32], index: 0, kind: input, shape index: {}]   ;;  %s1067_s1 = inlined_call_operand.vmem [shape: f32[4,64,64], index: 1, kind: input, shape index: {}]   ;;  %s1068_s2 = inlined_call_operand.vmem [shape: f32[4,32,32], index: 2, kind: input, shape index: {}]   ;;  %s1069_s3 = inlined_call_operand.vmem [shape: f32[4,32,32], index: 3, kind: input, shape index: {}]   ;;  %s1070_s4 = inlined_call_operand.vmem [shape: f32[4,32,32], index: 4, kind: input, shape index: {}]   ;;  %s1071_s5 = inlined_call_operand.vmem [shape: f32[4,32,32], index: 5, kind: output, shape index: {0}]   ;;  %s1072_s6 = inlined_call_operand.vmem [shape: f32[4,32,32], index: 6, kind: output, shape index: {1}]  }
   0x1   :  { %v22_v0 = vld [vmem:[%s1066_s0] sm:$0xff]  ;;  %vm102_vm4 = vcmask 27648   ;;  %vm104_vm5 = vcmask 31748   ;;  %vm113_vm6 = vcmask 130048   ;;  %v613_v12 = vld [vmem:[%s1067_s1 + $0x88] sm:$0xff]  ;;  %v621_v28 = vld [vmem:[%s1067_s1 + $0x50] sm:$0xff] }
   0x2   :  { %v26_v1 = vld [vmem:[%s1066_s0 + $0x20] sm:$0xff]  ;;  %31 = vst.msk [vmem:[#allocation2] sm:$0xff] %vm30_vm0, %v22_v0  ;;  %v27_v17 = vld [vmem:[%s1066_s0 + $0x28] sm:$0xff]  ;;  %v622_v29 = vld [vmem:[%s1067_s1 + $0x58] sm:$0xff]  ;;  %vm292_vm7 = vcmask 523264  }
   0x3   :  { %35 = vst.msk [vmem:[#allocation2 + $0x20] sm:$0xff] %vm30_vm0, %v26_v1  ;;  %v607_v5 = vld [vmem:[%s1067_s1 + $0xc0] sm:$0xff]  ;;  %v23_v18 = vld [vmem:[%s1066_s0 + $0x8] sm:$0xff]  ;;  %v29_v35 = vld [vmem:[%s1066_s0 + $0x38] sm:$0xff] }
   0x4   :  { %v608_v7 = vld [vmem:[%s1068_s2 + $0x60] sm:$0xf]  ;;  %36 = vst.msk [vmem:[#allocation2 + $0x28] sm:$0xff] %vm30_vm0, %v27_v17  ;;  %v624_v22 = vld [vmem:[%s1068_s2 + $0x28] sm:$0xff]  ;;  %v28_v36 = vld [vmem:[%s1066_s0 + $0x30] sm:$0xff] }
   0x5   :  { %610 = vmatpush.msk.msra.mxu1 %vm49_vm1, %v608_v7  ;;  %v612_v11 = vld [vmem:[%s1067_s1 + $0x80] sm:$0xff]  ;;  %32 = vst.msk [vmem:[#allocation2 + $0x8] sm:$0xff] %vm30_vm0, %v23_v18  ;;  %v620_v27 = vld [vmem:[%s1067_s1 + $0x48] sm:$0xff]  ;;  %v25_v38 = vld [vmem:[%s1066_s0 + $0x18] sm:$0xff] }
   0x6   :  { %v614_v14 = vld [vmem:[%s1068_s2 + $0x40] sm:$0xff]  ;;  %38 = vst.msk [vmem:[#allocation2 + $0x38] sm:$0xff] %vm30_vm0, %v29_v35  ;;  %v24_v40 = vld [vmem:[%s1066_s0 + $0x10] sm:$0xff]  ;;  %v275_v53 = vld [vmem:[%s1067_s1 + $0x18] sm:$0xff] }
   0x7   :  { %164 = vmatpush.msra.mxu3 %v614_v14  ;;  %253 = vmatpush.msrb.mxu1 %v624_v22  ;;  %v619_v25 = vld [vmem:[%s1067_s1 + $0x40] sm:$0xff]  ;;  %37 = vst.msk [vmem:[#allocation2 + $0x30] sm:$0xff] %vm30_vm0, %v28_v36  ;;  %v274_v50 = vld [vmem:[%s1067_s1 + $0x10] sm:$0xff]  ;;  %v273_v54 = vld [vmem:[%s1067_s1 + $0x8] sm:$0xff] }
   0x8   :  { %v623_v30 = vld [vmem:[%s1068_s2 + $0x20] sm:$0xff]  ;;  %34 = vst.msk [vmem:[#allocation2 + $0x18] sm:$0xff] %vm30_vm0, %v25_v38  ;;  %v283_v55 = vld [vmem:[%s1068_s2 + $0x18] sm:$0xff]  ;;  %v282_v56 = vld [vmem:[%s1068_s2 + $0x10] sm:$0xff] }
   0x9   :  { %v43_v2 = vld [vmem:[#allocation2] sm:$0xf]  ;;  %254 = vmatpush.msrb.mxu1 %v623_v30  ;;  %33 = vst.msk [vmem:[#allocation2 + $0x10] sm:$0xff] %vm30_vm0, %v24_v40  ;;  %v281_v57 = vld [vmem:[%s1068_s2 + $0x8] sm:$0xff]  ;;  %v278_v60 = vld [vmem:[%s1067_s1 + $0x30] sm:$0xff] }
   0xa   :  { %v45_v3 = vld [vmem:[#allocation2 + $0x20] sm:$0xf]  ;;  %v277_v59 = vld [vmem:[%s1067_s1 + $0x28] sm:$0xff]  ;;  %v279_v61 = vld [vmem:[%s1067_s1 + $0x38] sm:$0xff] }
   0xb   :  { %v47_v4 = vrot.slane %v45_v3, 4  ;;  %v185_v19 = vld [vmem:[#allocation2 + $0x28] sm:$0xff]  ;;  %v272_v51 = vld [vmem:[%s1067_s1] sm:$0xff] }
   0xc   :  { %v183_v24 = vld [vmem:[#allocation2 + $0x8] sm:$0xff]  ;;  %v276_v58 = vld [vmem:[%s1067_s1 + $0x20] sm:$0xff] }
   0xd   :  { %v50_v6 = vsel %vm49_vm1, %v43_v2, %v47_v4  ;;  %v291_v37 = vld [vmem:[#allocation2 + $0x38] sm:$0xff]  ;;  %v280_v62 = vld [vmem:[%s1068_s2] sm:$0xff]  ;;  %v440_v40 = vld [vmem:[%s1069_s3 + $0x8] sm:$0xff] }
   0xe   :  { %70 = vmatpush.msra.mxu0 %v50_v6  ;;  %651 = vmatpush.msrb.mxu3 %v291_v37  ;;  %v290_v39 = vld [vmem:[#allocation2 + $0x30] sm:$0xff]  ;;  %v447_v14 = vld [vmem:[%s1069_s3 + $0x40] sm:$0xff] }
   0xf   :  { %609 = vmatmul.msk.f32.vlgmr.msra.gmra.mxu0 %vm51_vm2, %v607_v5  ;;  %v287_v47 = vld [vmem:[#allocation2 + $0x18] sm:$0xff]  ;;  %v455_v17 = vld [vmem:[%s1070_s4] sm:$0xff] }
  0x10   :  { %652 = vmatpush.msrb.mxu3 %v290_v39  ;;  %v286_v48 = vld [vmem:[#allocation2 + $0x10] sm:$0xff]  ;;  %v459_v18 = vld [vmem:[%s1070_s4 + $0x20] sm:$0xff] }
  0x8c   :  { %v72_v8 = vpop.f32.mrf.mxu0 }
  0x8d   :  { %611 = vmatmul.msk.f32.vlgmr.msra.gmra.mxu1 %vm75_vm3, %v72_v8 }
  0x8e   :  { %325 = vmatpush.msra.mxu1 %v291_v37 }
  0x90   :  { %326 = vmatpush.msra.mxu1 %v290_v39 }
 0x10a   :  { %v99_v9 = vpop.f32.mrf.mxu1 }
 0x10b   :  { %103 = vst.msk [vmem:[#allocation2] sm:$0xf] %vm102_vm4, %v99_v9 }
 0x10c   :  { %105 = vst.msk [vmem:[#allocation2 + $0x1c] sm:$0xf0] %vm104_vm5, %v99_v9 }
 0x112   :  { %v111_v13 = vld [vmem:[#allocation2] sm:$0xff] }
 0x113   :  { %v112_v10 = vld [vmem:[#allocation2 + $0x20] sm:$0xff] }
 0x114   :  { %134 = vmatpush.msrb.mxu0 %v112_v10  ;;  %649 = vmatpush.msra.mxu2 %v112_v10 }
 0x116   :  { %135 = vmatpush.msrb.mxu0 %v111_v13  ;;  %650 = vmatpush.msra.mxu2 %v111_v13  ;;  %v443_v13 = vld [vmem:[%s1069_s3 + $0x20] sm:$0xff] }
 0x117   :  { %615 = vmatmul.msk.f32.vlgmr.msrb.gmra.mxu0 %vm113_vm6, %v612_v11  ;;  %616 = vmatmul.msk.f32.vlgmr.msra.gmra.mxu2 %vm113_vm6, %v613_v12  ;;  %v439_v12 = vld [vmem:[%s1069_s3] sm:$0xff] }
 0x118   :  { %210 = vmatpush.msra.mxu0 %v185_v19  ;;  %659 = vmatpush.msrb.mxu2 %v283_v55  ;;  %v463_v19 = vld [vmem:[%s1070_s4 + $0x40] sm:$0xff] }
 0x11a   :  { %660 = vmatpush.msrb.mxu2 %v282_v56 }
 0x11c   :  { %661 = vmatpush.msrb.mxu2 %v281_v57 }
 0x11e   :  { %662 = vmatpush.msrb.mxu2 %v280_v62 }
 0x194   :  { %v137_v15 = vpop.f32.mrf.mxu0 }
 0x195   :  { %617 = vmatmul.msk.f32.vlgmr.msra.gmra.mxu3 %vm51_vm2, %v137_v15 }
 0x19a   :  { %v140_v16 = vpop.f32.mrf.mxu2 }
 0x19d   :  { %618 = vmatmul.msk.f32.gmra.mxu3 %vm51_vm2, %v140_v16  ;;  %v451_v16 = vld [vmem:[%s1069_s3 + $0x60] sm:$0xff] }
 0x218   :  { %v166_v20 = vpop.f32.mrf.mxu3 }
 0x219   :  { %172 = vst.msk [vmem:[#allocation2] sm:$0xff] %vm51_vm2, %v166_v20  ;;  %v467_v20 = vld [vmem:[%s1070_s4 + $0x60] sm:$0xff] }
 0x220   :  { %v169_v21 = vpop.f32.mrf.mxu3  ;;  %v182_v26 = vld [vmem:[#allocation2] sm:$0xff] }
 0x221   :  { %173 = vst.msk [vmem:[#allocation2 + $0x20] sm:$0xff] %vm51_vm2, %v169_v21 }
 0x228   :  { %v184_v23 = vld [vmem:[#allocation2 + $0x20] sm:$0xff] }
 0x229   :  { %211 = vmatpush.msra.mxu0 %v184_v23 }
 0x22b   :  { %212 = vmatpush.msra.mxu0 %v183_v24 }
 0x22d   :  { %213 = vmatpush.msra.mxu0 %v182_v26 }
 0x22e   :  { %625 = vmatmul.msk.f32.vlgmr.msra.gmra.mxu0 %vm30_vm0, %v619_v25 }
 0x22f   :  { %394 = vmatpush.msrb.mxu0 %v283_v55 }
 0x231   :  { %395 = vmatpush.msrb.mxu0 %v282_v56 }
 0x233   :  { %396 = vmatpush.msrb.mxu0 %v281_v57 }
 0x235   :  { %397 = vmatpush.msrb.mxu0 %v280_v62 }
 0x236   :  { %626 = vmatmul.msk.f32.gmra.mxu0 %vm30_vm0, %v620_v27 }
 0x23e   :  { %627 = vmatmul.msk.f32.gmra.mxu0 %vm30_vm0, %v621_v28 }
 0x246   :  { %628 = vmatmul.msk.f32.gmra.mxu0 %vm30_vm0, %v622_v29 }
 0x2ab   :  { %v215_v31 = vpop.f32.mrf.mxu0 }
 0x2ac   :  { %629 = vmatmul.msk.f32.vlgmr.msrb.gmra.mxu1 %vm113_vm6, %v215_v31 }
 0x2b3   :  { %v218_v32 = vpop.f32.mrf.mxu0 }
 0x2b4   :  { %630 = vmatmul.msk.f32.gmra.mxu1 %vm113_vm6, %v218_v32 }
 0x2bb   :  { %v221_v33 = vpop.f32.mrf.mxu0 }
 0x2bc   :  { %631 = vmatmul.msk.f32.gmra.mxu1 %vm113_vm6, %v221_v33 }
 0x2c3   :  { %v224_v34 = vpop.f32.mrf.mxu0 }
 0x2c4   :  { %632 = vmatmul.msk.f32.gmra.mxu1 %vm113_vm6, %v224_v34 }
 0x329   :  { %v256_v41 = vpop.f32.mrf.mxu1 }
 0x32a   :  { %268 = vst.msk [vmem:[#allocation2] sm:$0xff] %vm113_vm6, %v256_v41 }
 0x331   :  { %v259_v42 = vpop.f32.mrf.mxu1  ;;  %v284_v52 = vld [vmem:[#allocation2] sm:$0xff] }
 0x332   :  { %269 = vst.msk [vmem:[#allocation2 + $0x8] sm:$0xff] %vm113_vm6, %v259_v42 }
 0x339   :  { %v262_v43 = vpop.f32.mrf.mxu1  ;;  %v285_v49 = vld [vmem:[#allocation2 + $0x8] sm:$0xff] }
 0x33a   :  { %270 = vst.msk [vmem:[#allocation2 + $0x20] sm:$0xff] %vm113_vm6, %v262_v43 }
 0x341   :  { %v265_v44 = vpop.f32.mrf.mxu1  ;;  %v288_v46 = vld [vmem:[#allocation2 + $0x20] sm:$0xff] }
 0x342   :  { %271 = vst.msk [vmem:[#allocation2 + $0x28] sm:$0xff] %vm113_vm6, %v265_v44  ;;  %v444_v44 = vld [vmem:[%s1069_s3 + $0x28] sm:$0xff] }
 0x349   :  { %v289_v45 = vld [vmem:[#allocation2 + $0x28] sm:$0xff] }
 0x34a   :  { %327 = vmatpush.msra.mxu1 %v289_v45  ;;  %653 = vmatpush.msrb.mxu3 %v289_v45  ;;  %v448_v45 = vld [vmem:[%s1069_s3 + $0x48] sm:$0xff] }
 0x34c   :  { %328 = vmatpush.msra.mxu1 %v288_v46  ;;  %654 = vmatpush.msrb.mxu3 %v288_v46 }
 0x34e   :  { %329 = vmatpush.msra.mxu1 %v287_v47  ;;  %655 = vmatpush.msrb.mxu3 %v287_v47 }
 0x350   :  { %330 = vmatpush.msra.mxu1 %v286_v48  ;;  %656 = vmatpush.msrb.mxu3 %v286_v48  ;;  %v452_v48 = vld [vmem:[%s1069_s3 + $0x68] sm:$0xff] }
 0x352   :  { %331 = vmatpush.msra.mxu1 %v285_v49  ;;  %657 = vmatpush.msrb.mxu3 %v285_v49  ;;  %v456_v49 = vld [vmem:[%s1070_s4 + $0x8] sm:$0xff] }
 0x354   :  { %332 = vmatpush.msra.mxu1 %v284_v52  ;;  %658 = vmatpush.msrb.mxu3 %v284_v52  ;;  %v464_v52 = vld [vmem:[%s1070_s4 + $0x48] sm:$0xff] }
 0x355   :  { %635 = vmatmul.msk.f32.vlgmr.msrb.gmra.mxu3 %vm292_vm7, %v274_v50  ;;  %633 = vmatmul.msk.f32.vlgmr.msra.gmra.mxu1 %vm292_vm7, %v272_v51  ;;  %v460_v51 = vld [vmem:[%s1070_s4 + $0x28] sm:$0xff] }
 0x35d   :  { %636 = vmatmul.msk.f32.gmra.mxu3 %vm292_vm7, %v275_v53  ;;  %634 = vmatmul.msk.f32.gmra.mxu1 %vm292_vm7, %v273_v54  ;;  %v468_v53 = vld [vmem:[%s1070_s4 + $0x68] sm:$0xff] }
 0x365   :  { %637 = vmatmul.msk.f32.gmra.mxu3 %vm292_vm7, %v276_v58 }
 0x36d   :  { %638 = vmatmul.msk.f32.gmra.mxu3 %vm292_vm7, %v277_v59 }
 0x375   :  { %639 = vmatmul.msk.f32.gmra.mxu3 %vm292_vm7, %v278_v60 }
 0x37d   :  { %640 = vmatmul.msk.f32.gmra.mxu3 %vm292_vm7, %v279_v61 }
 0x3d2   :  { %v334_v63 = vpop.f32.mrf.mxu1 }
 0x3d3   :  { %641 = vmatmul.msk.f32.vlgmr.msrb.gmra.mxu0 %vm30_vm0, %v334_v63 }
 0x3d8   :  { %v340_v0 = vpop.f32.mrf.mxu3 }
 0x3d9   :  { %643 = vmatmul.msk.f32.vlgmr.msrb.gmra.mxu2 %vm30_vm0, %v340_v0 }
 0x3da   :  { %v337_v1 = vpop.f32.mrf.mxu1 }
 0x3db   :  { %642 = vmatmul.msk.f32.gmra.mxu0 %vm30_vm0, %v337_v1 }
 0x3e0   :  { %v343_v2 = vpop.f32.mrf.mxu3 }
 0x3e1   :  { %644 = vmatmul.msk.f32.gmra.mxu2 %vm30_vm0, %v343_v2 }
 0x3e8   :  { %v346_v3 = vpop.f32.mrf.mxu3 }
 0x3e9   :  { %645 = vmatmul.msk.f32.gmra.mxu2 %vm30_vm0, %v346_v3 }
 0x3f0   :  { %v349_v4 = vpop.f32.mrf.mxu3 }
 0x3f1   :  { %646 = vmatmul.msk.f32.gmra.mxu2 %vm30_vm0, %v349_v4 }
 0x3f8   :  { %v352_v5 = vpop.f32.mrf.mxu3 }
 0x3f9   :  { %647 = vmatmul.msk.f32.gmra.mxu2 %vm30_vm0, %v352_v5 }
 0x400   :  { %v355_v6 = vpop.f32.mrf.mxu3 }
 0x401   :  { %648 = vmatmul.msk.f32.gmra.mxu2 %vm30_vm0, %v355_v6 }
 0x450   :  { %v399_v7 = vpop.f32.mrf.mxu0 }
 0x451   :  { %423 = vst.msk [vmem:[#allocation2] sm:$0xff] %vm30_vm0, %v399_v7 }
 0x458   :  { %v402_v8 = vpop.f32.mrf.mxu0  ;;  %v431_v15 = vld [vmem:[#allocation2] sm:$0xff] }
 0x459   :  { %424 = vst.msk [vmem:[#allocation2 + $0x8] sm:$0xff] %vm30_vm0, %v402_v8  ;;  %v471_v21 = vmul.f32 %v439_v12, %v431_v15  ;;  %v475_v22 = vmul.f32 %v443_v13, %v431_v15  ;;  %v479_v23 = vmul.f32 %v447_v14, %v431_v15  ;;  %v483_v25 = vmul.f32 %v451_v16, %v431_v15 }
 0x45a   :  { %v535_v26 = vmul.f32 %v455_v17, %v431_v15  ;;  %v539_v34 = vmul.f32 %v459_v18, %v431_v15  ;;  %v543_v35 = vmul.f32 %v463_v19, %v431_v15  ;;  %v547_v43 = vmul.f32 %v467_v20, %v431_v15 }
 0x45c   :  { %v405_v9 = vpop.f32.mrf.mxu2 }
 0x45d   :  { %425 = vst.msk [vmem:[#allocation2 + $0x10] sm:$0xff] %vm30_vm0, %v405_v9 }
 0x460   :  { %v432_v46 = vld [vmem:[#allocation2 + $0x8] sm:$0xff] }
 0x461   :  { %v472_v55 = vmul.f32 %v440_v40, %v432_v46  ;;  %v476_v56 = vmul.f32 %v444_v44, %v432_v46  ;;  %v480_v57 = vmul.f32 %v448_v45, %v432_v46  ;;  %v484_v60 = vmul.f32 %v452_v48, %v432_v46 }
 0x462   :  { %v536_v61 = vmul.f32 %v456_v49, %v432_v46  ;;  %v540_v5 = vmul.f32 %v460_v51, %v432_v46  ;;  %v544_v6 = vmul.f32 %v464_v52, %v432_v46 }
 0x464   :  { %v408_v10 = vpop.f32.mrf.mxu2 }
 0x465   :  { %426 = vst.msk [vmem:[#allocation2 + $0x18] sm:$0xff] %vm30_vm0, %v408_v10 }
 0x46c   :  { %v411_v11 = vpop.f32.mrf.mxu2 }
 0x46d   :  { %427 = vst.msk [vmem:[#allocation2 + $0x20] sm:$0xff] %vm30_vm0, %v411_v11 }
 0x474   :  { %v435_v24 = vld [vmem:[#allocation2 + $0x20] sm:$0xff]  ;;  %v414_v27 = vpop.f32.mrf.mxu2 }
 0x475   :  { %v487_v28 = vmul.f32 %v455_v17, %v435_v24  ;;  %v491_v29 = vmul.f32 %v459_v18, %v435_v24  ;;  %v495_v30 = vmul.f32 %v463_v19, %v435_v24  ;;  %v499_v31 = vmul.f32 %v467_v20, %v435_v24  ;;  %428 = vst.msk [vmem:[#allocation2 + $0x28] sm:$0xff] %vm30_vm0, %v414_v27  ;;  %v441_v19 = vld [vmem:[%s1069_s3 + $0x10] sm:$0xff] }
 0x476   :  { %v519_v32 = vmul.f32 %v439_v12, %v435_v24  ;;  %v523_v33 = vmul.f32 %v443_v13, %v435_v24  ;;  %v527_v36 = vmul.f32 %v447_v14, %v435_v24  ;;  %v531_v41 = vmul.f32 %v451_v16, %v435_v24  ;;  %v433_v20 = vld [vmem:[#allocation2 + $0x10] sm:$0xff] }
 0x477   :  { %v503_v37 = vsub.f32 %v471_v21, %v487_v28  ;;  %v507_v38 = vsub.f32 %v475_v22, %v491_v29  ;;  %v511_v39 = vsub.f32 %v479_v23, %v495_v30  ;;  %v515_v42 = vsub.f32 %v483_v25, %v499_v31  ;;  %v445_v21 = vld [vmem:[%s1069_s3 + $0x30] sm:$0xff] }
 0x478   :  { %v551_v47 = vadd.f32 %v535_v26, %v519_v32  ;;  %v555_v50 = vadd.f32 %v539_v34, %v523_v33  ;;  %v559_v54 = vadd.f32 %v543_v35, %v527_v36  ;;  %v563_v58 = vadd.f32 %v547_v43, %v531_v41  ;;  %v449_v22 = vld [vmem:[%s1069_s3 + $0x50] sm:$0xff] }
 0x479   :  { %567 = vst.msk [vmem:[%s1071_s5] sm:$0xff] %vm30_vm0, %v503_v37  ;;  %v548_v13 = vmul.f32 %v468_v53, %v432_v46  ;;  %v453_v23 = vld [vmem:[%s1069_s3 + $0x70] sm:$0xff]  ;;  %v473_v28 = vmul.f32 %v441_v19, %v433_v20  ;;  %v477_v29 = vmul.f32 %v445_v21, %v433_v20  ;;  %v481_v30 = vmul.f32 %v449_v22, %v433_v20  ;;  %v434_v46 = vld [vmem:[#allocation2 + $0x18] sm:$0xff] }
 0x47a   :  { %571 = vst.msk [vmem:[%s1071_s5 + $0x20] sm:$0xff] %vm30_vm0, %v507_v38  ;;  %v457_v24 = vld [vmem:[%s1070_s4 + $0x10] sm:$0xff]  ;;  %v485_v36 = vmul.f32 %v453_v23, %v433_v20 }
 0x47b   :  { %575 = vst.msk [vmem:[%s1071_s5 + $0x40] sm:$0xff] %vm30_vm0, %v511_v39  ;;  %v461_v25 = vld [vmem:[%s1070_s4 + $0x30] sm:$0xff]  ;;  %v537_v37 = vmul.f32 %v457_v24, %v433_v20 }
 0x47c   :  { %579 = vst.msk [vmem:[%s1071_s5 + $0x60] sm:$0xff] %vm30_vm0, %v515_v42  ;;  %v436_v59 = vld [vmem:[#allocation2 + $0x28] sm:$0xff]  ;;  %v417_v2 = vpop.f32.mrf.mxu2  ;;  %v465_v26 = vld [vmem:[%s1070_s4 + $0x50] sm:$0xff] }
 0x47d   :  { %583 = vst.msk [vmem:[%s1072_s6] sm:$0xff] %vm30_vm0, %v551_v47  ;;  %v488_v62 = vmul.f32 %v456_v49, %v436_v59  ;;  %v492_v63 = vmul.f32 %v460_v51, %v436_v59  ;;  %v496_v0 = vmul.f32 %v464_v52, %v436_v59  ;;  %v500_v1 = vmul.f32 %v468_v53, %v436_v59  ;;  %v469_v27 = vld [vmem:[%s1070_s4 + $0x70] sm:$0xff]  ;;  %v442_v47 = vld [vmem:[%s1069_s3 + $0x18] sm:$0xff] }
 0x47e   :  { %587 = vst.msk [vmem:[%s1072_s6 + $0x20] sm:$0xff] %vm30_vm0, %v555_v50  ;;  %v520_v3 = vmul.f32 %v440_v40, %v436_v59  ;;  %v524_v4 = vmul.f32 %v444_v44, %v436_v59  ;;  %v528_v7 = vmul.f32 %v448_v45, %v436_v59  ;;  %v532_v11 = vmul.f32 %v452_v48, %v436_v59  ;;  %v458_v48 = vld [vmem:[%s1070_s4 + $0x18] sm:$0xff] }
 0x47f   :  { %591 = vst.msk [vmem:[%s1072_s6 + $0x40] sm:$0xff] %vm30_vm0, %v559_v54  ;;  %v504_v8 = vsub.f32 %v472_v55, %v488_v62  ;;  %v508_v9 = vsub.f32 %v476_v56, %v492_v63  ;;  %v512_v10 = vsub.f32 %v480_v57, %v496_v0  ;;  %v516_v12 = vsub.f32 %v484_v60, %v500_v1  ;;  %v446_v52 = vld [vmem:[%s1069_s3 + $0x38] sm:$0xff] }
 0x480   :  { %595 = vst.msk [vmem:[%s1072_s6 + $0x60] sm:$0xff] %vm30_vm0, %v563_v58  ;;  %v552_v14 = vadd.f32 %v536_v61, %v520_v3  ;;  %v556_v15 = vadd.f32 %v540_v5, %v524_v4  ;;  %v560_v16 = vadd.f32 %v544_v6, %v528_v7  ;;  %v564_v17 = vadd.f32 %v548_v13, %v532_v11  ;;  %v462_v53 = vld [vmem:[%s1070_s4 + $0x38] sm:$0xff] }
 0x481   :  { %568 = vst.msk [vmem:[%s1071_s5 + $0x8] sm:$0xff] %vm30_vm0, %v504_v8  ;;  %v541_v45 = vmul.f32 %v461_v25, %v433_v20  ;;  %v545_v51 = vmul.f32 %v465_v26, %v433_v20  ;;  %v549_v56 = vmul.f32 %v469_v27, %v433_v20  ;;  %v450_v57 = vld [vmem:[%s1069_s3 + $0x58] sm:$0xff]  ;;  %v474_v63 = vmul.f32 %v442_v47, %v434_v46 }
 0x482   :  { %572 = vst.msk [vmem:[%s1071_s5 + $0x28] sm:$0xff] %vm30_vm0, %v508_v9  ;;  %v466_v58 = vld [vmem:[%s1070_s4 + $0x58] sm:$0xff]  ;;  %v482_v5 = vmul.f32 %v450_v57, %v434_v46  ;;  %v538_v11 = vmul.f32 %v458_v48, %v434_v46 }
 0x483   :  { %576 = vst.msk [vmem:[%s1071_s5 + $0x48] sm:$0xff] %vm30_vm0, %v512_v10  ;;  %v454_v61 = vld [vmem:[%s1069_s3 + $0x78] sm:$0xff] }
 0x484   :  { %580 = vst.msk [vmem:[%s1071_s5 + $0x68] sm:$0xff] %vm30_vm0, %v516_v12  ;;  %v420_v18 = vpop.f32.mrf.mxu2  ;;  %v470_v62 = vld [vmem:[%s1070_s4 + $0x78] sm:$0xff]  ;;  %v486_v8 = vmul.f32 %v454_v61, %v434_v46 }
 0x485   :  { %584 = vst.msk [vmem:[%s1072_s6 + $0x8] sm:$0xff] %vm30_vm0, %v552_v14  ;;  %v542_v14 = vmul.f32 %v462_v53, %v434_v46 }
 0x486   :  { %588 = vst.msk [vmem:[%s1072_s6 + $0x28] sm:$0xff] %vm30_vm0, %v556_v15 }
 0x487   :  { %592 = vst.msk [vmem:[%s1072_s6 + $0x48] sm:$0xff] %vm30_vm0, %v560_v16 }
 0x488   :  { %596 = vst.msk [vmem:[%s1072_s6 + $0x68] sm:$0xff] %vm30_vm0, %v564_v17  ;;  %v546_v17 = vmul.f32 %v466_v58, %v434_v46 }
 0x489   :  { %429 = vst.msk [vmem:[#allocation2 + $0x30] sm:$0xff] %vm30_vm0, %v417_v2  ;;  %v478_v2 = vmul.f32 %v446_v52, %v434_v46 }
 0x48a   :  { %430 = vst.msk [vmem:[#allocation2 + $0x38] sm:$0xff] %vm30_vm0, %v420_v18 }
 0x490   :  { %v437_v31 = vld [vmem:[#allocation2 + $0x30] sm:$0xff] }
 0x491   :  { %v489_v32 = vmul.f32 %v457_v24, %v437_v31  ;;  %v493_v33 = vmul.f32 %v461_v25, %v437_v31  ;;  %v497_v34 = vmul.f32 %v465_v26, %v437_v31  ;;  %v501_v35 = vmul.f32 %v469_v27, %v437_v31  ;;  %v438_v40 = vld [vmem:[#allocation2 + $0x38] sm:$0xff] }
 0x492   :  { %v521_v38 = vmul.f32 %v441_v19, %v437_v31  ;;  %v525_v39 = vmul.f32 %v445_v21, %v437_v31  ;;  %v529_v44 = vmul.f32 %v449_v22, %v437_v31  ;;  %v533_v50 = vmul.f32 %v453_v23, %v437_v31 }
 0x493   :  { %v505_v41 = vsub.f32 %v473_v28, %v489_v32  ;;  %v509_v42 = vsub.f32 %v477_v29, %v493_v33  ;;  %v513_v43 = vsub.f32 %v481_v30, %v497_v34  ;;  %v517_v49 = vsub.f32 %v485_v36, %v501_v35 }
 0x494   :  { %v553_v54 = vadd.f32 %v537_v37, %v521_v38  ;;  %v490_v55 = vmul.f32 %v458_v48, %v438_v40  ;;  %v557_v59 = vadd.f32 %v541_v45, %v525_v39  ;;  %v494_v60 = vmul.f32 %v462_v53, %v438_v40 }
 0x495   :  { %569 = vst.msk [vmem:[%s1071_s5 + $0x10] sm:$0xff] %vm30_vm0, %v505_v41  ;;  %v561_v0 = vadd.f32 %v545_v51, %v529_v44  ;;  %v498_v1 = vmul.f32 %v466_v58, %v438_v40  ;;  %v565_v3 = vadd.f32 %v549_v56, %v533_v50  ;;  %v502_v4 = vmul.f32 %v470_v62, %v438_v40 }
 0x496   :  { %573 = vst.msk [vmem:[%s1071_s5 + $0x30] sm:$0xff] %vm30_vm0, %v509_v42  ;;  %v506_v6 = vsub.f32 %v474_v63, %v490_v55  ;;  %v522_v7 = vmul.f32 %v442_v47, %v438_v40  ;;  %v510_v9 = vsub.f32 %v478_v2, %v494_v60  ;;  %v526_v10 = vmul.f32 %v446_v52, %v438_v40 }
 0x497   :  { %577 = vst.msk [vmem:[%s1071_s5 + $0x50] sm:$0xff] %vm30_vm0, %v513_v43  ;;  %v514_v12 = vsub.f32 %v482_v5, %v498_v1  ;;  %v530_v13 = vmul.f32 %v450_v57, %v438_v40  ;;  %v518_v15 = vsub.f32 %v486_v8, %v502_v4  ;;  %v534_v16 = vmul.f32 %v454_v61, %v438_v40 }
 0x498   :  { %581 = vst.msk [vmem:[%s1071_s5 + $0x70] sm:$0xff] %vm30_vm0, %v517_v49  ;;  %v554_v18 = vadd.f32 %v538_v11, %v522_v7  ;;  %v550_v19 = vmul.f32 %v470_v62, %v434_v46  ;;  %v558_v20 = vadd.f32 %v542_v14, %v526_v10 }
 0x499   :  { %585 = vst.msk [vmem:[%s1072_s6 + $0x10] sm:$0xff] %vm30_vm0, %v553_v54  ;;  %v562_v21 = vadd.f32 %v546_v17, %v530_v13 }
 0x49a   :  { %589 = vst.msk [vmem:[%s1072_s6 + $0x30] sm:$0xff] %vm30_vm0, %v557_v59  ;;  %v566_v22 = vadd.f32 %v550_v19, %v534_v16 }
 0x49b   :  { %593 = vst.msk [vmem:[%s1072_s6 + $0x50] sm:$0xff] %vm30_vm0, %v561_v0 }
 0x49c   :  { %597 = vst.msk [vmem:[%s1072_s6 + $0x70] sm:$0xff] %vm30_vm0, %v565_v3 }
 0x49d   :  { %570 = vst.msk [vmem:[%s1071_s5 + $0x18] sm:$0xff] %vm30_vm0, %v506_v6 }
 0x49e   :  { %574 = vst.msk [vmem:[%s1071_s5 + $0x38] sm:$0xff] %vm30_vm0, %v510_v9 }
 0x49f   :  { %578 = vst.msk [vmem:[%s1071_s5 + $0x58] sm:$0xff] %vm30_vm0, %v514_v12 }
 0x4a0   :  { %582 = vst.msk [vmem:[%s1071_s5 + $0x78] sm:$0xff] %vm30_vm0, %v518_v15 }
 0x4a1   :  { %586 = vst.msk [vmem:[%s1072_s6 + $0x18] sm:$0xff] %vm30_vm0, %v554_v18 }
 0x4a2   :  { %590 = vst.msk [vmem:[%s1072_s6 + $0x38] sm:$0xff] %vm30_vm0, %v558_v20 }
 0x4a3   :  { %594 = vst.msk [vmem:[%s1072_s6 + $0x58] sm:$0xff] %vm30_vm0, %v562_v21 }
 0x4a4   :  { %598 = vst.msk [vmem:[%s1072_s6 + $0x78] sm:$0xff] %vm30_vm0, %v566_v22 }

// kernel: custom-call.5
= control target key start
LH: loop header
LB: loop body
LE: loop exit
PB: predicated region body
PF: predicated region fallthrough
CT: control target
= control target key end

     0   :  { %s217_s0 = inlined_call_operand.vmem [shape: c64[1,1,32,32,4], index: 0, kind: input, shape index: {}]   ;;  %s218_s1 = inlined_call_operand.vmem [shape: f32[1,1,32,32,4], index: 1, kind: output, shape index: {}]  }
   0x1   :  { %v80_v0 = vld [vmem:[%s217_s0 + $0x80] sm:$0xff]  ;;  %v81_v1 = vld [vmem:[%s217_s0 + $0x88] sm:$0xff]  ;;  %v83_v2 = vld [vmem:[%s217_s0 + $0x90] sm:$0xff] }
   0x2   :  { %4 = vst [vmem:[%s218_s1] sm:$0xff] %v80_v0  ;;  %v85_v3 = vld [vmem:[%s217_s0 + $0x98] sm:$0xff]  ;;  %v87_v4 = vld [vmem:[%s217_s0 + $0xa0] sm:$0xff]  ;;  %v89_v5 = vld [vmem:[%s217_s0 + $0xa8] sm:$0xff] }
   0x3   :  { %82 = vst [vmem:[%s218_s1 + $0x8] sm:$0xff] %v81_v1  ;;  %v91_v6 = vld [vmem:[%s217_s0 + $0xb0] sm:$0xff]  ;;  %v93_v7 = vld [vmem:[%s217_s0 + $0xb8] sm:$0xff]  ;;  %v95_v8 = vld [vmem:[%s217_s0 + $0xc0] sm:$0xff] }
   0x4   :  { %84 = vst [vmem:[%s218_s1 + $0x10] sm:$0xff] %v83_v2  ;;  %v97_v9 = vld [vmem:[%s217_s0 + $0xc8] sm:$0xff]  ;;  %v99_v10 = vld [vmem:[%s217_s0 + $0xd0] sm:$0xff]  ;;  %v101_v11 = vld [vmem:[%s217_s0 + $0xd8] sm:$0xff] }
   0x5   :  { %86 = vst [vmem:[%s218_s1 + $0x18] sm:$0xff] %v85_v3  ;;  %v103_v12 = vld [vmem:[%s217_s0 + $0xe0] sm:$0xff]  ;;  %v105_v13 = vld [vmem:[%s217_s0 + $0xe8] sm:$0xff]  ;;  %v107_v14 = vld [vmem:[%s217_s0 + $0xf0] sm:$0xff] }
   0x6   :  { %88 = vst [vmem:[%s218_s1 + $0x20] sm:$0xff] %v87_v4  ;;  %v109_v15 = vld [vmem:[%s217_s0 + $0xf8] sm:$0xff] }
   0x7   :  { %90 = vst [vmem:[%s218_s1 + $0x28] sm:$0xff] %v89_v5 }
   0x8   :  { %92 = vst [vmem:[%s218_s1 + $0x30] sm:$0xff] %v91_v6 }
   0x9   :  { %94 = vst [vmem:[%s218_s1 + $0x38] sm:$0xff] %v93_v7 }
   0xa   :  { %96 = vst [vmem:[%s218_s1 + $0x40] sm:$0xff] %v95_v8 }
   0xb   :  { %98 = vst [vmem:[%s218_s1 + $0x48] sm:$0xff] %v97_v9 }
   0xc   :  { %100 = vst [vmem:[%s218_s1 + $0x50] sm:$0xff] %v99_v10 }
   0xd   :  { %102 = vst [vmem:[%s218_s1 + $0x58] sm:$0xff] %v101_v11 }
   0xe   :  { %104 = vst [vmem:[%s218_s1 + $0x60] sm:$0xff] %v103_v12 }
   0xf   :  { %106 = vst [vmem:[%s218_s1 + $0x68] sm:$0xff] %v105_v13 }
  0x10   :  { %108 = vst [vmem:[%s218_s1 + $0x70] sm:$0xff] %v107_v14 }
  0x11   :  { %110 = vst [vmem:[%s218_s1 + $0x78] sm:$0xff] %v109_v15 }

// kernel: custom-call.4
= control target key start
LH: loop header
LB: loop body
LE: loop exit
PB: predicated region body
PF: predicated region fallthrough
CT: control target
= control target key end

     0   :  { %s200_s0 = inlined_call_operand.vmem [shape: c64[1,1,32,32,4], index: 0, kind: input, shape index: {}]   ;;  %s201_s1 = inlined_call_operand.vmem [shape: f32[1,1,32,32,4], index: 1, kind: output, shape index: {}]  }
   0x1   :  { %v2_v0 = vld [vmem:[%s200_s0] sm:$0xff]  ;;  %v64_v1 = vld [vmem:[%s200_s0 + $0x8] sm:$0xff]  ;;  %v66_v2 = vld [vmem:[%s200_s0 + $0x10] sm:$0xff] }
   0x2   :  { %3 = vst [vmem:[%s201_s1] sm:$0xff] %v2_v0  ;;  %v68_v3 = vld [vmem:[%s200_s0 + $0x18] sm:$0xff]  ;;  %v70_v4 = vld [vmem:[%s200_s0 + $0x20] sm:$0xff]  ;;  %v72_v5 = vld [vmem:[%s200_s0 + $0x28] sm:$0xff] }
   0x3   :  { %65 = vst [vmem:[%s201_s1 + $0x8] sm:$0xff] %v64_v1  ;;  %v74_v6 = vld [vmem:[%s200_s0 + $0x30] sm:$0xff]  ;;  %v76_v7 = vld [vmem:[%s200_s0 + $0x38] sm:$0xff]  ;;  %v78_v8 = vld [vmem:[%s200_s0 + $0x40] sm:$0xff] }
   0x4   :  { %67 = vst [vmem:[%s201_s1 + $0x10] sm:$0xff] %v66_v2  ;;  %v80_v9 = vld [vmem:[%s200_s0 + $0x48] sm:$0xff]  ;;  %v82_v10 = vld [vmem:[%s200_s0 + $0x50] sm:$0xff]  ;;  %v84_v11 = vld [vmem:[%s200_s0 + $0x58] sm:$0xff] }
   0x5   :  { %69 = vst [vmem:[%s201_s1 + $0x18] sm:$0xff] %v68_v3  ;;  %v86_v12 = vld [vmem:[%s200_s0 + $0x60] sm:$0xff]  ;;  %v88_v13 = vld [vmem:[%s200_s0 + $0x68] sm:$0xff]  ;;  %v90_v14 = vld [vmem:[%s200_s0 + $0x70] sm:$0xff] }
   0x6   :  { %71 = vst [vmem:[%s201_s1 + $0x20] sm:$0xff] %v70_v4  ;;  %v92_v15 = vld [vmem:[%s200_s0 + $0x78] sm:$0xff] }
   0x7   :  { %73 = vst [vmem:[%s201_s1 + $0x28] sm:$0xff] %v72_v5 }
   0x8   :  { %75 = vst [vmem:[%s201_s1 + $0x30] sm:$0xff] %v74_v6 }
   0x9   :  { %77 = vst [vmem:[%s201_s1 + $0x38] sm:$0xff] %v76_v7 }
   0xa   :  { %79 = vst [vmem:[%s201_s1 + $0x40] sm:$0xff] %v78_v8 }
   0xb   :  { %81 = vst [vmem:[%s201_s1 + $0x48] sm:$0xff] %v80_v9 }
   0xc   :  { %83 = vst [vmem:[%s201_s1 + $0x50] sm:$0xff] %v82_v10 }
   0xd   :  { %85 = vst [vmem:[%s201_s1 + $0x58] sm:$0xff] %v84_v11 }
   0xe   :  { %87 = vst [vmem:[%s201_s1 + $0x60] sm:$0xff] %v86_v12 }
   0xf   :  { %89 = vst [vmem:[%s201_s1 + $0x68] sm:$0xff] %v88_v13 }
  0x10   :  { %91 = vst [vmem:[%s201_s1 + $0x70] sm:$0xff] %v90_v14 }
  0x11   :  { %93 = vst [vmem:[%s201_s1 + $0x78] sm:$0xff] %v92_v15 }

// kernel: zs_unrolled_network_onenet.24
= control target key start
LH: loop header
LB: loop body
LE: loop exit
PB: predicated region body
PF: predicated region fallthrough
CT: control target
= control target key end

     0   :  { %vm90_vm0 = vcmask 261120   ;;  %s602_s0 = inlined_call_operand.vmem [shape: f32[4,32,32], index: 0, kind: input, shape index: {}]   ;;  %s603_s2 = inlined_call_operand.vmem [shape: f32[4,32,32], index: 2, kind: input, shape index: {}]   ;;  %s604_s4 = inlined_call_operand.vmem [shape: f32[1,32,32], index: 4, kind: input, shape index: {}]   ;;  %s605_s5 = inlined_call_operand.vmem [shape: f32[4,32,32], index: 5, kind: output, shape index: {0}]   ;;  %s606_s1 = inlined_call_operand.vmem [shape: f32[4,32,32], index: 1, kind: input, shape index: {}]   ;;  %s607_s3 = inlined_call_operand.vmem [shape: f32[4,32,32], index: 3, kind: input, shape index: {}]   ;;  %s608_s6 = inlined_call_operand.vmem [shape: f32[4,32,32], index: 6, kind: output, shape index: {1}]  }
   0x1   :  { %v233_v0 = vld [vmem:[%s604_s4] sm:$0xff]  ;;  %v245_v4 = vld [vmem:[%s604_s4 + $0x8] sm:$0xff]  ;;  %v257_v8 = vld [vmem:[%s604_s4 + $0x10] sm:$0xff] }
   0x2   :  { %v26_v1 = vld [vmem:[%s602_s0] sm:$0xff]  ;;  %v27_v5 = vld [vmem:[%s602_s0 + $0x8] sm:$0xff]  ;;  %v28_v9 = vld [vmem:[%s602_s0 + $0x10] sm:$0xff] }
   0x3   :  { %v58_v2 = vld [vmem:[%s603_s2] sm:$0xff]  ;;  %v42_v3 = vmul.f32 %v26_v1, %v233_v0  ;;  %v59_v6 = vld [vmem:[%s603_s2 + $0x8] sm:$0xff]  ;;  %v43_v7 = vmul.f32 %v27_v5, %v245_v4  ;;  %v60_v10 = vld [vmem:[%s603_s2 + $0x10] sm:$0xff]  ;;  %v44_v12 = vmul.f32 %v28_v9, %v257_v8 }
   0x4   :  { %v269_v13 = vld [vmem:[%s604_s4 + $0x18] sm:$0xff]  ;;  %v30_v18 = vld [vmem:[%s602_s0 + $0x20] sm:$0xff]  ;;  %v31_v20 = vld [vmem:[%s602_s0 + $0x28] sm:$0xff] }
   0x5   :  { %v74_v11 = vsub.f32 %v42_v3, %v58_v2  ;;  %v29_v14 = vld [vmem:[%s602_s0 + $0x18] sm:$0xff]  ;;  %v75_v16 = vsub.f32 %v43_v7, %v59_v6  ;;  %v62_v19 = vld [vmem:[%s603_s2 + $0x20] sm:$0xff]  ;;  %v76_v21 = vsub.f32 %v44_v12, %v60_v10  ;;  %v46_v22 = vmul.f32 %v30_v18, %v233_v0  ;;  %v63_v24 = vld [vmem:[%s603_s2 + $0x28] sm:$0xff] }
   0x6   :  { %v61_v15 = vld [vmem:[%s603_s2 + $0x18] sm:$0xff]  ;;  %v45_v17 = vmul.f32 %v29_v14, %v269_v13  ;;  %v47_v23 = vmul.f32 %v31_v20, %v245_v4  ;;  %v32_v25 = vld [vmem:[%s602_s0 + $0x30] sm:$0xff]  ;;  %v34_v31 = vld [vmem:[%s602_s0 + $0x40] sm:$0xff] }
   0x7   :  { %91 = vst.msk [vmem:[%s605_s5] sm:$0xff] %vm90_vm0, %v74_v11  ;;  %v64_v26 = vld [vmem:[%s603_s2 + $0x30] sm:$0xff]  ;;  %v48_v28 = vmul.f32 %v32_v25, %v257_v8  ;;  %v33_v29 = vld [vmem:[%s602_s0 + $0x38] sm:$0xff]  ;;  %v78_v32 = vsub.f32 %v46_v22, %v62_v19  ;;  %v50_v35 = vmul.f32 %v34_v31, %v233_v0  ;;  %v66_v36 = vld [vmem:[%s603_s2 + $0x40] sm:$0xff] }
   0x8   :  { %92 = vst.msk [vmem:[%s605_s5 + $0x8] sm:$0xff] %vm90_vm0, %v75_v16  ;;  %v77_v27 = vsub.f32 %v45_v17, %v61_v15  ;;  %v65_v30 = vld [vmem:[%s603_s2 + $0x38] sm:$0xff]  ;;  %v79_v33 = vsub.f32 %v47_v23, %v63_v24  ;;  %v49_v34 = vmul.f32 %v33_v29, %v269_v13  ;;  %v35_v37 = vld [vmem:[%s602_s0 + $0x48] sm:$0xff]  ;;  %v36_v41 = vld [vmem:[%s602_s0 + $0x50] sm:$0xff] }
   0x9   :  { %93 = vst.msk [vmem:[%s605_s5 + $0x10] sm:$0xff] %vm90_vm0, %v76_v21  ;;  %v67_v38 = vld [vmem:[%s603_s2 + $0x48] sm:$0xff]  ;;  %v80_v39 = vsub.f32 %v48_v28, %v64_v26  ;;  %v51_v40 = vmul.f32 %v35_v37, %v245_v4  ;;  %v68_v42 = vld [vmem:[%s603_s2 + $0x50] sm:$0xff]  ;;  %v37_v43 = vld [vmem:[%s602_s0 + $0x58] sm:$0xff]  ;;  %v82_v45 = vsub.f32 %v50_v35, %v66_v36  ;;  %v52_v46 = vmul.f32 %v36_v41, %v257_v8 }
   0xa   :  { %94 = vst.msk [vmem:[%s605_s5 + $0x18] sm:$0xff] %vm90_vm0, %v77_v27  ;;  %v81_v44 = vsub.f32 %v49_v34, %v65_v30  ;;  %v53_v47 = vmul.f32 %v37_v43, %v269_v13  ;;  %v69_v48 = vld [vmem:[%s603_s2 + $0x58] sm:$0xff]  ;;  %v38_v49 = vld [vmem:[%s602_s0 + $0x60] sm:$0xff]  ;;  %v39_v53 = vld [vmem:[%s602_s0 + $0x68] sm:$0xff] }
   0xb   :  { %95 = vst.msk [vmem:[%s605_s5 + $0x20] sm:$0xff] %vm90_vm0, %v78_v32  ;;  %v83_v50 = vsub.f32 %v51_v40, %v67_v38  ;;  %v54_v51 = vmul.f32 %v38_v49, %v233_v0  ;;  %v70_v52 = vld [vmem:[%s603_s2 + $0x60] sm:$0xff]  ;;  %v40_v54 = vld [vmem:[%s602_s0 + $0x70] sm:$0xff]  ;;  %v84_v55 = vsub.f32 %v52_v46, %v68_v42  ;;  %v55_v56 = vmul.f32 %v39_v53, %v245_v4  ;;  %v71_v57 = vld [vmem:[%s603_s2 + $0x68] sm:$0xff] }
   0xc   :  { %96 = vst.msk [vmem:[%s605_s5 + $0x28] sm:$0xff] %vm90_vm0, %v79_v33  ;;  %v56_v58 = vmul.f32 %v40_v54, %v257_v8  ;;  %v41_v59 = vld [vmem:[%s602_s0 + $0x78] sm:$0xff]  ;;  %v85_v60 = vsub.f32 %v53_v47, %v69_v48  ;;  %v72_v61 = vld [vmem:[%s603_s2 + $0x70] sm:$0xff]  ;;  %v107_v63 = vld [vmem:[%s606_s1] sm:$0xff] }
   0xd   :  { %97 = vst.msk [vmem:[%s605_s5 + $0x30] sm:$0xff] %vm90_vm0, %v80_v39  ;;  %v57_v62 = vmul.f32 %v41_v59, %v269_v13  ;;  %v108_v1 = vld [vmem:[%s606_s1 + $0x8] sm:$0xff]  ;;  %v86_v2 = vsub.f32 %v54_v51, %v70_v52  ;;  %v73_v3 = vld [vmem:[%s603_s2 + $0x78] sm:$0xff]  ;;  %v123_v5 = vmul.f32 %v107_v63, %v233_v0  ;;  %v109_v6 = vld [vmem:[%s606_s1 + $0x10] sm:$0xff]  ;;  %v87_v7 = vsub.f32 %v55_v56, %v71_v57 }
   0xe   :  { %98 = vst.msk [vmem:[%s605_s5 + $0x38] sm:$0xff] %vm90_vm0, %v81_v44  ;;  %v139_v9 = vld [vmem:[%s607_s3] sm:$0xff]  ;;  %v124_v10 = vmul.f32 %v108_v1, %v245_v4  ;;  %v110_v11 = vld [vmem:[%s606_s1 + $0x18] sm:$0xff]  ;;  %v88_v14 = vsub.f32 %v56_v58, %v72_v61  ;;  %v140_v15 = vld [vmem:[%s607_s3 + $0x8] sm:$0xff]  ;;  %v125_v16 = vmul.f32 %v109_v6, %v257_v8 }
   0xf   :  { %99 = vst.msk [vmem:[%s605_s5 + $0x40] sm:$0xff] %vm90_vm0, %v82_v45  ;;  %v111_v12 = vld [vmem:[%s606_s1 + $0x20] sm:$0xff]  ;;  %v112_v17 = vld [vmem:[%s606_s1 + $0x28] sm:$0xff]  ;;  %v89_v18 = vsub.f32 %v57_v62, %v73_v3  ;;  %v141_v19 = vld [vmem:[%s607_s3 + $0x10] sm:$0xff]  ;;  %v126_v20 = vmul.f32 %v110_v11, %v269_v13  ;;  %v155_v22 = vsub.f32 %v123_v5, %v139_v9 }
  0x10   :  { %100 = vst.msk [vmem:[%s605_s5 + $0x48] sm:$0xff] %vm90_vm0, %v83_v50  ;;  %v113_v21 = vld [vmem:[%s606_s1 + $0x30] sm:$0xff]  ;;  %v142_v23 = vld [vmem:[%s607_s3 + $0x18] sm:$0xff]  ;;  %v127_v24 = vmul.f32 %v111_v12, %v233_v0  ;;  %v156_v26 = vsub.f32 %v124_v10, %v140_v15  ;;  %v143_v27 = vld [vmem:[%s607_s3 + $0x20] sm:$0xff]  ;;  %v128_v28 = vmul.f32 %v112_v17, %v245_v4  ;;  %v157_v30 = vsub.f32 %v125_v16, %v141_v19 }
  0x11   :  { %101 = vst.msk [vmem:[%s605_s5 + $0x50] sm:$0xff] %vm90_vm0, %v84_v55  ;;  %v114_v25 = vld [vmem:[%s606_s1 + $0x38] sm:$0xff]  ;;  %v115_v29 = vld [vmem:[%s606_s1 + $0x40] sm:$0xff]  ;;  %v144_v31 = vld [vmem:[%s607_s3 + $0x28] sm:$0xff]  ;;  %v129_v32 = vmul.f32 %v113_v21, %v257_v8  ;;  %v158_v34 = vsub.f32 %v126_v20, %v142_v23 }
  0x12   :  { %102 = vst.msk [vmem:[%s605_s5 + $0x58] sm:$0xff] %vm90_vm0, %v85_v60  ;;  %v116_v33 = vld [vmem:[%s606_s1 + $0x48] sm:$0xff]  ;;  %v145_v35 = vld [vmem:[%s607_s3 + $0x30] sm:$0xff]  ;;  %v130_v36 = vmul.f32 %v114_v25, %v269_v13  ;;  %v159_v38 = vsub.f32 %v127_v24, %v143_v27  ;;  %v146_v39 = vld [vmem:[%s607_s3 + $0x38] sm:$0xff]  ;;  %v131_v40 = vmul.f32 %v115_v29, %v233_v0  ;;  %v160_v42 = vsub.f32 %v128_v28, %v144_v31 }
  0x13   :  { %103 = vst.msk [vmem:[%s605_s5 + $0x60] sm:$0xff] %vm90_vm0, %v86_v2  ;;  %v117_v37 = vld [vmem:[%s606_s1 + $0x50] sm:$0xff]  ;;  %v118_v41 = vld [vmem:[%s606_s1 + $0x58] sm:$0xff]  ;;  %v147_v43 = vld [vmem:[%s607_s3 + $0x40] sm:$0xff]  ;;  %v132_v44 = vmul.f32 %v116_v33, %v245_v4  ;;  %v161_v46 = vsub.f32 %v129_v32, %v145_v35 }
  0x14   :  { %104 = vst.msk [vmem:[%s605_s5 + $0x68] sm:$0xff] %vm90_vm0, %v87_v7  ;;  %v119_v45 = vld [vmem:[%s606_s1 + $0x60] sm:$0xff]  ;;  %v148_v47 = vld [vmem:[%s607_s3 + $0x48] sm:$0xff]  ;;  %v133_v48 = vmul.f32 %v117_v37, %v257_v8  ;;  %v162_v50 = vsub.f32 %v130_v36, %v146_v39  ;;  %v149_v51 = vld [vmem:[%s607_s3 + $0x50] sm:$0xff]  ;;  %v134_v52 = vmul.f32 %v118_v41, %v269_v13  ;;  %v163_v54 = vsub.f32 %v131_v40, %v147_v43 }
  0x15   :  { %105 = vst.msk [vmem:[%s605_s5 + $0x70] sm:$0xff] %vm90_vm0, %v88_v14  ;;  %v120_v49 = vld [vmem:[%s606_s1 + $0x68] sm:$0xff]  ;;  %v121_v53 = vld [vmem:[%s606_s1 + $0x70] sm:$0xff]  ;;  %v150_v55 = vld [vmem:[%s607_s3 + $0x58] sm:$0xff]  ;;  %v135_v56 = vmul.f32 %v119_v45, %v233_v0  ;;  %v164_v58 = vsub.f32 %v132_v44, %v148_v47 }
  0x16   :  { %106 = vst.msk [vmem:[%s605_s5 + $0x78] sm:$0xff] %vm90_vm0, %v89_v18  ;;  %v122_v57 = vld [vmem:[%s606_s1 + $0x78] sm:$0xff]  ;;  %v151_v59 = vld [vmem:[%s607_s3 + $0x60] sm:$0xff]  ;;  %v136_v60 = vmul.f32 %v120_v49, %v245_v4  ;;  %v165_v0 = vsub.f32 %v133_v48, %v149_v51  ;;  %v152_v61 = vld [vmem:[%s607_s3 + $0x68] sm:$0xff]  ;;  %v137_v62 = vmul.f32 %v121_v53, %v257_v8  ;;  %v166_v63 = vsub.f32 %v134_v52, %v150_v55 }
  0x17   :  { %171 = vst.msk [vmem:[%s608_s6] sm:$0xff] %vm90_vm0, %v155_v22  ;;  %v153_v4 = vld [vmem:[%s607_s3 + $0x70] sm:$0xff]  ;;  %v138_v1 = vmul.f32 %v122_v57, %v269_v13  ;;  %v167_v2 = vsub.f32 %v135_v56, %v151_v59  ;;  %v154_v8 = vld [vmem:[%s607_s3 + $0x78] sm:$0xff] }
  0x18   :  { %172 = vst.msk [vmem:[%s608_s6 + $0x8] sm:$0xff] %vm90_vm0, %v156_v26  ;;  %v168_v3 = vsub.f32 %v136_v60, %v152_v61  ;;  %v169_v13 = vsub.f32 %v137_v62, %v153_v4 }
  0x19   :  { %173 = vst.msk [vmem:[%s608_s6 + $0x10] sm:$0xff] %vm90_vm0, %v157_v30  ;;  %v170_v5 = vsub.f32 %v138_v1, %v154_v8 }
  0x1a   :  { %174 = vst.msk [vmem:[%s608_s6 + $0x18] sm:$0xff] %vm90_vm0, %v158_v34 }
  0x1b   :  { %175 = vst.msk [vmem:[%s608_s6 + $0x20] sm:$0xff] %vm90_vm0, %v159_v38 }
  0x1c   :  { %176 = vst.msk [vmem:[%s608_s6 + $0x28] sm:$0xff] %vm90_vm0, %v160_v42 }
  0x1d   :  { %177 = vst.msk [vmem:[%s608_s6 + $0x30] sm:$0xff] %vm90_vm0, %v161_v46 }
  0x1e   :  { %178 = vst.msk [vmem:[%s608_s6 + $0x38] sm:$0xff] %vm90_vm0, %v162_v50 }
  0x1f   :  { %179 = vst.msk [vmem:[%s608_s6 + $0x40] sm:$0xff] %vm90_vm0, %v163_v54 }
  0x20   :  { %180 = vst.msk [vmem:[%s608_s6 + $0x48] sm:$0xff] %vm90_vm0, %v164_v58 }
  0x21   :  { %181 = vst.msk [vmem:[%s608_s6 + $0x50] sm:$0xff] %vm90_vm0, %v165_v0 }
  0x22   :  { %182 = vst.msk [vmem:[%s608_s6 + $0x58] sm:$0xff] %vm90_vm0, %v166_v63 }
  0x23   :  { %183 = vst.msk [vmem:[%s608_s6 + $0x60] sm:$0xff] %vm90_vm0, %v167_v2 }
  0x24   :  { %184 = vst.msk [vmem:[%s608_s6 + $0x68] sm:$0xff] %vm90_vm0, %v168_v3 }
  0x25   :  { %185 = vst.msk [vmem:[%s608_s6 + $0x70] sm:$0xff] %vm90_vm0, %v169_v13 }
  0x26   :  { %186 = vst.msk [vmem:[%s608_s6 + $0x78] sm:$0xff] %vm90_vm0, %v170_v5 }

// kernel: zs_unrolled_network_onenet.27
= control target key start
LH: loop header
LB: loop body
LE: loop exit
PB: predicated region body
PF: predicated region fallthrough
CT: control target
= control target key end

     0   :  { %vm169_vm0 = vcmask 261120   ;;  %s816_s0 = inlined_call_operand.vmem [shape: f32[4,32,32], index: 0, kind: input, shape index: {}]   ;;  %s817_s1 = inlined_call_operand.vmem [shape: f32[4,32,32], index: 1, kind: input, shape index: {}]   ;;  %s818_s2 = inlined_call_operand.vmem [shape: f32[4,32,32], index: 2, kind: input, shape index: {}]   ;;  %s819_s3 = inlined_call_operand.vmem [shape: f32[4,32,32], index: 3, kind: input, shape index: {}]   ;;  %s820_s4 = inlined_call_operand.vmem [shape: f32[1,32,32], index: 4, kind: input, shape index: {}]   ;;  %s821_s5 = inlined_call_operand.vmem [shape: f32[1,2], index: 5, kind: output, shape index: {}]  }
   0x1   :  { %v370_v0 = vld [vmem:[%s820_s4] sm:$0xff]  ;;  %v375_v1 = vld [vmem:[%s820_s4 + $0x8] sm:$0xff]  ;;  %v380_v2 = vld [vmem:[%s820_s4 + $0x10] sm:$0xff] }
   0x2   :  { %v385_v3 = vld [vmem:[%s820_s4 + $0x18] sm:$0xff]  ;;  %v25_v4 = vld [vmem:[%s818_s2] sm:$0xff]  ;;  %v26_v5 = vld [vmem:[%s818_s2 + $0x8] sm:$0xff] }
   0x3   :  { %v27_v6 = vld [vmem:[%s818_s2 + $0x10] sm:$0xff]  ;;  %v28_v7 = vld [vmem:[%s818_s2 + $0x18] sm:$0xff]  ;;  %v29_v8 = vld [vmem:[%s818_s2 + $0x20] sm:$0xff]  ;;  %v41_v15 = vmul.f32 %v25_v4, %v370_v0  ;;  %v42_v21 = vmul.f32 %v26_v5, %v375_v1 }
   0x4   :  { %v30_v9 = vld [vmem:[%s818_s2 + $0x28] sm:$0xff]  ;;  %v31_v10 = vld [vmem:[%s818_s2 + $0x30] sm:$0xff]  ;;  %v32_v11 = vld [vmem:[%s818_s2 + $0x38] sm:$0xff]  ;;  %v43_v22 = vmul.f32 %v27_v6, %v380_v2  ;;  %v44_v23 = vmul.f32 %v28_v7, %v385_v3  ;;  %v440_v24 = vmul.f32 %v29_v8, %v370_v0 }
   0x5   :  { %v33_v12 = vld [vmem:[%s818_s2 + $0x40] sm:$0xff]  ;;  %v34_v14 = vld [vmem:[%s818_s2 + $0x48] sm:$0xff]  ;;  %v59_v17 = vld [vmem:[%s819_s3 + $0x10] sm:$0xff]  ;;  %v449_v27 = vmul.f32 %v30_v9, %v375_v1  ;;  %v452_v28 = vmul.f32 %v31_v10, %v380_v2  ;;  %v455_v29 = vmul.f32 %v32_v11, %v385_v3  ;;  %v481_v38 = vmul.f32 %v41_v15, %v41_v15 }
   0x6   :  { %v57_v13 = vld [vmem:[%s819_s3] sm:$0xff]  ;;  %v58_v16 = vld [vmem:[%s819_s3 + $0x8] sm:$0xff]  ;;  %v35_v18 = vld [vmem:[%s818_s2 + $0x50] sm:$0xff]  ;;  %v467_v33 = vmul.f32 %v33_v12, %v370_v0  ;;  %v476_v36 = vmul.f32 %v59_v17, %v380_v2  ;;  %v484_v39 = vmul.f32 %v34_v14, %v375_v1  ;;  %v501_v45 = vmul.f32 %v42_v21, %v42_v21 }
   0x7   :  { %v36_v19 = vld [vmem:[%s818_s2 + $0x58] sm:$0xff]  ;;  %v37_v20 = vld [vmem:[%s818_s2 + $0x60] sm:$0xff]  ;;  %v38_v25 = vld [vmem:[%s818_s2 + $0x68] sm:$0xff]  ;;  %v461_v31 = vmul.f32 %v57_v13, %v370_v0  ;;  %v473_v35 = vmul.f32 %v58_v16, %v375_v1  ;;  %v487_v40 = vmul.f32 %v35_v18, %v380_v2  ;;  %v521_v52 = vmul.f32 %v43_v22, %v43_v22 }
   0x8   :  { %v39_v26 = vld [vmem:[%s818_s2 + $0x70] sm:$0xff]  ;;  %v60_v30 = vld [vmem:[%s819_s3 + $0x18] sm:$0xff]  ;;  %v61_v34 = vld [vmem:[%s819_s3 + $0x20] sm:$0xff]  ;;  %v490_v41 = vmul.f32 %v36_v19, %v385_v3  ;;  %v504_v46 = vmul.f32 %v37_v20, %v370_v0  ;;  %v507_v47 = vmul.f32 %v38_v25, %v375_v1  ;;  %v562_v11 = vmul.f32 %v44_v23, %v44_v23 }
   0x9   :  { %v40_v32 = vld [vmem:[%s818_s2 + $0x78] sm:$0xff]  ;;  %v89_v37 = vld [vmem:[%s816_s0] sm:$0xff]  ;;  %v62_v42 = vld [vmem:[%s819_s3 + $0x28] sm:$0xff]  ;;  %v513_v49 = vmul.f32 %v60_v30, %v385_v3  ;;  %v524_v53 = vmul.f32 %v39_v26, %v380_v2  ;;  %v527_v54 = vmul.f32 %v61_v34, %v370_v0  ;;  %v566_v12 = vmul.f32 %v440_v24, %v440_v24 }
   0xa   :  { %v90_v43 = vld [vmem:[%s816_s0 + $0x8] sm:$0xff]  ;;  %v91_v44 = vld [vmem:[%s816_s0 + $0x10] sm:$0xff]  ;;  %v121_v50 = vld [vmem:[%s817_s1] sm:$0xff]  ;;  %v105_v56 = vmul.f32 %v89_v37, %v41_v15  ;;  %v551_v7 = vmul.f32 %v40_v32, %v385_v3  ;;  %v554_v8 = vmul.f32 %v62_v42, %v375_v1  ;;  %v583_v19 = vmul.f32 %v449_v27, %v449_v27 }
   0xb   :  { %v63_v48 = vld [vmem:[%s819_s3 + $0x30] sm:$0xff]  ;;  %v122_v51 = vld [vmem:[%s817_s1 + $0x8] sm:$0xff]  ;;  %v92_v55 = vld [vmem:[%s816_s0 + $0x18] sm:$0xff]  ;;  %v137_v59 = vmul.f32 %v121_v50, %v461_v31  ;;  %v106_v63 = vmul.f32 %v90_v43, %v42_v21  ;;  %v107_v4 = vmul.f32 %v91_v44, %v43_v22 }
   0xc   :  { %v123_v57 = vld [vmem:[%s817_s1 + $0x10] sm:$0xff]  ;;  %v124_v58 = vld [vmem:[%s817_s1 + $0x18] sm:$0xff]  ;;  %v65_v61 = vld [vmem:[%s819_s3 + $0x40] sm:$0xff]  ;;  %v138_v5 = vmul.f32 %v122_v51, %v473_v35  ;;  %v578_v16 = vmul.f32 %v63_v48, %v380_v2  ;;  %v108_v17 = vmul.f32 %v92_v55, %v44_v23 }
   0xd   :  { %v64_v60 = vld [vmem:[%s819_s3 + $0x38] sm:$0xff]  ;;  %v66_v62 = vld [vmem:[%s819_s3 + $0x48] sm:$0xff]  ;;  %v139_v6 = vmul.f32 %v123_v57, %v476_v36  ;;  %v93_v9 = vld [vmem:[%s816_s0 + $0x20] sm:$0xff]  ;;  %v140_v18 = vmul.f32 %v124_v58, %v513_v49  ;;  %v589_v21 = vmul.f32 %v65_v61, %v370_v0  ;;  %v153_v26 = vadd.f32 %v137_v59, %v105_v56 }
   0xe   :  { %v125_v10 = vld [vmem:[%s817_s1 + $0x20] sm:$0xff]  ;;  %v67_v13 = vld [vmem:[%s819_s3 + $0x50] sm:$0xff]  ;;  %v68_v14 = vld [vmem:[%s819_s3 + $0x58] sm:$0xff]  ;;  %v586_v20 = vmul.f32 %v64_v60, %v385_v3  ;;  %v592_v22 = vmul.f32 %v66_v62, %v375_v1 }
   0xf   :  { %v69_v15 = vld [vmem:[%s819_s3 + $0x60] sm:$0xff]  ;;  %v94_v25 = vld [vmem:[%s816_s0 + $0x28] sm:$0xff] }
  0x10   :  { %v126_v23 = vld [vmem:[%s817_s1 + $0x28] sm:$0xff] }
  0x11   :  { %10 = vsyncpa [#allocation3], 0  ;;  %v70_v30 = vld [vmem:[%s819_s3 + $0x68] sm:$0xff]  ;;  %v71_v32 = vld [vmem:[%s819_s3 + $0x70] sm:$0xff]  ;;  %v109_v37 = vmul.f32 %v93_v9, %v440_v24  ;;  %v141_v42 = vmul.f32 %v125_v10, %v527_v54  ;;  %v154_v43 = vadd.f32 %v138_v5, %v106_v63  ;;  %v155_v44 = vadd.f32 %v139_v6, %v107_v4  ;;  %s307_s19 = sshll.u32 %s821_s5, 4  ;;  %s336_s21 = smov [#allocation2]   ;;  %s308_s19 = int_to_ptr.vmem [resolvable:$true] %s307_s19 }
  0x12   :  { %v95_v34 = vld [vmem:[%s816_s0 + $0x30] sm:$0xff]  ;;  %v612_v48 = vmul.f32 %v67_v13, %v380_v2  ;;  %v615_v50 = vmul.f32 %v68_v14, %v385_v3  ;;  %v618_v51 = vmul.f32 %v69_v15, %v370_v0  ;;  %v625_v24 = vmul.f32 %v452_v28, %v452_v28  ;;  %v72_v56 = vld [vmem:[%s819_s3 + $0x78] sm:$0xff]  ;;  %v129_v13 = vld [vmem:[%s817_s1 + $0x40] sm:$0xff] }
  0x13   :  { %v127_v55 = vld [vmem:[%s817_s1 + $0x30] sm:$0xff]  ;;  %v110_v57 = vmul.f32 %v94_v25, %v449_v27  ;;  %v142_v58 = vmul.f32 %v126_v23, %v554_v8  ;;  %v156_v59 = vadd.f32 %v140_v18, %v108_v17  ;;  %v634_v0 = vmul.f32 %v455_v29, %v455_v29  ;;  %v96_v62 = vld [vmem:[%s816_s0 + $0x38] sm:$0xff] }
  0x14   :  { %v637_v60 = vmul.f32 %v70_v30, %v375_v1  ;;  %v640_v61 = vmul.f32 %v71_v32, %v380_v2  ;;  %v111_v63 = vmul.f32 %v95_v34, %v452_v28  ;;  %v128_v27 = vld [vmem:[%s817_s1 + $0x38] sm:$0xff]  ;;  %v170_v4 = vsel %vm169_vm0, %v153_v26, 0.0  ;;  %v97_v1 = vld [vmem:[%s816_s0 + $0x40] sm:$0xff]  ;;  %v98_v28 = vld [vmem:[%s816_s0 + $0x48] sm:$0xff] }
  0x15   :  { %v143_v5 = vmul.f32 %v127_v55, %v578_v16  ;;  %v157_v2 = vadd.f32 %v141_v42, %v109_v37  ;;  %v171_v6 = vsel %vm169_vm0, %v154_v43, 0.0  ;;  %v173_v9 = vsel %vm169_vm0, %v155_v44, 0.0  ;;  %v100_v18 = vld [vmem:[%s816_s0 + $0x58] sm:$0xff]  ;;  %v101_v32 = vld [vmem:[%s816_s0 + $0x60] sm:$0xff]  ;;  %v130_v34 = vld [vmem:[%s817_s1 + $0x48] sm:$0xff] }
  0x16   :  { %v657_v10 = vmul.f32 %v72_v56, %v385_v3  ;;  %v172_v14 = vadd.f32 %v171_v6, %v170_v4  ;;  %v667_v15 = vmul.f32 %v467_v33, %v467_v33  ;;  %v228_v17 = vmul.f32 %v461_v31, %v461_v31  ;;  %v99_v3 = vld [vmem:[%s816_s0 + $0x50] sm:$0xff]  ;;  %v102_v43 = vld [vmem:[%s816_s0 + $0x68] sm:$0xff] }
  0x17   :  { %v112_v25 = vmul.f32 %v96_v62, %v455_v29  ;;  %v144_v23 = vmul.f32 %v128_v27, %v586_v20  ;;  %v158_v26 = vadd.f32 %v142_v58, %v110_v57  ;;  %v175_v30 = vsel %vm169_vm0, %v156_v59, 0.0  ;;  %v104_v58 = vld [vmem:[%s816_s0 + $0x78] sm:$0xff]  ;;  %v131_v62 = vld [vmem:[%s817_s1 + $0x50] sm:$0xff] }
  0x18   :  { %v113_v31 = vmul.f32 %v97_v1, %v467_v33  ;;  %v174_v37 = vadd.f32 %v173_v9, %v172_v14  ;;  %v689_v42 = vmul.f32 %v484_v39, %v484_v39  ;;  %v229_v29 = vmul.f32 %v473_v35, %v473_v35  ;;  %v103_v33 = vld [vmem:[%s816_s0 + $0x70] sm:$0xff]  ;;  %v132_v9 = vld [vmem:[%s817_s1 + $0x58] sm:$0xff]  ;;  %v133_v14 = vld [vmem:[%s817_s1 + $0x60] sm:$0xff] }
  0x19   :  { %v114_v44 = vmul.f32 %v98_v28, %v484_v39  ;;  %v145_v55 = vmul.f32 %v129_v13, %v589_v21  ;;  %v159_v56 = vadd.f32 %v143_v5, %v111_v63  ;;  %v177_v57 = vsel %vm169_vm0, %v157_v2, 0.0 }
  0x1a   :  { %v115_v35 = vmul.f32 %v99_v3, %v487_v40  ;;  %v116_v59 = vmul.f32 %v100_v18, %v490_v41  ;;  %v176_v27 = vadd.f32 %v175_v30, %v174_v37  ;;  %v230_v39 = vmul.f32 %v476_v36, %v476_v36 }
  0x1b   :  { %v117_v63 = vmul.f32 %v101_v32, %v504_v46  ;;  %v146_v4 = vmul.f32 %v130_v34, %v592_v22  ;;  %v160_v1 = vadd.f32 %v144_v23, %v112_v25  ;;  %v179_v5 = vsel %vm169_vm0, %v158_v26, 0.0  ;;  %v134_v23 = vld [vmem:[%s817_s1 + $0x68] sm:$0xff] }
  0x1c   :  { %v118_v2 = vmul.f32 %v102_v43, %v507_v47  ;;  %v119_v6 = vmul.f32 %v103_v33, %v524_v53  ;;  %v178_v28 = vadd.f32 %v177_v57, %v176_v27  ;;  %v231_v13 = vmul.f32 %v513_v49, %v513_v49 }
  0x1d   :  { %v120_v36 = vmul.f32 %v104_v58, %v551_v7  ;;  %v147_v3 = vmul.f32 %v131_v62, %v612_v48  ;;  %v161_v18 = vadd.f32 %v145_v55, %v113_v31  ;;  %v181_v25 = vsel %vm169_vm0, %v159_v56, 0.0 }
  0x1e   :  { %v180_v26 = vadd.f32 %v179_v5, %v178_v28  ;;  %v232_v30 = vmul.f32 %v527_v54, %v527_v54  ;;  %v244_v49 = vadd.f32 %v228_v17, %v481_v38  ;;  %v245_v32 = vadd.f32 %v229_v29, %v501_v45 }
  0x1f   :  { %v148_v34 = vmul.f32 %v132_v9, %v615_v50  ;;  %v162_v37 = vadd.f32 %v146_v4, %v114_v44  ;;  %v183_v43 = vsel %vm169_vm0, %v160_v1, 0.0  ;;  %v246_v31 = vadd.f32 %v230_v39, %v521_v52  ;;  %v135_v52 = vld [vmem:[%s817_s1 + $0x70] sm:$0xff] }
  0x20   :  { %v149_v33 = vmul.f32 %v133_v14, %v618_v51  ;;  %v182_v55 = vadd.f32 %v181_v25, %v180_v26  ;;  %v233_v56 = vmul.f32 %v554_v8, %v554_v8  ;;  %v247_v57 = vadd.f32 %v231_v13, %v562_v11 }
  0x21   :  { %v150_v54 = vmul.f32 %v134_v23, %v637_v60  ;;  %v163_v38 = vadd.f32 %v147_v3, %v115_v35  ;;  %v185_v45 = vsel %vm169_vm0, %v161_v18, 0.0  ;;  %v234_v17 = vmul.f32 %v578_v16, %v578_v16  ;;  %v136_v16 = vld [vmem:[%s817_s1 + $0x78] sm:$0xff] }
  0x22   :  { %v184_v29 = vadd.f32 %v183_v43, %v182_v55  ;;  %v248_v44 = vadd.f32 %v232_v30, %v566_v12  ;;  %v260_v58 = vsel %vm169_vm0, %v244_v49, 0.0  ;;  %v261_v8 = vsel %vm169_vm0, %v245_v32, 0.0 }
  0x23   :  { %v164_v11 = vadd.f32 %v148_v34, %v116_v59  ;;  %v187_v62 = vsel %vm169_vm0, %v162_v37, 0.0  ;;  %v262_v35 = vadd.f32 %v261_v8, %v260_v58  ;;  %v263_v27 = vsel %vm169_vm0, %v246_v31, 0.0 }
  0x24   :  { %v186_v39 = vadd.f32 %v185_v45, %v184_v29  ;;  %v235_v4 = vmul.f32 %v586_v20, %v586_v20  ;;  %v249_v12 = vadd.f32 %v233_v56, %v583_v19  ;;  %v265_v1 = vsel %vm169_vm0, %v247_v57, 0.0 }
  0x25   :  { %v151_v5 = vmul.f32 %v135_v52, %v640_v61  ;;  %v165_v59 = vadd.f32 %v149_v33, %v117_v63  ;;  %v189_v9 = vsel %vm169_vm0, %v163_v38, 0.0  ;;  %v264_v28 = vadd.f32 %v263_v27, %v262_v35 }
  0x26   :  { %v188_v13 = vadd.f32 %v187_v62, %v186_v39  ;;  %v236_v14 = vmul.f32 %v589_v21, %v589_v21  ;;  %v250_v3 = vadd.f32 %v234_v17, %v625_v24  ;;  %v267_v18 = vsel %vm169_vm0, %v248_v44, 0.0 }
  0x27   :  { %v152_v20 = vmul.f32 %v136_v16, %v657_v10  ;;  %v166_v25 = vadd.f32 %v150_v54, %v118_v2  ;;  %v191_v19 = vsel %vm169_vm0, %v164_v11, 0.0  ;;  %v266_v23 = vadd.f32 %v265_v1, %v264_v28 }
  0x28   :  { %v190_v26 = vadd.f32 %v189_v9, %v188_v13  ;;  %v237_v63 = vmul.f32 %v592_v22, %v592_v22  ;;  %v251_v30 = vadd.f32 %v235_v4, %v634_v0  ;;  %v269_v49 = vsel %vm169_vm0, %v249_v12, 0.0 }
  0x29   :  { %v167_v32 = vadd.f32 %v151_v5, %v119_v6  ;;  %v193_v21 = vsel %vm169_vm0, %v165_v59, 0.0  ;;  %v222_v24 = vmul.f32 %v487_v40, %v487_v40  ;;  %v268_v34 = vadd.f32 %v267_v18, %v266_v23 }
  0x2a   :  { %v192_v37 = vadd.f32 %v191_v19, %v190_v26  ;;  %v238_v2 = vmul.f32 %v612_v48, %v612_v48  ;;  %v252_v43 = vadd.f32 %v236_v14, %v667_v15  ;;  %v271_v31 = vsel %vm169_vm0, %v250_v3, 0.0 }
  0x2b   :  { %v168_v22 = vadd.f32 %v152_v20, %v120_v36  ;;  %v195_v0 = vsel %vm169_vm0, %v166_v25, 0.0  ;;  %v223_v6 = vmul.f32 %v490_v41, %v490_v41  ;;  %v270_v33 = vadd.f32 %v269_v49, %v268_v34 }
  0x2c   :  { %v194_v55 = vadd.f32 %v193_v21, %v192_v37  ;;  %v239_v40 = vmul.f32 %v615_v50, %v615_v50  ;;  %v253_v56 = vadd.f32 %v237_v63, %v689_v42  ;;  %v273_v57 = vsel %vm169_vm0, %v251_v30, 0.0 }
  0x2d   :  { %v197_v48 = vsel %vm169_vm0, %v167_v32, 0.0  ;;  %v224_v15 = vmul.f32 %v504_v46, %v504_v46  ;;  %v272_v36 = vadd.f32 %v271_v31, %v270_v33  ;;  %v240_v38 = vmul.f32 %v618_v51, %v618_v51 }
  0x2e   :  { %v196_v54 = vadd.f32 %v195_v0, %v194_v55  ;;  %v254_v41 = vadd.f32 %v238_v2, %v222_v24  ;;  %v275_v45 = vsel %vm169_vm0, %v252_v43, 0.0  ;;  %v199_v17 = vsel %vm169_vm0, %v168_v22, 0.0 }
  0x2f   :  { %v225_v50 = vmul.f32 %v507_v47, %v507_v47  ;;  %v274_v42 = vadd.f32 %v273_v57, %v272_v36  ;;  %v241_v29 = vmul.f32 %v637_v60, %v637_v60  ;;  %v255_v44 = vadd.f32 %v239_v40, %v223_v6 }
  0x30   :  { %v198_v52 = vadd.f32 %v197_v48, %v196_v54  ;;  %v277_v46 = vsel %vm169_vm0, %v253_v56, 0.0  ;;  %v226_v58 = vmul.f32 %v524_v53, %v524_v53  ;;  %v242_v11 = vmul.f32 %v640_v61, %v640_v61 }
  0x31   :  { %v276_v51 = vadd.f32 %v275_v45, %v274_v42  ;;  %v256_v62 = vadd.f32 %v240_v38, %v224_v15  ;;  %v279_v35 = vsel %vm169_vm0, %v254_v41, 0.0  ;;  %v227_v27 = vmul.f32 %v551_v7, %v551_v7 }
  0x32   :  { %v200_v8 = vadd.f32 %v199_v17, %v198_v52  ;;  %v243_v60 = vmul.f32 %v657_v10, %v657_v10  ;;  %v257_v16 = vadd.f32 %v241_v29, %v225_v50  ;;  %v281_v39 = vsel %vm169_vm0, %v255_v44, 0.0 }
  0x33   :  { %v278_v47 = vadd.f32 %v277_v46, %v276_v51  ;;  %v258_v4 = vadd.f32 %v242_v11, %v226_v58  ;;  %v283_v12 = vsel %vm169_vm0, %v256_v62, 0.0 }
  0x34   :  { %201 = vadd.xlane.f32.xlu0 %v200_v8  ;;  %v259_v61 = vadd.f32 %v243_v60, %v227_v27  ;;  %v285_v5 = vsel %vm169_vm0, %v257_v16, 0.0 }
  0x35   :  { %v280_v53 = vadd.f32 %v279_v35, %v278_v47  ;;  %v287_v9 = vsel %vm169_vm0, %v258_v4, 0.0 }
  0x36   :  { %v289_v7 = vsel %vm169_vm0, %v259_v61, 0.0 }
  0x37   :  { %v282_v1 = vadd.f32 %v281_v39, %v280_v53 }
  0x39   :  { %v284_v59 = vadd.f32 %v283_v12, %v282_v1 }
  0x3b   :  { %v286_v28 = vadd.f32 %v285_v5, %v284_v59 }
  0x3d   :  { %v288_v13 = vadd.f32 %v287_v9, %v286_v28 }
  0x3f   :  { %v290_v14 = vadd.f32 %v289_v7, %v288_v13 }
  0x41   :  { %291 = vadd.xlane.f32.xlu0 %v290_v14 }
  0xa7   :  { %v202_v10 = vpop.xlane.xlu0 %201 }
  0xa8   :  { %v203_v3 = vrot.slane %v202_v10, 4 }
  0xaa   :  { %v204_v18 = vadd.f32 %v203_v3, %v202_v10 }
  0xac   :  { %v205_v20 = vrot.slane %v204_v18, 2 }
  0xae   :  { %v206_v25 = vadd.f32 %v205_v20, %v204_v18 }
  0xb0   :  { %v207_v19 = vrot.slane %v206_v25, 1 }
  0xb2   :  { %v208_v23 = vadd.f32 %v207_v19, %v206_v25 }
  0xb4   :  { %v292_v26 = vpop.xlane.xlu0 %291  ;;  %317 = vpush %v208_v23 }
  0xb5   :  { %v293_v63 = vrot.slane %v292_v26, 4 }
  0xb7   :  { %v294_v30 = vadd.f32 %v293_v63, %v292_v26 }
  0xb9   :  { %v295_v49 = vrot.slane %v294_v30, 2 }
  0xbb   :  { %v296_v32 = vadd.f32 %v295_v49, %v294_v30 }
  0xbd   :  { %v297_v21 = vrot.slane %v296_v32, 1 }
  0xbf   :  { %v298_v24 = vadd.f32 %v297_v21, %v296_v32 }
  0xc1   :  { %319 = vpush %v298_v24 }
  0xe5   :  { %s318_s1 = spop %317 }
  0xe6   :  { %211 = sst [smem:[#allocation2]] %s318_s1 }
  0xf2   :  { %s320_s20 = spop %319 }
  0xf3   :  { %301 = sst [smem:[#allocation2 + $0x1]] %s320_s20 }
  0xf4   :  { %310 = dma.smem_to_vmem %s336_s21, 16, %s308_s19, [#allocation3]  }
  0xf5   :  { %334 = dma.done.wait [#allocation3], 16  }
  0xf6   :  { %335 = vsyncadd [#allocation3], 4294967280 }
  0xf7   :  { %315 = sfence }
  0xf8   :  { %316 = vsyncpa [#allocation3], 1 }

// kernel: zs_unrolled_network_onenet.25
= control target key start
LH: loop header
LB: loop body
LE: loop exit
PB: predicated region body
PF: predicated region fallthrough
CT: control target
= control target key end

     0   :  { %vm138_vm0 = vcmask 261120   ;;  %s1521_s0 = inlined_call_operand.vmem [shape: f32[4,32,32], index: 0, kind: input, shape index: {}]   ;;  %s1522_s1 = inlined_call_operand.vmem [shape: f32[4,32,32], index: 1, kind: input, shape index: {}]   ;;  %s1523_s2 = inlined_call_operand.vmem [shape: f32[4,32,32], index: 2, kind: input, shape index: {}]   ;;  %s1524_s3 = inlined_call_operand.vmem [shape: f32[4,32,32], index: 3, kind: input, shape index: {}]   ;;  %s1525_s4 = inlined_call_operand.vmem [shape: f32[4,64,64], index: 4, kind: input, shape index: {}]   ;;  %s1526_s5 = inlined_call_operand.vmem [shape: f32[4,32,32], index: 5, kind: input, shape index: {}]   ;;  %s1527_s6 = inlined_call_operand.vmem [shape: f32[2,32,32], index: 6, kind: output, shape index: {0}]   ;;  %s1528_s7 = inlined_call_operand.hbm [shape: f32[1,1], index: 7, kind: output, shape index: {1}]  }
   0x1   :  { %v29_v0 = vld [vmem:[%s1521_s0 + $0x18] sm:$0xff]  ;;  %v875_v27 = vld [vmem:[%s1521_s0 + $0x10] sm:$0xff] }
   0x2   :  { %v33_v1 = vld [vmem:[%s1521_s0 + $0x38] sm:$0xff]  ;;  %v880_v28 = vld [vmem:[%s1521_s0 + $0x30] sm:$0xff] }
   0x3   :  { %v37_v2 = vld [vmem:[%s1521_s0 + $0x58] sm:$0xff]  ;;  %v885_v29 = vld [vmem:[%s1521_s0 + $0x50] sm:$0xff] }
   0x4   :  { %v41_v3 = vld [vmem:[%s1521_s0 + $0x78] sm:$0xff]  ;;  %v890_v30 = vld [vmem:[%s1522_s1 + $0x10] sm:$0xff] }
   0x5   :  { %v45_v4 = vld [vmem:[%s1522_s1 + $0x18] sm:$0xff]  ;;  %v895_v37 = vld [vmem:[%s1521_s0 + $0x70] sm:$0xff] }
   0x6   :  { %v49_v5 = vld [vmem:[%s1522_s1 + $0x38] sm:$0xff]  ;;  %v900_v38 = vld [vmem:[%s1522_s1 + $0x30] sm:$0xff] }
   0x7   :  { %v53_v6 = vld [vmem:[%s1522_s1 + $0x58] sm:$0xff]  ;;  %v905_v39 = vld [vmem:[%s1522_s1 + $0x50] sm:$0xff] }
   0x8   :  { %v57_v7 = vld [vmem:[%s1522_s1 + $0x78] sm:$0xff]  ;;  %v910_v40 = vld [vmem:[%s1522_s1 + $0x70] sm:$0xff] }
   0x9   :  { %v61_v8 = vld [vmem:[%s1523_s2 + $0x18] sm:$0xff]  ;;  %v915_v43 = vld [vmem:[%s1523_s2 + $0x10] sm:$0xff] }
   0xa   :  { %v65_v9 = vld [vmem:[%s1523_s2 + $0x38] sm:$0xff]  ;;  %v170_v12 = vmul.f32 %v61_v8, %v45_v4  ;;  %v93_v13 = vmul.f32 %v61_v8, %v29_v0  ;;  %v920_v44 = vld [vmem:[%s1523_s2 + $0x30] sm:$0xff]  ;;  %v169_v55 = vmul.f32 %v915_v43, %v890_v30  ;;  %v997_v8 = vld [vmem:[%s1522_s1 + $0x8] sm:$0xff] }
   0xb   :  { %v69_v10 = vld [vmem:[%s1523_s2 + $0x58] sm:$0xff]  ;;  %v174_v17 = vmul.f32 %v65_v9, %v49_v5  ;;  %v97_v20 = vmul.f32 %v65_v9, %v33_v1  ;;  %v925_v45 = vld [vmem:[%s1523_s2 + $0x50] sm:$0xff]  ;;  %v173_v60 = vmul.f32 %v920_v44, %v900_v38  ;;  %v1002_v9 = vld [vmem:[%s1522_s1 + $0x28] sm:$0xff] }
   0xc   :  { %v73_v11 = vld [vmem:[%s1523_s2 + $0x78] sm:$0xff]  ;;  %v178_v18 = vmul.f32 %v69_v10, %v53_v6  ;;  %v101_v25 = vmul.f32 %v69_v10, %v37_v2  ;;  %v935_v52 = vld [vmem:[%s1523_s2 + $0x70] sm:$0xff]  ;;  %v177_v61 = vmul.f32 %v925_v45, %v905_v39  ;;  %v1007_v10 = vld [vmem:[%s1522_s1 + $0x48] sm:$0xff] }
   0xd   :  { %v77_v14 = vld [vmem:[%s1524_s3 + $0x18] sm:$0xff]  ;;  %v182_v19 = vmul.f32 %v73_v11, %v57_v7  ;;  %v105_v31 = vmul.f32 %v73_v11, %v41_v3  ;;  %v940_v53 = vld [vmem:[%s1524_s3 + $0x10] sm:$0xff]  ;;  %v181_v62 = vmul.f32 %v935_v52, %v910_v40 }
   0xe   :  { %v81_v15 = vld [vmem:[%s1524_s3 + $0x38] sm:$0xff]  ;;  %v186_v22 = vmul.f32 %v77_v14, %v29_v0  ;;  %v109_v32 = vmul.f32 %v77_v14, %v45_v4  ;;  %v945_v54 = vld [vmem:[%s1524_s3 + $0x30] sm:$0xff]  ;;  %v185_v63 = vmul.f32 %v940_v53, %v875_v27 }
   0xf   :  { %v85_v16 = vld [vmem:[%s1524_s3 + $0x58] sm:$0xff]  ;;  %v190_v23 = vmul.f32 %v81_v15, %v33_v1  ;;  %v113_v33 = vmul.f32 %v81_v15, %v49_v5  ;;  %v953_v58 = vld [vmem:[%s1524_s3 + $0x50] sm:$0xff]  ;;  %v189_v0 = vmul.f32 %v945_v54, %v880_v28  ;;  %v982_v5 = vld [vmem:[%s1521_s0 + $0x28] sm:$0xff] }
  0x10   :  { %v89_v21 = vld [vmem:[%s1524_s3 + $0x78] sm:$0xff]  ;;  %v194_v24 = vmul.f32 %v85_v16, %v37_v2  ;;  %v202_v34 = vsub.f32 %v170_v12, %v186_v22  ;;  %v117_v41 = vmul.f32 %v85_v16, %v53_v6  ;;  %v125_v47 = vadd.f32 %v109_v32, %v93_v13  ;;  %v958_v59 = vld [vmem:[%s1524_s3 + $0x70] sm:$0xff]  ;;  %v975_v2 = vld [vmem:[%s1521_s0 + $0x8] sm:$0xff] }
  0x11   :  { %v198_v26 = vmul.f32 %v89_v21, %v41_v3  ;;  %v206_v35 = vsub.f32 %v174_v17, %v190_v23  ;;  %v121_v46 = vmul.f32 %v89_v21, %v57_v7  ;;  %v927_v48 = vadd.f32 %v113_v33, %v97_v20  ;;  %v987_v6 = vld [vmem:[%s1521_s0 + $0x48] sm:$0xff] }
  0x12   :  { %v210_v36 = vsub.f32 %v178_v18, %v194_v24  ;;  %v236_v49 = vsel %vm138_vm0, %v202_v34, 0.0  ;;  %v193_v1 = vmul.f32 %v953_v58, %v885_v29  ;;  %v197_v4 = vmul.f32 %v958_v59, %v895_v37  ;;  %v992_v7 = vld [vmem:[%s1521_s0 + $0x68] sm:$0xff] }
  0x13   :  { %v214_v42 = vsub.f32 %v182_v19, %v198_v26  ;;  %v237_v50 = vsel %vm138_vm0, %v206_v35, 0.0  ;;  %v133_v11 = vadd.f32 %v117_v41, %v101_v25  ;;  %v1009_v12 = vadd.f32 %v121_v46, %v105_v31  ;;  %v1014_v16 = vld [vmem:[%s1522_s1 + $0x68] sm:$0xff] }
  0x14   :  { %v239_v51 = vsel %vm138_vm0, %v210_v36, 0.0  ;;  %v238_v56 = vadd.f32 %v237_v50, %v236_v49  ;;  %v201_v13 = vsub.f32 %v169_v55, %v185_v63  ;;  %v205_v14 = vsub.f32 %v173_v60, %v189_v0  ;;  %v1019_v17 = vld [vmem:[%s1523_s2 + $0x8] sm:$0xff]  ;;  %v1094_v60 = vld [vmem:[%s1521_s0 + $0x40] sm:$0xff] }
  0x15   :  { %v241_v57 = vsel %vm138_vm0, %v214_v42, 0.0  ;;  %v209_v15 = vsub.f32 %v177_v61, %v193_v1  ;;  %v1024_v18 = vld [vmem:[%s1523_s2 + $0x28] sm:$0xff]  ;;  %v160_v19 = vsel %vm138_vm0, %v125_v47, 0.0  ;;  %v213_v21 = vsub.f32 %v181_v62, %v197_v4  ;;  %v1099_v61 = vld [vmem:[%s1522_s1] sm:$0xff] }
  0x16   :  { %v240_v3 = vadd.f32 %v239_v51, %v238_v56  ;;  %v1030_v22 = vld [vmem:[%s1523_s2 + $0x48] sm:$0xff]  ;;  %v168_v25 = vmul.f32 %v1019_v17, %v997_v8  ;;  %v172_v26 = vmul.f32 %v1024_v18, %v1002_v9  ;;  %v229_v31 = vsel %vm138_vm0, %v201_v13, 0.0  ;;  %v1084_v56 = vld [vmem:[%s1521_s0] sm:$0xff]  ;;  %1539 = vst [vmem:[#allocation5_spill] sm:$0xff] %v1099_v61 }
  0x17   :  { %v1035_v23 = vld [vmem:[%s1523_s2 + $0x68] sm:$0xff]  ;;  %v230_v32 = vsel %vm138_vm0, %v205_v14, 0.0  ;;  %v232_v33 = vsel %vm138_vm0, %v209_v15, 0.0  ;;  %v176_v41 = vmul.f32 %v1030_v22, %v1007_v10  ;;  %v234_v46 = vsel %vm138_vm0, %v213_v21, 0.0  ;;  %v1104_v62 = vld [vmem:[%s1522_s1 + $0x20] sm:$0xff] }
  0x18   :  { %v242_v20 = vadd.f32 %v241_v57, %v240_v3  ;;  %v1040_v24 = vld [vmem:[%s1524_s3 + $0x8] sm:$0xff]  ;;  %v231_v42 = vadd.f32 %v230_v32, %v229_v31  ;;  %v180_v47 = vmul.f32 %v1035_v23, %v1014_v16  ;;  %v1089_v57 = vld [vmem:[%s1521_s0 + $0x20] sm:$0xff]  ;;  %1540 = vst [vmem:[#allocation6_spill] sm:$0xff] %v1104_v62  ;;  %v161_v63 = vsel %vm138_vm0, %v927_v48, 0.0 }
  0x19   :  { %v1052_v34 = vld [vmem:[%s1524_s3 + $0x28] sm:$0xff]  ;;  %v184_v49 = vmul.f32 %v1040_v24, %v975_v2  ;;  %v1111_v3 = vld [vmem:[%s1521_s0 + $0x60] sm:$0xff]  ;;  %v162_v14 = vadd.f32 %v161_v63, %v160_v19  ;;  %v163_v15 = vsel %vm138_vm0, %v133_v11, 0.0 }
  0x1a   :  { %v1057_v35 = vld [vmem:[%s1524_s3 + $0x48] sm:$0xff]  ;;  %707 = vst.msk [vmem:[%s1527_s6 + $0x38] sm:$0xff] %vm138_vm0, %v242_v20  ;;  %v188_v50 = vmul.f32 %v1052_v34, %v982_v5  ;;  %v233_v0 = vadd.f32 %v232_v33, %v231_v42  ;;  %v1116_v4 = vld [vmem:[%s1522_s1 + $0x40] sm:$0xff] }
  0x1b   :  { %v1062_v36 = vld [vmem:[%s1524_s3 + $0x68] sm:$0xff]  ;;  %v192_v51 = vmul.f32 %v1057_v35, %v987_v6  ;;  %v200_v1 = vsub.f32 %v168_v25, %v184_v49  ;;  %1541 = vst [vmem:[#allocation7_spill] sm:$0xff] %v1116_v4  ;;  %v1121_v13 = vld [vmem:[%s1522_s1 + $0x60] sm:$0xff] }
  0x1c   :  { %v196_v55 = vmul.f32 %v1062_v36, %v992_v7  ;;  %1542 = vst [vmem:[#allocation8_spill] sm:$0xff] %v1121_v13  ;;  %v1126_v48 = vld [vmem:[%s1523_s2] sm:$0xff]  ;;  %v204_v20 = vsub.f32 %v172_v26, %v188_v50  ;;  %v235_v19 = vadd.f32 %v234_v46, %v233_v0 }
  0x1d   :  { %v208_v21 = vsub.f32 %v176_v41, %v192_v51  ;;  %v1132_v31 = vld [vmem:[%s1523_s2 + $0x20] sm:$0xff]  ;;  %v167_v11 = vmul.f32 %v1126_v48, %v1099_v61  ;;  %v222_v26 = vsel %vm138_vm0, %v200_v1, 0.0 }
  0x1e   :  { %v212_v25 = vsub.f32 %v180_v47, %v196_v55  ;;  %v1137_v32 = vld [vmem:[%s1523_s2 + $0x40] sm:$0xff]  ;;  %v171_v46 = vmul.f32 %v1132_v31, %v1104_v62  ;;  %v223_v50 = vsel %vm138_vm0, %v204_v20, 0.0 }
  0x1f   :  { %1543 = vst [vmem:[#allocation9_spill] sm:$0xff] %v1137_v32  ;;  %v1142_v33 = vld [vmem:[%s1523_s2 + $0x60] sm:$0xff]  ;;  %v175_v49 = vmul.f32 %v1137_v32, %v1116_v4  ;;  %v225_v51 = vsel %vm138_vm0, %v208_v21, 0.0 }
  0x20   :  { %1544 = vst [vmem:[#allocation10_spill] sm:$0xff] %v1142_v33  ;;  %v1150_v41 = vld [vmem:[%s1524_s3] sm:$0xff]  ;;  %v227_v55 = vsel %vm138_vm0, %v212_v25, 0.0  ;;  %v179_v0 = vmul.f32 %v1142_v33, %v1121_v13 }
  0x21   :  { %1545 = vst [vmem:[#allocation11_spill] sm:$0xff] %v1150_v41  ;;  %v1155_v42 = vld [vmem:[%s1524_s3 + $0x20] sm:$0xff] }
  0x22   :  { %1546 = vst [vmem:[#allocation12_spill] sm:$0xff] %v1155_v42  ;;  %v1160_v47 = vld [vmem:[%s1524_s3 + $0x40] sm:$0xff] }
  0x23   :  { %1547 = vst [vmem:[#allocation13_spill] sm:$0xff] %v1160_v47  ;;  %v1172_v63 = vld [vmem:[%s1524_s3 + $0x60] sm:$0xff] }
  0x24   :  { %1548 = vst [vmem:[#allocation14_spill] sm:$0xff] %v1172_v63 }
  0x25   :  { %13 = vsyncpa [#allocation3], 0  ;;  %706 = vst.msk [vmem:[%s1527_s6 + $0x30] sm:$0xff] %vm138_vm0, %v235_v19  ;;  %v224_v1 = vadd.f32 %v223_v50, %v222_v26  ;;  %v183_v20 = vmul.f32 %v1150_v41, %v1084_v56  ;;  %v187_v21 = vmul.f32 %v1155_v42, %v1089_v57  ;;  %v191_v25 = vmul.f32 %v1160_v47, %v1094_v60  ;;  %v711_v13 = vld [vmem:[%s1527_s6 + $0x38] sm:$0xff]  ;;  %s692_s16 = sshll.u32 %s1528_s7, 4  ;;  %s783_s18 = smov [#allocation2]   ;;  %s693_s16 = int_to_ptr.hbm [resolvable:$true] %s692_s16 }
  0x26   :  { %v195_v4 = vmul.f32 %v1172_v63, %v1111_v3  ;;  %v164_v62 = vadd.f32 %v163_v15, %v162_v14  ;;  %v165_v19 = vsel %vm138_vm0, %v1009_v12, 0.0  ;;  %v92_v26 = vmul.f32 %v915_v43, %v875_v27  ;;  %305 = vmatpush.msra.mxu0 %v711_v13 }
  0x27   :  { %v226_v50 = vadd.f32 %v225_v51, %v224_v1  ;;  %v199_v42 = vsub.f32 %v167_v11, %v183_v20  ;;  %v203_v41 = vsub.f32 %v171_v46, %v187_v21  ;;  %v207_v61 = vsub.f32 %v175_v49, %v191_v25  ;;  %v1553_v51 = vld [vmem:[#allocation6_spill] sm:$0xff]  ;;  %v1557_v25 = vld [vmem:[#allocation8_spill] sm:$0xff] }
  0x28   :  { %v211_v47 = vsub.f32 %v179_v0, %v195_v4  ;;  %v166_v33 = vadd.f32 %v165_v19, %v164_v62  ;;  %v96_v32 = vmul.f32 %v920_v44, %v880_v28  ;;  %v100_v63 = vmul.f32 %v925_v45, %v885_v29  ;;  %v1555_v0 = vld [vmem:[#allocation7_spill] sm:$0xff] }
  0x29   :  { %v228_v14 = vadd.f32 %v227_v55, %v226_v50  ;;  %v215_v15 = vsel %vm138_vm0, %v199_v42, 0.0  ;;  %v216_v12 = vsel %vm138_vm0, %v203_v41, 0.0  ;;  %v218_v27 = vsel %vm138_vm0, %v207_v61, 0.0  ;;  %v1554_v55 = vld [vmem:[#allocation12_spill] sm:$0xff] }
  0x2a   :  { %v217_v43 = vadd.f32 %v216_v12, %v215_v15  ;;  %v220_v13 = vsel %vm138_vm0, %v211_v47, 0.0  ;;  %246 = vst.msk [vmem:[%s1527_s6 + $0x18] sm:$0xff] %vm138_vm0, %v166_v33  ;;  %v104_v28 = vmul.f32 %v935_v52, %v895_v37  ;;  %v108_v29 = vmul.f32 %v940_v53, %v890_v30  ;;  %v1552_v47 = vld [vmem:[#allocation11_spill] sm:$0xff]  ;;  %v1556_v1 = vld [vmem:[#allocation13_spill] sm:$0xff] }
  0x2b   :  { %705 = vst.msk [vmem:[%s1527_s6 + $0x28] sm:$0xff] %vm138_vm0, %v228_v14  ;;  %v112_v44 = vmul.f32 %v945_v54, %v900_v38  ;;  %v116_v45 = vmul.f32 %v953_v58, %v905_v39  ;;  %v120_v61 = vmul.f32 %v958_v59, %v910_v40  ;;  %v91_v37 = vmul.f32 %v1019_v17, %v975_v2  ;;  %v1558_v19 = vld [vmem:[#allocation14_spill] sm:$0xff] }
  0x2c   :  { %v710_v30 = vld [vmem:[%s1527_s6 + $0x30] sm:$0xff]  ;;  %v219_v52 = vadd.f32 %v218_v27, %v217_v43  ;;  %v124_v53 = vadd.f32 %v108_v29, %v92_v26  ;;  %v95_v62 = vmul.f32 %v1024_v18, %v982_v5  ;;  %v99_v38 = vmul.f32 %v1030_v22, %v987_v6 }
  0x2d   :  { %306 = vmatpush.msra.mxu0 %v710_v30  ;;  %v128_v39 = vadd.f32 %v112_v44, %v96_v32  ;;  %v132_v54 = vadd.f32 %v116_v45, %v100_v63  ;;  %v136_v58 = vadd.f32 %v120_v61, %v104_v28  ;;  %v103_v40 = vmul.f32 %v1035_v23, %v992_v7 }
  0x2e   :  { %v221_v59 = vadd.f32 %v220_v13, %v219_v52  ;;  %v153_v2 = vsel %vm138_vm0, %v124_v53, 0.0  ;;  %v107_v17 = vmul.f32 %v1040_v24, %v997_v8  ;;  %v111_v4 = vmul.f32 %v1052_v34, %v1002_v9  ;;  %v252_v53 = vld [vmem:[%s1525_s4] sm:$0xff] }
  0x2f   :  { %v154_v5 = vsel %vm138_vm0, %v128_v39, 0.0  ;;  %v156_v6 = vsel %vm138_vm0, %v132_v54, 0.0  ;;  %v158_v18 = vsel %vm138_vm0, %v136_v58, 0.0  ;;  %v115_v22 = vmul.f32 %v1057_v35, %v1007_v10  ;;  %v1549_v10 = vld [vmem:[#allocation9_spill] sm:$0xff]  ;;  %v263_v39 = vld [vmem:[%s1526_s5 + $0x18] sm:$0xff]  ;;  %v262_v54 = vld [vmem:[%s1526_s5 + $0x10] sm:$0xff] }
  0x30   :  { %704 = vst.msk [vmem:[%s1527_s6 + $0x20] sm:$0xff] %vm138_vm0, %v221_v59  ;;  %v155_v7 = vadd.f32 %v154_v5, %v153_v2  ;;  %v119_v8 = vmul.f32 %v1062_v36, %v1014_v16  ;;  %v123_v23 = vadd.f32 %v107_v17, %v91_v37  ;;  %v127_v9 = vadd.f32 %v111_v4, %v95_v62  ;;  %v261_v58 = vld [vmem:[%s1526_s5 + $0x8] sm:$0xff]  ;;  %v255_v59 = vld [vmem:[%s1525_s4 + $0x18] sm:$0xff]  ;;  %v256_v2 = vld [vmem:[%s1525_s4 + $0x20] sm:$0xff] }
  0x31   :  { %v131_v24 = vadd.f32 %v115_v22, %v99_v38  ;;  %v90_v34 = vmul.f32 %v1126_v48, %v1084_v56  ;;  %v94_v32 = vmul.f32 %v1132_v31, %v1089_v57  ;;  %v98_v35 = vmul.f32 %v1549_v10, %v1094_v60  ;;  %v1550_v48 = vld [vmem:[#allocation10_spill] sm:$0xff]  ;;  %v1551_v31 = vld [vmem:[#allocation5_spill] sm:$0xff]  ;;  %v267_v12 = vld [vmem:[%s1527_s6 + $0x18] sm:$0xff]  ;;  %374 = vmatpush.msra.mxu1 %v263_v39 }
  0x32   :  { %v709_v33 = vld [vmem:[%s1527_s6 + $0x28] sm:$0xff]  ;;  %v157_v11 = vadd.f32 %v156_v6, %v155_v7  ;;  %v135_v41 = vadd.f32 %v119_v8, %v103_v40  ;;  %v146_v16 = vsel %vm138_vm0, %v123_v23, 0.0  ;;  %v147_v36 = vsel %vm138_vm0, %v127_v9, 0.0  ;;  %v254_v40 = vld [vmem:[%s1525_s4 + $0x10] sm:$0xff]  ;;  %v260_v4 = vld [vmem:[%s1526_s5] sm:$0xff] }
  0x33   :  { %307 = vmatpush.msra.mxu0 %v709_v33  ;;  %v148_v42 = vadd.f32 %v147_v36, %v146_v16  ;;  %v149_v56 = vsel %vm138_vm0, %v131_v24, 0.0  ;;  %v102_v57 = vmul.f32 %v1550_v48, %v1111_v3  ;;  %v106_v60 = vmul.f32 %v1552_v47, %v1551_v31  ;;  %v253_v38 = vld [vmem:[%s1525_s4 + $0x8] sm:$0xff]  ;;  %375 = vmatpush.msra.mxu1 %v262_v54  ;;  %v732_v16 = vld [vmem:[%s1525_s4 + $0x40] sm:$0xff] }
  0x34   :  { %v159_v46 = vadd.f32 %v158_v18, %v157_v11  ;;  %v151_v49 = vsel %vm138_vm0, %v135_v41, 0.0  ;;  %v110_v63 = vmul.f32 %v1554_v55, %v1553_v51  ;;  %v114_v20 = vmul.f32 %v1556_v1, %v1555_v0  ;;  %v257_v17 = vld [vmem:[%s1525_s4 + $0x28] sm:$0xff]  ;;  %v736_v48 = vld [vmem:[%s1526_s5 + $0x20] sm:$0xff] }
  0x35   :  { %v150_v21 = vadd.f32 %v149_v56, %v148_v42  ;;  %v118_v26 = vmul.f32 %v1558_v19, %v1557_v25  ;;  %v122_v50 = vadd.f32 %v106_v60, %v90_v34  ;;  %vm272_vm1 = vcmask 523264   ;;  %376 = vmatpush.msra.mxu1 %v261_v58  ;;  %v733_v42 = vld [vmem:[%s1525_s4 + $0x48] sm:$0xff]  ;;  %v734_v56 = vld [vmem:[%s1525_s4 + $0x50] sm:$0xff]  ;;  %v750_v0 = vld [vmem:[%s1525_s4 + $0x80] sm:$0xff] }
  0x36   :  { %245 = vst.msk [vmem:[%s1527_s6 + $0x10] sm:$0xff] %vm138_vm0, %v159_v46  ;;  %v126_v3 = vadd.f32 %v110_v63, %v94_v32  ;;  %v130_v14 = vadd.f32 %v114_v20, %v98_v35  ;;  %v737_v35 = vld [vmem:[%s1526_s5 + $0x28] sm:$0xff]  ;;  %vm464_vm2 = vcmask 130048   ;;  %vm546_vm3 = vcmask 64512  }
  0x37   :  { %v708_v15 = vld [vmem:[%s1527_s6 + $0x20] sm:$0xff]  ;;  %v152_v27 = vadd.f32 %v151_v49, %v150_v21  ;;  %v134_v43 = vadd.f32 %v118_v26, %v102_v57  ;;  %v139_v13 = vsel %vm138_vm0, %v122_v50, 0.0  ;;  %377 = vmatpush.msra.mxu1 %v260_v4  ;;  %491 = vmatpush.msra.mxu3 %v737_v35  ;;  %v735_v57 = vld [vmem:[%s1525_s4 + $0x58] sm:$0xff]  ;;  %v751_v20 = vld [vmem:[%s1525_s4 + $0x88] sm:$0xff]  ;;  %vm587_vm4 = vcmask 1043456  }
  0x38   :  { %308 = vmatpush.msra.mxu0 %v708_v15  ;;  %v140_v28 = vsel %vm138_vm0, %v126_v3, 0.0  ;;  %v142_v29 = vsel %vm138_vm0, %v130_v14, 0.0  ;;  %v752_v21 = vld [vmem:[%s1526_s5 + $0x40] sm:$0xff]  ;;  %v258_v50 = vld [vmem:[%s1525_s4 + $0x30] sm:$0xff]  ;;  %v259_v3 = vld [vmem:[%s1525_s4 + $0x38] sm:$0xff]  ;;  %vm612_vm5 = vcmask 31744  }
  0x39   :  { %244 = vst.msk [vmem:[%s1527_s6 + $0x8] sm:$0xff] %vm138_vm0, %v152_v27  ;;  %v141_v44 = vadd.f32 %v140_v28, %v139_v13  ;;  %v144_v45 = vsel %vm138_vm0, %v134_v43, 0.0  ;;  %492 = vmatpush.msra.mxu3 %v736_v48  ;;  %v759_v13 = vld [vmem:[%s1525_s4 + $0xc0] sm:$0xff]  ;;  %vm639_vm6 = vcmask 27648   ;;  %vm641_vm7 = vcmask 31748  }
  0x3a   :  { %309 = vmatpush.msra.mxu0 %v267_v12 }
  0x3b   :  { %v143_v61 = vadd.f32 %v142_v29, %v141_v44  ;;  %v760_v29 = vld [vmem:[%s1526_s5 + $0x60] sm:$0xf] }
  0x3d   :  { %v266_v37 = vld [vmem:[%s1527_s6 + $0x10] sm:$0xff]  ;;  %v145_v30 = vadd.f32 %v144_v45, %v143_v61 }
  0x3e   :  { %310 = vmatpush.msra.mxu0 %v266_v37 }
  0x3f   :  { %243 = vst.msk [vmem:[%s1527_s6] sm:$0xff] %vm138_vm0, %v145_v30 }
  0x40   :  { %v265_v52 = vld [vmem:[%s1527_s6 + $0x8] sm:$0xff] }
  0x41   :  { %311 = vmatpush.msra.mxu0 %v265_v52 }
  0x46   :  { %v264_v62 = vld [vmem:[%s1527_s6] sm:$0xff] }
  0x47   :  { %312 = vmatpush.msra.mxu0 %v264_v62 }
  0x48   :  { %712 = vmatmul.msk.f32.vlgmr.msra.gmra.mxu0 %vm272_vm1, %v252_v53 }
  0x50   :  { %713 = vmatmul.msk.f32.gmra.mxu0 %vm272_vm1, %v253_v38 }
  0x58   :  { %714 = vmatmul.msk.f32.gmra.mxu0 %vm272_vm1, %v254_v40 }
  0x60   :  { %715 = vmatmul.msk.f32.gmra.mxu0 %vm272_vm1, %v255_v59 }
  0x68   :  { %716 = vmatmul.msk.f32.gmra.mxu0 %vm272_vm1, %v256_v2 }
  0x70   :  { %717 = vmatmul.msk.f32.gmra.mxu0 %vm272_vm1, %v257_v17 }
  0x78   :  { %718 = vmatmul.msk.f32.gmra.mxu0 %vm272_vm1, %v258_v50 }
  0x80   :  { %719 = vmatmul.msk.f32.gmra.mxu0 %vm272_vm1, %v259_v3 }
  0xc5   :  { %v314_v5 = vpop.f32.mrf.mxu0 }
  0xc6   :  { %720 = vmatmul.msk.f32.vlgmr.msra.gmra.mxu1 %vm138_vm0, %v314_v5 }
  0xcd   :  { %v317_v6 = vpop.f32.mrf.mxu0 }
  0xce   :  { %721 = vmatmul.msk.f32.gmra.mxu1 %vm138_vm0, %v317_v6 }
  0xd5   :  { %v320_v18 = vpop.f32.mrf.mxu0 }
  0xd6   :  { %722 = vmatmul.msk.f32.gmra.mxu1 %vm138_vm0, %v320_v18 }
  0xdd   :  { %v323_v22 = vpop.f32.mrf.mxu0 }
  0xde   :  { %723 = vmatmul.msk.f32.gmra.mxu1 %vm138_vm0, %v323_v22 }
  0xe5   :  { %v326_v7 = vpop.f32.mrf.mxu0 }
  0xe6   :  { %724 = vmatmul.msk.f32.gmra.mxu1 %vm138_vm0, %v326_v7 }
  0xed   :  { %v329_v8 = vpop.f32.mrf.mxu0 }
  0xee   :  { %725 = vmatmul.msk.f32.gmra.mxu1 %vm138_vm0, %v329_v8 }
  0xf5   :  { %v332_v44 = vpop.f32.mrf.mxu0 }
  0xf6   :  { %726 = vmatmul.msk.f32.gmra.mxu1 %vm138_vm0, %v332_v44 }
  0xfd   :  { %v335_v45 = vpop.f32.mrf.mxu0 }
  0xfe   :  { %727 = vmatmul.msk.f32.gmra.mxu1 %vm138_vm0, %v335_v45 }
 0x143   :  { %v379_v23 = vpop.f32.mrf.mxu1 }
 0x144   :  { %403 = vst.msk [vmem:[%s1527_s6] sm:$0xff] %vm138_vm0, %v379_v23 }
 0x14b   :  { %v382_v9 = vpop.f32.mrf.mxu1  ;;  %v419_v36 = vld [vmem:[%s1527_s6] sm:$0xff] }
 0x14c   :  { %404 = vst.msk [vmem:[%s1527_s6 + $0x8] sm:$0xff] %vm138_vm0, %v382_v9 }
 0x153   :  { %v385_v24 = vpop.f32.mrf.mxu1  ;;  %v420_v41 = vld [vmem:[%s1527_s6 + $0x8] sm:$0xff] }
 0x154   :  { %405 = vst.msk [vmem:[%s1527_s6 + $0x10] sm:$0xff] %vm138_vm0, %v385_v24 }
 0x15b   :  { %v388_v34 = vpop.f32.mrf.mxu1  ;;  %v645_v62 = vld [vmem:[%s1527_s6 + $0x10] sm:$0xff] }
 0x15c   :  { %406 = vst.msk [vmem:[%s1527_s6 + $0x18] sm:$0xff] %vm138_vm0, %v388_v34  ;;  %v653_v40 = vmul.f32 %v645_v62, %v645_v62 }
 0x15e   :  { %v662_v22 = vsel %vm138_vm0, %v653_v40, 0.0 }
 0x163   :  { %v391_v32 = vpop.f32.mrf.mxu1  ;;  %v646_v54 = vld [vmem:[%s1527_s6 + $0x18] sm:$0xff] }
 0x164   :  { %728 = vst.msk [vmem:[%s1527_s6 + $0x20] sm:$0xff] %vm138_vm0, %v391_v32  ;;  %v654_v2 = vmul.f32 %v646_v54, %v646_v54 }
 0x166   :  { %v664_v24 = vsel %vm138_vm0, %v654_v2, 0.0 }
 0x16b   :  { %v394_v10 = vpop.f32.mrf.mxu1  ;;  %v738_v11 = vld [vmem:[%s1527_s6 + $0x20] sm:$0xff] }
 0x16c   :  { %729 = vst.msk [vmem:[%s1527_s6 + $0x28] sm:$0xff] %vm138_vm0, %v394_v10 }
 0x173   :  { %v739_v33 = vld [vmem:[%s1527_s6 + $0x28] sm:$0xff]  ;;  %v397_v37 = vpop.f32.mrf.mxu1 }
 0x174   :  { %447 = vmatpush.msra.mxu2 %v739_v33  ;;  %730 = vst.msk [vmem:[%s1527_s6 + $0x30] sm:$0xff] %vm138_vm0, %v397_v37 }
 0x176   :  { %448 = vmatpush.msra.mxu2 %v738_v11 }
 0x178   :  { %449 = vmatpush.msra.mxu2 %v420_v41 }
 0x17a   :  { %450 = vmatpush.msra.mxu2 %v419_v36 }
 0x17b   :  { %740 = vmatmul.msk.f32.vlgmr.msra.gmra.mxu2 %vm138_vm0, %v732_v16  ;;  %v400_v30 = vpop.f32.mrf.mxu1  ;;  %v649_v7 = vld [vmem:[%s1527_s6 + $0x30] sm:$0xff] }
 0x17c   :  { %568 = vmatpush.msrb.mxu2 %v752_v21  ;;  %731 = vst.msk [vmem:[%s1527_s6 + $0x38] sm:$0xff] %vm138_vm0, %v400_v30  ;;  %v657_v32 = vmul.f32 %v649_v7, %v649_v7 }
 0x17e   :  { %763 = vmatpush.msk.msra.mxu2 %vm587_vm4, %v760_v29  ;;  %v670_v16 = vsel %vm138_vm0, %v657_v32, 0.0 }
 0x183   :  { %741 = vmatmul.msk.f32.gmra.mxu2 %vm138_vm0, %v733_v42  ;;  %v650_v8 = vld [vmem:[%s1527_s6 + $0x38] sm:$0xff] }
 0x184   :  { %v658_v10 = vmul.f32 %v650_v8, %v650_v8 }
 0x186   :  { %v672_v36 = vsel %vm138_vm0, %v658_v10, 0.0 }
 0x18b   :  { %742 = vmatmul.msk.f32.gmra.mxu2 %vm138_vm0, %v734_v56 }
 0x193   :  { %743 = vmatmul.msk.f32.gmra.mxu2 %vm138_vm0, %v735_v57 }
 0x1fe   :  { %v452_v31 = vpop.f32.mrf.mxu2 }
 0x1ff   :  { %744 = vmatmul.msk.f32.vlgmr.msra.gmra.mxu3 %vm464_vm2, %v452_v31 }
 0x206   :  { %v455_v47 = vpop.f32.mrf.mxu2 }
 0x207   :  { %745 = vmatmul.msk.f32.gmra.mxu3 %vm464_vm2, %v455_v47 }
 0x20e   :  { %v458_v60 = vpop.f32.mrf.mxu2 }
 0x20f   :  { %746 = vmatmul.msk.f32.gmra.mxu3 %vm464_vm2, %v458_v60 }
 0x216   :  { %v461_v46 = vpop.f32.mrf.mxu2 }
 0x217   :  { %747 = vmatmul.msk.f32.gmra.mxu3 %vm464_vm2, %v461_v46 }
 0x282   :  { %v494_v49 = vpop.f32.mrf.mxu3 }
 0x283   :  { %506 = vst.msk [vmem:[%s1527_s6] sm:$0xff] %vm464_vm2, %v494_v49 }
 0x28a   :  { %v497_v51 = vpop.f32.mrf.mxu3  ;;  %v515_v1 = vld [vmem:[%s1527_s6] sm:$0xff] }
 0x28b   :  { %507 = vst.msk [vmem:[%s1527_s6 + $0x8] sm:$0xff] %vm464_vm2, %v497_v51 }
 0x292   :  { %v500_v55 = vpop.f32.mrf.mxu3  ;;  %v644_v53 = vld [vmem:[%s1527_s6 + $0x8] sm:$0xff] }
 0x293   :  { %748 = vst.msk [vmem:[%s1527_s6 + $0x20] sm:$0xff] %vm464_vm2, %v500_v55  ;;  %v652_v38 = vmul.f32 %v644_v53, %v644_v53 }
 0x295   :  { %v660_v4 = vsel %vm138_vm0, %v652_v38, 0.0 }
 0x29a   :  { %v753_v63 = vld [vmem:[%s1527_s6 + $0x20] sm:$0xff]  ;;  %v503_v25 = vpop.f32.mrf.mxu3 }
 0x29b   :  { %537 = vmatpush.msrb.mxu3 %v753_v63  ;;  %749 = vst.msk [vmem:[%s1527_s6 + $0x28] sm:$0xff] %vm464_vm2, %v503_v25 }
 0x29d   :  { %538 = vmatpush.msrb.mxu3 %v515_v1 }
 0x29e   :  { %754 = vmatmul.msk.f32.vlgmr.msrb.gmra.mxu3 %vm464_vm2, %v750_v0 }
 0x2a2   :  { %v648_v5 = vld [vmem:[%s1527_s6 + $0x28] sm:$0xff] }
 0x2a3   :  { %v656_v9 = vmul.f32 %v648_v5, %v648_v5 }
 0x2a5   :  { %v668_v11 = vsel %vm138_vm0, %v656_v9, 0.0 }
 0x2a6   :  { %755 = vmatmul.msk.f32.gmra.mxu3 %vm464_vm2, %v751_v20 }
 0x321   :  { %v540_v19 = vpop.f32.mrf.mxu3 }
 0x322   :  { %756 = vmatmul.msk.f32.vlgmr.msrb.gmra.mxu2 %vm546_vm3, %v540_v19 }
 0x329   :  { %v543_v26 = vpop.f32.mrf.mxu3 }
 0x32a   :  { %757 = vmatmul.msk.f32.gmra.mxu2 %vm546_vm3, %v543_v26 }
 0x3a5   :  { %v570_v14 = vpop.f32.mrf.mxu2 }
 0x3a6   :  { %576 = vst.msk [vmem:[%s1527_s6] sm:$0xff] %vm546_vm3, %v570_v14 }
 0x3ad   :  { %v573_v15 = vpop.f32.mrf.mxu2  ;;  %v582_v43 = vld [vmem:[%s1527_s6] sm:$0xf] }
 0x3ae   :  { %758 = vst.msk [vmem:[%s1527_s6 + $0x20] sm:$0xff] %vm546_vm3, %v573_v15 }
 0x3b5   :  { %v761_v12 = vld [vmem:[%s1527_s6 + $0x20] sm:$0xf] }
 0x3b6   :  { %v585_v27 = vrot.slane %v761_v12, 4 }
 0x3b8   :  { %v588_v28 = vsel %vm587_vm4, %v582_v43, %v585_v27 }
 0x3b9   :  { %607 = vmatpush.msra.mxu3 %v588_v28 }
 0x3ba   :  { %762 = vmatmul.msk.f32.vlgmr.msra.gmra.mxu3 %vm546_vm3, %v759_v13 }
 0x43d   :  { %v609_v61 = vpop.f32.mrf.mxu3 }
 0x43e   :  { %764 = vmatmul.msk.f32.vlgmr.msra.gmra.mxu2 %vm612_vm5, %v609_v61 }
 0x4c1   :  { %v636_v52 = vpop.f32.mrf.mxu2 }
 0x4c2   :  { %640 = vst.msk [vmem:[%s1527_s6] sm:$0xf] %vm639_vm6, %v636_v52 }
 0x4c3   :  { %765 = vst.msk [vmem:[%s1527_s6 + $0x1c] sm:$0xf0] %vm641_vm7, %v636_v52 }
 0x4c9   :  { %v643_v39 = vld [vmem:[%s1527_s6] sm:$0xff] }
 0x4ca   :  { %v651_v58 = vmul.f32 %v643_v39, %v643_v39  ;;  %v647_v59 = vld [vmem:[%s1527_s6 + $0x20] sm:$0xff] }
 0x4cb   :  { %v655_v18 = vmul.f32 %v647_v59, %v647_v59 }
 0x4cc   :  { %v659_v17 = vsel %vm138_vm0, %v651_v58, 0.0 }
 0x4cd   :  { %v661_v6 = vadd.f32 %v660_v4, %v659_v17  ;;  %v666_v35 = vsel %vm138_vm0, %v655_v18, 0.0 }
 0x4cf   :  { %v663_v23 = vadd.f32 %v662_v22, %v661_v6 }
 0x4d1   :  { %v665_v34 = vadd.f32 %v664_v24, %v663_v23 }
 0x4d3   :  { %v667_v33 = vadd.f32 %v666_v35, %v665_v34 }
 0x4d5   :  { %v669_v41 = vadd.f32 %v668_v11, %v667_v33 }
 0x4d7   :  { %v671_v42 = vadd.f32 %v670_v16, %v669_v41 }
 0x4d9   :  { %v673_v56 = vadd.f32 %v672_v36, %v671_v42 }
 0x4db   :  { %674 = vadd.xlane.f32.xlu0 %v673_v56 }
 0x54e   :  { %v675_v48 = vpop.xlane.xlu0 %674 }
 0x54f   :  { %v676_v57 = vrot.slane %v675_v48, 4 }
 0x551   :  { %v677_v31 = vadd.f32 %v676_v57, %v675_v48 }
 0x553   :  { %v678_v47 = vrot.slane %v677_v31, 2 }
 0x555   :  { %v679_v60 = vadd.f32 %v678_v47, %v677_v31 }
 0x557   :  { %v680_v46 = vrot.slane %v679_v60, 1 }
 0x559   :  { %v681_v49 = vadd.f32 %v680_v46, %v679_v60 }
 0x55b   :  { %766 = vpush %v681_v49 }
 0x58c   :  { %s767_s17 = spop %766 }
 0x58d   :  { %684 = sst [smem:[#allocation2]] %s767_s17 }
 0x58e   :  { %695 = dma.smem_to_hbm %s783_s18, 16, %s693_s16, [#allocation3]  }
 0x58f   :  { %781 = dma.done.wait [#allocation3], 16  }
 0x590   :  { %782 = vsyncadd [#allocation3], 4294967280 }
 0x591   :  { %702 = sfence }
 0x592   :  { %703 = vsyncpa [#allocation3], 1 }

// kernel: zs_unrolled_network_onenet.28
= control target key start
LH: loop header
LB: loop body
LE: loop exit
PB: predicated region body
PF: predicated region fallthrough
CT: control target
= control target key end

     0   :  { %vm153_vm0 = vcmask 261120   ;;  %s671_s0 = inlined_call_operand.vmem [shape: f32[2,32,32], index: 0, kind: input, shape index: {}]   ;;  %s672_s1 = inlined_call_operand.vmem [shape: f32[4,32,32], index: 1, kind: input, shape index: {}]   ;;  %s673_s2 = inlined_call_operand.vmem [shape: f32[4,32,32], index: 2, kind: input, shape index: {}]   ;;  %s674_s3 = inlined_call_operand.vmem [shape: f32[4,32,32], index: 3, kind: output, shape index: {0}]   ;;  %s675_s4 = inlined_call_operand.vmem [shape: f32[4,32,32], index: 4, kind: output, shape index: {1}]  }
   0x1   :  { %v226_v0 = vld [vmem:[%s671_s0] sm:$0xff]  ;;  %v243_v5 = vld [vmem:[%s671_s0 + $0x8] sm:$0xff]  ;;  %v265_v11 = vld [vmem:[%s671_s0 + $0x10] sm:$0xff] }
   0x2   :  { %v231_v1 = vld [vmem:[%s671_s0 + $0x20] sm:$0xff]  ;;  %v248_v6 = vld [vmem:[%s671_s0 + $0x28] sm:$0xff]  ;;  %v275_v15 = vld [vmem:[%s671_s0 + $0x30] sm:$0xff] }
   0x3   :  { %v25_v2 = vld [vmem:[%s672_s1] sm:$0xff]  ;;  %v255_v9 = vld [vmem:[%s672_s1 + $0x8] sm:$0xff]  ;;  %v280_v16 = vld [vmem:[%s672_s1 + $0x10] sm:$0xff] }
   0x4   :  { %v41_v3 = vld [vmem:[%s673_s2] sm:$0xff]  ;;  %v57_v4 = vmul.f32 %v25_v2, %v226_v0  ;;  %v105_v7 = vmul.f32 %v231_v1, %v25_v2  ;;  %v260_v10 = vld [vmem:[%s673_s2 + $0x8] sm:$0xff]  ;;  %v58_v13 = vmul.f32 %v255_v9, %v243_v5  ;;  %v285_v17 = vld [vmem:[%s673_s2 + $0x10] sm:$0xff]  ;;  %v59_v19 = vmul.f32 %v280_v16, %v265_v11 }
   0x5   :  { %v73_v8 = vmul.f32 %v231_v1, %v41_v3  ;;  %v121_v12 = vmul.f32 %v41_v3, %v226_v0  ;;  %v74_v14 = vmul.f32 %v248_v6, %v260_v10  ;;  %v75_v20 = vmul.f32 %v275_v15, %v285_v17  ;;  %v294_v21 = vld [vmem:[%s671_s0 + $0x18] sm:$0xff]  ;;  %v316_v27 = vld [vmem:[%s672_s1 + $0x20] sm:$0xff]  ;;  %v336_v34 = vld [vmem:[%s672_s1 + $0x28] sm:$0xff] }
   0x6   :  { %v299_v22 = vld [vmem:[%s671_s0 + $0x38] sm:$0xff]  ;;  %v321_v28 = vld [vmem:[%s673_s2 + $0x20] sm:$0xff]  ;;  %v61_v32 = vmul.f32 %v316_v27, %v226_v0  ;;  %v341_v35 = vld [vmem:[%s673_s2 + $0x28] sm:$0xff]  ;;  %v62_v37 = vmul.f32 %v336_v34, %v243_v5 }
   0x7   :  { %v89_v18 = vsub.f32 %v57_v4, %v73_v8  ;;  %v304_v23 = vld [vmem:[%s672_s1 + $0x18] sm:$0xff]  ;;  %v90_v24 = vsub.f32 %v58_v13, %v74_v14  ;;  %v137_v29 = vadd.f32 %v121_v12, %v105_v7  ;;  %v91_v30 = vsub.f32 %v59_v19, %v75_v20  ;;  %v346_v36 = vld [vmem:[%s672_s1 + $0x30] sm:$0xff]  ;;  %v384_v47 = vld [vmem:[%s672_s1 + $0x40] sm:$0xff] }
   0x8   :  { %v309_v25 = vld [vmem:[%s673_s2 + $0x18] sm:$0xff]  ;;  %v60_v26 = vmul.f32 %v304_v23, %v294_v21  ;;  %v77_v33 = vmul.f32 %v231_v1, %v321_v28  ;;  %v78_v38 = vmul.f32 %v248_v6, %v341_v35  ;;  %v359_v39 = vld [vmem:[%s673_s2 + $0x30] sm:$0xff]  ;;  %v63_v40 = vmul.f32 %v346_v36, %v265_v11  ;;  %v389_v48 = vld [vmem:[%s673_s2 + $0x40] sm:$0xff] }
   0x9   :  { %154 = vst.msk [vmem:[%s674_s3] sm:$0xff] %vm153_vm0, %v89_v18  ;;  %v76_v31 = vmul.f32 %v299_v22, %v309_v25  ;;  %v366_v41 = vld [vmem:[%s672_s1 + $0x38] sm:$0xff]  ;;  %v79_v45 = vmul.f32 %v275_v15, %v359_v39  ;;  %v394_v49 = vld [vmem:[%s672_s1 + $0x48] sm:$0xff]  ;;  %v65_v52 = vmul.f32 %v384_v47, %v226_v0  ;;  %v81_v53 = vmul.f32 %v231_v1, %v389_v48  ;;  %v410_v55 = vld [vmem:[%s672_s1 + $0x50] sm:$0xff] }
   0xa   :  { %155 = vst.msk [vmem:[%s674_s3 + $0x8] sm:$0xff] %vm153_vm0, %v90_v24  ;;  %v371_v42 = vld [vmem:[%s673_s2 + $0x38] sm:$0xff]  ;;  %v93_v44 = vsub.f32 %v61_v32, %v77_v33  ;;  %v64_v46 = vmul.f32 %v366_v41, %v294_v21  ;;  %v94_v50 = vsub.f32 %v62_v37, %v78_v38  ;;  %v405_v54 = vld [vmem:[%s673_s2 + $0x48] sm:$0xff]  ;;  %v415_v56 = vld [vmem:[%s673_s2 + $0x50] sm:$0xff]  ;;  %v66_v58 = vmul.f32 %v394_v49, %v243_v5 }
   0xb   :  { %156 = vst.msk [vmem:[%s674_s3 + $0x10] sm:$0xff] %vm153_vm0, %v91_v30  ;;  %v92_v43 = vsub.f32 %v60_v26, %v76_v31  ;;  %v80_v51 = vmul.f32 %v299_v22, %v371_v42  ;;  %v95_v57 = vsub.f32 %v63_v40, %v79_v45  ;;  %v82_v59 = vmul.f32 %v248_v6, %v405_v54  ;;  %v434_v61 = vld [vmem:[%s672_s1 + $0x58] sm:$0xff]  ;;  %v444_v63 = vld [vmem:[%s672_s1 + $0x60] sm:$0xff]  ;;  %v462_v12 = vld [vmem:[%s672_s1 + $0x68] sm:$0xff] }
   0xc   :  { %170 = vst.msk [vmem:[%s675_s4] sm:$0xff] %vm153_vm0, %v137_v29  ;;  %v67_v60 = vmul.f32 %v410_v55, %v265_v11  ;;  %v439_v62 = vld [vmem:[%s673_s2 + $0x58] sm:$0xff]  ;;  %v97_v3 = vsub.f32 %v65_v52, %v81_v53  ;;  %v83_v4 = vmul.f32 %v275_v15, %v415_v56  ;;  %v68_v7 = vmul.f32 %v434_v61, %v294_v21  ;;  %v457_v8 = vld [vmem:[%s673_s2 + $0x60] sm:$0xff]  ;;  %v467_v13 = vld [vmem:[%s673_s2 + $0x68] sm:$0xff] }
   0xd   :  { %157 = vst.msk [vmem:[%s674_s3 + $0x18] sm:$0xff] %vm153_vm0, %v92_v43  ;;  %v96_v2 = vsub.f32 %v64_v46, %v80_v51  ;;  %v98_v14 = vsub.f32 %v66_v58, %v82_v59  ;;  %v84_v18 = vmul.f32 %v299_v22, %v439_v62  ;;  %v69_v19 = vmul.f32 %v444_v63, %v226_v0  ;;  %v482_v24 = vld [vmem:[%s672_s1 + $0x70] sm:$0xff]  ;;  %v492_v29 = vld [vmem:[%s672_s1 + $0x78] sm:$0xff] }
   0xe   :  { %158 = vst.msk [vmem:[%s674_s3 + $0x20] sm:$0xff] %vm153_vm0, %v93_v44  ;;  %v85_v20 = vmul.f32 %v231_v1, %v457_v8  ;;  %v487_v26 = vld [vmem:[%s673_s2 + $0x70] sm:$0xff]  ;;  %v99_v30 = vsub.f32 %v67_v60, %v83_v4  ;;  %v70_v31 = vmul.f32 %v462_v12, %v243_v5  ;;  %v86_v32 = vmul.f32 %v248_v6, %v467_v13  ;;  %v507_v37 = vld [vmem:[%s673_s2 + $0x78] sm:$0xff] }
   0xf   :  { %159 = vst.msk [vmem:[%s674_s3 + $0x28] sm:$0xff] %vm153_vm0, %v94_v50  ;;  %v71_v33 = vmul.f32 %v482_v24, %v265_v11  ;;  %v100_v38 = vsub.f32 %v68_v7, %v84_v18  ;;  %v87_v40 = vmul.f32 %v275_v15, %v487_v26  ;;  %v72_v43 = vmul.f32 %v492_v29, %v294_v21 }
  0x10   :  { %160 = vst.msk [vmem:[%s674_s3 + $0x30] sm:$0xff] %vm153_vm0, %v95_v57  ;;  %v101_v44 = vsub.f32 %v69_v19, %v85_v20  ;;  %v88_v45 = vmul.f32 %v299_v22, %v507_v37  ;;  %v106_v46 = vmul.f32 %v248_v6, %v255_v9  ;;  %v122_v50 = vmul.f32 %v260_v10, %v243_v5 }
  0x11   :  { %161 = vst.msk [vmem:[%s674_s3 + $0x38] sm:$0xff] %vm153_vm0, %v96_v2  ;;  %v102_v51 = vsub.f32 %v70_v31, %v86_v32  ;;  %v107_v52 = vmul.f32 %v275_v15, %v280_v16  ;;  %v123_v53 = vmul.f32 %v285_v17, %v265_v11  ;;  %v103_v9 = vsub.f32 %v71_v33, %v87_v40 }
  0x12   :  { %162 = vst.msk [vmem:[%s674_s3 + $0x40] sm:$0xff] %vm153_vm0, %v97_v3  ;;  %v108_v10 = vmul.f32 %v299_v22, %v304_v23  ;;  %v124_v57 = vmul.f32 %v309_v25, %v294_v21  ;;  %v104_v16 = vsub.f32 %v72_v43, %v88_v45  ;;  %v109_v17 = vmul.f32 %v231_v1, %v316_v27 }
  0x13   :  { %163 = vst.msk [vmem:[%s674_s3 + $0x48] sm:$0xff] %vm153_vm0, %v98_v14  ;;  %v125_v58 = vmul.f32 %v321_v28, %v226_v0  ;;  %v138_v23 = vadd.f32 %v122_v50, %v106_v46  ;;  %v110_v25 = vmul.f32 %v248_v6, %v336_v34  ;;  %v126_v59 = vmul.f32 %v341_v35, %v243_v5 }
  0x14   :  { %164 = vst.msk [vmem:[%s674_s3 + $0x50] sm:$0xff] %vm153_vm0, %v99_v30  ;;  %v139_v27 = vadd.f32 %v123_v53, %v107_v52  ;;  %v111_v28 = vmul.f32 %v275_v15, %v346_v36  ;;  %v127_v60 = vmul.f32 %v359_v39, %v265_v11  ;;  %v140_v34 = vadd.f32 %v124_v57, %v108_v10 }
  0x15   :  { %165 = vst.msk [vmem:[%s674_s3 + $0x58] sm:$0xff] %vm153_vm0, %v100_v38  ;;  %v112_v35 = vmul.f32 %v299_v22, %v366_v41  ;;  %v128_v2 = vmul.f32 %v371_v42, %v294_v21  ;;  %v141_v36 = vadd.f32 %v125_v58, %v109_v17  ;;  %v113_v39 = vmul.f32 %v231_v1, %v384_v47 }
  0x16   :  { %166 = vst.msk [vmem:[%s674_s3 + $0x60] sm:$0xff] %vm153_vm0, %v101_v44  ;;  %v129_v3 = vmul.f32 %v389_v48, %v226_v0  ;;  %v142_v41 = vadd.f32 %v126_v59, %v110_v25  ;;  %v114_v42 = vmul.f32 %v248_v6, %v394_v49  ;;  %v130_v4 = vmul.f32 %v405_v54, %v243_v5 }
  0x17   :  { %167 = vst.msk [vmem:[%s674_s3 + $0x68] sm:$0xff] %vm153_vm0, %v102_v51  ;;  %v143_v47 = vadd.f32 %v127_v60, %v111_v28  ;;  %v115_v48 = vmul.f32 %v275_v15, %v410_v55  ;;  %v131_v7 = vmul.f32 %v415_v56, %v265_v11  ;;  %v144_v49 = vadd.f32 %v128_v2, %v112_v35 }
  0x18   :  { %168 = vst.msk [vmem:[%s674_s3 + $0x70] sm:$0xff] %vm153_vm0, %v103_v9  ;;  %v116_v54 = vmul.f32 %v299_v22, %v434_v61  ;;  %v132_v14 = vmul.f32 %v439_v62, %v294_v21  ;;  %v145_v55 = vadd.f32 %v129_v3, %v113_v39  ;;  %v117_v56 = vmul.f32 %v231_v1, %v444_v63 }
  0x19   :  { %169 = vst.msk [vmem:[%s674_s3 + $0x78] sm:$0xff] %vm153_vm0, %v104_v16  ;;  %v133_v18 = vmul.f32 %v457_v8, %v226_v0  ;;  %v146_v61 = vadd.f32 %v130_v4, %v114_v42  ;;  %v118_v62 = vmul.f32 %v248_v6, %v462_v12  ;;  %v134_v19 = vmul.f32 %v467_v13, %v243_v5 }
  0x1a   :  { %171 = vst.msk [vmem:[%s675_s4 + $0x8] sm:$0xff] %vm153_vm0, %v138_v23  ;;  %v147_v1 = vadd.f32 %v131_v7, %v115_v48  ;;  %v119_v0 = vmul.f32 %v275_v15, %v482_v24  ;;  %v135_v63 = vmul.f32 %v487_v26, %v265_v11  ;;  %v148_v6 = vadd.f32 %v132_v14, %v116_v54 }
  0x1b   :  { %172 = vst.msk [vmem:[%s675_s4 + $0x10] sm:$0xff] %vm153_vm0, %v139_v27  ;;  %v120_v5 = vmul.f32 %v299_v22, %v492_v29  ;;  %v136_v8 = vmul.f32 %v507_v37, %v294_v21  ;;  %v149_v15 = vadd.f32 %v133_v18, %v117_v56  ;;  %v150_v11 = vadd.f32 %v134_v19, %v118_v62 }
  0x1c   :  { %173 = vst.msk [vmem:[%s675_s4 + $0x18] sm:$0xff] %vm153_vm0, %v140_v34  ;;  %v151_v22 = vadd.f32 %v135_v63, %v119_v0 }
  0x1d   :  { %174 = vst.msk [vmem:[%s675_s4 + $0x20] sm:$0xff] %vm153_vm0, %v141_v36  ;;  %v152_v21 = vadd.f32 %v136_v8, %v120_v5 }
  0x1e   :  { %175 = vst.msk [vmem:[%s675_s4 + $0x28] sm:$0xff] %vm153_vm0, %v142_v41 }
  0x1f   :  { %176 = vst.msk [vmem:[%s675_s4 + $0x30] sm:$0xff] %vm153_vm0, %v143_v47 }
  0x20   :  { %177 = vst.msk [vmem:[%s675_s4 + $0x38] sm:$0xff] %vm153_vm0, %v144_v49 }
  0x21   :  { %178 = vst.msk [vmem:[%s675_s4 + $0x40] sm:$0xff] %vm153_vm0, %v145_v55 }
  0x22   :  { %179 = vst.msk [vmem:[%s675_s4 + $0x48] sm:$0xff] %vm153_vm0, %v146_v61 }
  0x23   :  { %180 = vst.msk [vmem:[%s675_s4 + $0x50] sm:$0xff] %vm153_vm0, %v147_v1 }
  0x24   :  { %181 = vst.msk [vmem:[%s675_s4 + $0x58] sm:$0xff] %vm153_vm0, %v148_v6 }
  0x25   :  { %182 = vst.msk [vmem:[%s675_s4 + $0x60] sm:$0xff] %vm153_vm0, %v149_v15 }
  0x26   :  { %183 = vst.msk [vmem:[%s675_s4 + $0x68] sm:$0xff] %vm153_vm0, %v150_v11 }
  0x27   :  { %184 = vst.msk [vmem:[%s675_s4 + $0x70] sm:$0xff] %vm153_vm0, %v151_v22 }
  0x28   :  { %185 = vst.msk [vmem:[%s675_s4 + $0x78] sm:$0xff] %vm153_vm0, %v152_v21 }

// kernel: zs_unrolled_network_onenet.29
= control target key start
LH: loop header
LB: loop body
LE: loop exit
PB: predicated region body
PF: predicated region fallthrough
CT: control target
= control target key end

     0   :  { %vm110_vm0 = vcmask 261120   ;;  %s682_s0 = inlined_call_operand.vmem [shape: f32[4,32,32], index: 0, kind: input, shape index: {}]   ;;  %s683_s2 = inlined_call_operand.vmem [shape: f32[4,32,32], index: 2, kind: input, shape index: {}]   ;;  %s684_s4 = inlined_call_operand.vmem [shape: f32[1,32,32], index: 4, kind: input, shape index: {}]   ;;  %s685_s5 = inlined_call_operand.vmem [shape: f32[4,32,32], index: 5, kind: output, shape index: {0}]   ;;  %s686_s1 = inlined_call_operand.vmem [shape: f32[4,32,32], index: 1, kind: input, shape index: {}]   ;;  %s687_s3 = inlined_call_operand.vmem [shape: f32[4,32,32], index: 3, kind: input, shape index: {}]   ;;  %s688_s6 = inlined_call_operand.vmem [shape: f32[4,32,32], index: 6, kind: output, shape index: {1}]  }
   0x1   :  { %v269_v0 = vld [vmem:[%s684_s4] sm:$0xff]  ;;  %v284_v5 = vld [vmem:[%s684_s4 + $0x8] sm:$0xff]  ;;  %v299_v10 = vld [vmem:[%s684_s4 + $0x10] sm:$0xff] }
   0x2   :  { %v26_v1 = vld [vmem:[%s683_s2] sm:$0xff]  ;;  %v279_v4 = vsub.f32 1.0, %v269_v0  ;;  %v27_v6 = vld [vmem:[%s683_s2 + $0x8] sm:$0xff]  ;;  %v294_v9 = vsub.f32 1.0, %v284_v5  ;;  %v28_v11 = vld [vmem:[%s683_s2 + $0x10] sm:$0xff]  ;;  %v310_v15 = vsub.f32 1.0, %v299_v10 }
   0x3   :  { %v62_v2 = vld [vmem:[%s682_s0] sm:$0xff]  ;;  %v42_v3 = vmul.f32 %v26_v1, %v269_v0  ;;  %v63_v7 = vld [vmem:[%s682_s0 + $0x8] sm:$0xff]  ;;  %v43_v8 = vmul.f32 %v27_v6, %v284_v5  ;;  %v64_v12 = vld [vmem:[%s682_s0 + $0x10] sm:$0xff]  ;;  %v44_v14 = vmul.f32 %v28_v11, %v299_v10 }
   0x4   :  { %v78_v13 = vmul.f32 %v62_v2, %v279_v4  ;;  %v315_v16 = vld [vmem:[%s684_s4 + $0x18] sm:$0xff]  ;;  %v79_v19 = vmul.f32 %v63_v7, %v294_v9  ;;  %v30_v22 = vld [vmem:[%s683_s2 + $0x20] sm:$0xff]  ;;  %v31_v24 = vld [vmem:[%s683_s2 + $0x28] sm:$0xff]  ;;  %v80_v26 = vmul.f32 %v64_v12, %v310_v15 }
   0x5   :  { %v29_v17 = vld [vmem:[%s683_s2 + $0x18] sm:$0xff]  ;;  %v326_v21 = vsub.f32 1.0, %v315_v16  ;;  %v66_v23 = vld [vmem:[%s682_s0 + $0x20] sm:$0xff]  ;;  %v46_v27 = vmul.f32 %v30_v22, %v269_v0  ;;  %v67_v29 = vld [vmem:[%s682_s0 + $0x28] sm:$0xff]  ;;  %v47_v34 = vmul.f32 %v31_v24, %v284_v5 }
   0x6   :  { %v65_v18 = vld [vmem:[%s682_s0 + $0x18] sm:$0xff]  ;;  %v45_v20 = vmul.f32 %v29_v17, %v315_v16  ;;  %v94_v25 = vadd.f32 %v78_v13, %v42_v3  ;;  %v82_v28 = vmul.f32 %v66_v23, %v279_v4  ;;  %v32_v30 = vld [vmem:[%s683_s2 + $0x30] sm:$0xff]  ;;  %v95_v32 = vadd.f32 %v79_v19, %v43_v8  ;;  %v34_v38 = vld [vmem:[%s683_s2 + $0x40] sm:$0xff] }
   0x7   :  { %v68_v31 = vld [vmem:[%s682_s0 + $0x30] sm:$0xff]  ;;  %v81_v33 = vmul.f32 %v65_v18, %v326_v21  ;;  %v83_v35 = vmul.f32 %v67_v29, %v294_v9  ;;  %v33_v36 = vld [vmem:[%s683_s2 + $0x38] sm:$0xff]  ;;  %v96_v39 = vadd.f32 %v80_v26, %v44_v14  ;;  %v48_v41 = vmul.f32 %v32_v30, %v299_v10  ;;  %v70_v43 = vld [vmem:[%s682_s0 + $0x40] sm:$0xff] }
   0x8   :  { %v69_v37 = vld [vmem:[%s682_s0 + $0x38] sm:$0xff]  ;;  %111 = vst.msk [vmem:[%s685_s5] sm:$0xff] %vm110_vm0, %v94_v25  ;;  %v98_v40 = vadd.f32 %v82_v28, %v46_v27  ;;  %v84_v42 = vmul.f32 %v68_v31, %v310_v15  ;;  %v35_v44 = vld [vmem:[%s683_s2 + $0x48] sm:$0xff]  ;;  %v49_v48 = vmul.f32 %v33_v36, %v315_v16  ;;  %v36_v50 = vld [vmem:[%s683_s2 + $0x50] sm:$0xff]  ;;  %v50_v54 = vmul.f32 %v34_v38, %v269_v0 }
   0x9   :  { %v71_v45 = vld [vmem:[%s682_s0 + $0x48] sm:$0xff]  ;;  %112 = vst.msk [vmem:[%s685_s5 + $0x8] sm:$0xff] %vm110_vm0, %v95_v32  ;;  %v97_v46 = vadd.f32 %v81_v33, %v45_v20  ;;  %v99_v47 = vadd.f32 %v83_v35, %v47_v34  ;;  %v85_v49 = vmul.f32 %v69_v37, %v326_v21  ;;  %v72_v51 = vld [vmem:[%s682_s0 + $0x50] sm:$0xff]  ;;  %v37_v52 = vld [vmem:[%s683_s2 + $0x58] sm:$0xff]  ;;  %v86_v55 = vmul.f32 %v70_v43, %v279_v4 }
   0xa   :  { %113 = vst.msk [vmem:[%s685_s5 + $0x10] sm:$0xff] %vm110_vm0, %v96_v39  ;;  %v100_v53 = vadd.f32 %v84_v42, %v48_v41  ;;  %v51_v56 = vmul.f32 %v35_v44, %v284_v5  ;;  %v73_v57 = vld [vmem:[%s682_s0 + $0x58] sm:$0xff]  ;;  %v38_v58 = vld [vmem:[%s683_s2 + $0x60] sm:$0xff]  ;;  %v87_v61 = vmul.f32 %v71_v45, %v294_v9  ;;  %v52_v62 = vmul.f32 %v36_v50, %v299_v10  ;;  %v39_v1 = vld [vmem:[%s683_s2 + $0x68] sm:$0xff] }
   0xb   :  { %v74_v59 = vld [vmem:[%s682_s0 + $0x60] sm:$0xff]  ;;  %114 = vst.msk [vmem:[%s685_s5 + $0x18] sm:$0xff] %vm110_vm0, %v97_v46  ;;  %v101_v60 = vadd.f32 %v85_v49, %v49_v48  ;;  %v88_v63 = vmul.f32 %v72_v51, %v310_v15  ;;  %v75_v2 = vld [vmem:[%s682_s0 + $0x68] sm:$0xff]  ;;  %v40_v3 = vld [vmem:[%s683_s2 + $0x70] sm:$0xff]  ;;  %v102_v6 = vadd.f32 %v86_v55, %v50_v54  ;;  %v53_v7 = vmul.f32 %v37_v52, %v315_v16 }
   0xc   :  { %115 = vst.msk [vmem:[%s685_s5 + $0x20] sm:$0xff] %vm110_vm0, %v98_v40  ;;  %v89_v8 = vmul.f32 %v73_v57, %v326_v21  ;;  %v54_v11 = vmul.f32 %v38_v58, %v269_v0  ;;  %v76_v12 = vld [vmem:[%s682_s0 + $0x70] sm:$0xff]  ;;  %v41_v13 = vld [vmem:[%s683_s2 + $0x78] sm:$0xff]  ;;  %v103_v17 = vadd.f32 %v87_v61, %v51_v56  ;;  %v90_v18 = vmul.f32 %v74_v59, %v279_v4  ;;  %v127_v20 = vld [vmem:[%s687_s3] sm:$0xff] }
   0xd   :  { %v77_v14 = vld [vmem:[%s682_s0 + $0x78] sm:$0xff]  ;;  %116 = vst.msk [vmem:[%s685_s5 + $0x28] sm:$0xff] %vm110_vm0, %v99_v47  ;;  %v55_v19 = vmul.f32 %v39_v1, %v284_v5  ;;  %v159_v22 = vld [vmem:[%s686_s1] sm:$0xff]  ;;  %v104_v23 = vadd.f32 %v88_v63, %v52_v62  ;;  %v91_v24 = vmul.f32 %v75_v2, %v294_v9  ;;  %v56_v25 = vmul.f32 %v40_v3, %v299_v10  ;;  %v128_v27 = vld [vmem:[%s687_s3 + $0x8] sm:$0xff] }
   0xe   :  { %117 = vst.msk [vmem:[%s685_s5 + $0x30] sm:$0xff] %vm110_vm0, %v100_v53  ;;  %v92_v26 = vmul.f32 %v76_v12, %v310_v15  ;;  %v160_v28 = vld [vmem:[%s686_s1 + $0x8] sm:$0xff]  ;;  %v105_v29 = vadd.f32 %v89_v8, %v53_v7  ;;  %v57_v30 = vmul.f32 %v41_v13, %v315_v16  ;;  %v93_v31 = vmul.f32 %v77_v14, %v326_v21  ;;  %v129_v32 = vld [vmem:[%s687_s3 + $0x10] sm:$0xff]  ;;  %v130_v37 = vld [vmem:[%s687_s3 + $0x18] sm:$0xff] }
   0xf   :  { %118 = vst.msk [vmem:[%s685_s5 + $0x38] sm:$0xff] %vm110_vm0, %v101_v60  ;;  %v161_v33 = vld [vmem:[%s686_s1 + $0x10] sm:$0xff]  ;;  %v106_v34 = vadd.f32 %v90_v18, %v54_v11  ;;  %v143_v35 = vmul.f32 %v127_v20, %v269_v0  ;;  %v175_v36 = vmul.f32 %v159_v22, %v279_v4  ;;  %v162_v38 = vld [vmem:[%s686_s1 + $0x18] sm:$0xff]  ;;  %v107_v39 = vadd.f32 %v91_v24, %v55_v19  ;;  %v131_v42 = vld [vmem:[%s687_s3 + $0x20] sm:$0xff] }
  0x10   :  { %119 = vst.msk [vmem:[%s685_s5 + $0x40] sm:$0xff] %vm110_vm0, %v102_v6  ;;  %v144_v40 = vmul.f32 %v128_v27, %v284_v5  ;;  %v176_v41 = vmul.f32 %v160_v28, %v294_v9  ;;  %v163_v43 = vld [vmem:[%s686_s1 + $0x20] sm:$0xff]  ;;  %v108_v44 = vadd.f32 %v92_v26, %v56_v25  ;;  %v145_v45 = vmul.f32 %v129_v32, %v299_v10  ;;  %v132_v47 = vld [vmem:[%s687_s3 + $0x28] sm:$0xff]  ;;  %v133_v52 = vld [vmem:[%s687_s3 + $0x30] sm:$0xff] }
  0x11   :  { %120 = vst.msk [vmem:[%s685_s5 + $0x48] sm:$0xff] %vm110_vm0, %v103_v17  ;;  %v177_v46 = vmul.f32 %v161_v33, %v310_v15  ;;  %v164_v48 = vld [vmem:[%s686_s1 + $0x28] sm:$0xff]  ;;  %v109_v49 = vadd.f32 %v93_v31, %v57_v30  ;;  %v146_v50 = vmul.f32 %v130_v37, %v315_v16  ;;  %v178_v51 = vmul.f32 %v162_v38, %v326_v21  ;;  %v165_v53 = vld [vmem:[%s686_s1 + $0x30] sm:$0xff]  ;;  %v134_v57 = vld [vmem:[%s687_s3 + $0x38] sm:$0xff] }
  0x12   :  { %121 = vst.msk [vmem:[%s685_s5 + $0x50] sm:$0xff] %vm110_vm0, %v104_v23  ;;  %v191_v54 = vadd.f32 %v175_v36, %v143_v35  ;;  %v147_v55 = vmul.f32 %v131_v42, %v269_v0  ;;  %v179_v56 = vmul.f32 %v163_v43, %v279_v4  ;;  %v166_v58 = vld [vmem:[%s686_s1 + $0x38] sm:$0xff]  ;;  %v192_v59 = vadd.f32 %v176_v41, %v144_v40  ;;  %v135_v62 = vld [vmem:[%s687_s3 + $0x40] sm:$0xff]  ;;  %v136_v6 = vld [vmem:[%s687_s3 + $0x48] sm:$0xff] }
  0x13   :  { %122 = vst.msk [vmem:[%s685_s5 + $0x58] sm:$0xff] %vm110_vm0, %v105_v29  ;;  %v148_v60 = vmul.f32 %v132_v47, %v284_v5  ;;  %v180_v61 = vmul.f32 %v164_v48, %v294_v9  ;;  %v167_v63 = vld [vmem:[%s686_s1 + $0x40] sm:$0xff]  ;;  %v193_v1 = vadd.f32 %v177_v46, %v145_v45  ;;  %v149_v2 = vmul.f32 %v133_v52, %v299_v10  ;;  %v168_v7 = vld [vmem:[%s686_s1 + $0x48] sm:$0xff]  ;;  %v137_v13 = vld [vmem:[%s687_s3 + $0x50] sm:$0xff] }
  0x14   :  { %123 = vst.msk [vmem:[%s685_s5 + $0x60] sm:$0xff] %vm110_vm0, %v106_v34  ;;  %v181_v3 = vmul.f32 %v165_v53, %v310_v15  ;;  %v194_v8 = vadd.f32 %v178_v51, %v146_v50  ;;  %v150_v11 = vmul.f32 %v134_v57, %v315_v16  ;;  %v182_v12 = vmul.f32 %v166_v58, %v326_v21  ;;  %v169_v14 = vld [vmem:[%s686_s1 + $0x50] sm:$0xff]  ;;  %v138_v20 = vld [vmem:[%s687_s3 + $0x58] sm:$0xff]  ;;  %v139_v26 = vld [vmem:[%s687_s3 + $0x60] sm:$0xff] }
  0x15   :  { %124 = vst.msk [vmem:[%s685_s5 + $0x68] sm:$0xff] %vm110_vm0, %v107_v39  ;;  %v195_v17 = vadd.f32 %v179_v56, %v147_v55  ;;  %v151_v18 = vmul.f32 %v135_v62, %v269_v0  ;;  %v183_v19 = vmul.f32 %v167_v63, %v279_v4  ;;  %v170_v22 = vld [vmem:[%s686_s1 + $0x58] sm:$0xff]  ;;  %v196_v23 = vadd.f32 %v180_v61, %v148_v60  ;;  %v171_v27 = vld [vmem:[%s686_s1 + $0x60] sm:$0xff]  ;;  %v140_v31 = vld [vmem:[%s687_s3 + $0x68] sm:$0xff] }
  0x16   :  { %125 = vst.msk [vmem:[%s685_s5 + $0x70] sm:$0xff] %vm110_vm0, %v108_v44  ;;  %v152_v24 = vmul.f32 %v136_v6, %v284_v5  ;;  %v184_v25 = vmul.f32 %v168_v7, %v294_v9  ;;  %v197_v28 = vadd.f32 %v181_v3, %v149_v2  ;;  %v153_v29 = vmul.f32 %v137_v13, %v299_v10  ;;  %v172_v32 = vld [vmem:[%s686_s1 + $0x68] sm:$0xff]  ;;  %v141_v36 = vld [vmem:[%s687_s3 + $0x70] sm:$0xff]  ;;  %v142_v41 = vld [vmem:[%s687_s3 + $0x78] sm:$0xff] }
  0x17   :  { %126 = vst.msk [vmem:[%s685_s5 + $0x78] sm:$0xff] %vm110_vm0, %v109_v49  ;;  %v185_v30 = vmul.f32 %v169_v14, %v310_v15  ;;  %v198_v33 = vadd.f32 %v182_v12, %v150_v11  ;;  %v154_v34 = vmul.f32 %v138_v20, %v315_v16  ;;  %v186_v35 = vmul.f32 %v170_v22, %v326_v21  ;;  %v173_v37 = vld [vmem:[%s686_s1 + $0x70] sm:$0xff]  ;;  %v174_v42 = vld [vmem:[%s686_s1 + $0x78] sm:$0xff] }
  0x18   :  { %207 = vst.msk [vmem:[%s688_s6] sm:$0xff] %vm110_vm0, %v191_v54  ;;  %v199_v38 = vadd.f32 %v183_v19, %v151_v18  ;;  %v155_v39 = vmul.f32 %v139_v26, %v269_v0  ;;  %v187_v40 = vmul.f32 %v171_v27, %v279_v4  ;;  %v200_v43 = vadd.f32 %v184_v25, %v152_v24 }
  0x19   :  { %208 = vst.msk [vmem:[%s688_s6 + $0x8] sm:$0xff] %vm110_vm0, %v192_v59  ;;  %v156_v44 = vmul.f32 %v140_v31, %v284_v5  ;;  %v188_v0 = vmul.f32 %v172_v32, %v294_v9  ;;  %v201_v4 = vadd.f32 %v185_v30, %v153_v29  ;;  %v157_v45 = vmul.f32 %v141_v36, %v299_v10 }
  0x1a   :  { %209 = vst.msk [vmem:[%s688_s6 + $0x10] sm:$0xff] %vm110_vm0, %v193_v1  ;;  %v189_v46 = vmul.f32 %v173_v37, %v310_v15  ;;  %v202_v47 = vadd.f32 %v186_v35, %v154_v34  ;;  %v158_v5 = vmul.f32 %v142_v41, %v315_v16  ;;  %v190_v9 = vmul.f32 %v174_v42, %v326_v21 }
  0x1b   :  { %210 = vst.msk [vmem:[%s688_s6 + $0x18] sm:$0xff] %vm110_vm0, %v194_v8  ;;  %v203_v48 = vadd.f32 %v187_v40, %v155_v39  ;;  %v204_v10 = vadd.f32 %v188_v0, %v156_v44 }
  0x1c   :  { %211 = vst.msk [vmem:[%s688_s6 + $0x20] sm:$0xff] %vm110_vm0, %v195_v17  ;;  %v205_v15 = vadd.f32 %v189_v46, %v157_v45  ;;  %v206_v16 = vadd.f32 %v190_v9, %v158_v5 }
  0x1d   :  { %212 = vst.msk [vmem:[%s688_s6 + $0x28] sm:$0xff] %vm110_vm0, %v196_v23 }
  0x1e   :  { %213 = vst.msk [vmem:[%s688_s6 + $0x30] sm:$0xff] %vm110_vm0, %v197_v28 }
  0x1f   :  { %214 = vst.msk [vmem:[%s688_s6 + $0x38] sm:$0xff] %vm110_vm0, %v198_v33 }
  0x20   :  { %215 = vst.msk [vmem:[%s688_s6 + $0x40] sm:$0xff] %vm110_vm0, %v199_v38 }
  0x21   :  { %216 = vst.msk [vmem:[%s688_s6 + $0x48] sm:$0xff] %vm110_vm0, %v200_v43 }
  0x22   :  { %217 = vst.msk [vmem:[%s688_s6 + $0x50] sm:$0xff] %vm110_vm0, %v201_v4 }
  0x23   :  { %218 = vst.msk [vmem:[%s688_s6 + $0x58] sm:$0xff] %vm110_vm0, %v202_v47 }
  0x24   :  { %219 = vst.msk [vmem:[%s688_s6 + $0x60] sm:$0xff] %vm110_vm0, %v203_v48 }
  0x25   :  { %220 = vst.msk [vmem:[%s688_s6 + $0x68] sm:$0xff] %vm110_vm0, %v204_v10 }
  0x26   :  { %221 = vst.msk [vmem:[%s688_s6 + $0x70] sm:$0xff] %vm110_vm0, %v205_v15 }
  0x27   :  { %222 = vst.msk [vmem:[%s688_s6 + $0x78] sm:$0xff] %vm110_vm0, %v206_v16 }

// kernel: zs_unrolled_network_onenet.45
= control target key start
LH: loop header
LB: loop body
LE: loop exit
PB: predicated region body
PF: predicated region fallthrough
CT: control target
= control target key end

     0   :  { %vm129_vm0 = vcmask 261120   ;;  %s751_s0 = inlined_call_operand.vmem [shape: f32[4,32,32], index: 0, kind: input, shape index: {}]   ;;  %s752_s1 = inlined_call_operand.vmem [shape: f32[4,32,32], index: 1, kind: input, shape index: {}]   ;;  %s753_s2 = inlined_call_operand.vmem [shape: f32[4,32,32], index: 2, kind: input, shape index: {}]   ;;  %s754_s3 = inlined_call_operand.vmem [shape: f32[4,32,32], index: 3, kind: input, shape index: {}]   ;;  %s755_s4 = inlined_call_operand.vmem [shape: f32[2,32,32], index: 4, kind: output, shape index: {}]  }
   0x1   :  { %v17_v0 = vld [vmem:[%s751_s0] sm:$0xff]  ;;  %v331_v25 = vld [vmem:[%s751_s0 + $0x8] sm:$0xff]  ;;  %v434_v62 = vld [vmem:[%s751_s0 + $0x10] sm:$0xff] }
   0x2   :  { %v21_v1 = vld [vmem:[%s751_s0 + $0x20] sm:$0xff]  ;;  %v336_v26 = vld [vmem:[%s751_s0 + $0x28] sm:$0xff] }
   0x3   :  { %v25_v2 = vld [vmem:[%s751_s0 + $0x40] sm:$0xff]  ;;  %v343_v29 = vld [vmem:[%s751_s0 + $0x48] sm:$0xff] }
   0x4   :  { %v29_v3 = vld [vmem:[%s751_s0 + $0x60] sm:$0xff]  ;;  %v348_v30 = vld [vmem:[%s751_s0 + $0x68] sm:$0xff] }
   0x5   :  { %v33_v4 = vld [vmem:[%s752_s1] sm:$0xff]  ;;  %v353_v31 = vld [vmem:[%s752_s1 + $0x8] sm:$0xff] }
   0x6   :  { %v37_v5 = vld [vmem:[%s752_s1 + $0x20] sm:$0xff]  ;;  %v362_v38 = vld [vmem:[%s752_s1 + $0x28] sm:$0xff] }
   0x7   :  { %v41_v6 = vld [vmem:[%s752_s1 + $0x40] sm:$0xff]  ;;  %v367_v39 = vld [vmem:[%s752_s1 + $0x48] sm:$0xff] }
   0x8   :  { %v45_v7 = vld [vmem:[%s752_s1 + $0x60] sm:$0xff]  ;;  %v372_v40 = vld [vmem:[%s752_s1 + $0x68] sm:$0xff] }
   0x9   :  { %v49_v8 = vld [vmem:[%s753_s2] sm:$0xff]  ;;  %v379_v43 = vld [vmem:[%s753_s2 + $0x8] sm:$0xff] }
   0xa   :  { %v53_v9 = vld [vmem:[%s753_s2 + $0x20] sm:$0xff]  ;;  %v81_v12 = vmul.f32 %v49_v8, %v17_v0  ;;  %v312_v13 = vmul.f32 %v49_v8, %v33_v4  ;;  %v384_v44 = vld [vmem:[%s753_s2 + $0x28] sm:$0xff]  ;;  %v82_v55 = vmul.f32 %v379_v43, %v331_v25  ;;  %v464_v8 = vld [vmem:[%s752_s1 + $0x10] sm:$0xff] }
   0xb   :  { %v57_v10 = vld [vmem:[%s753_s2 + $0x40] sm:$0xff]  ;;  %v85_v17 = vmul.f32 %v53_v9, %v21_v1  ;;  %v323_v20 = vmul.f32 %v53_v9, %v37_v5  ;;  %v389_v45 = vld [vmem:[%s753_s2 + $0x48] sm:$0xff]  ;;  %v86_v60 = vmul.f32 %v384_v44, %v336_v26  ;;  %v469_v9 = vld [vmem:[%s752_s1 + $0x30] sm:$0xff] }
   0xc   :  { %v61_v11 = vld [vmem:[%s753_s2 + $0x60] sm:$0xff]  ;;  %v89_v18 = vmul.f32 %v57_v10, %v25_v2  ;;  %v338_v27 = vmul.f32 %v57_v10, %v41_v6  ;;  %v402_v52 = vld [vmem:[%s753_s2 + $0x68] sm:$0xff]  ;;  %v90_v61 = vmul.f32 %v389_v45, %v343_v29  ;;  %v474_v10 = vld [vmem:[%s752_s1 + $0x50] sm:$0xff] }
   0xd   :  { %v65_v14 = vld [vmem:[%s754_s3] sm:$0xff]  ;;  %v93_v19 = vmul.f32 %v61_v11, %v29_v3  ;;  %v355_v32 = vmul.f32 %v61_v11, %v45_v7  ;;  %v407_v53 = vld [vmem:[%s754_s3 + $0x8] sm:$0xff]  ;;  %v94_v63 = vmul.f32 %v402_v52, %v348_v30 }
   0xe   :  { %v69_v15 = vld [vmem:[%s754_s3 + $0x20] sm:$0xff]  ;;  %v97_v22 = vmul.f32 %v65_v14, %v33_v4  ;;  %v174_v33 = vmul.f32 %v65_v14, %v17_v0  ;;  %v412_v54 = vld [vmem:[%s754_s3 + $0x28] sm:$0xff]  ;;  %v98_v0 = vmul.f32 %v407_v53, %v353_v31  ;;  %v452_v4 = vld [vmem:[%s751_s0 + $0x50] sm:$0xff] }
   0xf   :  { %v73_v16 = vld [vmem:[%s754_s3 + $0x40] sm:$0xff]  ;;  %v101_v23 = vmul.f32 %v69_v15, %v37_v5  ;;  %v357_v34 = vmul.f32 %v69_v15, %v21_v1  ;;  %v420_v58 = vld [vmem:[%s754_s3 + $0x48] sm:$0xff]  ;;  %v102_v1 = vmul.f32 %v412_v54, %v362_v38  ;;  %v457_v5 = vld [vmem:[%s751_s0 + $0x70] sm:$0xff] }
  0x10   :  { %v77_v21 = vld [vmem:[%s754_s3 + $0x60] sm:$0xff]  ;;  %v105_v24 = vmul.f32 %v73_v16, %v41_v6  ;;  %v113_v35 = vadd.f32 %v97_v22, %v81_v12  ;;  %v374_v41 = vmul.f32 %v73_v16, %v25_v2  ;;  %v190_v47 = vsub.f32 %v312_v13, %v174_v33  ;;  %v425_v59 = vld [vmem:[%s754_s3 + $0x68] sm:$0xff]  ;;  %v483_v16 = vld [vmem:[%s752_s1 + $0x70] sm:$0xff] }
  0x11   :  { %v109_v28 = vmul.f32 %v77_v21, %v45_v7  ;;  %v117_v36 = vadd.f32 %v101_v23, %v85_v17  ;;  %v391_v46 = vmul.f32 %v77_v21, %v29_v3  ;;  %v194_v48 = vsub.f32 %v323_v20, %v357_v34  ;;  %v447_v3 = vld [vmem:[%s751_s0 + $0x30] sm:$0xff] }
  0x12   :  { %v121_v37 = vadd.f32 %v105_v24, %v89_v18  ;;  %v130_v49 = vsel %vm129_vm0, %v113_v35, 0.0  ;;  %v106_v2 = vmul.f32 %v420_v58, %v367_v39  ;;  %v110_v7 = vmul.f32 %v425_v59, %v372_v40  ;;  %v488_v17 = vld [vmem:[%s753_s2 + $0x10] sm:$0xff] }
  0x13   :  { %v125_v42 = vadd.f32 %v109_v28, %v93_v19  ;;  %v131_v50 = vsel %vm129_vm0, %v117_v36, 0.0  ;;  %v198_v11 = vsub.f32 %v338_v27, %v374_v41  ;;  %v114_v13 = vadd.f32 %v98_v0, %v82_v55  ;;  %v493_v18 = vld [vmem:[%s753_s2 + $0x30] sm:$0xff] }
  0x14   :  { %v133_v51 = vsel %vm129_vm0, %v121_v37, 0.0  ;;  %v132_v56 = vadd.f32 %v131_v50, %v130_v49  ;;  %v118_v14 = vadd.f32 %v102_v1, %v86_v60  ;;  %v122_v15 = vadd.f32 %v106_v2, %v90_v61  ;;  %v499_v23 = vld [vmem:[%s753_s2 + $0x50] sm:$0xff]  ;;  %v552_v60 = vld [vmem:[%s751_s0 + $0x38] sm:$0xff] }
  0x15   :  { %v135_v57 = vsel %vm129_vm0, %v125_v42, 0.0  ;;  %v206_v19 = vsel %vm129_vm0, %v190_v47, 0.0  ;;  %v126_v22 = vadd.f32 %v110_v7, %v94_v63  ;;  %v504_v24 = vld [vmem:[%s753_s2 + $0x70] sm:$0xff]  ;;  %v83_v28 = vmul.f32 %v488_v17, %v434_v62  ;;  %767 = vst [vmem:[#allocation3_spill] sm:$0xff] %v552_v60  ;;  %v557_v61 = vld [vmem:[%s751_s0 + $0x58] sm:$0xff] }
  0x16   :  { %v134_v6 = vadd.f32 %v133_v51, %v132_v56  ;;  %v509_v27 = vld [vmem:[%s754_s3 + $0x10] sm:$0xff]  ;;  %v87_v33 = vmul.f32 %v493_v18, %v447_v3  ;;  %v137_v35 = vsel %vm129_vm0, %v114_v13, 0.0  ;;  %v138_v36 = vsel %vm129_vm0, %v118_v14, 0.0  ;;  %768 = vst [vmem:[#allocation4_spill] sm:$0xff] %v557_v61  ;;  %v568_v2 = vld [vmem:[%s751_s0 + $0x78] sm:$0xff] }
  0x17   :  { %v140_v37 = vsel %vm129_vm0, %v122_v15, 0.0  ;;  %v521_v41 = vld [vmem:[%s754_s3 + $0x30] sm:$0xff]  ;;  %v91_v49 = vmul.f32 %v499_v23, %v452_v4  ;;  %v139_v50 = vadd.f32 %v138_v36, %v137_v35  ;;  %v142_v51 = vsel %vm129_vm0, %v126_v22, 0.0  ;;  %769 = vst [vmem:[#allocation5_spill] sm:$0xff] %v568_v2  ;;  %v578_v7 = vld [vmem:[%s752_s1 + $0x38] sm:$0xff] }
  0x18   :  { %v136_v21 = vadd.f32 %v135_v57, %v134_v6  ;;  %v526_v42 = vld [vmem:[%s754_s3 + $0x50] sm:$0xff]  ;;  %v95_v55 = vmul.f32 %v504_v24, %v457_v5  ;;  %v99_v56 = vmul.f32 %v509_v27, %v464_v8  ;;  %v547_v57 = vld [vmem:[%s751_s0 + $0x18] sm:$0xff]  ;;  %v103_v63 = vmul.f32 %v521_v41, %v469_v9 }
  0x19   :  { %v531_v47 = vld [vmem:[%s754_s3 + $0x70] sm:$0xff]  ;;  %766 = vst [vmem:[#allocation2_spill] sm:$0xff] %v547_v57  ;;  %v107_v0 = vmul.f32 %v526_v42, %v474_v10  ;;  %v573_v6 = vld [vmem:[%s752_s1 + $0x18] sm:$0xff]  ;;  %v207_v13 = vsel %vm129_vm0, %v194_v48, 0.0  ;;  %v141_v14 = vadd.f32 %v140_v37, %v139_v50  ;;  %v209_v34 = vsel %vm129_vm0, %v198_v11, 0.0 }
  0x1a   :  { %234 = vst.msk [vmem:[%s755_s4] sm:$0xff] %vm129_vm0, %v136_v21  ;;  %v111_v1 = vmul.f32 %v531_v47, %v483_v16  ;;  %v115_v15 = vadd.f32 %v99_v56, %v83_v28  ;;  %v587_v21 = vld [vmem:[%s752_s1 + $0x58] sm:$0xff]  ;;  %v208_v20 = vadd.f32 %v207_v13, %v206_v19  ;;  %v119_v48 = vadd.f32 %v103_v63, %v87_v33 }
  0x1b   :  { %v592_v22 = vld [vmem:[%s752_s1 + $0x78] sm:$0xff]  ;;  %v123_v28 = vadd.f32 %v107_v0, %v91_v49  ;;  %v143_v19 = vadd.f32 %v142_v51, %v141_v14 }
  0x1c   :  { %v597_v35 = vld [vmem:[%s753_s2 + $0x18] sm:$0xff]  ;;  %v127_v36 = vadd.f32 %v111_v1, %v95_v55  ;;  %v144_v33 = vsel %vm129_vm0, %v115_v15, 0.0  ;;  %v145_v1 = vsel %vm129_vm0, %v119_v48, 0.0 }
  0x1d   :  { %v603_v37 = vld [vmem:[%s753_s2 + $0x38] sm:$0xff]  ;;  %v84_v11 = vmul.f32 %v597_v35, %v547_v57  ;;  %v147_v13 = vsel %vm129_vm0, %v123_v28, 0.0  ;;  %235 = vst.msk [vmem:[%s755_s4 + $0x8] sm:$0xff] %vm129_vm0, %v143_v19  ;;  %v210_v57 = vadd.f32 %v209_v34, %v208_v20  ;;  %v159_v19 = vmul.f32 %v379_v43, %v353_v31 }
  0x1e   :  { %770 = vst [vmem:[#allocation6_spill] sm:$0xff] %v603_v37  ;;  %v608_v50 = vld [vmem:[%s753_s2 + $0x58] sm:$0xff]  ;;  %v88_v51 = vmul.f32 %v603_v37, %v552_v60  ;;  %v149_v14 = vsel %vm129_vm0, %v127_v36, 0.0  ;;  %v167_v20 = vmul.f32 %v389_v45, %v367_v39  ;;  %v175_v39 = vmul.f32 %v407_v53, %v331_v25 }
  0x1f   :  { %771 = vst [vmem:[#allocation7_spill] sm:$0xff] %v608_v50  ;;  %v613_v56 = vld [vmem:[%s753_s2 + $0x78] sm:$0xff]  ;;  %v92_v0 = vmul.f32 %v608_v50, %v557_v61  ;;  %v146_v61 = vadd.f32 %v145_v1, %v144_v33  ;;  %v183_v45 = vmul.f32 %v420_v58, %v343_v29  ;;  %v164_v25 = vmul.f32 %v493_v18, %v469_v9 }
  0x20   :  { %772 = vst [vmem:[#allocation8_spill] sm:$0xff] %v613_v56  ;;  %v621_v49 = vld [vmem:[%s754_s3 + $0x18] sm:$0xff]  ;;  %v96_v12 = vmul.f32 %v613_v56, %v568_v2  ;;  %v776_v2 = vsub.f32 %v355_v32, %v391_v46  ;;  %v168_v53 = vmul.f32 %v499_v23, %v474_v10  ;;  %v172_v29 = vmul.f32 %v504_v24, %v483_v16 }
  0x21   :  { %773 = vst [vmem:[#allocation9_spill] sm:$0xff] %v621_v49  ;;  %v626_v55 = vld [vmem:[%s754_s3 + $0x38] sm:$0xff]  ;;  %v100_v48 = vmul.f32 %v621_v49, %v573_v6  ;;  %v148_v33 = vadd.f32 %v147_v13, %v146_v61  ;;  %v199_v61 = vsub.f32 %v167_v20, %v183_v45  ;;  %v176_v58 = vmul.f32 %v509_v27, %v434_v62 }
  0x22   :  { %774 = vst [vmem:[#allocation10_spill] sm:$0xff] %v626_v55  ;;  %v631_v63 = vld [vmem:[%s754_s3 + $0x58] sm:$0xff]  ;;  %v104_v28 = vmul.f32 %v626_v55, %v578_v7  ;;  %v211_v56 = vsel %vm129_vm0, %v776_v2, 0.0  ;;  %v188_v62 = vmul.f32 %v531_v47, %v457_v5  ;;  %v161_v24 = vmul.f32 %v597_v35, %v573_v6 }
  0x23   :  { %775 = vst [vmem:[#allocation11_spill] sm:$0xff] %v631_v63  ;;  %v643_v15 = vld [vmem:[%s754_s3 + $0x78] sm:$0xff]  ;;  %v108_v36 = vmul.f32 %v631_v63, %v587_v21  ;;  %v116_v1 = vadd.f32 %v100_v48, %v84_v11  ;;  %v212_v37 = vadd.f32 %v211_v56, %v210_v57  ;;  %v163_v63 = vmul.f32 %v384_v44, %v362_v38 }
  0x24   :  { %v112_v60 = vmul.f32 %v643_v15, %v592_v22  ;;  %v120_v49 = vadd.f32 %v104_v28, %v88_v51  ;;  %v150_v34 = vadd.f32 %v149_v14, %v148_v33  ;;  %v171_v38 = vmul.f32 %v402_v52, %v372_v40  ;;  %v784_v14 = vld [vmem:[#allocation4_spill] sm:$0xff] }
  0x25   :  { %v124_v50 = vadd.f32 %v108_v36, %v92_v0  ;;  %v151_v32 = vsel %vm129_vm0, %v116_v1, 0.0  ;;  %247 = vst.msk [vmem:[%s755_s4 + $0x20] sm:$0xff] %vm129_vm0, %v212_v37  ;;  %v179_v44 = vmul.f32 %v412_v54, %v336_v26  ;;  %v160_v40 = vmul.f32 %v488_v17, %v464_v8  ;;  %v777_v27 = vld [vmem:[#allocation6_spill] sm:$0xff]  ;;  %v782_v0 = vld [vmem:[#allocation3_spill] sm:$0xff] }
  0x26   :  { %v128_v55 = vadd.f32 %v112_v60, %v96_v12  ;;  %v152_v46 = vsel %vm129_vm0, %v120_v49, 0.0  ;;  %236 = vst.msk [vmem:[%s755_s4 + $0x10] sm:$0xff] %vm129_vm0, %v150_v34  ;;  %v187_v12 = vmul.f32 %v425_v59, %v348_v30  ;;  %v191_v57 = vsub.f32 %v159_v19, %v175_v39  ;;  %v786_v19 = vld [vmem:[#allocation5_spill] sm:$0xff] }
  0x27   :  { %v154_v2 = vsel %vm129_vm0, %v124_v50, 0.0  ;;  %v153_v31 = vadd.f32 %v152_v46, %v151_v32  ;;  %v195_v60 = vsub.f32 %v163_v63, %v179_v44  ;;  %v180_v59 = vmul.f32 %v521_v41, %v447_v3  ;;  %v779_v47 = vld [vmem:[#allocation8_spill] sm:$0xff]  ;;  %v780_v63 = vld [vmem:[#allocation2_spill] sm:$0xff] }
  0x28   :  { %v156_v43 = vsel %vm129_vm0, %v128_v55, 0.0  ;;  %v203_v26 = vsub.f32 %v171_v38, %v187_v12  ;;  %v213_v30 = vsel %vm129_vm0, %v191_v57, 0.0  ;;  %v216_v9 = vsel %vm129_vm0, %v199_v61, 0.0  ;;  %v781_v6 = vld [vmem:[#allocation9_spill] sm:$0xff] }
  0x29   :  { %v155_v52 = vadd.f32 %v154_v2, %v153_v31  ;;  %v214_v8 = vsel %vm129_vm0, %v195_v60, 0.0  ;;  %v184_v17 = vmul.f32 %v526_v42, %v452_v4  ;;  %v192_v18 = vsub.f32 %v160_v40, %v176_v58  ;;  %v778_v4 = vld [vmem:[#allocation7_spill] sm:$0xff] }
  0x2a   :  { %v218_v10 = vsel %vm129_vm0, %v203_v26, 0.0  ;;  %v215_v16 = vadd.f32 %v214_v8, %v213_v30  ;;  %v196_v3 = vsub.f32 %v164_v25, %v180_v59  ;;  %v165_v41 = vmul.f32 %v777_v27, %v578_v7  ;;  %v785_v48 = vld [vmem:[#allocation11_spill] sm:$0xff] }
  0x2b   :  { %v157_v54 = vadd.f32 %v156_v43, %v155_v52  ;;  %v200_v23 = vsub.f32 %v168_v53, %v184_v17  ;;  %v169_v42 = vmul.f32 %v778_v4, %v587_v21  ;;  %v204_v50 = vsub.f32 %v172_v29, %v188_v62  ;;  %v783_v21 = vld [vmem:[#allocation10_spill] sm:$0xff] }
  0x2c   :  { %v217_v37 = vadd.f32 %v216_v9, %v215_v16  ;;  %v220_v56 = vsel %vm129_vm0, %v192_v18, 0.0  ;;  %v221_v11 = vsel %vm129_vm0, %v196_v3, 0.0  ;;  %v173_v55 = vmul.f32 %v779_v47, %v592_v22 }
  0x2d   :  { %237 = vst.msk [vmem:[%s755_s4 + $0x18] sm:$0xff] %vm129_vm0, %v157_v54  ;;  %v222_v49 = vadd.f32 %v221_v11, %v220_v56  ;;  %v223_v5 = vsel %vm129_vm0, %v200_v23, 0.0  ;;  %v177_v35 = vmul.f32 %v781_v6, %v780_v63  ;;  %v225_v7 = vsel %vm129_vm0, %v204_v50, 0.0 }
  0x2e   :  { %v219_v51 = vadd.f32 %v218_v10, %v217_v37  ;;  %v181_v13 = vmul.f32 %v783_v21, %v782_v0  ;;  %v185_v28 = vmul.f32 %v785_v48, %v784_v14  ;;  %v189_v33 = vmul.f32 %v643_v15, %v786_v19 }
  0x2f   :  { %v224_v36 = vadd.f32 %v223_v5, %v222_v49  ;;  %v193_v1 = vsub.f32 %v161_v24, %v177_v35 }
  0x30   :  { %248 = vst.msk [vmem:[%s755_s4 + $0x28] sm:$0xff] %vm129_vm0, %v219_v51  ;;  %v197_v22 = vsub.f32 %v165_v41, %v181_v13  ;;  %v201_v20 = vsub.f32 %v169_v42, %v185_v28  ;;  %v205_v32 = vsub.f32 %v173_v55, %v189_v33 }
  0x31   :  { %v226_v34 = vadd.f32 %v225_v7, %v224_v36  ;;  %v227_v46 = vsel %vm129_vm0, %v193_v1, 0.0 }
  0x32   :  { %v228_v2 = vsel %vm129_vm0, %v197_v22, 0.0  ;;  %v230_v31 = vsel %vm129_vm0, %v201_v20, 0.0  ;;  %v232_v43 = vsel %vm129_vm0, %v205_v32, 0.0 }
  0x33   :  { %249 = vst.msk [vmem:[%s755_s4 + $0x30] sm:$0xff] %vm129_vm0, %v226_v34  ;;  %v229_v15 = vadd.f32 %v228_v2, %v227_v46 }
  0x35   :  { %v231_v38 = vadd.f32 %v230_v31, %v229_v15 }
  0x37   :  { %v233_v39 = vadd.f32 %v232_v43, %v231_v38 }
  0x39   :  { %250 = vst.msk [vmem:[%s755_s4 + $0x38] sm:$0xff] %vm129_vm0, %v233_v39 }

// kernel: zs_unrolled_network_onenet.32
= control target key start
LH: loop header
LB: loop body
LE: loop exit
PB: predicated region body
PF: predicated region fallthrough
CT: control target
= control target key end

     0   :  { %vm22_vm0 = vcmask 261120   ;;  %vm52_vm1 = vcmask 523264   ;;  %vm244_vm2 = vcmask 130048   ;;  %vm326_vm3 = vcmask 64512   ;;  %s769_s0 = inlined_call_operand.vmem [shape: f32[2,32,32], index: 0, kind: input, shape index: {}]   ;;  %s770_s3 = inlined_call_operand.vmem [shape: f32[2,32,32], index: 3, kind: output, shape index: {}]   ;;  %s771_s1 = inlined_call_operand.vmem [shape: f32[4,64,64], index: 1, kind: input, shape index: {}]   ;;  %s772_s2 = inlined_call_operand.vmem [shape: f32[4,32,32], index: 2, kind: input, shape index: {}]  }
   0x1   :  { %v21_v0 = vld [vmem:[%s769_s0 + $0x38] sm:$0xff]  ;;  %v20_v1 = vld [vmem:[%s769_s0 + $0x30] sm:$0xff]  ;;  %v19_v2 = vld [vmem:[%s769_s0 + $0x28] sm:$0xff]  ;;  %vm367_vm4 = vcmask 1043456   ;;  %vm392_vm5 = vcmask 31744   ;;  %vm419_vm6 = vcmask 27648  }
   0x2   :  { %30 = vst.msk [vmem:[%s770_s3 + $0x38] sm:$0xff] %vm22_vm0, %v21_v0  ;;  %v18_v3 = vld [vmem:[%s769_s0 + $0x20] sm:$0xff]  ;;  %v17_v4 = vld [vmem:[%s769_s0 + $0x18] sm:$0xff]  ;;  %v16_v5 = vld [vmem:[%s769_s0 + $0x10] sm:$0xff]  ;;  %vm421_vm7 = vcmask 31748  }
   0x3   :  { %29 = vst.msk [vmem:[%s770_s3 + $0x30] sm:$0xff] %vm22_vm0, %v20_v1  ;;  %v15_v6 = vld [vmem:[%s769_s0 + $0x8] sm:$0xff]  ;;  %v14_v7 = vld [vmem:[%s769_s0] sm:$0xff]  ;;  %v42_v18 = vld [vmem:[%s772_s2 + $0x18] sm:$0xff] }
   0x4   :  { %28 = vst.msk [vmem:[%s770_s3 + $0x28] sm:$0xff] %vm22_vm0, %v19_v2  ;;  %v31_v16 = vld [vmem:[%s771_s1] sm:$0xff]  ;;  %v32_v17 = vld [vmem:[%s771_s1 + $0x8] sm:$0xff]  ;;  %v41_v19 = vld [vmem:[%s772_s2 + $0x10] sm:$0xff]  ;;  %154 = vmatpush.msra.mxu1 %v42_v18 }
   0x5   :  { %27 = vst.msk [vmem:[%s770_s3 + $0x20] sm:$0xff] %vm22_vm0, %v18_v3  ;;  %v40_v20 = vld [vmem:[%s772_s2 + $0x8] sm:$0xff]  ;;  %v33_v21 = vld [vmem:[%s771_s1 + $0x10] sm:$0xff]  ;;  %v34_v22 = vld [vmem:[%s771_s1 + $0x18] sm:$0xff] }
   0x6   :  { %26 = vst.msk [vmem:[%s770_s3 + $0x18] sm:$0xff] %vm22_vm0, %v17_v4  ;;  %155 = vmatpush.msra.mxu1 %v41_v19  ;;  %v35_v23 = vld [vmem:[%s771_s1 + $0x20] sm:$0xff]  ;;  %v36_v24 = vld [vmem:[%s771_s1 + $0x28] sm:$0xff]  ;;  %v453_v45 = vld [vmem:[%s771_s1 + $0x50] sm:$0xff] }
   0x7   :  { %25 = vst.msk [vmem:[%s770_s3 + $0x10] sm:$0xff] %vm22_vm0, %v16_v5  ;;  %v39_v25 = vld [vmem:[%s772_s2] sm:$0xff]  ;;  %v456_v38 = vld [vmem:[%s772_s2 + $0x28] sm:$0xff]  ;;  %v454_v47 = vld [vmem:[%s771_s1 + $0x58] sm:$0xff] }
   0x8   :  { %24 = vst.msk [vmem:[%s770_s3 + $0x8] sm:$0xff] %vm22_vm0, %v15_v6  ;;  %156 = vmatpush.msra.mxu1 %v40_v20  ;;  %271 = vmatpush.msra.mxu3 %v456_v38  ;;  %v451_v42 = vld [vmem:[%s771_s1 + $0x40] sm:$0xff]  ;;  %v452_v44 = vld [vmem:[%s771_s1 + $0x48] sm:$0xff]  ;;  %v37_v63 = vld [vmem:[%s771_s1 + $0x30] sm:$0xff] }
   0x9   :  { %v430_v8 = vld [vmem:[%s770_s3 + $0x38] sm:$0xff]  ;;  %23 = vst.msk [vmem:[%s770_s3] sm:$0xff] %vm22_vm0, %v14_v7  ;;  %v455_v46 = vld [vmem:[%s772_s2 + $0x20] sm:$0xff]  ;;  %v470_v58 = vld [vmem:[%s771_s1 + $0x88] sm:$0xff] }
   0xa   :  { %85 = vmatpush.msra.mxu0 %v430_v8  ;;  %v429_v9 = vld [vmem:[%s770_s3 + $0x30] sm:$0xff]  ;;  %157 = vmatpush.msra.mxu1 %v39_v25  ;;  %v469_v56 = vld [vmem:[%s771_s1 + $0x80] sm:$0xff]  ;;  %v38_v1 = vld [vmem:[%s771_s1 + $0x38] sm:$0xff] }
   0xb   :  { %v428_v10 = vld [vmem:[%s770_s3 + $0x28] sm:$0xff]  ;;  %272 = vmatpush.msra.mxu3 %v455_v46  ;;  %v471_v59 = vld [vmem:[%s772_s2 + $0x40] sm:$0xff] }
   0xc   :  { %86 = vmatpush.msra.mxu0 %v429_v9  ;;  %v427_v11 = vld [vmem:[%s770_s3 + $0x20] sm:$0xff] }
   0xd   :  { %v46_v12 = vld [vmem:[%s770_s3 + $0x18] sm:$0xff]  ;;  %v479_v0 = vld [vmem:[%s772_s2 + $0x60] sm:$0xf] }
   0xe   :  { %87 = vmatpush.msra.mxu0 %v428_v10  ;;  %v45_v13 = vld [vmem:[%s770_s3 + $0x10] sm:$0xff]  ;;  %v478_v7 = vld [vmem:[%s771_s1 + $0xc0] sm:$0xff] }
   0xf   :  { %v44_v14 = vld [vmem:[%s770_s3 + $0x8] sm:$0xff] }
  0x10   :  { %88 = vmatpush.msra.mxu0 %v427_v11  ;;  %v43_v15 = vld [vmem:[%s770_s3] sm:$0xff] }
  0x12   :  { %89 = vmatpush.msra.mxu0 %v46_v12 }
  0x14   :  { %90 = vmatpush.msra.mxu0 %v45_v13 }
  0x16   :  { %91 = vmatpush.msra.mxu0 %v44_v14 }
  0x18   :  { %92 = vmatpush.msra.mxu0 %v43_v15 }
  0x19   :  { %431 = vmatmul.msk.f32.vlgmr.msra.gmra.mxu0 %vm52_vm1, %v31_v16 }
  0x21   :  { %432 = vmatmul.msk.f32.gmra.mxu0 %vm52_vm1, %v32_v17 }
  0x29   :  { %433 = vmatmul.msk.f32.gmra.mxu0 %vm52_vm1, %v33_v21 }
  0x31   :  { %434 = vmatmul.msk.f32.gmra.mxu0 %vm52_vm1, %v34_v22 }
  0x39   :  { %435 = vmatmul.msk.f32.gmra.mxu0 %vm52_vm1, %v35_v23 }
  0x41   :  { %436 = vmatmul.msk.f32.gmra.mxu0 %vm52_vm1, %v36_v24 }
  0x49   :  { %437 = vmatmul.msk.f32.gmra.mxu0 %vm52_vm1, %v37_v63 }
  0x51   :  { %438 = vmatmul.msk.f32.gmra.mxu0 %vm52_vm1, %v38_v1 }
  0x96   :  { %v94_v26 = vpop.f32.mrf.mxu0 }
  0x97   :  { %439 = vmatmul.msk.f32.vlgmr.msra.gmra.mxu1 %vm22_vm0, %v94_v26 }
  0x9e   :  { %v97_v27 = vpop.f32.mrf.mxu0 }
  0x9f   :  { %440 = vmatmul.msk.f32.gmra.mxu1 %vm22_vm0, %v97_v27 }
  0xa6   :  { %v100_v28 = vpop.f32.mrf.mxu0 }
  0xa7   :  { %441 = vmatmul.msk.f32.gmra.mxu1 %vm22_vm0, %v100_v28 }
  0xae   :  { %v103_v29 = vpop.f32.mrf.mxu0 }
  0xaf   :  { %442 = vmatmul.msk.f32.gmra.mxu1 %vm22_vm0, %v103_v29 }
  0xb6   :  { %v106_v30 = vpop.f32.mrf.mxu0 }
  0xb7   :  { %443 = vmatmul.msk.f32.gmra.mxu1 %vm22_vm0, %v106_v30 }
  0xbe   :  { %v109_v31 = vpop.f32.mrf.mxu0 }
  0xbf   :  { %444 = vmatmul.msk.f32.gmra.mxu1 %vm22_vm0, %v109_v31 }
  0xc6   :  { %v112_v9 = vpop.f32.mrf.mxu0 }
  0xc7   :  { %445 = vmatmul.msk.f32.gmra.mxu1 %vm22_vm0, %v112_v9 }
  0xce   :  { %v115_v10 = vpop.f32.mrf.mxu0 }
  0xcf   :  { %446 = vmatmul.msk.f32.gmra.mxu1 %vm22_vm0, %v115_v10 }
 0x114   :  { %v159_v32 = vpop.f32.mrf.mxu1 }
 0x115   :  { %183 = vst.msk [vmem:[%s770_s3] sm:$0xff] %vm22_vm0, %v159_v32 }
 0x11c   :  { %v162_v33 = vpop.f32.mrf.mxu1  ;;  %v199_v43 = vld [vmem:[%s770_s3] sm:$0xff] }
 0x11d   :  { %184 = vst.msk [vmem:[%s770_s3 + $0x8] sm:$0xff] %vm22_vm0, %v162_v33 }
 0x124   :  { %v165_v34 = vpop.f32.mrf.mxu1  ;;  %v200_v41 = vld [vmem:[%s770_s3 + $0x8] sm:$0xff] }
 0x125   :  { %185 = vst.msk [vmem:[%s770_s3 + $0x10] sm:$0xff] %vm22_vm0, %v165_v34 }
 0x12c   :  { %v168_v35 = vpop.f32.mrf.mxu1 }
 0x12d   :  { %186 = vst.msk [vmem:[%s770_s3 + $0x18] sm:$0xff] %vm22_vm0, %v168_v35 }
 0x134   :  { %v171_v36 = vpop.f32.mrf.mxu1 }
 0x135   :  { %447 = vst.msk [vmem:[%s770_s3 + $0x20] sm:$0xff] %vm22_vm0, %v171_v36 }
 0x13c   :  { %v174_v37 = vpop.f32.mrf.mxu1  ;;  %v457_v40 = vld [vmem:[%s770_s3 + $0x20] sm:$0xff] }
 0x13d   :  { %448 = vst.msk [vmem:[%s770_s3 + $0x28] sm:$0xff] %vm22_vm0, %v174_v37 }
 0x144   :  { %v458_v39 = vld [vmem:[%s770_s3 + $0x28] sm:$0xff]  ;;  %v177_v12 = vpop.f32.mrf.mxu1 }
 0x145   :  { %227 = vmatpush.msra.mxu2 %v458_v39  ;;  %449 = vst.msk [vmem:[%s770_s3 + $0x30] sm:$0xff] %vm22_vm0, %v177_v12 }
 0x147   :  { %228 = vmatpush.msra.mxu2 %v457_v40 }
 0x149   :  { %229 = vmatpush.msra.mxu2 %v200_v41 }
 0x14b   :  { %230 = vmatpush.msra.mxu2 %v199_v43 }
 0x14c   :  { %459 = vmatmul.msk.f32.vlgmr.msra.gmra.mxu2 %vm22_vm0, %v451_v42  ;;  %v180_v13 = vpop.f32.mrf.mxu1 }
 0x14d   :  { %348 = vmatpush.msrb.mxu2 %v471_v59  ;;  %450 = vst.msk [vmem:[%s770_s3 + $0x38] sm:$0xff] %vm22_vm0, %v180_v13 }
 0x14f   :  { %482 = vmatpush.msk.msra.mxu2 %vm367_vm4, %v479_v0 }
 0x154   :  { %460 = vmatmul.msk.f32.gmra.mxu2 %vm22_vm0, %v452_v44 }
 0x15c   :  { %461 = vmatmul.msk.f32.gmra.mxu2 %vm22_vm0, %v453_v45 }
 0x164   :  { %462 = vmatmul.msk.f32.gmra.mxu2 %vm22_vm0, %v454_v47 }
 0x1cf   :  { %v232_v48 = vpop.f32.mrf.mxu2 }
 0x1d0   :  { %463 = vmatmul.msk.f32.vlgmr.msra.gmra.mxu3 %vm244_vm2, %v232_v48 }
 0x1d7   :  { %v235_v49 = vpop.f32.mrf.mxu2 }
 0x1d8   :  { %464 = vmatmul.msk.f32.gmra.mxu3 %vm244_vm2, %v235_v49 }
 0x1df   :  { %v238_v50 = vpop.f32.mrf.mxu2 }
 0x1e0   :  { %465 = vmatmul.msk.f32.gmra.mxu3 %vm244_vm2, %v238_v50 }
 0x1e7   :  { %v241_v51 = vpop.f32.mrf.mxu2 }
 0x1e8   :  { %466 = vmatmul.msk.f32.gmra.mxu3 %vm244_vm2, %v241_v51 }
 0x253   :  { %v274_v52 = vpop.f32.mrf.mxu3 }
 0x254   :  { %286 = vst.msk [vmem:[%s770_s3] sm:$0xff] %vm244_vm2, %v274_v52 }
 0x25b   :  { %v277_v53 = vpop.f32.mrf.mxu3  ;;  %v295_v57 = vld [vmem:[%s770_s3] sm:$0xff] }
 0x25c   :  { %287 = vst.msk [vmem:[%s770_s3 + $0x8] sm:$0xff] %vm244_vm2, %v277_v53 }
 0x263   :  { %v280_v54 = vpop.f32.mrf.mxu3 }
 0x264   :  { %467 = vst.msk [vmem:[%s770_s3 + $0x20] sm:$0xff] %vm244_vm2, %v280_v54 }
 0x26b   :  { %v472_v55 = vld [vmem:[%s770_s3 + $0x20] sm:$0xff]  ;;  %v283_v60 = vpop.f32.mrf.mxu3 }
 0x26c   :  { %317 = vmatpush.msrb.mxu3 %v472_v55  ;;  %468 = vst.msk [vmem:[%s770_s3 + $0x28] sm:$0xff] %vm244_vm2, %v283_v60 }
 0x26e   :  { %318 = vmatpush.msrb.mxu3 %v295_v57 }
 0x26f   :  { %473 = vmatmul.msk.f32.vlgmr.msrb.gmra.mxu3 %vm244_vm2, %v469_v56 }
 0x277   :  { %474 = vmatmul.msk.f32.gmra.mxu3 %vm244_vm2, %v470_v58 }
 0x2f2   :  { %v320_v61 = vpop.f32.mrf.mxu3 }
 0x2f3   :  { %475 = vmatmul.msk.f32.vlgmr.msrb.gmra.mxu2 %vm326_vm3, %v320_v61 }
 0x2fa   :  { %v323_v62 = vpop.f32.mrf.mxu3 }
 0x2fb   :  { %476 = vmatmul.msk.f32.gmra.mxu2 %vm326_vm3, %v323_v62 }
 0x376   :  { %v350_v2 = vpop.f32.mrf.mxu2 }
 0x377   :  { %356 = vst.msk [vmem:[%s770_s3] sm:$0xff] %vm326_vm3, %v350_v2 }
 0x37e   :  { %v353_v3 = vpop.f32.mrf.mxu2  ;;  %v362_v6 = vld [vmem:[%s770_s3] sm:$0xf] }
 0x37f   :  { %477 = vst.msk [vmem:[%s770_s3 + $0x20] sm:$0xff] %vm326_vm3, %v353_v3 }
 0x386   :  { %v480_v4 = vld [vmem:[%s770_s3 + $0x20] sm:$0xf] }
 0x387   :  { %v365_v5 = vrot.slane %v480_v4, 4 }
 0x389   :  { %v368_v8 = vsel %vm367_vm4, %v362_v6, %v365_v5 }
 0x38a   :  { %387 = vmatpush.msra.mxu3 %v368_v8 }
 0x38b   :  { %481 = vmatmul.msk.f32.vlgmr.msra.gmra.mxu3 %vm326_vm3, %v478_v7 }
 0x40e   :  { %v389_v11 = vpop.f32.mrf.mxu3 }
 0x40f   :  { %483 = vmatmul.msk.f32.vlgmr.msra.gmra.mxu2 %vm392_vm5, %v389_v11 }
 0x492   :  { %v416_v14 = vpop.f32.mrf.mxu2 }
 0x493   :  { %420 = vst.msk [vmem:[%s770_s3] sm:$0xf] %vm419_vm6, %v416_v14 }
 0x494   :  { %484 = vst.msk [vmem:[%s770_s3 + $0x1c] sm:$0xf0] %vm421_vm7, %v416_v14 }

// kernel: zs_unrolled_network_onenet.30
= control target key start
LH: loop header
LB: loop body
LE: loop exit
PB: predicated region body
PF: predicated region fallthrough
CT: control target
= control target key end

     0   :  { %vm135_vm0 = vcmask 261120   ;;  %vm258_vm1 = vcmask 1043456   ;;  %vm260_vm2 = vcmask 64512   ;;  %vm284_vm3 = vcmask 31744   ;;  %s1231_s0 = inlined_call_operand.vmem [shape: f32[4,32,32], index: 0, kind: input, shape index: {}]   ;;  %s1232_s1 = inlined_call_operand.vmem [shape: f32[4,32,32], index: 1, kind: input, shape index: {}]   ;;  %s1233_s2 = inlined_call_operand.vmem [shape: f32[4,32,32], index: 2, kind: input, shape index: {}]   ;;  %s1234_s3 = inlined_call_operand.vmem [shape: f32[4,32,32], index: 3, kind: input, shape index: {}]   ;;  %s1235_s6 = inlined_call_operand.vmem [shape: f32[2,32,32], index: 6, kind: output, shape index: {}]   ;;  %s1236_s4 = inlined_call_operand.vmem [shape: f32[4,64,64], index: 4, kind: input, shape index: {}]   ;;  %s1237_s5 = inlined_call_operand.vmem [shape: f32[4,32,32], index: 5, kind: input, shape index: {}]  }
   0x1   :  { %v23_v0 = vld [vmem:[%s1231_s0] sm:$0xff]  ;;  %vm311_vm4 = vcmask 27648   ;;  %vm313_vm5 = vcmask 31748   ;;  %vm322_vm6 = vcmask 130048   ;;  %vm501_vm7 = vcmask 523264  }
   0x2   :  { %v27_v1 = vld [vmem:[%s1231_s0 + $0x20] sm:$0xff] }
   0x3   :  { %v31_v2 = vld [vmem:[%s1231_s0 + $0x40] sm:$0xff] }
   0x4   :  { %v35_v3 = vld [vmem:[%s1231_s0 + $0x60] sm:$0xff] }
   0x5   :  { %v39_v4 = vld [vmem:[%s1232_s1] sm:$0xff] }
   0x6   :  { %v43_v5 = vld [vmem:[%s1232_s1 + $0x20] sm:$0xff] }
   0x7   :  { %v47_v6 = vld [vmem:[%s1232_s1 + $0x40] sm:$0xff] }
   0x8   :  { %v51_v7 = vld [vmem:[%s1232_s1 + $0x60] sm:$0xff] }
   0x9   :  { %v55_v8 = vld [vmem:[%s1233_s2] sm:$0xff] }
   0xa   :  { %v59_v9 = vld [vmem:[%s1233_s2 + $0x20] sm:$0xff]  ;;  %v87_v12 = vmul.f32 %v55_v8, %v23_v0  ;;  %v164_v13 = vmul.f32 %v55_v8, %v39_v4  ;;  %v44_v8 = vld [vmem:[%s1232_s1 + $0x28] sm:$0xff] }
   0xb   :  { %v63_v10 = vld [vmem:[%s1233_s2 + $0x40] sm:$0xff]  ;;  %v91_v17 = vmul.f32 %v59_v9, %v27_v1  ;;  %v168_v20 = vmul.f32 %v59_v9, %v43_v5  ;;  %v56_v9 = vld [vmem:[%s1233_s2 + $0x8] sm:$0xff] }
   0xc   :  { %v67_v11 = vld [vmem:[%s1233_s2 + $0x60] sm:$0xff]  ;;  %v95_v18 = vmul.f32 %v63_v10, %v31_v2  ;;  %v172_v25 = vmul.f32 %v63_v10, %v47_v6  ;;  %v60_v10 = vld [vmem:[%s1233_s2 + $0x28] sm:$0xff] }
   0xd   :  { %v71_v14 = vld [vmem:[%s1234_s3] sm:$0xff]  ;;  %v99_v19 = vmul.f32 %v67_v11, %v35_v3  ;;  %v176_v27 = vmul.f32 %v67_v11, %v51_v7  ;;  %v32_v11 = vld [vmem:[%s1231_s0 + $0x48] sm:$0xff] }
   0xe   :  { %v75_v15 = vld [vmem:[%s1234_s3 + $0x20] sm:$0xff]  ;;  %v103_v22 = vmul.f32 %v71_v14, %v39_v4  ;;  %v180_v28 = vmul.f32 %v71_v14, %v23_v0  ;;  %v656_v0 = vld [vmem:[%s1236_s4 + $0x88] sm:$0xff] }
   0xf   :  { %v79_v16 = vld [vmem:[%s1234_s3 + $0x40] sm:$0xff]  ;;  %v107_v23 = vmul.f32 %v75_v15, %v43_v5  ;;  %v184_v29 = vmul.f32 %v75_v15, %v27_v1  ;;  %v24_v5 = vld [vmem:[%s1231_s0 + $0x8] sm:$0xff]  ;;  %v169_v15 = vmul.f32 %v60_v10, %v44_v8 }
  0x10   :  { %v83_v21 = vld [vmem:[%s1234_s3 + $0x60] sm:$0xff]  ;;  %v111_v24 = vmul.f32 %v79_v16, %v47_v6  ;;  %v119_v30 = vadd.f32 %v103_v22, %v87_v12  ;;  %v188_v33 = vmul.f32 %v79_v16, %v31_v2  ;;  %v196_v36 = vsub.f32 %v164_v13, %v180_v28  ;;  %v28_v6 = vld [vmem:[%s1231_s0 + $0x28] sm:$0xff] }
  0x11   :  { %v115_v26 = vmul.f32 %v83_v21, %v51_v7  ;;  %v123_v31 = vadd.f32 %v107_v23, %v91_v17  ;;  %v192_v35 = vmul.f32 %v83_v21, %v35_v3  ;;  %v200_v37 = vsub.f32 %v168_v20, %v184_v29  ;;  %v648_v57 = vld [vmem:[%s1236_s4 + $0xc0] sm:$0xff]  ;;  %v40_v7 = vld [vmem:[%s1232_s1 + $0x8] sm:$0xff] }
  0x12   :  { %v127_v32 = vadd.f32 %v111_v24, %v95_v18  ;;  %v136_v38 = vsel %vm135_vm0, %v119_v30, 0.0  ;;  %v204_v41 = vsub.f32 %v172_v25, %v188_v33  ;;  %v212_v44 = vsel %vm135_vm0, %v196_v36, 0.0  ;;  %v649_v59 = vld [vmem:[%s1237_s5 + $0x60] sm:$0xf]  ;;  %v48_v12 = vld [vmem:[%s1232_s1 + $0x48] sm:$0xff] }
  0x13   :  { %v131_v34 = vadd.f32 %v115_v26, %v99_v19  ;;  %v137_v39 = vsel %vm135_vm0, %v123_v31, 0.0  ;;  %v208_v43 = vsub.f32 %v176_v27, %v192_v35  ;;  %v213_v46 = vsel %vm135_vm0, %v200_v37, 0.0  ;;  %652 = vmatpush.msk.msra.mxu1 %vm258_vm1, %v649_v59  ;;  %v655_v63 = vld [vmem:[%s1236_s4 + $0x80] sm:$0xff]  ;;  %v64_v13 = vld [vmem:[%s1233_s2 + $0x48] sm:$0xff] }
  0x14   :  { %v139_v40 = vsel %vm135_vm0, %v127_v32, 0.0  ;;  %v138_v42 = vadd.f32 %v137_v39, %v136_v38  ;;  %v215_v47 = vsel %vm135_vm0, %v204_v41, 0.0  ;;  %v214_v49 = vadd.f32 %v213_v46, %v212_v44  ;;  %v657_v2 = vld [vmem:[%s1237_s5 + $0x40] sm:$0xff]  ;;  %v72_v16 = vld [vmem:[%s1234_s3 + $0x8] sm:$0xff] }
  0x15   :  { %v141_v45 = vsel %vm135_vm0, %v131_v34, 0.0  ;;  %v217_v50 = vsel %vm135_vm0, %v208_v43, 0.0  ;;  %373 = vmatpush.msra.mxu3 %v657_v2  ;;  %v165_v14 = vmul.f32 %v56_v9, %v40_v7  ;;  %v76_v17 = vld [vmem:[%s1234_s3 + $0x28] sm:$0xff]  ;;  %v173_v19 = vmul.f32 %v64_v13, %v48_v12 }
  0x16   :  { %v140_v48 = vadd.f32 %v139_v40, %v138_v42  ;;  %v216_v52 = vadd.f32 %v215_v47, %v214_v49  ;;  %v80_v18 = vld [vmem:[%s1234_s3 + $0x48] sm:$0xff]  ;;  %v181_v23 = vmul.f32 %v72_v16, %v24_v5  ;;  %v185_v24 = vmul.f32 %v76_v17, %v28_v6 }
  0x17   :  { %v36_v20 = vld [vmem:[%s1231_s0 + $0x68] sm:$0xff]  ;;  %v189_v25 = vmul.f32 %v80_v18, %v32_v11  ;;  %v88_v28 = vmul.f32 %v56_v9, %v24_v5  ;;  %v92_v29 = vmul.f32 %v60_v10, %v28_v6  ;;  %v104_v30 = vmul.f32 %v72_v16, %v40_v7  ;;  %v667_v5 = vld [vmem:[%s1236_s4 + $0x58] sm:$0xff]  ;;  %v668_v6 = vld [vmem:[%s1237_s5 + $0x20] sm:$0xff] }
  0x18   :  { %v142_v51 = vadd.f32 %v141_v45, %v140_v48  ;;  %v218_v53 = vadd.f32 %v217_v50, %v216_v52  ;;  %v52_v21 = vld [vmem:[%s1232_s1 + $0x68] sm:$0xff]  ;;  %v197_v32 = vsub.f32 %v165_v14, %v181_v23  ;;  %v201_v33 = vsub.f32 %v169_v15, %v185_v24  ;;  %v981_v14 = vld [vmem:[%s1232_s1 + $0x38] sm:$0xff] }
  0x19   :  { %v68_v22 = vld [vmem:[%s1233_s2 + $0x68] sm:$0xff]  ;;  %v205_v34 = vsub.f32 %v173_v19, %v189_v25  ;;  %v96_v35 = vmul.f32 %v64_v13, %v32_v11  ;;  %v108_v36 = vmul.f32 %v76_v17, %v44_v8  ;;  %v112_v37 = vmul.f32 %v80_v18, %v48_v12  ;;  %v26_v11 = vld [vmem:[%s1231_s0 + $0x18] sm:$0xff] }
  0x1a   :  { %240 = vst.msk [vmem:[%s1235_s6] sm:$0xff] %vm135_vm0, %v142_v51  ;;  %v84_v26 = vld [vmem:[%s1234_s3 + $0x68] sm:$0xff]  ;;  %v177_v27 = vmul.f32 %v68_v22, %v52_v21  ;;  %v120_v38 = vadd.f32 %v104_v30, %v88_v28  ;;  %v219_v40 = vsel %vm135_vm0, %v197_v32, 0.0  ;;  %v220_v41 = vsel %vm135_vm0, %v201_v33, 0.0  ;;  %v30_v12 = vld [vmem:[%s1231_s0 + $0x38] sm:$0xff] }
  0x1b   :  { %644 = vst.msk [vmem:[%s1235_s6 + $0x20] sm:$0xff] %vm135_vm0, %v218_v53  ;;  %v193_v31 = vmul.f32 %v84_v26, %v36_v20  ;;  %v222_v42 = vsel %vm135_vm0, %v205_v34, 0.0  ;;  %v221_v43 = vadd.f32 %v220_v41, %v219_v40  ;;  %v100_v44 = vmul.f32 %v68_v22, %v36_v20  ;;  %v976_v13 = vld [vmem:[%s1232_s1 + $0x18] sm:$0xff]  ;;  %v25_v34 = vld [vmem:[%s1231_s0 + $0x10] sm:$0xff] }
  0x1c   :  { %v116_v45 = vmul.f32 %v84_v26, %v52_v21  ;;  %v124_v46 = vadd.f32 %v108_v36, %v92_v29  ;;  %v128_v48 = vadd.f32 %v112_v37, %v96_v35  ;;  %v143_v49 = vsel %vm135_vm0, %v120_v38, 0.0  ;;  %v58_v15 = vld [vmem:[%s1233_s2 + $0x18] sm:$0xff]  ;;  %v29_v35 = vld [vmem:[%s1231_s0 + $0x30] sm:$0xff] }
  0x1d   :  { %v209_v39 = vsub.f32 %v177_v27, %v193_v31  ;;  %v223_v50 = vadd.f32 %v222_v42, %v221_v43  ;;  %v62_v16 = vld [vmem:[%s1233_s2 + $0x38] sm:$0xff]  ;;  %v167_v20 = vmul.f32 %v58_v15, %v976_v13  ;;  %v33_v40 = vld [vmem:[%s1231_s0 + $0x50] sm:$0xff] }
  0x1e   :  { %v132_v51 = vadd.f32 %v116_v45, %v100_v44  ;;  %v144_v52 = vsel %vm135_vm0, %v124_v46, 0.0  ;;  %v34_v17 = vld [vmem:[%s1231_s0 + $0x58] sm:$0xff]  ;;  %v171_v21 = vmul.f32 %v62_v16, %v981_v14  ;;  %v37_v41 = vld [vmem:[%s1231_s0 + $0x70] sm:$0xff] }
  0x1f   :  { %v224_v47 = vsel %vm135_vm0, %v209_v39, 0.0  ;;  %v145_v53 = vadd.f32 %v144_v52, %v143_v49  ;;  %v995_v18 = vld [vmem:[%s1232_s1 + $0x58] sm:$0xff]  ;;  %v41_v42 = vld [vmem:[%s1232_s1 + $0x10] sm:$0xff] }
  0x20   :  { %v66_v19 = vld [vmem:[%s1233_s2 + $0x58] sm:$0xff]  ;;  %v45_v43 = vld [vmem:[%s1232_s1 + $0x30] sm:$0xff] }
  0x21   :  { %v253_v54 = vld [vmem:[%s1235_s6] sm:$0xf]  ;;  %v74_v22 = vld [vmem:[%s1234_s3 + $0x18] sm:$0xff]  ;;  %v175_v25 = vmul.f32 %v66_v19, %v995_v18  ;;  %v49_v44 = vld [vmem:[%s1232_s1 + $0x50] sm:$0xff] }
  0x22   :  { %v650_v55 = vld [vmem:[%s1235_s6 + $0x20] sm:$0xf]  ;;  %v78_v23 = vld [vmem:[%s1234_s3 + $0x38] sm:$0xff]  ;;  %v183_v29 = vmul.f32 %v74_v22, %v26_v11  ;;  %v53_v45 = vld [vmem:[%s1232_s1 + $0x70] sm:$0xff] }
  0x23   :  { %v256_v56 = vrot.slane %v650_v55, 4  ;;  %v225_v55 = vadd.f32 %v224_v47, %v223_v50  ;;  %v82_v24 = vld [vmem:[%s1234_s3 + $0x58] sm:$0xff]  ;;  %v187_v30 = vmul.f32 %v78_v23, %v30_v12  ;;  %v57_v50 = vld [vmem:[%s1233_s2 + $0x10] sm:$0xff] }
  0x24   :  { %v38_v26 = vld [vmem:[%s1231_s0 + $0x78] sm:$0xff]  ;;  %v191_v31 = vmul.f32 %v82_v24, %v34_v17  ;;  %v199_v37 = vsub.f32 %v167_v20, %v183_v29  ;;  %v65_v52 = vld [vmem:[%s1233_s2 + $0x50] sm:$0xff] }
  0x25   :  { %v259_v58 = vsel %vm258_vm1, %v253_v54, %v256_v56  ;;  %v146_v54 = vsel %vm135_vm0, %v128_v48, 0.0  ;;  %v148_v56 = vsel %vm135_vm0, %v132_v51, 0.0  ;;  %645 = vst.msk [vmem:[%s1235_s6 + $0x28] sm:$0xff] %vm135_vm0, %v225_v55  ;;  %v54_v27 = vld [vmem:[%s1232_s1 + $0x78] sm:$0xff]  ;;  %v203_v38 = vsub.f32 %v171_v21, %v187_v30  ;;  %v61_v51 = vld [vmem:[%s1233_s2 + $0x30] sm:$0xff] }
  0x26   :  { %279 = vmatpush.msra.mxu0 %v259_v58  ;;  %v70_v28 = vld [vmem:[%s1233_s2 + $0x78] sm:$0xff]  ;;  %v207_v39 = vsub.f32 %v175_v25, %v191_v31  ;;  %v233_v47 = vsel %vm135_vm0, %v199_v37, 0.0  ;;  %v73_v55 = vld [vmem:[%s1234_s3 + $0x10] sm:$0xff]  ;;  %v106_v31 = vmul.f32 %v74_v22, %v976_v13  ;;  %v93_v22 = vmul.f32 %v61_v51, %v29_v35 }
  0x27   :  { %651 = vmatmul.msk.f32.vlgmr.msra.gmra.mxu0 %vm260_vm2, %v648_v57  ;;  %v147_v57 = vadd.f32 %v146_v54, %v145_v53  ;;  %v86_v32 = vld [vmem:[%s1234_s3 + $0x78] sm:$0xff]  ;;  %v179_v33 = vmul.f32 %v70_v28, %v54_v27  ;;  %v234_v48 = vsel %vm135_vm0, %v203_v38, 0.0  ;;  %v69_v54 = vld [vmem:[%s1233_s2 + $0x70] sm:$0xff]  ;;  %v102_v25 = vmul.f32 %v70_v28, %v38_v26 }
  0x28   :  { %v195_v36 = vmul.f32 %v86_v32, %v38_v26  ;;  %v236_v49 = vsel %vm135_vm0, %v207_v39, 0.0  ;;  %v235_v53 = vadd.f32 %v234_v48, %v233_v47  ;;  %v89_v28 = vmul.f32 %v57_v50, %v25_v34 }
  0x29   :  { %v149_v58 = vadd.f32 %v148_v56, %v147_v57  ;;  %v77_v56 = vld [vmem:[%s1234_s3 + $0x30] sm:$0xff]  ;;  %v166_v57 = vmul.f32 %v57_v50, %v41_v42  ;;  %v101_v39 = vmul.f32 %v69_v54, %v37_v41 }
  0x2a   :  { %v211_v46 = vsub.f32 %v179_v33, %v195_v36  ;;  %v110_v33 = vmul.f32 %v78_v23, %v981_v14  ;;  %v97_v14 = vmul.f32 %v65_v52, %v33_v40 }
  0x2b   :  { %241 = vst.msk [vmem:[%s1235_s6 + $0x8] sm:$0xff] %vm135_vm0, %v149_v58  ;;  %v170_v58 = vmul.f32 %v61_v51, %v45_v43 }
  0x2c   :  { %v671_v59 = vld [vmem:[%s1235_s6 + $0x28] sm:$0xff] }
  0xa4   :  { %v281_v60 = vpop.f32.mrf.mxu0 }
  0xa5   :  { %653 = vmatmul.msk.f32.vlgmr.msra.gmra.mxu1 %vm284_vm3, %v281_v60 }
 0x122   :  { %v308_v61 = vpop.f32.mrf.mxu1 }
 0x123   :  { %312 = vst.msk [vmem:[%s1235_s6] sm:$0xf] %vm311_vm4, %v308_v61 }
 0x124   :  { %654 = vst.msk [vmem:[%s1235_s6 + $0x1c] sm:$0xf0] %vm313_vm5, %v308_v61 }
 0x12a   :  { %v320_v1 = vld [vmem:[%s1235_s6] sm:$0xff] }
 0x12b   :  { %v658_v62 = vld [vmem:[%s1235_s6 + $0x20] sm:$0xff] }
 0x12c   :  { %343 = vmatpush.msrb.mxu0 %v658_v62  ;;  %706 = vmatpush.msra.mxu2 %v658_v62  ;;  %v669_v62 = vld [vmem:[%s1237_s5 + $0x28] sm:$0xff] }
 0x12d   :  { %462 = vmatpush.msrb.mxu1 %v669_v62  ;;  %v85_v62 = vld [vmem:[%s1234_s3 + $0x70] sm:$0xff] }
 0x12e   :  { %344 = vmatpush.msrb.mxu0 %v320_v1  ;;  %707 = vmatpush.msra.mxu2 %v320_v1  ;;  %v664_v1 = vld [vmem:[%s1236_s4 + $0x40] sm:$0xff] }
 0x12f   :  { %659 = vmatmul.msk.f32.vlgmr.msrb.gmra.mxu0 %vm322_vm6, %v655_v63  ;;  %660 = vmatmul.msk.f32.vlgmr.msra.gmra.mxu2 %vm322_vm6, %v656_v0  ;;  %v392_v0 = vld [vmem:[%s1235_s6 + $0x8] sm:$0xff] }
 0x130   :  { %419 = vmatpush.msra.mxu0 %v671_v59  ;;  %463 = vmatpush.msrb.mxu1 %v668_v6  ;;  %v174_v59 = vmul.f32 %v65_v52, %v49_v44 }
 0x1ac   :  { %v346_v3 = vpop.f32.mrf.mxu0 }
 0x1ad   :  { %661 = vmatmul.msk.f32.vlgmr.msra.gmra.mxu3 %vm260_vm2, %v346_v3  ;;  %v665_v3 = vld [vmem:[%s1236_s4 + $0x48] sm:$0xff] }
 0x1b2   :  { %v349_v4 = vpop.f32.mrf.mxu2 }
 0x1b5   :  { %662 = vmatmul.msk.f32.gmra.mxu3 %vm260_vm2, %v349_v4  ;;  %v666_v4 = vld [vmem:[%s1236_s4 + $0x50] sm:$0xff] }
 0x230   :  { %v375_v60 = vpop.f32.mrf.mxu3 }
 0x231   :  { %381 = vst.msk [vmem:[%s1235_s6] sm:$0xff] %vm260_vm2, %v375_v60  ;;  %v238_v60 = vsel %vm135_vm0, %v211_v46, 0.0 }
 0x238   :  { %v378_v61 = vpop.f32.mrf.mxu3  ;;  %v391_v2 = vld [vmem:[%s1235_s6] sm:$0xff] }
 0x239   :  { %663 = vst.msk [vmem:[%s1235_s6 + $0x20] sm:$0xff] %vm260_vm2, %v378_v61  ;;  %v81_v61 = vld [vmem:[%s1234_s3 + $0x50] sm:$0xff] }
 0x240   :  { %v670_v63 = vld [vmem:[%s1235_s6 + $0x20] sm:$0xff] }
 0x241   :  { %420 = vmatpush.msra.mxu0 %v670_v63  ;;  %v178_v63 = vmul.f32 %v69_v54, %v53_v45 }
 0x243   :  { %421 = vmatpush.msra.mxu0 %v392_v0  ;;  %v182_v0 = vmul.f32 %v73_v55, %v25_v34 }
 0x245   :  { %422 = vmatpush.msra.mxu0 %v391_v2  ;;  %v237_v2 = vadd.f32 %v236_v49, %v235_v53  ;;  %v198_v6 = vsub.f32 %v166_v57, %v182_v0  ;;  %v105_v49 = vmul.f32 %v73_v55, %v41_v42 }
 0x246   :  { %672 = vmatmul.msk.f32.vlgmr.msra.gmra.mxu0 %vm135_vm0, %v664_v1  ;;  %v186_v1 = vmul.f32 %v77_v56, %v29_v35 }
 0x247   :  { %v226_v29 = vsel %vm135_vm0, %v198_v6, 0.0  ;;  %v121_v35 = vadd.f32 %v105_v49, %v89_v28  ;;  %v492_v6 = vld [vmem:[%s1237_s5 + $0x18] sm:$0xff] }
 0x248   :  { %716 = vmatpush.msrb.mxu2 %v492_v6  ;;  %603 = vmatpush.msrb.mxu0 %v492_v6 }
 0x24e   :  { %673 = vmatmul.msk.f32.gmra.mxu0 %vm135_vm0, %v665_v3  ;;  %v190_v3 = vmul.f32 %v81_v61, %v33_v40 }
 0x250   :  { %v206_v20 = vsub.f32 %v174_v59, %v190_v3 }
 0x256   :  { %674 = vmatmul.msk.f32.gmra.mxu0 %vm135_vm0, %v666_v4  ;;  %v194_v4 = vmul.f32 %v85_v62, %v37_v41 }
 0x258   :  { %v210_v21 = vsub.f32 %v178_v63, %v194_v4  ;;  %v484_v4 = vld [vmem:[%s1236_s4 + $0x18] sm:$0xff] }
 0x25e   :  { %675 = vmatmul.msk.f32.gmra.mxu0 %vm135_vm0, %v667_v5  ;;  %v90_v5 = vmul.f32 %v58_v15, %v26_v11  ;;  %v231_v15 = vsel %vm135_vm0, %v210_v21, 0.0  ;;  %v486_v21 = vld [vmem:[%s1236_s4 + $0x28] sm:$0xff] }
 0x2c3   :  { %v424_v7 = vpop.f32.mrf.mxu0 }
 0x2c4   :  { %676 = vmatmul.msk.f32.vlgmr.msrb.gmra.mxu1 %vm322_vm6, %v424_v7  ;;  %v202_v7 = vsub.f32 %v170_v58, %v186_v1 }
 0x2c6   :  { %v227_v30 = vsel %vm135_vm0, %v202_v7, 0.0  ;;  %v491_v7 = vld [vmem:[%s1237_s5 + $0x10] sm:$0xff] }
 0x2c7   :  { %v228_v11 = vadd.f32 %v227_v30, %v226_v29  ;;  %717 = vmatpush.msrb.mxu2 %v491_v7  ;;  %604 = vmatpush.msrb.mxu0 %v491_v7  ;;  %v488_v29 = vld [vmem:[%s1236_s4 + $0x38] sm:$0xff] }
 0x2cb   :  { %v427_v8 = vpop.f32.mrf.mxu0 }
 0x2cc   :  { %677 = vmatmul.msk.f32.gmra.mxu1 %vm322_vm6, %v427_v8  ;;  %v94_v8 = vmul.f32 %v62_v16, %v30_v12  ;;  %v229_v12 = vsel %vm135_vm0, %v206_v20, 0.0  ;;  %v114_v16 = vmul.f32 %v82_v24, %v995_v18  ;;  %v109_v24 = vmul.f32 %v77_v56, %v45_v43  ;;  %v482_v20 = vld [vmem:[%s1236_s4 + $0x8] sm:$0xff] }
 0x2cd   :  { %v230_v36 = vadd.f32 %v229_v12, %v228_v11 }
 0x2ce   :  { %v126_v26 = vadd.f32 %v110_v33, %v94_v8  ;;  %v125_v41 = vadd.f32 %v109_v24, %v93_v22  ;;  %v490_v8 = vld [vmem:[%s1237_s5 + $0x8] sm:$0xff] }
 0x2cf   :  { %v232_v46 = vadd.f32 %v231_v15, %v230_v36  ;;  %718 = vmatpush.msrb.mxu2 %v490_v8  ;;  %605 = vmatpush.msrb.mxu0 %v490_v8 }
 0x2d0   :  { %v158_v38 = vsel %vm135_vm0, %v126_v26, 0.0 }
 0x2d1   :  { %646 = vst.msk [vmem:[%s1235_s6 + $0x30] sm:$0xff] %vm135_vm0, %v232_v46 }
 0x2d3   :  { %v430_v9 = vpop.f32.mrf.mxu0 }
 0x2d4   :  { %678 = vmatmul.msk.f32.gmra.mxu1 %vm322_vm6, %v430_v9  ;;  %v98_v9 = vmul.f32 %v66_v19, %v34_v17  ;;  %v118_v17 = vmul.f32 %v86_v32, %v54_v27  ;;  %v122_v19 = vadd.f32 %v106_v31, %v90_v5  ;;  %v113_v27 = vmul.f32 %v81_v61, %v49_v44  ;;  %v481_v5 = vld [vmem:[%s1236_s4] sm:$0xff] }
 0x2d5   :  { %v117_v32 = vmul.f32 %v85_v62, %v53_v45  ;;  %v150_v44 = vsel %vm135_vm0, %v121_v35, 0.0  ;;  %v151_v45 = vsel %vm135_vm0, %v125_v41, 0.0 }
 0x2d6   :  { %v130_v13 = vadd.f32 %v114_v16, %v98_v9  ;;  %v134_v23 = vadd.f32 %v118_v17, %v102_v25  ;;  %v157_v37 = vsel %vm135_vm0, %v122_v19, 0.0  ;;  %v129_v50 = vadd.f32 %v113_v27, %v97_v14  ;;  %v489_v9 = vld [vmem:[%s1237_s5] sm:$0xff]  ;;  %v487_v25 = vld [vmem:[%s1236_s4 + $0x30] sm:$0xff] }
 0x2d7   :  { %v159_v47 = vadd.f32 %v158_v38, %v157_v37  ;;  %v133_v51 = vadd.f32 %v117_v32, %v101_v39  ;;  %v152_v53 = vadd.f32 %v151_v45, %v150_v44  ;;  %719 = vmatpush.msrb.mxu2 %v489_v9  ;;  %606 = vmatpush.msrb.mxu0 %v489_v9 }
 0x2d8   :  { %v160_v48 = vsel %vm135_vm0, %v130_v13, 0.0  ;;  %v162_v18 = vsel %vm135_vm0, %v134_v23, 0.0  ;;  %v153_v52 = vsel %vm135_vm0, %v129_v50, 0.0  ;;  %v684_v56 = vld [vmem:[%s1235_s6 + $0x30] sm:$0xff] }
 0x2d9   :  { %v161_v34 = vadd.f32 %v160_v48, %v159_v47  ;;  %v155_v54 = vsel %vm135_vm0, %v133_v51, 0.0  ;;  %v154_v55 = vadd.f32 %v153_v52, %v152_v53 }
 0x2db   :  { %v433_v10 = vpop.f32.mrf.mxu0  ;;  %v163_v43 = vadd.f32 %v162_v18, %v161_v34  ;;  %v156_v57 = vadd.f32 %v155_v54, %v154_v55 }
 0x2dc   :  { %679 = vmatmul.msk.f32.gmra.mxu1 %vm322_vm6, %v433_v10  ;;  %v239_v10 = vadd.f32 %v238_v60, %v237_v2  ;;  %v483_v2 = vld [vmem:[%s1236_s4 + $0x10] sm:$0xff] }
 0x2dd   :  { %243 = vst.msk [vmem:[%s1235_s6 + $0x18] sm:$0xff] %vm135_vm0, %v163_v43 }
 0x2de   :  { %647 = vst.msk [vmem:[%s1235_s6 + $0x38] sm:$0xff] %vm135_vm0, %v239_v10  ;;  %v485_v10 = vld [vmem:[%s1236_s4 + $0x20] sm:$0xff] }
 0x2df   :  { %242 = vst.msk [vmem:[%s1235_s6 + $0x10] sm:$0xff] %vm135_vm0, %v156_v57 }
 0x2e4   :  { %v496_v63 = vld [vmem:[%s1235_s6 + $0x18] sm:$0xff] }
 0x2e5   :  { %v685_v40 = vld [vmem:[%s1235_s6 + $0x38] sm:$0xff] }
 0x2e6   :  { %534 = vmatpush.msra.mxu1 %v685_v40  ;;  %708 = vmatpush.msrb.mxu3 %v685_v40  ;;  %v495_v0 = vld [vmem:[%s1235_s6 + $0x10] sm:$0xff] }
 0x2e8   :  { %535 = vmatpush.msra.mxu1 %v684_v56  ;;  %709 = vmatpush.msrb.mxu3 %v684_v56 }
 0x341   :  { %v465_v42 = vpop.f32.mrf.mxu1 }
 0x342   :  { %477 = vst.msk [vmem:[%s1235_s6] sm:$0xff] %vm322_vm6, %v465_v42 }
 0x349   :  { %v468_v58 = vpop.f32.mrf.mxu1  ;;  %v493_v3 = vld [vmem:[%s1235_s6] sm:$0xff] }
 0x34a   :  { %478 = vst.msk [vmem:[%s1235_s6 + $0x8] sm:$0xff] %vm322_vm6, %v468_v58 }
 0x351   :  { %v471_v59 = vpop.f32.mrf.mxu1  ;;  %v494_v1 = vld [vmem:[%s1235_s6 + $0x8] sm:$0xff] }
 0x352   :  { %680 = vst.msk [vmem:[%s1235_s6 + $0x20] sm:$0xff] %vm322_vm6, %v471_v59 }
 0x359   :  { %v474_v60 = vpop.f32.mrf.mxu1  ;;  %v682_v62 = vld [vmem:[%s1235_s6 + $0x20] sm:$0xff] }
 0x35a   :  { %681 = vst.msk [vmem:[%s1235_s6 + $0x28] sm:$0xff] %vm322_vm6, %v474_v60 }
 0x361   :  { %v683_v61 = vld [vmem:[%s1235_s6 + $0x28] sm:$0xff] }
 0x362   :  { %536 = vmatpush.msra.mxu1 %v683_v61  ;;  %710 = vmatpush.msrb.mxu3 %v683_v61 }
 0x364   :  { %537 = vmatpush.msra.mxu1 %v682_v62  ;;  %711 = vmatpush.msrb.mxu3 %v682_v62 }
 0x366   :  { %538 = vmatpush.msra.mxu1 %v496_v63  ;;  %712 = vmatpush.msrb.mxu3 %v496_v63 }
 0x368   :  { %539 = vmatpush.msra.mxu1 %v495_v0  ;;  %713 = vmatpush.msrb.mxu3 %v495_v0 }
 0x36a   :  { %540 = vmatpush.msra.mxu1 %v494_v1  ;;  %714 = vmatpush.msrb.mxu3 %v494_v1 }
 0x36c   :  { %541 = vmatpush.msra.mxu1 %v493_v3  ;;  %715 = vmatpush.msrb.mxu3 %v493_v3 }
 0x36d   :  { %688 = vmatmul.msk.f32.vlgmr.msrb.gmra.mxu3 %vm501_vm7, %v483_v2  ;;  %686 = vmatmul.msk.f32.vlgmr.msra.gmra.mxu1 %vm501_vm7, %v481_v5 }
 0x375   :  { %689 = vmatmul.msk.f32.gmra.mxu3 %vm501_vm7, %v484_v4  ;;  %687 = vmatmul.msk.f32.gmra.mxu1 %vm501_vm7, %v482_v20 }
 0x37d   :  { %690 = vmatmul.msk.f32.gmra.mxu3 %vm501_vm7, %v485_v10 }
 0x385   :  { %691 = vmatmul.msk.f32.gmra.mxu3 %vm501_vm7, %v486_v21 }
 0x38d   :  { %692 = vmatmul.msk.f32.gmra.mxu3 %vm501_vm7, %v487_v25 }
 0x395   :  { %693 = vmatmul.msk.f32.gmra.mxu3 %vm501_vm7, %v488_v29 }
 0x3ea   :  { %v543_v31 = vpop.f32.mrf.mxu1 }
 0x3eb   :  { %694 = vmatmul.msk.f32.vlgmr.msrb.gmra.mxu0 %vm135_vm0, %v543_v31 }
 0x3f0   :  { %v549_v30 = vpop.f32.mrf.mxu3 }
 0x3f1   :  { %696 = vmatmul.msk.f32.vlgmr.msrb.gmra.mxu2 %vm135_vm0, %v549_v30 }
 0x3f2   :  { %v546_v11 = vpop.f32.mrf.mxu1 }
 0x3f3   :  { %695 = vmatmul.msk.f32.gmra.mxu0 %vm135_vm0, %v546_v11 }
 0x3f8   :  { %v552_v33 = vpop.f32.mrf.mxu3 }
 0x3f9   :  { %697 = vmatmul.msk.f32.gmra.mxu2 %vm135_vm0, %v552_v33 }
 0x400   :  { %v555_v12 = vpop.f32.mrf.mxu3 }
 0x401   :  { %698 = vmatmul.msk.f32.gmra.mxu2 %vm135_vm0, %v555_v12 }
 0x408   :  { %v558_v15 = vpop.f32.mrf.mxu3 }
 0x409   :  { %699 = vmatmul.msk.f32.gmra.mxu2 %vm135_vm0, %v558_v15 }
 0x410   :  { %v561_v16 = vpop.f32.mrf.mxu3 }
 0x411   :  { %700 = vmatmul.msk.f32.gmra.mxu2 %vm135_vm0, %v561_v16 }
 0x418   :  { %v564_v17 = vpop.f32.mrf.mxu3 }
 0x419   :  { %701 = vmatmul.msk.f32.gmra.mxu2 %vm135_vm0, %v564_v17 }
 0x468   :  { %v608_v19 = vpop.f32.mrf.mxu0 }
 0x469   :  { %632 = vst.msk [vmem:[%s1235_s6] sm:$0xff] %vm135_vm0, %v608_v19 }
 0x470   :  { %v611_v28 = vpop.f32.mrf.mxu0 }
 0x471   :  { %633 = vst.msk [vmem:[%s1235_s6 + $0x8] sm:$0xff] %vm135_vm0, %v611_v28 }
 0x474   :  { %v614_v26 = vpop.f32.mrf.mxu2 }
 0x475   :  { %634 = vst.msk [vmem:[%s1235_s6 + $0x10] sm:$0xff] %vm135_vm0, %v614_v26 }
 0x47c   :  { %v617_v36 = vpop.f32.mrf.mxu2 }
 0x47d   :  { %635 = vst.msk [vmem:[%s1235_s6 + $0x18] sm:$0xff] %vm135_vm0, %v617_v36 }
 0x484   :  { %v620_v13 = vpop.f32.mrf.mxu2 }
 0x485   :  { %702 = vst.msk [vmem:[%s1235_s6 + $0x20] sm:$0xff] %vm135_vm0, %v620_v13 }
 0x48c   :  { %v623_v22 = vpop.f32.mrf.mxu2 }
 0x48d   :  { %703 = vst.msk [vmem:[%s1235_s6 + $0x28] sm:$0xff] %vm135_vm0, %v623_v22 }
 0x494   :  { %v626_v14 = vpop.f32.mrf.mxu2 }
 0x495   :  { %704 = vst.msk [vmem:[%s1235_s6 + $0x30] sm:$0xff] %vm135_vm0, %v626_v14 }
 0x49c   :  { %v629_v23 = vpop.f32.mrf.mxu2 }
 0x49d   :  { %705 = vst.msk [vmem:[%s1235_s6 + $0x38] sm:$0xff] %vm135_vm0, %v629_v23 }

// kernel: custom-call.6
= control target key start
LH: loop header
LB: loop body
LE: loop exit
PB: predicated region body
PF: predicated region fallthrough
CT: control target
= control target key end

     0   :  { %s105_s0 = inlined_call_operand.vmem [shape: f32[1,1,32,32], index: 0, kind: input, shape index: {}]   ;;  %s106_s1 = inlined_call_operand.vmem [shape: f32[1,1,32,32], index: 1, kind: input, shape index: {}]   ;;  %s107_s2 = inlined_call_operand.hbm [shape: c64[1,1,32,32], index: 2, kind: output, shape index: {}]  }
   0x1   :  { %s3_s11 = scalar_lea.hbm %s107_s2, 32 }
   0x2   :  { %4 = vsyncpa [#allocation0], 0  ;;  %s6_s14 = sshll.u32 %s105_s0, 4  ;;  %s8_s17 = sshll.u32 %s107_s2, 4  ;;  %s7_s14 = int_to_ptr.vmem [resolvable:$true] %s6_s14  ;;  %s9_s17 = int_to_ptr.hbm [resolvable:$true] %s8_s17 }
   0x3   :  { %11 = dma.vmem_to_hbm [thread:$0]  %s7_s14, 512, %s9_s17, [#allocation0] }
   0x4   :  { %74 = dma.done.wait [#allocation0], 512  }
   0x5   :  { %75 = vsyncadd [#allocation0], 4294966784 }
   0x6   :  { %14 = vsyncpa [#allocation0], 1 }
   0x7   :  { %15 = vsyncpa [#allocation1], 0  ;;  %s17_s20 = sshll.u32 %s106_s1, 4  ;;  %s19_s21 = sshll.u32 %s3_s11, 4  ;;  %s18_s20 = int_to_ptr.vmem [resolvable:$true] %s17_s20  ;;  %s20_s21 = int_to_ptr.hbm [resolvable:$true] %s19_s21 }
   0x8   :  { %22 = dma.vmem_to_hbm [thread:$0]  %s18_s20, 512, %s20_s21, [#allocation1] }
   0x9   :  { %76 = dma.done.wait [#allocation1], 512  }
   0xa   :  { %77 = vsyncadd [#allocation1], 4294966784 }
   0xb   :  { %25 = vsyncpa [#allocation1], 1 }

// kernel: zs_unrolled_network_onenet.31
= control target key start
LH: loop header
LB: loop body
LE: loop exit
PB: predicated region body
PF: predicated region fallthrough
CT: control target
= control target key end

     0   :  { %s6454_s9 = smov 33   ;;  %vm187_vm0 = vcmask 1041408   ;;  %vm1119_vm1 = vcmask 1045508   ;;  %vm1121_vm2 = vcmask 1043456   ;;  %s6456_s14 = smov 31   ;;  %vm183_vm4 = vcmask 15360   ;;  %s8662_s0 = inlined_call_operand.vmem [shape: f32[2,1024], index: 0, kind: input, shape index: {}]   ;;  %s8663_s1 = inlined_call_operand.vmem [shape: f32[9,1024], index: 1, kind: input, shape index: {}]   ;;  %s8664_s2 = inlined_call_operand.vmem [shape: f32[9,8,2], index: 2, kind: input, shape index: {}]   ;;  %s8665_s3 = inlined_call_operand.vmem [shape: f32[8,1], index: 3, kind: input, shape index: {}]   ;;  %s8666_s4 = inlined_call_operand.vmem [shape: f32[9,8,8], index: 4, kind: input, shape index: {}]   ;;  %s8667_s5 = inlined_call_operand.vmem [shape: f32[8,1], index: 5, kind: input, shape index: {}]   ;;  %s8668_s6 = inlined_call_operand.vmem [shape: f32[9,2,8], index: 6, kind: input, shape index: {}]   ;;  %s8669_s7 = inlined_call_operand.vmem [shape: f32[2,1], index: 7, kind: input, shape index: {}]   ;;  %s8670_s8 = inlined_call_operand.vmem [shape: f32[2,1024], index: 8, kind: output, shape index: {}]  }
   0x1   :  { %v6511_v0 = vld [vmem:[%s8662_s0] sm:$0xff]  ;;  %v6516_v1 = vld [vmem:[%s8662_s0 + $0x8] sm:$0xff]  ;;  %s6455_s0 = smov 32   ;;  %s6457_s15 = smov 1   ;;  %vm2501_vm12 = vcmask 64512  }
   0x2   :  { %33 = vst [vmem:[#allocation1] ss:$4 sm:$0xff] %v6511_v0  ;;  %v6188_v18 = vld [vmem:[%s8663_s1 + $0x4] ss:$8 sm:$0xf]  ;;  %s6458_s16 = smov 127  }
   0x3   :  { %35 = vst [vmem:[#allocation1 + $0x20] ss:$4 sm:$0xff] %v6516_v1  ;;  %v6189_v19 = vld [vmem:[%s8663_s1 + $0x4] ss:$8 sm:$0xf0]  ;;  %s6459_s17 = smov 97  }
   0x4   :  { %v1102_v20 = vor.u32 %v6189_v19, %v6188_v18  ;;  %s6460_s26 = smov 96   ;;  %s6461_s29 = smov 95  }
   0x6   :  { %v6542_v21 = vperm.slane %v1102_v20, 1  ;;  %v6544_v22 = vperm.slane %v1102_v20, 2  ;;  %v6546_v23 = vperm.slane %v1102_v20, 3  ;;  %v6551_v28 = vperm.slane %v1102_v20, 5 }
   0x7   :  { %v6553_v29 = vperm.slane %v1102_v20, 6  ;;  %v6555_v30 = vperm.slane %v1102_v20, 7  ;;  %v6557_v31 = vperm.slane %v1102_v20, 0  ;;  %v6563_v35 = vperm.slane %v1102_v20, 4 }
   0x8   :  { %8818 = vst [vmem:[#allocation2_spill] sm:$0xff] %v6542_v21  ;;  %v1112_v32 = vrot.slane %v6542_v21, 6  ;;  %v1113_v33 = vrot.slane %v6544_v22, 4  ;;  %v1114_v34 = vrot.slane %v6546_v23, 2  ;;  %v1115_v36 = vrot.slane %v6551_v28, 6 }
   0x9   :  { %v36_v2 = vld.sshfl [vmem:[#allocation1] sm:$0xff pattern:$0x73625140]  ;;  %v37_v3 = vld.sshfl [vmem:[#allocation1 + $0x8] sm:$0xff pattern:$0x73625140] }
   0xa   :  { %v38_v4 = vld.sshfl [vmem:[#allocation1 + $0x10] sm:$0xff pattern:$0x73625140]  ;;  %v39_v5 = vld.sshfl [vmem:[#allocation1 + $0x18] sm:$0xff pattern:$0x73625140]  ;;  %54 = vrot.lane.b32.xlu2 %v37_v3, %s6454_s9  ;;  %v1118_v39 = vsel %vm187_vm0, %v6557_v31, %v1112_v32  ;;  %v1120_v40 = vsel %vm1119_vm1, %v1113_v33, %v1114_v34  ;;  %v1123_v46 = vsel %vm187_vm0, %v6563_v35, %v1115_v36 }
   0xb   :  { %108 = vst [vmem:[#allocation1] ss:$4 sm:$0xff] %v6511_v0  ;;  %v6522_v6 = vld.sshfl [vmem:[#allocation1 + $0x20] sm:$0xff pattern:$0x73625140]  ;;  %v1116_v37 = vrot.slane %v6553_v29, 4  ;;  %v1122_v45 = vsel %vm1121_vm2, %v1118_v39, %v1120_v40 }
   0xc   :  { %v41_v7 = vld.sshfl [vmem:[#allocation1 + $0x28] sm:$0xff pattern:$0x73625140]  ;;  %v42_v8 = vld.sshfl [vmem:[#allocation1 + $0x30] sm:$0xff pattern:$0x73625140]  ;;  %v1128_v48 = vmul.f32 %v1122_v45, %v6511_v0 }
   0xd   :  { %v43_v9 = vld.sshfl [vmem:[#allocation1 + $0x38] sm:$0xff pattern:$0x73625140]  ;;  %8819 = vst [vmem:[#allocation3_spill] sm:$0xff] %v6544_v22  ;;  %v1117_v38 = vrot.slane %v6555_v30, 2 }
   0xe   :  { %110 = vst [vmem:[#allocation1 + $0x20] ss:$4 sm:$0xff] %v6516_v1 }
   0xf   :  { %8820 = vst [vmem:[#allocation4_spill] sm:$0xff] %v6546_v23  ;;  %v1124_v47 = vsel %vm1119_vm1, %v1116_v37, %v1117_v38  ;;  %v6115_v37 = vld [vmem:[%s8663_s1 + $0x1] ss:$8 sm:$0xf] }
  0x10   :  { %8821 = vst [vmem:[#allocation5_spill] sm:$0xff] %v6551_v28  ;;  %v1125_v49 = vsel %vm1121_vm2, %v1123_v46, %v1124_v47  ;;  %v6116_v38 = vld [vmem:[%s8663_s1 + $0x1] ss:$8 sm:$0xf0] }
  0x11   :  { %8822 = vst [vmem:[#allocation6_spill] sm:$0xff] %v6553_v29  ;;  %v1129_v52 = vmul.f32 %v1125_v49, %v6516_v1  ;;  %v155_v45 = vor.u32 %v6116_v38, %v6115_v37 }
  0x12   :  { %v114_v10 = vld.sshfl [vmem:[#allocation1 + $0x18] sm:$0xff pattern:$0x73625140]  ;;  %v112_v11 = vld.sshfl [vmem:[#allocation1 + $0x8] sm:$0xff pattern:$0x73625140] }
  0x13   :  { %133 = vrot.lane.b32.xlu1 %v114_v10, %s6455_s0  ;;  %129 = vrot.lane.b32.xlu0 %v112_v11, %s6455_s0  ;;  %v113_v12 = vld.sshfl [vmem:[#allocation1 + $0x10] sm:$0xff pattern:$0x73625140]  ;;  %v111_v13 = vld.sshfl [vmem:[#allocation1] sm:$0xff pattern:$0x73625140] }
  0x14   :  { %559 = vst [vmem:[#allocation1] ss:$4 sm:$0xff] %v6511_v0  ;;  %v6670_v49 = vperm.slane %v155_v45, 2 }
  0x15   :  { %v116_v14 = vld.sshfl [vmem:[#allocation1 + $0x28] sm:$0xff pattern:$0x73625140]  ;;  %v118_v15 = vld.sshfl [vmem:[#allocation1 + $0x38] sm:$0xff pattern:$0x73625140] }
  0x16   :  { %137 = vrot.lane.b32.xlu2 %v116_v14, %s6455_s0  ;;  %v115_v16 = vld.sshfl [vmem:[#allocation1 + $0x20] sm:$0xff pattern:$0x73625140]  ;;  %v117_v17 = vld.sshfl [vmem:[#allocation1 + $0x30] sm:$0xff pattern:$0x73625140] }
  0x17   :  { %561 = vst [vmem:[#allocation1 + $0x20] ss:$4 sm:$0xff] %v6516_v1 }
  0x18   :  { %8823 = vst [vmem:[#allocation7_spill] sm:$0xff] %v6555_v30 }
  0x19   :  { %8824 = vst [vmem:[#allocation8_spill] sm:$0xff] %v6557_v31 }
  0x1a   :  { %8825 = vst [vmem:[#allocation9_spill] sm:$0xff] %v6563_v35 }
  0x1b   :  { %131 = vrot.lane.b32.xlu0 %v113_v12, %s6455_s0  ;;  %127 = vrot.lane.b32.xlu1 %v111_v13, %s6455_s0  ;;  %v563_v24 = vld.sshfl [vmem:[#allocation1 + $0x8] sm:$0xff pattern:$0x73625140]  ;;  %v565_v25 = vld.sshfl [vmem:[#allocation1 + $0x18] sm:$0xff pattern:$0x73625140] }
  0x1c   :  { %v562_v26 = vld.sshfl [vmem:[#allocation1] sm:$0xff pattern:$0x73625140]  ;;  %v564_v27 = vld.sshfl [vmem:[#allocation1 + $0x10] sm:$0xff pattern:$0x73625140] }
  0x1d   :  { %829 = vst [vmem:[#allocation1] ss:$4 sm:$0xff] %v6511_v0 }
  0x1e   :  { %139 = vrot.lane.b32.xlu2 %v117_v17, %s6455_s0  ;;  %v567_v41 = vld.sshfl [vmem:[#allocation1 + $0x28] sm:$0xff pattern:$0x73625140]  ;;  %v568_v42 = vld.sshfl [vmem:[#allocation1 + $0x30] sm:$0xff pattern:$0x73625140] }
  0x1f   :  { %v569_v43 = vld.sshfl [vmem:[#allocation1 + $0x38] sm:$0xff pattern:$0x73625140]  ;;  %v566_v44 = vld.sshfl [vmem:[#allocation1 + $0x20] sm:$0xff pattern:$0x73625140] }
  0x20   :  { %831 = vst [vmem:[#allocation1 + $0x20] ss:$4 sm:$0xff] %v6516_v1 }
  0x21   :  { %8828 = vst [vmem:[#allocation12_spill] sm:$0xff] %v6670_v49 }
  0x23   :  { %141 = vrot.lane.b32.xlu0 %v118_v15, %s6455_s0  ;;  %135 = vrot.lane.b32.xlu1 %v115_v16, %s6455_s0 }
  0x24   :  { %v834_v50 = vld.sshfl [vmem:[#allocation1 + $0x10] sm:$0xff pattern:$0x73625140]  ;;  %v833_v51 = vld.sshfl [vmem:[#allocation1 + $0x8] sm:$0xff pattern:$0x73625140] }
  0x25   :  { %v832_v53 = vld.sshfl [vmem:[#allocation1] sm:$0xff pattern:$0x73625140]  ;;  %v835_v54 = vld.sshfl [vmem:[#allocation1 + $0x18] sm:$0xff pattern:$0x73625140] }
  0x26   :  { %52 = vrot.lane.b32.xlu2 %v36_v2, %s6454_s9  ;;  %1134 = vst [vmem:[#allocation1] ss:$4 sm:$0xff] %v1128_v48  ;;  %v6668_v48 = vperm.slane %v155_v45, 1 }
  0x27   :  { %v837_v55 = vld.sshfl [vmem:[#allocation1 + $0x28] sm:$0xff pattern:$0x73625140]  ;;  %v836_v56 = vld.sshfl [vmem:[#allocation1 + $0x20] sm:$0xff pattern:$0x73625140] }
  0x28   :  { %v839_v57 = vld.sshfl [vmem:[#allocation1 + $0x38] sm:$0xff pattern:$0x73625140]  ;;  %v838_v58 = vld.sshfl [vmem:[#allocation1 + $0x30] sm:$0xff pattern:$0x73625140] }
  0x29   :  { %1136 = vst [vmem:[#allocation1 + $0x20] ss:$4 sm:$0xff] %v1129_v52 }
  0x2a   :  { %8827 = vst [vmem:[#allocation11_spill] sm:$0xff] %v6668_v48 }
  0x2b   :  { %56 = vrot.lane.b32.xlu0 %v38_v4, %s6454_s9  ;;  %58 = vrot.lane.b32.xlu1 %v39_v5, %s6454_s9 }
  0x2d   :  { %v6586_v59 = vld.sshfl [vmem:[#allocation1] sm:$0xff pattern:$0x73625140]  ;;  %v6588_v60 = vld.sshfl [vmem:[#allocation1 + $0x8] sm:$0xff pattern:$0x73625140] }
  0x2e   :  { %66 = vrot.lane.b32.xlu2 %v43_v9, %s6454_s9  ;;  %v6592_v61 = vld.sshfl [vmem:[#allocation1 + $0x10] sm:$0xff pattern:$0x73625140]  ;;  %v6594_v62 = vld.sshfl [vmem:[#allocation1 + $0x18] sm:$0xff pattern:$0x73625140] }
  0x2f   :  { %1332 = vst [vmem:[#allocation1] ss:$4 sm:$0xff] %v6511_v0 }
  0x30   :  { %v6597_v63 = vld.sshfl [vmem:[#allocation1 + $0x20] sm:$0xff pattern:$0x73625140]  ;;  %v6599_v2 = vld.sshfl [vmem:[#allocation1 + $0x28] sm:$0xff pattern:$0x73625140] }
  0x31   :  { %v6602_v3 = vld.sshfl [vmem:[#allocation1 + $0x30] sm:$0xff pattern:$0x73625140]  ;;  %v6604_v4 = vld.sshfl [vmem:[#allocation1 + $0x38] sm:$0xff pattern:$0x73625140] }
  0x32   :  { %1334 = vst [vmem:[#allocation1 + $0x20] ss:$4 sm:$0xff] %v6516_v1 }
  0x33   :  { %62 = vrot.lane.b32.xlu0 %v41_v7, %s6454_s9  ;;  %64 = vrot.lane.b32.xlu1 %v42_v8, %s6454_s9 }
  0x36   :  { %582 = vrot.lane.b32.xlu2 %v564_v27, %s6456_s14  ;;  %v1337_v5 = vld.sshfl [vmem:[#allocation1 + $0x10] sm:$0xff pattern:$0x73625140]  ;;  %v1338_v7 = vld.sshfl [vmem:[#allocation1 + $0x18] sm:$0xff pattern:$0x73625140] }
  0x37   :  { %v1336_v8 = vld.sshfl [vmem:[#allocation1 + $0x8] sm:$0xff pattern:$0x73625140] }
  0x39   :  { %v1340_v9 = vld.sshfl [vmem:[#allocation1 + $0x28] sm:$0xff pattern:$0x73625140]  ;;  %v1339_v10 = vld.sshfl [vmem:[#allocation1 + $0x20] sm:$0xff pattern:$0x73625140] }
  0x3a   :  { %v1341_v11 = vld.sshfl [vmem:[#allocation1 + $0x30] sm:$0xff pattern:$0x73625140]  ;;  %v1342_v12 = vld.sshfl [vmem:[#allocation1 + $0x38] sm:$0xff pattern:$0x73625140] }
  0x3b   :  { %60 = vrot.lane.b32.xlu0 %v6522_v6, %s6454_s9  ;;  %580 = vrot.lane.b32.xlu1 %v563_v24, %s6456_s14  ;;  %v1335_v6 = vld.sshfl [vmem:[#allocation1] sm:$0xff pattern:$0x73625140]  ;;  %1604 = vst [vmem:[#allocation1 + $0x20] ss:$4 sm:$0xff] %v6516_v1 }
  0x3c   :  { %1602 = vst [vmem:[#allocation1] ss:$4 sm:$0xff] %v6511_v0 }
  0x3e   :  { %588 = vrot.lane.b32.xlu2 %v567_v41, %s6456_s14 }
  0x42   :  { %v1609_v20 = vld.sshfl [vmem:[#allocation1 + $0x20] sm:$0xff pattern:$0x73625140]  ;;  %v1611_v24 = vld.sshfl [vmem:[#allocation1 + $0x30] sm:$0xff pattern:$0x73625140] }
  0x43   :  { %584 = vrot.lane.b32.xlu0 %v565_v25, %s6456_s14  ;;  %578 = vrot.lane.b32.xlu1 %v562_v26, %s6456_s14  ;;  %v1608_v14 = vld.sshfl [vmem:[#allocation1 + $0x18] sm:$0xff pattern:$0x73625140]  ;;  %v1607_v15 = vld.sshfl [vmem:[#allocation1 + $0x10] sm:$0xff pattern:$0x73625140] }
  0x44   :  { %v1606_v16 = vld.sshfl [vmem:[#allocation1 + $0x8] sm:$0xff pattern:$0x73625140]  ;;  %v1605_v17 = vld.sshfl [vmem:[#allocation1] sm:$0xff pattern:$0x73625140] }
  0x45   :  { %1872 = vst [vmem:[#allocation1] ss:$4 sm:$0xff] %v6511_v0  ;;  %v1612_v25 = vld.sshfl [vmem:[#allocation1 + $0x38] sm:$0xff pattern:$0x73625140] }
  0x46   :  { %586 = vrot.lane.b32.xlu2 %v566_v44, %s6456_s14  ;;  %v1610_v32 = vld.sshfl [vmem:[#allocation1 + $0x28] sm:$0xff pattern:$0x73625140] }
  0x47   :  { %1874 = vst [vmem:[#allocation1 + $0x20] ss:$4 sm:$0xff] %v6516_v1 }
  0x4b   :  { %590 = vrot.lane.b32.xlu0 %v568_v42, %s6456_s14  ;;  %592 = vrot.lane.b32.xlu1 %v569_v43, %s6456_s14  ;;  %v68_v42 = vlaneseq }
  0x4c   :  { %v1878_v26 = vld.sshfl [vmem:[#allocation1 + $0x18] sm:$0xff pattern:$0x73625140]  ;;  %v1877_v27 = vld.sshfl [vmem:[#allocation1 + $0x10] sm:$0xff pattern:$0x73625140] }
  0x4d   :  { %v6636_v33 = vld.sshfl [vmem:[#allocation1 + $0x8] sm:$0xff pattern:$0x73625140]  ;;  %v6639_v34 = vld.sshfl [vmem:[#allocation1] sm:$0xff pattern:$0x73625140] }
  0x4e   :  { %854 = vrot.lane.b32.xlu2 %v835_v54, %s6457_s15  ;;  %2142 = vst [vmem:[#allocation1] ss:$4 sm:$0xff] %v6511_v0  ;;  %v6653_v39 = vld.sshfl [vmem:[#allocation1 + $0x30] sm:$0xff pattern:$0x73625140]  ;;  %v6663_v47 = vand.u32 127, %v68_v42 }
  0x4f   :  { %v6655_v40 = vld.sshfl [vmem:[#allocation1 + $0x38] sm:$0xff pattern:$0x73625140]  ;;  %v6657_v0 = vld.sshfl [vmem:[#allocation1 + $0x28] sm:$0xff pattern:$0x73625140] }
  0x50   :  { %v1879_v41 = vld.sshfl [vmem:[#allocation1 + $0x20] sm:$0xff pattern:$0x73625140]  ;;  %8826 = vst [vmem:[#allocation10_spill] sm:$0xff] %v6663_v47  ;;  %vm143_vm3 = vcmp.lt.s32.totalorder %v6663_v47, 32  ;;  %vm70_vm5 = vcmp.lt.s32.totalorder %v6663_v47, 33 }
  0x51   :  { %2144 = vst [vmem:[#allocation1 + $0x20] ss:$4 sm:$0xff] %v6516_v1  ;;  %v6674_v1 = vperm.slane %v155_v45, 6  ;;  %v79_v54 = vld [vmem:[%s8663_s1] ss:$8 sm:$0xf] }
  0x52   :  { %vm594_vm6 = vcmp.lt.s32.totalorder %v6663_v47, 31  ;;  %vm864_vm7 = vcmp.lt.s32.totalorder %v6663_v47, 1  ;;  %vm1367_vm8 = vcmp.lt.s32.totalorder %v6663_v47, 127  ;;  %vm1637_vm9 = vcmp.lt.s32.totalorder %v6663_v47, 97 }
  0x53   :  { %852 = vrot.lane.b32.xlu1 %v834_v50, %s6457_s15  ;;  %850 = vrot.lane.b32.xlu0 %v833_v51, %s6457_s15  ;;  %v6672_v50 = vperm.slane %v155_v45, 3  ;;  %8830 = vst [vmem:[#allocation14_spill] sm:$0xff] %v6674_v1  ;;  %vm1907_vm10 = vcmp.lt.s32.totalorder %v6663_v47, 96  ;;  %vm2177_vm11 = vcmp.lt.s32.totalorder %v6663_v47, 95 }
  0x55   :  { %8829 = vst [vmem:[#allocation13_spill] sm:$0xff] %v6672_v50 }
  0x56   :  { %860 = vrot.lane.b32.xlu2 %v838_v58, %s6457_s15 }
  0x5b   :  { %858 = vrot.lane.b32.xlu1 %v837_v55, %s6457_s15  ;;  %848 = vrot.lane.b32.xlu0 %v832_v53, %s6457_s15  ;;  %v80_v55 = vld [vmem:[%s8663_s1] ss:$8 sm:$0xf0] }
  0x5e   :  { %1355 = vrot.lane.b32.xlu2 %v1337_v5, %s6458_s16 }
  0x63   :  { %856 = vrot.lane.b32.xlu1 %v836_v56, %s6457_s15  ;;  %862 = vrot.lane.b32.xlu0 %v839_v57, %s6457_s15 }
  0x64   :  { %v6620_v13 = vpop.permute.xlu2 %54 }
  0x66   :  { %1353 = vrot.lane.b32.xlu2 %v1336_v8, %s6458_s16  ;;  %v6699_v8 = vld [vmem:[%s8664_s2 + $0x8] sm:$0xff] }
  0x6b   :  { %1359 = vrot.lane.b32.xlu1 %v1339_v10, %s6458_s16  ;;  %1357 = vrot.lane.b32.xlu0 %v1338_v7, %s6458_s16 }
  0x6e   :  { %1365 = vrot.lane.b32.xlu2 %v1342_v12, %s6458_s16  ;;  %v6714_v12 = vperm.slane %v155_v45, 0 }
  0x70   :  { %v6627_v18 = vpop.permute.xlu2 %137  ;;  %8831 = vst [vmem:[#allocation15_spill] sm:$0xff] %v6714_v12 }
  0x73   :  { %1363 = vrot.lane.b32.xlu1 %v1341_v11, %s6458_s16  ;;  %1351 = vrot.lane.b32.xlu0 %v1335_v6, %s6458_s16  ;;  %v6704_v11 = vor.u32 %v80_v55, %v79_v54 }
  0x76   :  { %1627 = vrot.lane.b32.xlu2 %v1608_v14, %s6459_s17  ;;  %v6716_v14 = vperm.slane %v155_v45, 5 }
  0x78   :  { %v6632_v19 = vpop.permute.xlu2 %139  ;;  %8832 = vst [vmem:[#allocation16_spill] sm:$0xff] %v6716_v14 }
  0x79   :  { %v145_v51 = vsel %vm143_vm3, %v6627_v18, %v6632_v19 }
  0x7b   :  { %1361 = vrot.lane.b32.xlu0 %v1340_v9, %s6458_s16  ;;  %1625 = vrot.lane.b32.xlu1 %v1607_v15, %s6459_s17  ;;  %v179_v9 = vmul.f32 %v6674_v1, %v145_v51  ;;  %v6718_v15 = vperm.slane %v155_v45, 7  ;;  %v6772_v51 = vperm.slane %v6704_v11, 3 }
  0x7d   :  { %8833 = vst [vmem:[#allocation17_spill] sm:$0xff] %v6718_v15 }
  0x7e   :  { %1621 = vrot.lane.b32.xlu2 %v1605_v17, %s6459_s17  ;;  %v6726_v17 = vperm.slane %v6704_v11, 1  ;;  %8838 = vst [vmem:[#allocation22_spill] sm:$0xff] %v6772_v51 }
  0x80   :  { %v6643_v36 = vpop.permute.xlu2 %52  ;;  %8835 = vst [vmem:[#allocation19_spill] sm:$0xff] %v6726_v17 }
  0x83   :  { %1629 = vrot.lane.b32.xlu0 %v1609_v20, %s6459_s17  ;;  %1623 = vrot.lane.b32.xlu1 %v1606_v16, %s6459_s17  ;;  %v6720_v16 = vperm.slane %v155_v45, 4  ;;  %v77_v20 = vsel %vm70_vm5, %v6643_v36, %v6620_v13 }
  0x85   :  { %v134_v43 = vpop.permute.xlu1 %133  ;;  %v130_v44 = vpop.permute.xlu0 %129  ;;  %8834 = vst [vmem:[#allocation18_spill] sm:$0xff] %v6720_v16 }
  0x86   :  { %1631 = vrot.lane.b32.xlu2 %v1610_v32, %s6459_s17 }
  0x88   :  { %v6661_v46 = vpop.permute.xlu2 %66 }
  0x8b   :  { %1633 = vrot.lane.b32.xlu0 %v1611_v24, %s6459_s17  ;;  %1635 = vrot.lane.b32.xlu1 %v1612_v25, %s6459_s17 }
  0x8d   :  { %v132_v52 = vpop.permute.xlu0 %131  ;;  %v128_v53 = vpop.permute.xlu1 %127 }
  0x8e   :  { %v150_v56 = vsel %vm143_vm3, %v128_v53, %v130_v44  ;;  %v149_v57 = vsel %vm143_vm3, %v130_v44, %v132_v52  ;;  %v148_v58 = vsel %vm143_vm3, %v132_v52, %v134_v43  ;;  %1899 = vrot.lane.b32.xlu2 %v1879_v41, %s6460_s26  ;;  %v2147_v52 = vld.sshfl [vmem:[#allocation1 + $0x10] sm:$0xff pattern:$0x73625140] }
  0x8f   :  { %v174_v5 = vmul.f32 %v6668_v48, %v150_v56  ;;  %v175_v6 = vmul.f32 %v6670_v49, %v149_v57  ;;  %v176_v7 = vmul.f32 %v6672_v50, %v148_v58  ;;  %v6796_v57 = vld [vmem:[%s8664_s2] sm:$0xff]  ;;  %v6805_v58 = vperm.slane %v6704_v11, 6 }
  0x90   :  { %v6702_v10 = vpop.permute.xlu2 %582 }
  0x91   :  { %6120 = vmatpush.msk.msra.mxu1 %vm187_vm0, %v174_v5  ;;  %6122 = vmatpush.msk.msra.mxu2 %vm187_vm0, %v175_v6  ;;  %8839 = vst [vmem:[#allocation23_spill] sm:$0xff] %v6805_v58  ;;  %v6808_v5 = vperm.slane %v6704_v11, 7  ;;  %v6150_v6 = vld [vmem:[%s8663_s1 + $0x2] ss:$8 sm:$0xf] }
  0x92   :  { %6124 = vmatpush.msk.msra.mxu3 %vm187_vm0, %v176_v7  ;;  %6123 = vmatmul.msk.f32.vlgmr.msra.gmra.mxu2 %vm183_vm4, %v6699_v8  ;;  %v6151_v7 = vld [vmem:[%s8663_s1 + $0x2] ss:$8 sm:$0xf0] }
  0x93   :  { %1897 = vrot.lane.b32.xlu1 %v1878_v26, %s6460_s26  ;;  %1895 = vrot.lane.b32.xlu0 %v1877_v27, %s6460_s26  ;;  %v6735_v26 = vperm.slane %v6704_v11, 0  ;;  %v78_v27 = vsel %vm70_vm5, %v6661_v46, %v6643_v36  ;;  %8840 = vst [vmem:[#allocation24_spill] sm:$0xff] %v6808_v5 }
  0x94   :  { %6130 = vmatpush.msk.msrb.mxu2 %vm187_vm0, %v179_v9  ;;  %6121 = vmatmul.msk.f32.vlgmr.msra.gmra.mxu1 %vm183_vm4, %v6699_v8  ;;  %v2146_v9 = vld.sshfl [vmem:[#allocation1 + $0x8] sm:$0xff pattern:$0x73625140] }
  0x95   :  { %v142_v24 = vpop.permute.xlu0 %141  ;;  %v136_v25 = vpop.permute.xlu1 %135  ;;  %6125 = vmatmul.msk.f32.vlgmr.msra.gmra.mxu3 %vm183_vm4, %v6699_v8  ;;  %8836 = vst [vmem:[#allocation20_spill] sm:$0xff] %v6735_v26 }
  0x96   :  { %v144_v32 = vsel %vm143_vm3, %v6632_v19, %v142_v24  ;;  %v146_v37 = vsel %vm143_vm3, %v136_v25, %v6627_v18  ;;  %v147_v38 = vsel %vm143_vm3, %v134_v43, %v136_v25  ;;  %v151_v41 = vsel %vm143_vm3, %v142_v24, %v128_v53  ;;  %1903 = vrot.lane.b32.xlu2 %v6653_v39, %s6460_s26 }
  0x97   :  { %v173_v42 = vmul.f32 %v6714_v12, %v151_v41  ;;  %v178_v36 = vmul.f32 %v6716_v14, %v146_v37  ;;  %v180_v44 = vmul.f32 %v6718_v15, %v144_v32  ;;  %v177_v19 = vmul.f32 %v6720_v16, %v147_v38  ;;  %v2149_v37 = vld.sshfl [vmem:[#allocation1 + $0x20] sm:$0xff pattern:$0x73625140]  ;;  %v2148_v38 = vld.sshfl [vmem:[#allocation1 + $0x18] sm:$0xff pattern:$0x73625140] }
  0x98   :  { %v6757_v45 = vpop.permute.xlu2 %588  ;;  %v100_v18 = vmul.f32 %v6726_v17, %v77_v20  ;;  %v99_v39 = vmul.f32 %v6735_v26, %v78_v27  ;;  %v6769_v43 = vperm.slane %v6704_v11, 2  ;;  %v606_v32 = vor.u32 %v6151_v7, %v6150_v6 }
  0x99   :  { %6118 = vmatpush.msk.msra.mxu0 %vm187_vm0, %v173_v42  ;;  %6128 = vmatpush.msk.msrb.mxu1 %vm187_vm0, %v178_v36  ;;  %v6844_v41 = vperm.slane %v6704_v11, 5  ;;  %v2152_v36 = vld.sshfl [vmem:[#allocation1 + $0x38] sm:$0xff pattern:$0x73625140] }
  0x9a   :  { %6132 = vmatpush.msk.msrb.mxu3 %vm187_vm0, %v180_v44  ;;  %6131 = vmatmul.msk.f32.vlgmr.msrb.gmra.mxu2 %vm183_vm4, %v6699_v8  ;;  %8837 = vst [vmem:[#allocation21_spill] sm:$0xff] %v6769_v43  ;;  %v6847_v42 = vperm.slane %v606_v32, 2  ;;  %v6880_v6 = vperm.slane %v606_v32, 3  ;;  %v6882_v7 = vperm.slane %v606_v32, 5 }
  0x9b   :  { %6126 = vmatpush.msk.msrb.mxu0 %vm187_vm0, %v177_v19  ;;  %6136 = vmatpush.msk.msra.mxu1 %vm187_vm0, %v100_v18  ;;  %8842 = vst [vmem:[#allocation26_spill] sm:$0xff] %v6844_v41 }
  0x9c   :  { %1893 = vrot.lane.b32.xlu0 %v6636_v33, %s6460_s26  ;;  %1891 = vrot.lane.b32.xlu1 %v6639_v34, %s6460_s26  ;;  %8843 = vst [vmem:[#allocation27_spill] sm:$0xff] %v6847_v42 }
  0x9d   :  { %v57_v53 = vpop.permute.xlu0 %56  ;;  %v59_v54 = vpop.permute.xlu1 %58  ;;  %6119 = vmatmul.msk.f32.vlgmr.msra.gmra.mxu0 %vm183_vm4, %v6699_v8  ;;  %6129 = vmatmul.msk.f32.vlgmr.msrb.gmra.mxu1 %vm183_vm4, %v6699_v8  ;;  %8844 = vst [vmem:[#allocation28_spill] sm:$0xff] %v6880_v6 }
  0x9e   :  { %v76_v55 = vsel %vm70_vm5, %v6620_v13, %v57_v53  ;;  %v75_v56 = vsel %vm70_vm5, %v57_v53, %v59_v54  ;;  %6133 = vmatmul.msk.f32.vlgmr.msrb.gmra.mxu3 %vm183_vm4, %v6699_v8  ;;  %6134 = vmatpush.msk.msra.mxu0 %vm187_vm0, %v99_v39  ;;  %8845 = vst [vmem:[#allocation29_spill] sm:$0xff] %v6882_v7 }
  0x9f   :  { %v101_v33 = vmul.f32 %v6769_v43, %v76_v55  ;;  %v102_v34 = vmul.f32 %v6772_v51, %v75_v56  ;;  %2165 = vrot.lane.b32.xlu2 %v2147_v52, %s6461_s29  ;;  %v6869_v56 = vld [vmem:[%s8664_s2 + $0x10] sm:$0xff] }
  0xa0   :  { %v6798_v13 = vpop.permute.xlu2 %586 }
  0xa1   :  { %6138 = vmatpush.msk.msra.mxu2 %vm187_vm0, %v101_v33  ;;  %6140 = vmatpush.msk.msra.mxu3 %vm187_vm0, %v102_v34  ;;  %v2151_v33 = vld.sshfl [vmem:[#allocation1 + $0x30] sm:$0xff pattern:$0x73625140]  ;;  %v2145_v34 = vld.sshfl [vmem:[#allocation1] sm:$0xff pattern:$0x73625140] }
  0xa2   :  { %6139 = vmatmul.msk.f32.vlgmr.msra.gmra.mxu2 %vm183_vm4, %v6796_v57 }
  0xa4   :  { %1905 = vrot.lane.b32.xlu0 %v6655_v40, %s6460_s26  ;;  %1901 = vrot.lane.b32.xlu1 %v6657_v0, %s6460_s26 }
  0xa5   :  { %v63_v20 = vpop.permute.xlu0 %62  ;;  %v65_v24 = vpop.permute.xlu1 %64  ;;  %6127 = vmatmul.msk.f32.vlgmr.msrb.gmra.mxu0 %vm183_vm4, %v6699_v8  ;;  %6137 = vmatmul.msk.f32.vlgmr.msra.gmra.mxu1 %vm183_vm4, %v6796_v57 }
  0xa6   :  { %v71_v40 = vsel %vm70_vm5, %v65_v24, %v6661_v46  ;;  %v72_v0 = vsel %vm70_vm5, %v63_v20, %v65_v24  ;;  %6141 = vmatmul.msk.f32.vlgmr.msra.gmra.mxu3 %vm183_vm4, %v6796_v57  ;;  %v6841_v46 = vperm.slane %v6704_v11, 4 }
  0xa7   :  { %v105_v25 = vmul.f32 %v6805_v58, %v72_v0  ;;  %v106_v27 = vmul.f32 %v6808_v5, %v71_v40  ;;  %2163 = vrot.lane.b32.xlu2 %v2146_v9, %s6461_s29  ;;  %v6884_v9 = vperm.slane %v606_v32, 1 }
  0xa8   :  { %v6834_v8 = vpop.permute.xlu2 %854  ;;  %8841 = vst [vmem:[#allocation25_spill] sm:$0xff] %v6841_v46 }
  0xa9   :  { %6146 = vmatpush.msk.msrb.mxu2 %vm187_vm0, %v105_v25  ;;  %6148 = vmatpush.msk.msrb.mxu3 %vm187_vm0, %v106_v27  ;;  %8846 = vst [vmem:[#allocation30_spill] sm:$0xff] %v6884_v9 }
  0xaa   :  { %6147 = vmatmul.msk.f32.vlgmr.msrb.gmra.mxu2 %vm183_vm4, %v6796_v57 }
  0xac   :  { %2169 = vrot.lane.b32.xlu1 %v2149_v37, %s6461_s29  ;;  %2167 = vrot.lane.b32.xlu0 %v2148_v38, %s6461_s29 }
  0xad   :  { %v61_v44 = vpop.permute.xlu0 %60  ;;  %v581_v19 = vpop.permute.xlu1 %580  ;;  %6135 = vmatmul.msk.f32.vlgmr.msra.gmra.mxu0 %vm183_vm4, %v6796_v57 }
  0xae   :  { %v73_v18 = vsel %vm70_vm5, %v61_v44, %v63_v20  ;;  %v74_v11 = vsel %vm70_vm5, %v59_v54, %v61_v44  ;;  %v600_v39 = vsel %vm594_vm6, %v581_v19, %v6702_v10  ;;  %6149 = vmatmul.msk.f32.vlgmr.msrb.gmra.mxu3 %vm183_vm4, %v6796_v57  ;;  %v597_v20 = vsel %vm594_vm6, %v6798_v13, %v6757_v45 }
  0xaf   :  { %v103_v52 = vmul.f32 %v6841_v46, %v74_v11  ;;  %v104_v53 = vmul.f32 %v6844_v41, %v73_v18  ;;  %v626_v55 = vmul.f32 %v6847_v42, %v600_v39  ;;  %2175 = vrot.lane.b32.xlu2 %v2152_v36, %s6461_s29  ;;  %v629_v37 = vmul.f32 %v6882_v7, %v597_v20  ;;  %v2150_v36 = vld.sshfl [vmem:[#allocation1 + $0x28] sm:$0xff pattern:$0x73625140] }
  0xb0   :  { %v6871_v54 = vpop.permute.xlu2 %860  ;;  %v6912_v44 = vperm.slane %v606_v32, 0  ;;  %v6169_v18 = vld [vmem:[%s8663_s1 + $0x3] ss:$8 sm:$0xf]  ;;  %v6924_v39 = vperm.slane %v606_v32, 4 }
  0xb1   :  { %6142 = vmatpush.msk.msrb.mxu0 %vm187_vm0, %v103_v52  ;;  %6144 = vmatpush.msk.msrb.mxu1 %vm187_vm0, %v104_v53  ;;  %v6170_v11 = vld [vmem:[%s8663_s1 + $0x3] ss:$8 sm:$0xf0] }
  0xb2   :  { %6157 = vmatpush.msk.msra.mxu2 %vm187_vm0, %v626_v55  ;;  %6145 = vmatmul.msk.f32.vlgmr.msrb.gmra.mxu1 %vm183_vm4, %v6796_v57  ;;  %8848 = vst [vmem:[#allocation32_spill] sm:$0xff] %v6912_v44 }
  0xb3   :  { %6158 = vmatmul.msk.f32.vlgmr.msra.gmra.mxu2 %vm183_vm4, %v6869_v56  ;;  %8850 = vst [vmem:[#allocation34_spill] sm:$0xff] %v6924_v39 }
  0xb4   :  { %2173 = vrot.lane.b32.xlu1 %v2151_v33, %s6461_s29  ;;  %2161 = vrot.lane.b32.xlu0 %v2145_v34, %s6461_s29 }
  0xb5   :  { %v585_v24 = vpop.permute.xlu0 %584  ;;  %v579_v40 = vpop.permute.xlu1 %578  ;;  %6143 = vmatmul.msk.f32.vlgmr.msrb.gmra.mxu0 %vm183_vm4, %v6796_v57  ;;  %v6910_v57 = vperm.slane %v606_v32, 6 }
  0xb6   :  { %v599_v0 = vsel %vm594_vm6, %v6702_v10, %v585_v24  ;;  %v601_v25 = vsel %vm594_vm6, %v579_v40, %v581_v19  ;;  %v6914_v19 = vperm.slane %v606_v32, 7  ;;  %v598_v55 = vsel %vm594_vm6, %v585_v24, %v6798_v13 }
  0xb7   :  { %v627_v27 = vmul.f32 %v6880_v6, %v599_v0  ;;  %v625_v38 = vmul.f32 %v6884_v9, %v601_v25  ;;  %8847 = vst [vmem:[#allocation31_spill] sm:$0xff] %v6910_v57 }
  0xb8   :  { %v6908_v10 = vpop.permute.xlu2 %1355  ;;  %8849 = vst [vmem:[#allocation33_spill] sm:$0xff] %v6914_v19 }
  0xb9   :  { %6155 = vmatpush.msk.msra.mxu1 %vm187_vm0, %v625_v38  ;;  %6159 = vmatpush.msk.msra.mxu3 %vm187_vm0, %v627_v27  ;;  %v876_v27 = vor.u32 %v6170_v11, %v6169_v18 }
  0xba   :  { %6156 = vmatmul.msk.f32.vlgmr.msra.gmra.mxu1 %vm183_vm4, %v6869_v56  ;;  %6160 = vmatmul.msk.f32.vlgmr.msra.gmra.mxu3 %vm183_vm4, %v6869_v56 }
  0xbb   :  { %6163 = vmatpush.msk.msrb.mxu1 %vm187_vm0, %v629_v37  ;;  %v628_v37 = vmul.f32 %v6924_v39, %v598_v55  ;;  %v6951_v13 = vperm.slane %v876_v27, 2  ;;  %v6975_v55 = vperm.slane %v876_v27, 6 }
  0xbc   :  { %2171 = vrot.lane.b32.xlu0 %v2150_v36, %s6461_s29 }
  0xbd   :  { %v591_v52 = vpop.permute.xlu0 %590  ;;  %v593_v53 = vpop.permute.xlu1 %592  ;;  %8852 = vst [vmem:[#allocation36_spill] sm:$0xff] %v6951_v13 }
  0xbe   :  { %v596_v33 = vsel %vm594_vm6, %v6757_v45, %v591_v52  ;;  %v595_v34 = vsel %vm594_vm6, %v591_v52, %v593_v53  ;;  %v602_v20 = vsel %vm594_vm6, %v593_v53, %v579_v40  ;;  %v6949_v45 = vperm.slane %v876_v27, 3  ;;  %v6971_v53 = vld [vmem:[%s8664_s2 + $0x18] sm:$0xff]  ;;  %8853 = vst [vmem:[#allocation37_spill] sm:$0xff] %v6975_v55 }
  0xbf   :  { %v630_v0 = vmul.f32 %v6910_v57, %v596_v33  ;;  %v624_v32 = vmul.f32 %v6912_v44, %v602_v20  ;;  %v631_v25 = vmul.f32 %v6914_v19, %v595_v34  ;;  %v6977_v33 = vperm.slane %v876_v27, 1 }
  0xc0   :  { %8851 = vst [vmem:[#allocation35_spill] sm:$0xff] %v6949_v45  ;;  %v6957_v24 = vpop.permute.xlu2 %1353 }
  0xc1   :  { %6153 = vmatpush.msk.msra.mxu0 %vm187_vm0, %v624_v32  ;;  %6165 = vmatpush.msk.msrb.mxu2 %vm187_vm0, %v630_v0  ;;  %8854 = vst [vmem:[#allocation38_spill] sm:$0xff] %v6977_v33 }
  0xc2   :  { %6167 = vmatpush.msk.msrb.mxu3 %vm187_vm0, %v631_v25  ;;  %6154 = vmatmul.msk.f32.vlgmr.msra.gmra.mxu0 %vm183_vm4, %v6869_v56 }
  0xc3   :  { %6161 = vmatpush.msk.msrb.mxu0 %vm187_vm0, %v628_v37  ;;  %6164 = vmatmul.msk.f32.vlgmr.msrb.gmra.mxu1 %vm183_vm4, %v6869_v56 }
  0xc4   :  { %6166 = vmatmul.msk.f32.vlgmr.msrb.gmra.mxu2 %vm183_vm4, %v6869_v56  ;;  %6168 = vmatmul.msk.f32.vlgmr.msrb.gmra.mxu3 %vm183_vm4, %v6869_v56 }
  0xc5   :  { %v853_v40 = vpop.permute.xlu1 %852  ;;  %v851_v38 = vpop.permute.xlu0 %850 }
  0xc6   :  { %v869_v36 = vsel %vm864_vm7, %v853_v40, %v6834_v8  ;;  %v870_v18 = vsel %vm864_vm7, %v851_v38, %v853_v40  ;;  %v6998_v40 = vperm.slane %v876_v27, 4 }
  0xc7   :  { %v897_v11 = vmul.f32 %v6949_v45, %v869_v36  ;;  %v896_v52 = vmul.f32 %v6951_v13, %v870_v18  ;;  %v7000_v36 = vperm.slane %v876_v27, 5  ;;  %v7004_v18 = vperm.slane %v876_v27, 7 }
  0xc8   :  { %8855 = vst [vmem:[#allocation39_spill] sm:$0xff] %v6998_v40 }
  0xc9   :  { %6176 = vmatpush.msk.msra.mxu2 %vm187_vm0, %v896_v52  ;;  %6178 = vmatpush.msk.msra.mxu3 %vm187_vm0, %v897_v11  ;;  %8856 = vst [vmem:[#allocation40_spill] sm:$0xff] %v7000_v36 }
  0xca   :  { %6162 = vmatmul.msk.f32.vlgmr.msrb.gmra.mxu0 %vm183_vm4, %v6869_v56  ;;  %v6988_v56 = vpop.permute.xlu2 %1365  ;;  %8858 = vst [vmem:[#allocation42_spill] sm:$0xff] %v7004_v18 }
  0xcc   :  { %6177 = vmatmul.msk.f32.vlgmr.msra.gmra.mxu2 %vm183_vm4, %v6971_v53  ;;  %6179 = vmatmul.msk.f32.vlgmr.msra.gmra.mxu3 %vm183_vm4, %v6971_v53 }
  0xcd   :  { %v859_v34 = vpop.permute.xlu1 %858  ;;  %v849_v20 = vpop.permute.xlu0 %848 }
  0xce   :  { %v866_v0 = vsel %vm864_vm7, %v859_v34, %v6871_v54  ;;  %v871_v32 = vsel %vm864_vm7, %v849_v20, %v851_v38  ;;  %v7002_v38 = vperm.slane %v876_v27, 0 }
  0xcf   :  { %v900_v25 = vmul.f32 %v6975_v55, %v866_v0  ;;  %v895_v37 = vmul.f32 %v6977_v33, %v871_v32 }
  0xd0   :  { %8857 = vst [vmem:[#allocation41_spill] sm:$0xff] %v7002_v38 }
  0xd1   :  { %6174 = vmatpush.msk.msra.mxu1 %vm187_vm0, %v895_v37  ;;  %6184 = vmatpush.msk.msrb.mxu2 %vm187_vm0, %v900_v25  ;;  %v6207_v25 = vld [vmem:[%s8663_s1 + $0x5] ss:$8 sm:$0xf] }
  0xd2   :  { %6175 = vmatmul.msk.f32.vlgmr.msra.gmra.mxu1 %vm183_vm4, %v6971_v53 }
  0xd3   :  { %6195 = vmatpush.msk.msra.mxu2 %vm187_vm0, %v6592_v61 }
  0xd4   :  { %6185 = vmatmul.msk.f32.vlgmr.msrb.gmra.mxu2 %vm183_vm4, %v6971_v53 }
  0xd5   :  { %v857_v11 = vpop.permute.xlu1 %856  ;;  %v863_v52 = vpop.permute.xlu0 %862  ;;  %6203 = vmatpush.msk.msrb.mxu2 %vm187_vm0, %v6602_v3  ;;  %v6208_v3 = vld [vmem:[%s8663_s1 + $0x5] ss:$8 sm:$0xf0] }
  0xd6   :  { %v867_v0 = vsel %vm864_vm7, %v857_v11, %v859_v34  ;;  %v868_v61 = vsel %vm864_vm7, %v6834_v8, %v857_v11  ;;  %v865_v27 = vsel %vm864_vm7, %v6871_v54, %v863_v52  ;;  %v872_v32 = vsel %vm864_vm7, %v863_v52, %v849_v20  ;;  %v7030_v54 = vpop.permute.xlu2 %1627  ;;  %v7037_v20 = vld [vmem:[%s8664_s2 + $0x20] sm:$0xff] }
  0xd7   :  { %v898_v34 = vmul.f32 %v6998_v40, %v868_v61  ;;  %v899_v37 = vmul.f32 %v7000_v36, %v867_v0  ;;  %v894_v8 = vmul.f32 %v7002_v38, %v872_v32  ;;  %v901_v11 = vmul.f32 %v7004_v18, %v865_v27 }
  0xd8   :  { %v1379_v35 = vor.u32 %v6208_v3, %v6207_v25 }
  0xd9   :  { %6172 = vmatpush.msk.msra.mxu0 %vm187_vm0, %v894_v8  ;;  %6182 = vmatpush.msk.msrb.mxu1 %vm187_vm0, %v899_v37 }
  0xda   :  { %6186 = vmatpush.msk.msrb.mxu3 %vm187_vm0, %v901_v11  ;;  %6173 = vmatmul.msk.f32.vlgmr.msra.gmra.mxu0 %vm183_vm4, %v6971_v53  ;;  %v7045_v52 = vperm.slane %v1379_v35, 2  ;;  %v7052_v61 = vperm.slane %v1379_v35, 3  ;;  %v7067_v3 = vperm.slane %v1379_v35, 1  ;;  %v7087_v37 = vperm.slane %v1379_v35, 0 }
  0xdb   :  { %6180 = vmatpush.msk.msrb.mxu0 %vm187_vm0, %v898_v34  ;;  %6183 = vmatmul.msk.f32.vlgmr.msrb.gmra.mxu1 %vm183_vm4, %v6971_v53 }
  0xdc   :  { %8859 = vst [vmem:[#allocation43_spill] sm:$0xff] %v7045_v52  ;;  %6187 = vmatmul.msk.f32.vlgmr.msrb.gmra.mxu3 %vm183_vm4, %v6971_v53  ;;  %6196 = vmatmul.msk.f32.vlgmr.msra.gmra.mxu2 %vm183_vm4, %v7037_v20 }
  0xdd   :  { %v1360_v0 = vpop.permute.xlu1 %1359  ;;  %8860 = vst [vmem:[#allocation44_spill] sm:$0xff] %v7052_v61  ;;  %v1358_v27 = vpop.permute.xlu0 %1357  ;;  %6193 = vmatpush.msk.msra.mxu1 %vm187_vm0, %v6588_v60  ;;  %6197 = vmatpush.msk.msra.mxu3 %vm187_vm0, %v6594_v62  ;;  %v1373_v62 = vsel %vm1367_vm8, %v6957_v24, %v6908_v10 }
  0xde   :  { %v1371_v32 = vsel %vm1367_vm8, %v1358_v27, %v1360_v0  ;;  %v1372_v25 = vsel %vm1367_vm8, %v6908_v10, %v1358_v27  ;;  %8861 = vst [vmem:[#allocation45_spill] sm:$0xff] %v7067_v3  ;;  %6191 = vmatpush.msk.msra.mxu0 %vm187_vm0, %v6586_v59  ;;  %v7085_v59 = vperm.slane %v1379_v35, 6  ;;  %v6226_v10 = vld [vmem:[%s8663_s1 + $0x6] ss:$8 sm:$0xf] }
  0xdf   :  { %6201 = vmatpush.msk.msrb.mxu1 %vm187_vm0, %v6599_v2  ;;  %6205 = vmatpush.msk.msrb.mxu3 %vm187_vm0, %v6604_v4  ;;  %v1399_v60 = vmul.f32 %v7045_v52, %v1372_v25  ;;  %v1400_v34 = vmul.f32 %v7052_v61, %v1371_v32  ;;  %v7080_v2 = vpop.permute.xlu2 %1621  ;;  %v1398_v4 = vmul.f32 %v7067_v3, %v1373_v62  ;;  %v7120_v52 = vld [vmem:[%s8664_s2 + $0x28] sm:$0xff] }
  0xe0   :  { %8862 = vst [vmem:[#allocation46_spill] sm:$0xff] %v7085_v59 }
  0xe1   :  { %6214 = vmatpush.msk.msra.mxu2 %vm187_vm0, %v1399_v60  ;;  %8863 = vst [vmem:[#allocation47_spill] sm:$0xff] %v7087_v37 }
  0xe2   :  { %6181 = vmatmul.msk.f32.vlgmr.msrb.gmra.mxu0 %vm183_vm4, %v6971_v53  ;;  %v6227_v53 = vld [vmem:[%s8663_s1 + $0x6] ss:$8 sm:$0xf0] }
  0xe3   :  { %6194 = vmatmul.msk.f32.vlgmr.msra.gmra.mxu1 %vm183_vm4, %v7037_v20  ;;  %6199 = vmatpush.msk.msrb.mxu0 %vm187_vm0, %v6597_v63  ;;  %v7103_v63 = vperm.slane %v1379_v35, 7 }
  0xe4   :  { %6198 = vmatmul.msk.f32.vlgmr.msra.gmra.mxu3 %vm183_vm4, %v7037_v20  ;;  %6204 = vmatmul.msk.f32.vlgmr.msrb.gmra.mxu2 %vm183_vm4, %v7037_v20 }
  0xe5   :  { %6212 = vmatpush.msk.msra.mxu1 %vm187_vm0, %v1398_v4  ;;  %6216 = vmatpush.msk.msra.mxu3 %vm187_vm0, %v1400_v34  ;;  %v1364_v8 = vpop.permute.xlu1 %1363  ;;  %8864 = vst [vmem:[#allocation48_spill] sm:$0xff] %v7103_v63  ;;  %v1352_v11 = vpop.permute.xlu0 %1351  ;;  %v1649_v34 = vor.u32 %v6227_v53, %v6226_v10 }
  0xe6   :  { %v1368_v27 = vsel %vm1367_vm8, %v1364_v8, %v6988_v56  ;;  %v1374_v32 = vsel %vm1367_vm8, %v1352_v11, %v6957_v24  ;;  %v1375_v25 = vsel %vm1367_vm8, %v6988_v56, %v1352_v11  ;;  %v7128_v24 = vperm.slane %v1379_v35, 4 }
  0xe7   :  { %v1403_v60 = vmul.f32 %v7085_v59, %v1368_v27  ;;  %v1397_v62 = vmul.f32 %v7087_v37, %v1374_v32  ;;  %v1404_v4 = vmul.f32 %v7103_v63, %v1375_v25  ;;  %v7130_v56 = vperm.slane %v1379_v35, 5  ;;  %v1632_v53 = vpop.permute.xlu2 %1631 }
  0xe8   :  { %8865 = vst [vmem:[#allocation49_spill] sm:$0xff] %v7128_v24  ;;  %v7133_v10 = vperm.slane %v1649_v34, 2 }
  0xe9   :  { %6222 = vmatpush.msk.msrb.mxu2 %vm187_vm0, %v1403_v60  ;;  %8866 = vst [vmem:[#allocation50_spill] sm:$0xff] %v7130_v56 }
  0xea   :  { %6192 = vmatmul.msk.f32.vlgmr.msra.gmra.mxu0 %vm183_vm4, %v7037_v20  ;;  %8867 = vst [vmem:[#allocation51_spill] sm:$0xff] %v7133_v10 }
  0xeb   :  { %6202 = vmatmul.msk.f32.vlgmr.msrb.gmra.mxu1 %vm183_vm4, %v7037_v20  ;;  %6210 = vmatpush.msk.msra.mxu0 %vm187_vm0, %v1397_v62 }
  0xec   :  { %6206 = vmatmul.msk.f32.vlgmr.msrb.gmra.mxu3 %vm183_vm4, %v7037_v20  ;;  %6215 = vmatmul.msk.f32.vlgmr.msra.gmra.mxu2 %vm183_vm4, %v7120_v52 }
  0xed   :  { %6224 = vmatpush.msk.msrb.mxu3 %vm187_vm0, %v1404_v4  ;;  %v1362_v11 = vpop.permute.xlu0 %1361  ;;  %v1626_v27 = vpop.permute.xlu1 %1625  ;;  %v7161_v4 = vperm.slane %v1649_v34, 1 }
  0xee   :  { %v1369_v32 = vsel %vm1367_vm8, %v1362_v11, %v1364_v8  ;;  %v1370_v35 = vsel %vm1367_vm8, %v1360_v0, %v1362_v11  ;;  %v1642_v25 = vsel %vm1637_vm9, %v1626_v27, %v7030_v54  ;;  %v7157_v0 = vperm.slane %v1649_v34, 3 }
  0xef   :  { %v1401_v60 = vmul.f32 %v7128_v24, %v1370_v35  ;;  %v1402_v62 = vmul.f32 %v7130_v56, %v1369_v32  ;;  %v1669_v59 = vmul.f32 %v7133_v10, %v1642_v25  ;;  %v7159_v8 = vperm.slane %v1649_v34, 0  ;;  %8870 = vst [vmem:[#allocation54_spill] sm:$0xff] %v7161_v4 }
  0xf0   :  { %8868 = vst [vmem:[#allocation52_spill] sm:$0xff] %v7157_v0 }
  0xf1   :  { %6220 = vmatpush.msk.msrb.mxu1 %vm187_vm0, %v1402_v62  ;;  %6233 = vmatpush.msk.msra.mxu2 %vm187_vm0, %v1669_v59  ;;  %8869 = vst [vmem:[#allocation53_spill] sm:$0xff] %v7159_v8  ;;  %v7167_v59 = vpop.permute.xlu2 %1899 }
  0xf2   :  { %6200 = vmatmul.msk.f32.vlgmr.msrb.gmra.mxu0 %vm183_vm4, %v7037_v20 }
  0xf3   :  { %6213 = vmatmul.msk.f32.vlgmr.msra.gmra.mxu1 %vm183_vm4, %v7120_v52  ;;  %6218 = vmatpush.msk.msrb.mxu0 %vm187_vm0, %v1401_v60 }
  0xf4   :  { %6217 = vmatmul.msk.f32.vlgmr.msra.gmra.mxu3 %vm183_vm4, %v7120_v52  ;;  %6223 = vmatmul.msk.f32.vlgmr.msrb.gmra.mxu2 %vm183_vm4, %v7120_v52 }
  0xf5   :  { %v1630_v20 = vpop.permute.xlu0 %1629  ;;  %v1624_v11 = vpop.permute.xlu1 %1623 }
  0xf6   :  { %v1641_v32 = vsel %vm1637_vm9, %v7030_v54, %v1630_v20  ;;  %v1643_v35 = vsel %vm1637_vm9, %v1624_v11, %v1626_v27  ;;  %v1644_v25 = vsel %vm1637_vm9, %v7080_v2, %v1624_v11  ;;  %v7185_v54 = vld [vmem:[%s8664_s2 + $0x30] sm:$0xff]  ;;  %v7191_v27 = vperm.slane %v1649_v34, 5 }
  0xf7   :  { %v1670_v60 = vmul.f32 %v7157_v0, %v1641_v32  ;;  %v1667_v62 = vmul.f32 %v7159_v8, %v1644_v25  ;;  %v1668_v10 = vmul.f32 %v7161_v4, %v1643_v35  ;;  %v7193_v11 = vperm.slane %v1649_v34, 6  ;;  %v6246_v35 = vld [vmem:[%s8663_s1 + $0x7] ss:$8 sm:$0xf0] }
  0xf8   :  { %8871 = vst [vmem:[#allocation55_spill] sm:$0xff] %v7191_v27  ;;  %v7195_v32 = vperm.slane %v1649_v34, 7  ;;  %v7208_v25 = vperm.slane %v1649_v34, 4 }
  0xf9   :  { %6231 = vmatpush.msk.msra.mxu1 %vm187_vm0, %v1668_v10  ;;  %6235 = vmatpush.msk.msra.mxu3 %vm187_vm0, %v1670_v60  ;;  %8872 = vst [vmem:[#allocation56_spill] sm:$0xff] %v7193_v11  ;;  %v6245_v10 = vld [vmem:[%s8663_s1 + $0x7] ss:$8 sm:$0xf]  ;;  %v7222_v3 = vpop.permute.xlu2 %1903 }
  0xfa   :  { %6211 = vmatmul.msk.f32.vlgmr.msra.gmra.mxu0 %vm183_vm4, %v7120_v52  ;;  %8873 = vst [vmem:[#allocation57_spill] sm:$0xff] %v7195_v32  ;;  %v1919_v37 = vor.u32 %v6246_v35, %v6245_v10 }
  0xfb   :  { %6221 = vmatmul.msk.f32.vlgmr.msrb.gmra.mxu1 %vm183_vm4, %v7120_v52  ;;  %6229 = vmatpush.msk.msra.mxu0 %vm187_vm0, %v1667_v62  ;;  %8874 = vst [vmem:[#allocation58_spill] sm:$0xff] %v7208_v25  ;;  %v1640_v62 = vsel %vm1637_vm9, %v1630_v20, %v1632_v53 }
  0xfc   :  { %6225 = vmatmul.msk.f32.vlgmr.msrb.gmra.mxu3 %vm183_vm4, %v7120_v52  ;;  %6234 = vmatmul.msk.f32.vlgmr.msra.gmra.mxu2 %vm183_vm4, %v7185_v54  ;;  %v1671_v20 = vmul.f32 %v7208_v25, %v1640_v62  ;;  %v7266_v35 = vperm.slane %v1919_v37, 1 }
  0xfd   :  { %v1634_v60 = vpop.permute.xlu0 %1633  ;;  %v1636_v4 = vpop.permute.xlu1 %1635 }
  0xfe   :  { %v1639_v8 = vsel %vm1637_vm9, %v1632_v53, %v1634_v60  ;;  %v1638_v56 = vsel %vm1637_vm9, %v1634_v60, %v1636_v4  ;;  %v1645_v0 = vsel %vm1637_vm9, %v1636_v4, %v7080_v2  ;;  %v7234_v2 = vperm.slane %v1919_v37, 3  ;;  %v7253_v4 = vld [vmem:[%s8664_s2 + $0x38] sm:$0xff]  ;;  %8877 = vst [vmem:[#allocation61_spill] sm:$0xff] %v7266_v35 }
  0xff   :  { %v1672_v24 = vmul.f32 %v7191_v27, %v1639_v8  ;;  %v1673_v34 = vmul.f32 %v7193_v11, %v1638_v56  ;;  %v1674_v63 = vmul.f32 %v7195_v32, %v1645_v0  ;;  %v7236_v56 = vperm.slane %v1919_v37, 2 }
 0x100   :  { %8875 = vst [vmem:[#allocation59_spill] sm:$0xff] %v7234_v2  ;;  %v7268_v60 = vperm.slane %v1919_v37, 0 }
 0x101   :  { %6239 = vmatpush.msk.msrb.mxu1 %vm187_vm0, %v1672_v24  ;;  %6241 = vmatpush.msk.msrb.mxu2 %vm187_vm0, %v1673_v34  ;;  %8876 = vst [vmem:[#allocation60_spill] sm:$0xff] %v7236_v56  ;;  %v7256_v10 = vpop.permute.xlu2 %2165 }
 0x102   :  { %6243 = vmatpush.msk.msrb.mxu3 %vm187_vm0, %v1674_v63  ;;  %6219 = vmatmul.msk.f32.vlgmr.msrb.gmra.mxu0 %vm183_vm4, %v7120_v52  ;;  %8878 = vst [vmem:[#allocation62_spill] sm:$0xff] %v7268_v60 }
 0x103   :  { %6232 = vmatmul.msk.f32.vlgmr.msra.gmra.mxu1 %vm183_vm4, %v7185_v54  ;;  %6237 = vmatpush.msk.msrb.mxu0 %vm187_vm0, %v1671_v20 }
 0x104   :  { %6236 = vmatmul.msk.f32.vlgmr.msra.gmra.mxu3 %vm183_vm4, %v7185_v54  ;;  %6242 = vmatmul.msk.f32.vlgmr.msrb.gmra.mxu2 %vm183_vm4, %v7185_v54 }
 0x105   :  { %v1898_v63 = vpop.permute.xlu1 %1897  ;;  %v1896_v24 = vpop.permute.xlu0 %1895 }
 0x106   :  { %v1911_v52 = vsel %vm1907_vm10, %v1898_v63, %v7167_v59  ;;  %v1912_v53 = vsel %vm1907_vm10, %v1896_v24, %v1898_v63 }
 0x107   :  { %v1940_v0 = vmul.f32 %v7234_v2, %v1911_v52  ;;  %v1939_v8 = vmul.f32 %v7236_v56, %v1912_v53  ;;  %v6264_v52 = vld [vmem:[%s8663_s1 + $0x40] ss:$8 sm:$0xf]  ;;  %v6462_v2 = vmov 0  }
 0x108   :  { %v6265_v53 = vld [vmem:[%s8663_s1 + $0x40] ss:$8 sm:$0xf0]  ;;  %6452 = vset.pattern.permute.xlu1 %v6462_v2  ;;  %6453 = vset.pattern.permute.xlu0 %v6462_v2  ;;  %v7298_v2 = vperm.slane %v1919_v37, 7 }
 0x109   :  { %6252 = vmatpush.msk.msra.mxu2 %vm187_vm0, %v1939_v8  ;;  %6254 = vmatpush.msk.msra.mxu3 %vm187_vm0, %v1940_v0 }
 0x10a   :  { %6230 = vmatmul.msk.f32.vlgmr.msra.gmra.mxu0 %vm183_vm4, %v7185_v54  ;;  %8880 = vst [vmem:[#allocation64_spill] sm:$0xff] %v7298_v2 }
 0x10b   :  { %6240 = vmatmul.msk.f32.vlgmr.msrb.gmra.mxu1 %vm183_vm4, %v7185_v54 }
 0x10c   :  { %6244 = vmatmul.msk.f32.vlgmr.msrb.gmra.mxu3 %vm183_vm4, %v7185_v54  ;;  %6253 = vmatmul.msk.f32.vlgmr.msra.gmra.mxu2 %vm183_vm4, %v7253_v4 }
 0x10e   :  { %v1894_v62 = vpop.permute.xlu0 %1893  ;;  %v1892_v34 = vpop.permute.xlu1 %1891 }
 0x10f   :  { %v1913_v20 = vsel %vm1907_vm10, %v1894_v62, %v1896_v24  ;;  %v1914_v63 = vsel %vm1907_vm10, %v1892_v34, %v1894_v62  ;;  %v2412_v24 = vld [vmem:[%s8665_s3] sm:$0xff]  ;;  %v7287_v62 = vor.u32 %v6265_v53, %v6264_v52  ;;  %v7302_v52 = vperm.slane %v1919_v37, 5 }
 0x110   :  { %v1938_v0 = vmul.f32 %v7266_v35, %v1913_v20  ;;  %v1937_v8 = vmul.f32 %v7268_v60, %v1914_v63  ;;  %v2164_v20 = vpop.permute.xlu2 %2163  ;;  %v7296_v63 = vperm.slane %v1919_v37, 6  ;;  %2415 = vperm.xlu1 %6452, %v2412_v24  }
 0x111   :  { %8882 = vst [vmem:[#allocation66_spill] sm:$0xff] %v7302_v52  ;;  %v2183_v60 = vsel %vm2177_vm11, %v2164_v20, %v7256_v10  ;;  %v7323_v25 = vpop.f32.mrf.mxu1 }
 0x112   :  { %6248 = vmatpush.msk.msra.mxu0 %vm187_vm0, %v1937_v8  ;;  %6250 = vmatpush.msk.msra.mxu1 %vm187_vm0, %v1938_v0  ;;  %8879 = vst [vmem:[#allocation63_spill] sm:$0xff] %v7296_v63  ;;  %v7300_v8 = vperm.slane %v1919_v37, 4  ;;  %v7305_v0 = vperm.slane %v7287_v62, 1 }
 0x113   :  { %6238 = vmatmul.msk.f32.vlgmr.msrb.gmra.mxu0 %vm183_vm4, %v7185_v54  ;;  %6251 = vmatmul.msk.f32.vlgmr.msra.gmra.mxu1 %vm183_vm4, %v7253_v4 }
 0x114   :  { %6255 = vmatmul.msk.f32.vlgmr.msra.gmra.mxu3 %vm183_vm4, %v7253_v4  ;;  %8881 = vst [vmem:[#allocation65_spill] sm:$0xff] %v7300_v8 }
 0x115   :  { %8883 = vst [vmem:[#allocation67_spill] sm:$0xff] %v7305_v0  ;;  %v7310_v56 = vpop.f32.mrf.mxu2 }
 0x116   :  { %v1906_v53 = vpop.permute.xlu0 %1905  ;;  %v1902_v54 = vpop.permute.xlu1 %1901 }
 0x117   :  { %v1908_v32 = vsel %vm1907_vm10, %v7222_v3, %v1906_v53  ;;  %v1915_v37 = vsel %vm1907_vm10, %v1906_v53, %v1892_v34  ;;  %v1909_v24 = vsel %vm1907_vm10, %v1902_v54, %v7222_v3  ;;  %v1910_v11 = vsel %vm1907_vm10, %v7167_v59, %v1902_v54 }
 0x118   :  { %v1943_v35 = vmul.f32 %v7296_v63, %v1908_v32  ;;  %v1944_v27 = vmul.f32 %v7298_v2, %v1915_v37  ;;  %v1941_v61 = vmul.f32 %v7300_v8, %v1910_v11  ;;  %v1942_v28 = vmul.f32 %v7302_v52, %v1909_v24  ;;  %v7332_v34 = vpop.f32.mrf.mxu3  ;;  %v6266_v37 = vld [vmem:[%s8664_s2 + $0x40] sm:$0xff] }
 0x119   :  { %v2208_v3 = vmul.f32 %v7305_v0, %v2183_v60 }
 0x11a   :  { %6256 = vmatpush.msk.msrb.mxu0 %vm187_vm0, %v1941_v61  ;;  %6258 = vmatpush.msk.msrb.mxu1 %vm187_vm0, %v1942_v28  ;;  %v7345_v28 = vperm.slane %v7287_v62, 2  ;;  %v7348_v61 = vperm.slane %v7287_v62, 3  ;;  %v7365_v24 = vpop.f32.mrf.mxu1 }
 0x11b   :  { %6260 = vmatpush.msk.msrb.mxu2 %vm187_vm0, %v1943_v35  ;;  %6262 = vmatpush.msk.msrb.mxu3 %vm187_vm0, %v1944_v27  ;;  %v7351_v27 = vpop.f32.mrf.mxu0 }
 0x11c   :  { %6249 = vmatmul.msk.f32.vlgmr.msra.gmra.mxu0 %vm183_vm4, %v7253_v4  ;;  %6259 = vmatmul.msk.f32.vlgmr.msrb.gmra.mxu1 %vm183_vm4, %v7253_v4  ;;  %8884 = vst [vmem:[#allocation68_spill] sm:$0xff] %v7345_v28 }
 0x11d   :  { %6261 = vmatmul.msk.f32.vlgmr.msrb.gmra.mxu2 %vm183_vm4, %v7253_v4  ;;  %6263 = vmatmul.msk.f32.vlgmr.msrb.gmra.mxu3 %vm183_vm4, %v7253_v4  ;;  %8885 = vst [vmem:[#allocation69_spill] sm:$0xff] %v7348_v61  ;;  %v7358_v60 = vpop.f32.mrf.mxu2 }
 0x11e   :  { %v2170_v59 = vpop.permute.xlu1 %2169  ;;  %6269 = vmatpush.msk.msra.mxu1 %vm187_vm0, %v2208_v3  ;;  %v2168_v11 = vpop.permute.xlu0 %2167  ;;  %v7375_v3 = vperm.slane %v7287_v62, 6 }
 0x11f   :  { %v2181_v32 = vsel %vm2177_vm11, %v2168_v11, %v2170_v59  ;;  %v2182_v35 = vsel %vm2177_vm11, %v7256_v10, %v2168_v11  ;;  %v2176_v11 = vpop.permute.xlu2 %2175 }
 0x120   :  { %v2209_v53 = vmul.f32 %v7345_v28, %v2182_v35  ;;  %v2210_v54 = vmul.f32 %v7348_v61, %v2181_v32  ;;  %8886 = vst [vmem:[#allocation70_spill] sm:$0xff] %v7375_v3  ;;  %v7380_v32 = vperm.slane %v7287_v62, 0  ;;  %v7383_v35 = vperm.slane %v7287_v62, 7 }
 0x121   :  { %v7372_v10 = vpop.f32.mrf.mxu3 }
 0x122   :  { %6271 = vmatpush.msk.msra.mxu2 %vm187_vm0, %v2209_v53  ;;  %6273 = vmatpush.msk.msra.mxu3 %vm187_vm0, %v2210_v54  ;;  %8887 = vst [vmem:[#allocation71_spill] sm:$0xff] %v7380_v32 }
 0x123   :  { %8888 = vst [vmem:[#allocation72_spill] sm:$0xff] %v7383_v35  ;;  %v7392_v8 = vpop.f32.mrf.mxu0 }
 0x124   :  { %6257 = vmatmul.msk.f32.vlgmr.msrb.gmra.mxu0 %vm183_vm4, %v7253_v4  ;;  %6270 = vmatmul.msk.f32.vlgmr.msra.gmra.mxu1 %vm183_vm4, %v6266_v37 }
 0x125   :  { %6272 = vmatmul.msk.f32.vlgmr.msra.gmra.mxu2 %vm183_vm4, %v6266_v37  ;;  %6274 = vmatmul.msk.f32.vlgmr.msra.gmra.mxu3 %vm183_vm4, %v6266_v37  ;;  %v7397_v2 = vpop.f32.mrf.mxu2 }
 0x126   :  { %v2174_v53 = vpop.permute.xlu1 %2173  ;;  %v2162_v54 = vpop.permute.xlu0 %2161 }
 0x127   :  { %v2178_v4 = vsel %vm2177_vm11, %v2174_v53, %v2176_v11  ;;  %v2184_v0 = vsel %vm2177_vm11, %v2162_v54, %v2164_v20  ;;  %v2185_v52 = vsel %vm2177_vm11, %v2176_v11, %v2162_v54  ;;  %v7405_v20 = vperm.slane %v7287_v62, 4 }
 0x128   :  { %v2213_v61 = vmul.f32 %v7375_v3, %v2178_v4  ;;  %v2207_v28 = vmul.f32 %v7380_v32, %v2184_v0  ;;  %v2214_v63 = vmul.f32 %v7383_v35, %v2185_v52  ;;  %v436_v4 = vpop.f32.mrf.mxu1  ;;  %v7408_v52 = vperm.slane %v7287_v62, 5 }
 0x129   :  { %8889 = vst [vmem:[#allocation73_spill] sm:$0xff] %v7405_v20  ;;  %v7410_v0 = vpop.f32.mrf.mxu3  ;;  %v437_v15 = vadd.f32 %v436_v4, %v7323_v25 }
 0x12a   :  { %6279 = vmatpush.msk.msrb.mxu2 %vm187_vm0, %v2213_v61  ;;  %6267 = vmatpush.msk.msra.mxu0 %vm187_vm0, %v2207_v28  ;;  %8890 = vst [vmem:[#allocation74_spill] sm:$0xff] %v7408_v52  ;;  %v477_v25 = vadd.f32 %v7410_v0, %v7332_v34 }
 0x12b   :  { %6281 = vmatpush.msk.msrb.mxu3 %vm187_vm0, %v2214_v63  ;;  %v416_v3 = vpop.f32.mrf.mxu0 }
 0x12c   :  { %6268 = vmatmul.msk.f32.vlgmr.msra.gmra.mxu0 %vm183_vm4, %v6266_v37 }
 0x12d   :  { %6280 = vmatmul.msk.f32.vlgmr.msrb.gmra.mxu2 %vm183_vm4, %v6266_v37  ;;  %6282 = vmatmul.msk.f32.vlgmr.msrb.gmra.mxu3 %vm183_vm4, %v6266_v37  ;;  %v7424_v35 = vpop.f32.mrf.mxu2 }
 0x12e   :  { %v2172_v61 = vpop.permute.xlu0 %2171 }
 0x12f   :  { %v2179_v28 = vsel %vm2177_vm11, %v2172_v61, %v2174_v53  ;;  %v2180_v63 = vsel %vm2177_vm11, %v2170_v59, %v2172_v61 }
 0x130   :  { %v2211_v11 = vmul.f32 %v7405_v20, %v2180_v63  ;;  %v2212_v54 = vmul.f32 %v7408_v52, %v2179_v28  ;;  %v7420_v62 = vpop.f32.mrf.mxu1 }
 0x131   :  { %v7426_v53 = vpop.f32.mrf.mxu3 }
 0x132   :  { %6275 = vmatpush.msk.msrb.mxu0 %vm187_vm0, %v2211_v11  ;;  %6277 = vmatpush.msk.msrb.mxu1 %vm187_vm0, %v2212_v54 }
 0x133   :  { %6278 = vmatmul.msk.f32.vlgmr.msrb.gmra.mxu1 %vm183_vm4, %v6266_v37  ;;  %v7428_v59 = vpop.f32.mrf.mxu0 }
 0x134   :  { %6276 = vmatmul.msk.f32.vlgmr.msrb.gmra.mxu0 %vm183_vm4, %v6266_v37 }
 0x136   :  { %v718_v63 = vpop.f32.mrf.mxu2 }
 0x138   :  { %v698_v61 = vpop.f32.mrf.mxu1 }
 0x139   :  { %v822_v1 = vadd.f32 %v698_v61, %v437_v15 }
 0x13d   :  { %v738_v28 = vpop.f32.mrf.mxu3 }
 0x13f   :  { %v678_v52 = vpop.f32.mrf.mxu0 }
 0x140   :  { %v7432_v11 = vpop.f32.mrf.mxu1 }
 0x147   :  { %v7430_v20 = vpop.f32.mrf.mxu2  ;;  %v7434_v54 = vpop.f32.mrf.mxu3 }
 0x148   :  { %v7436_v32 = vpop.f32.mrf.mxu0 }
 0x14f   :  { %v988_v30 = vpop.f32.mrf.mxu2  ;;  %v968_v37 = vpop.f32.mrf.mxu1 }
 0x150   :  { %v1008_v29 = vpop.f32.mrf.mxu3  ;;  %v1092_v12 = vadd.f32 %v968_v37, %v822_v1 }
 0x157   :  { %v7438_v21 = vpop.f32.mrf.mxu2  ;;  %v948_v31 = vpop.f32.mrf.mxu0 }
 0x158   :  { %v7440_v36 = vpop.f32.mrf.mxu1 }
 0x15f   :  { %v7442_v40 = vpop.f32.mrf.mxu3  ;;  %v1221_v23 = vpop.f32.mrf.mxu2 }
 0x160   :  { %8891 = vst [vmem:[#allocation75_spill] sm:$0xff] %v7442_v40  ;;  %v7444_v22 = vpop.f32.mrf.mxu0  ;;  %v1201_v18 = vpop.f32.mrf.mxu1 }
 0x167   :  { %v1241_v55 = vpop.f32.mrf.mxu3  ;;  %v7446_v38 = vpop.f32.mrf.mxu2 }
 0x168   :  { %v1181_v45 = vpop.f32.mrf.mxu0  ;;  %v7448_v39 = vpop.f32.mrf.mxu1 }
 0x16f   :  { %v7450_v19 = vpop.f32.mrf.mxu3  ;;  %v1491_v44 = vpop.f32.mrf.mxu2 }
 0x170   :  { %8892 = vst [vmem:[#allocation76_spill] sm:$0xff] %v7450_v19  ;;  %v7452_v13 = vpop.f32.mrf.mxu0  ;;  %v1471_v33 = vpop.f32.mrf.mxu1  ;;  %v417_v19 = vadd.f32 %v416_v3, %v7351_v27 }
 0x171   :  { %8893 = vst [vmem:[#allocation77_spill] sm:$0xff] %v7452_v13 }
 0x172   :  { %v821_v40 = vadd.f32 %v678_v52, %v417_v19 }
 0x174   :  { %v1091_v1 = vadd.f32 %v948_v31, %v821_v40  ;;  %v537_v40 = vadd.f32 %v7424_v35, %v7358_v60 }
 0x177   :  { %v1511_v57 = vpop.f32.mrf.mxu3  ;;  %v7456_v7 = vpop.f32.mrf.mxu2 }
 0x178   :  { %v1451_v6 = vpop.f32.mrf.mxu0  ;;  %v7454_v42 = vpop.f32.mrf.mxu1 }
 0x17f   :  { %v7458_v5 = vpop.f32.mrf.mxu3  ;;  %v1761_v26 = vpop.f32.mrf.mxu2 }
 0x180   :  { %8894 = vst [vmem:[#allocation78_spill] sm:$0xff] %v7458_v5  ;;  %v7460_v58 = vpop.f32.mrf.mxu0  ;;  %v1741_v46 = vpop.f32.mrf.mxu1  ;;  %v1325_v5 = vadd.f32 %v1201_v18, %v1092_v12  ;;  %v824_v12 = vadd.f32 %v738_v28, %v477_v25 }
 0x181   :  { %8895 = vst [vmem:[#allocation79_spill] sm:$0xff] %v7460_v58  ;;  %v457_v58 = vadd.f32 %v7397_v2, %v7310_v56 }
 0x182   :  { %v1595_v13 = vadd.f32 %v1471_v33, %v1325_v5  ;;  %v7478_v4 = vpop.permute.xlu1 %2415  ;;  %v1324_v5 = vadd.f32 %v1181_v45, %v1091_v1  ;;  %v1094_v19 = vadd.f32 %v1008_v29, %v824_v12  ;;  %v8901_v1 = vld [vmem:[#allocation77_spill] sm:$0xff]  ;;  %v8902_v12 = vld [vmem:[#allocation76_spill] sm:$0xff] }
 0x187   :  { %v1781_v9 = vpop.f32.mrf.mxu3  ;;  %v7464_v14 = vpop.f32.mrf.mxu2 }
 0x188   :  { %v1721_v41 = vpop.f32.mrf.mxu0  ;;  %v7462_v17 = vpop.f32.mrf.mxu1 }
 0x18f   :  { %v7466_v16 = vpop.f32.mrf.mxu3  ;;  %v2031_v49 = vpop.f32.mrf.mxu2 }
 0x190   :  { %8896 = vst [vmem:[#allocation80_spill] sm:$0xff] %v7466_v16  ;;  %v7468_v51 = vpop.f32.mrf.mxu0  ;;  %v2011_v43 = vpop.f32.mrf.mxu1  ;;  %v823_v16 = vadd.f32 %v718_v63, %v457_v58 }
 0x191   :  { %8897 = vst [vmem:[#allocation81_spill] sm:$0xff] %v7468_v51  ;;  %v1865_v51 = vadd.f32 %v1741_v46, %v1595_v13  ;;  %v1594_v13 = vadd.f32 %v1451_v6, %v1324_v5 }
 0x192   :  { %v1093_v15 = vadd.f32 %v988_v30, %v823_v16  ;;  %v1327_v30 = vadd.f32 %v1241_v55, %v1094_v19 }
 0x193   :  { %v2135_v61 = vadd.f32 %v2011_v43, %v1865_v51  ;;  %v1864_v34 = vadd.f32 %v1721_v41, %v1594_v13  ;;  %v517_v43 = vadd.f32 %v7420_v62, %v7365_v24 }
 0x194   :  { %v1326_v18 = vadd.f32 %v1221_v23, %v1093_v15  ;;  %v1597_v51 = vadd.f32 %v1511_v57, %v1327_v30 }
 0x195   :  { %v826_v29 = vadd.f32 %v7432_v11, %v517_v43  ;;  %v8900_v11 = vld [vmem:[#allocation75_spill] sm:$0xff] }
 0x196   :  { %v1596_v46 = vadd.f32 %v1491_v44, %v1326_v18  ;;  %v827_v44 = vadd.f32 %v7430_v20, %v537_v40  ;;  %v497_v20 = vadd.f32 %v7428_v59, %v7392_v8 }
 0x197   :  { %v2051_v50 = vpop.f32.mrf.mxu3  ;;  %v1096_v55 = vadd.f32 %v7440_v36, %v826_v29 }
 0x198   :  { %v1866_v16 = vadd.f32 %v1761_v26, %v1596_v46  ;;  %v1867_v26 = vadd.f32 %v1781_v9, %v1597_v51  ;;  %v1097_v24 = vadd.f32 %v7438_v21, %v827_v44  ;;  %v557_v21 = vadd.f32 %v7426_v53, %v7372_v10  ;;  %v8906_v46 = vld [vmem:[#allocation80_spill] sm:$0xff]  ;;  %v8908_v44 = vld [vmem:[#allocation11_spill] sm:$0xff] }
 0x199   :  { %v1991_v48 = vpop.f32.mrf.mxu0  ;;  %v7471_v47 = vpop.f32.mrf.mxu1  ;;  %v1329_v35 = vadd.f32 %v7448_v39, %v1096_v55  ;;  %v825_v36 = vadd.f32 %v7436_v32, %v497_v20  ;;  %v7627_v55 = vld [vmem:[%s8666_s4 + $0x8] sm:$0xff] }
 0x19a   :  { %8898 = vst [vmem:[#allocation82_spill] sm:$0xff] %v7471_v47  ;;  %v2136_v23 = vadd.f32 %v2031_v49, %v1866_v16  ;;  %v2134_v45 = vadd.f32 %v1991_v48, %v1864_v34  ;;  %v2137_v60 = vadd.f32 %v2051_v50, %v1867_v26  ;;  %v1330_v0 = vadd.f32 %v7446_v38, %v1097_v24 }
 0x19b   :  { %v1599_v50 = vadd.f32 %v7454_v42, %v1329_v35  ;;  %v828_v8 = vadd.f32 %v7434_v54, %v557_v21  ;;  %v1095_v10 = vadd.f32 %v7444_v22, %v825_v36  ;;  %v8903_v54 = vld [vmem:[#allocation79_spill] sm:$0xff]  ;;  %v8904_v22 = vld [vmem:[#allocation78_spill] sm:$0xff] }
 0x19c   :  { %v1600_v39 = vadd.f32 %v7456_v7, %v1330_v0  ;;  %v8909_v0 = vld [vmem:[#allocation12_spill] sm:$0xff]  ;;  %v8910_v21 = vld [vmem:[#allocation15_spill] sm:$0xff] }
 0x19d   :  { %v1869_v38 = vadd.f32 %v7462_v17, %v1599_v50  ;;  %v1098_v25 = vadd.f32 %v8900_v11, %v828_v8 }
 0x19e   :  { %v1870_v59 = vadd.f32 %v7464_v14, %v1600_v39 }
 0x19f   :  { %v1331_v18 = vadd.f32 %v8902_v12, %v1098_v25 }
 0x1a0   :  { %v2111_v37 = vpop.f32.mrf.mxu2  ;;  %v7480_v47 = vpop.f32.mrf.mxu3 }
 0x1a1   :  { %v7482_v56 = vpop.f32.mrf.mxu0  ;;  %v2281_v2 = vpop.f32.mrf.mxu1  ;;  %v8899_v7 = vld [vmem:[#allocation82_spill] sm:$0xff]  ;;  %v2140_v15 = vadd.f32 %v2111_v37, %v1870_v59  ;;  %v1601_v14 = vadd.f32 %v8904_v22, %v1331_v18  ;;  %v8905_v37 = vld [vmem:[#allocation81_spill] sm:$0xff] }
 0x1a2   :  { %v2405_v58 = vadd.f32 %v2281_v2, %v2135_v61  ;;  %v2139_v53 = vadd.f32 %v8899_v7, %v1869_v38  ;;  %v1328_v61 = vadd.f32 %v8901_v1, %v1095_v10  ;;  %v8911_v59 = vld [vmem:[#allocation13_spill] sm:$0xff]  ;;  %v8912_v1 = vld [vmem:[#allocation14_spill] sm:$0xff] }
 0x1a3   :  { %v1871_v13 = vadd.f32 %v8906_v46, %v1601_v14  ;;  %v8914_v18 = vld [vmem:[#allocation21_spill] sm:$0xff] }
 0x1a4   :  { %v2419_v33 = vadd.f32 %v7478_v4, %v2405_v58  ;;  %v1598_v5 = vadd.f32 %v8903_v54, %v1328_v61  ;;  %v8915_v54 = vld [vmem:[#allocation22_spill] sm:$0xff] }
 0x1a5   :  { %v2141_v43 = vadd.f32 %v7480_v47, %v1871_v13 }
 0x1a6   :  { %v7485_v31 = vmax.f32 %v2419_v33, 0.0  ;;  %v1868_v58 = vadd.f32 %v8905_v37, %v1598_v5 }
 0x1a8   :  { %v2301_v27 = vpop.f32.mrf.mxu2  ;;  %2436 = vrot.lane.b32.xlu1 %v7485_v31, %s6454_s9  ;;  %2469 = vrot.lane.b32.xlu2 %v7485_v31, %s6455_s0  ;;  %v2321_v57 = vpop.f32.mrf.mxu3  ;;  %v2138_v16 = vadd.f32 %v7482_v56, %v1868_v58 }
 0x1a9   :  { %v2406_v41 = vadd.f32 %v2301_v27, %v2136_v23  ;;  %v2261_v6 = vpop.f32.mrf.mxu0  ;;  %v2407_v9 = vadd.f32 %v2321_v57, %v2137_v60 }
 0x1aa   :  { %v2404_v49 = vadd.f32 %v2261_v6, %v2134_v45 }
 0x1ab   :  { %v2420_v48 = vadd.f32 %v7478_v4, %v2406_v41  ;;  %v2421_v42 = vadd.f32 %v7478_v4, %v2407_v9 }
 0x1ac   :  { %v2418_v3 = vadd.f32 %v7478_v4, %v2404_v49 }
 0x1ad   :  { %v7502_v52 = vmax.f32 %v2420_v48, 0.0  ;;  %v7528_v32 = vmax.f32 %v2421_v42, 0.0 }
 0x1ae   :  { %v7505_v62 = vmax.f32 %v2418_v3, 0.0 }
 0x1af   :  { %2471 = vrot.lane.b32.xlu0 %v7502_v52, %s6455_s0 }
 0x1b0   :  { %2434 = vrot.lane.b32.xlu1 %v7505_v62, %s6454_s9  ;;  %2467 = vrot.lane.b32.xlu2 %v7505_v62, %s6455_s0  ;;  %v2361_v63 = vpop.f32.mrf.mxu1  ;;  %v2381_v28 = vpop.f32.mrf.mxu2 }
 0x1b1   :  { %v2409_v17 = vadd.f32 %v2361_v63, %v2139_v53  ;;  %v2410_v2 = vadd.f32 %v2381_v28, %v2140_v15  ;;  %v2341_v30 = vpop.f32.mrf.mxu0  ;;  %v2401_v34 = vpop.f32.mrf.mxu3 }
 0x1b2   :  { %v2408_v51 = vadd.f32 %v2341_v30, %v2138_v16  ;;  %v2411_v45 = vadd.f32 %v2401_v34, %v2141_v43  ;;  %v8917_v16 = vld [vmem:[#allocation16_spill] sm:$0xff]  ;;  %v8918_v43 = vld [vmem:[#allocation19_spill] sm:$0xff] }
 0x1b3   :  { %v2423_v19 = vadd.f32 %v7478_v4, %v2409_v17  ;;  %v2424_v33 = vadd.f32 %v7478_v4, %v2410_v2  ;;  %v8913_v17 = vld [vmem:[#allocation17_spill] sm:$0xff] }
 0x1b4   :  { %v2422_v56 = vadd.f32 %v7478_v4, %v2408_v51  ;;  %v2425_v27 = vadd.f32 %v7478_v4, %v2411_v45  ;;  %v8919_v45 = vld [vmem:[#allocation26_spill] sm:$0xff] }
 0x1b5   :  { %v7545_v23 = vmax.f32 %v2423_v19, 0.0  ;;  %v7547_v40 = vmax.f32 %v2424_v33, 0.0  ;;  %v8916_v33 = vld [vmem:[#allocation18_spill] sm:$0xff] }
 0x1b6   :  { %v7557_v47 = vmax.f32 %v2422_v56, 0.0  ;;  %v7559_v29 = vmax.f32 %v2425_v27, 0.0  ;;  %v2466_v27 = vld [vmem:[%s8666_s4] sm:$0xff] }
 0x1b7   :  { %2440 = vrot.lane.b32.xlu0 %v7528_v32, %s6454_s9 }
 0x1b8   :  { %2473 = vrot.lane.b32.xlu1 %v7528_v32, %s6455_s0  ;;  %2438 = vrot.lane.b32.xlu2 %v7502_v52, %s6454_s9 }
 0x1bf   :  { %2477 = vrot.lane.b32.xlu0 %v7545_v23, %s6455_s0 }
 0x1c0   :  { %2479 = vrot.lane.b32.xlu1 %v7547_v40, %s6455_s0  ;;  %2444 = vrot.lane.b32.xlu2 %v7545_v23, %s6454_s9 }
 0x1c7   :  { %2475 = vrot.lane.b32.xlu0 %v7557_v47, %s6455_s0 }
 0x1c8   :  { %2832 = vrot.lane.b32.xlu1 %v7502_v52, %s6456_s14  ;;  %2481 = vrot.lane.b32.xlu2 %v7559_v29, %s6455_s0 }
 0x1cf   :  { %2830 = vrot.lane.b32.xlu0 %v7485_v31, %s6456_s14 }
 0x1d0   :  { %2838 = vrot.lane.b32.xlu1 %v7545_v23, %s6456_s14  ;;  %2442 = vrot.lane.b32.xlu2 %v7557_v47, %s6454_s9 }
 0x1d7   :  { %2828 = vrot.lane.b32.xlu0 %v7505_v62, %s6456_s14 }
 0x1d8   :  { %2448 = vrot.lane.b32.xlu1 %v7559_v29, %s6454_s9  ;;  %2834 = vrot.lane.b32.xlu2 %v7528_v32, %s6456_s14 }
 0x1df   :  { %2446 = vrot.lane.b32.xlu0 %v7547_v40, %s6454_s9 }
 0x1e0   :  { %2836 = vrot.lane.b32.xlu1 %v7557_v47, %s6456_s14  ;;  %3035 = vrot.lane.b32.xlu2 %v7485_v31, %s6457_s15 }
 0x1e7   :  { %3037 = vrot.lane.b32.xlu0 %v7502_v52, %s6457_s15 }
 0x1e8   :  { %3039 = vrot.lane.b32.xlu1 %v7528_v32, %s6457_s15  ;;  %2840 = vrot.lane.b32.xlu2 %v7547_v40, %s6456_s14 }
 0x1ef   :  { %2842 = vrot.lane.b32.xlu0 %v7559_v29, %s6456_s14 }
 0x1f0   :  { %3431 = vrot.lane.b32.xlu1 %v7502_v52, %s6458_s16  ;;  %3033 = vrot.lane.b32.xlu2 %v7505_v62, %s6457_s15 }
 0x1f7   :  { %3043 = vrot.lane.b32.xlu0 %v7545_v23, %s6457_s15 }
 0x1f8   :  { %3045 = vrot.lane.b32.xlu1 %v7547_v40, %s6457_s15  ;;  %3047 = vrot.lane.b32.xlu2 %v7559_v29, %s6457_s15 }
 0x1ff   :  { %3041 = vrot.lane.b32.xlu0 %v7557_v47, %s6457_s15 }
 0x200   :  { %3429 = vrot.lane.b32.xlu1 %v7485_v31, %s6458_s16  ;;  %3433 = vrot.lane.b32.xlu2 %v7528_v32, %s6458_s16 }
 0x202   :  { %v2470_v4 = vpop.permute.xlu2 %2469 }
 0x207   :  { %3435 = vrot.lane.b32.xlu0 %v7557_v47, %s6458_s16 }
 0x208   :  { %3638 = vrot.lane.b32.xlu1 %v7528_v32, %s6459_s17  ;;  %3427 = vrot.lane.b32.xlu2 %v7505_v62, %s6458_s16 }
 0x20a   :  { %v2468_v26 = vpop.permute.xlu2 %2467 }
 0x20b   :  { %v2489_v6 = vsel %vm143_vm3, %v2468_v26, %v2470_v4 }
 0x20c   :  { %v2492_v57 = vmul.f32 %v2489_v6, %v8908_v44 }
 0x20e   :  { %2540 = vmatpush.msra.mxu1 %v2492_v57 }
 0x20f   :  { %3636 = vrot.lane.b32.xlu0 %v7502_v52, %s6459_s17  ;;  %6285 = vmatmul.msk.f32.vlgmr.msra.gmra.mxu1 %vm2501_vm12, %v7627_v55 }
 0x210   :  { %3632 = vrot.lane.b32.xlu1 %v7505_v62, %s6459_s17  ;;  %3437 = vrot.lane.b32.xlu2 %v7545_v23, %s6458_s16 }
 0x212   :  { %v2439_v49 = vpop.permute.xlu2 %2438 }
 0x217   :  { %3634 = vrot.lane.b32.xlu0 %v7485_v31, %s6459_s17 }
 0x218   :  { %3441 = vrot.lane.b32.xlu1 %v7559_v29, %s6458_s16  ;;  %3640 = vrot.lane.b32.xlu2 %v7557_v47, %s6459_s17 }
 0x21a   :  { %v2437_v60 = vpop.permute.xlu1 %2436  ;;  %v7637_v48 = vpop.permute.xlu2 %2444 }
 0x21b   :  { %v2455_v7 = vsel %vm70_vm5, %v2437_v60, %v2439_v49 }
 0x21c   :  { %v2460_v2 = vmul.f32 %v2455_v7, %v8914_v18 }
 0x21f   :  { %3439 = vrot.lane.b32.xlu0 %v7547_v40, %s6458_s16 }
 0x220   :  { %3642 = vrot.lane.b32.xlu1 %v7545_v23, %s6459_s17  ;;  %3841 = vrot.lane.b32.xlu2 %v7502_v52, %s6460_s26 }
 0x221   :  { %v2472_v24 = vpop.permute.xlu0 %2471 }
 0x222   :  { %v2488_v3 = vsel %vm143_vm3, %v2470_v4, %v2472_v24  ;;  %v7647_v35 = vpop.permute.xlu1 %2434  ;;  %v2482_v9 = vpop.permute.xlu2 %2481 }
 0x223   :  { %v2493_v20 = vmul.f32 %v2488_v3, %v8909_v0  ;;  %v2490_v50 = vsel %vm143_vm3, %v2482_v9, %v2468_v26  ;;  %v2456_v14 = vsel %vm70_vm5, %v7647_v35, %v2437_v60  ;;  %v8920_v3 = vld [vmem:[#allocation30_spill] sm:$0xff] }
 0x224   :  { %v2491_v39 = vmul.f32 %v2490_v50, %v8910_v21  ;;  %v2459_v51 = vmul.f32 %v2456_v14, %v8918_v43  ;;  %v8921_v50 = vld [vmem:[#allocation20_spill] sm:$0xff]  ;;  %v6300_v14 = vld [vmem:[%s8666_s4 + $0x10] sm:$0xff] }
 0x225   :  { %2560 = vmatpush.msra.mxu2 %v2493_v20 }
 0x226   :  { %2520 = vmatpush.msra.mxu0 %v2491_v39  ;;  %6286 = vmatmul.msk.f32.vlgmr.msra.gmra.mxu2 %vm2501_vm12, %v7627_v55 }
 0x227   :  { %3843 = vrot.lane.b32.xlu0 %v7528_v32, %s6460_s26  ;;  %6284 = vmatmul.msk.f32.vlgmr.msra.gmra.mxu0 %vm2501_vm12, %v7627_v55 }
 0x228   :  { %3845 = vrot.lane.b32.xlu1 %v7557_v47, %s6460_s26  ;;  %3644 = vrot.lane.b32.xlu2 %v7547_v40, %s6459_s17 }
 0x229   :  { %v2441_v36 = vpop.permute.xlu0 %2440 }
 0x22a   :  { %v2474_v38 = vpop.permute.xlu1 %2473  ;;  %v2443_v42 = vpop.permute.xlu2 %2442  ;;  %v2454_v11 = vsel %vm70_vm5, %v2439_v49, %v2441_v36 }
 0x22b   :  { %v2487_v8 = vsel %vm143_vm3, %v2472_v24, %v2474_v38  ;;  %v2461_v5 = vmul.f32 %v2454_v11, %v8915_v54  ;;  %v2452_v13 = vsel %vm70_vm5, %v2443_v42, %v7637_v48  ;;  %v2453_v49 = vsel %vm70_vm5, %v2441_v36, %v2443_v42  ;;  %v8923_v11 = vld [vmem:[#allocation23_spill] sm:$0xff] }
 0x22c   :  { %v2494_v63 = vmul.f32 %v2487_v8, %v8911_v59  ;;  %v2463_v56 = vmul.f32 %v2452_v13, %v8919_v45 }
 0x22e   :  { %2580 = vmatpush.msra.mxu3 %v2494_v63 }
 0x22f   :  { %3646 = vrot.lane.b32.xlu0 %v7559_v29, %s6459_s17  ;;  %6287 = vmatmul.msk.f32.vlgmr.msra.gmra.mxu3 %vm2501_vm12, %v7627_v55 }
 0x230   :  { %4046 = vrot.lane.b32.xlu1 %v7502_v52, %s6461_s29  ;;  %3839 = vrot.lane.b32.xlu2 %v7485_v31, %s6460_s26 }
 0x231   :  { %v2478_v10 = vpop.permute.xlu0 %2477 }
 0x232   :  { %v2480_v53 = vpop.permute.xlu1 %2479  ;;  %v7676_v28 = vpop.permute.xlu2 %2834 }
 0x233   :  { %v2483_v25 = vsel %vm143_vm3, %v2480_v53, %v2482_v9  ;;  %v2484_v15 = vsel %vm143_vm3, %v2478_v10, %v2480_v53 }
 0x234   :  { %v2497_v61 = vmul.f32 %v2484_v15, %v8912_v1  ;;  %v2498_v12 = vmul.f32 %v2483_v25, %v8913_v17  ;;  %v8924_v15 = vld [vmem:[#allocation24_spill] sm:$0xff] }
 0x236   :  { %2640 = vmatpush.msrb.mxu2 %v2497_v61  ;;  %2660 = vmatpush.msrb.mxu3 %v2498_v12 }
 0x237   :  { %3837 = vrot.lane.b32.xlu0 %v7505_v62, %s6460_s26  ;;  %6291 = vmatmul.msk.f32.vlgmr.msrb.gmra.mxu3 %vm2501_vm12, %v7627_v55 }
 0x238   :  { %2723 = vmatpush.msra.mxu2 %v2460_v2  ;;  %2743 = vmatpush.msra.mxu3 %v2461_v5  ;;  %v8925_v5 = vld [vmem:[#allocation29_spill] sm:$0xff] }
 0x239   :  { %3849 = vrot.lane.b32.xlu1 %v7547_v40, %s6460_s26  ;;  %3851 = vrot.lane.b32.xlu2 %v7559_v29, %s6460_s26  ;;  %v2476_v22 = vpop.permute.xlu0 %2475 }
 0x23a   :  { %v2485_v37 = vsel %vm143_vm3, %v2476_v22, %v2478_v10  ;;  %v2486_v58 = vsel %vm143_vm3, %v2474_v38, %v2476_v22  ;;  %v2833_v19 = vpop.permute.xlu1 %2832  ;;  %v7703_v46 = vpop.permute.xlu2 %3035  ;;  %6290 = vmatmul.msk.f32.vlgmr.msrb.gmra.mxu2 %vm2501_vm12, %v7627_v55  ;;  %v8922_v38 = vld [vmem:[#allocation25_spill] sm:$0xff] }
 0x23b   :  { %v2495_v30 = vmul.f32 %v2486_v58, %v8916_v33  ;;  %v2496_v34 = vmul.f32 %v2485_v37, %v8917_v16  ;;  %v2462_v8 = vmul.f32 %v2453_v49, %v8922_v38  ;;  %v2848_v53 = vsel %vm594_vm6, %v2833_v19, %v7676_v28  ;;  %v8926_v37 = vld [vmem:[#allocation27_spill] sm:$0xff] }
 0x23d   :  { %2600 = vmatpush.msrb.mxu0 %v2495_v30  ;;  %2620 = vmatpush.msrb.mxu1 %v2496_v34  ;;  %v8928_v30 = vld [vmem:[#allocation31_spill] sm:$0xff] }
 0x23e   :  { %6289 = vmatmul.msk.f32.vlgmr.msrb.gmra.mxu1 %vm2501_vm12, %v7627_v55  ;;  %6288 = vmatmul.msk.f32.vlgmr.msrb.gmra.mxu0 %vm2501_vm12, %v7627_v55 }
 0x23f   :  { %2703 = vmatpush.msra.mxu1 %v2459_v51  ;;  %3847 = vrot.lane.b32.xlu0 %v7545_v23, %s6460_s26  ;;  %v8929_v51 = vld [vmem:[#allocation38_spill] sm:$0xff] }
 0x240   :  { %6295 = vmatmul.msk.f32.vlgmr.msra.gmra.mxu3 %vm2501_vm12, %v2466_v27 }
 0x241   :  { %2783 = vmatpush.msrb.mxu1 %v2463_v56  ;;  %4044 = vrot.lane.b32.xlu1 %v7485_v31, %s6461_s29  ;;  %v2831_v4 = vpop.permute.xlu0 %2830 }
 0x242   :  { %4048 = vrot.lane.b32.xlu2 %v7528_v32, %s6461_s29  ;;  %v2839_v26 = vpop.permute.xlu1 %2838  ;;  %v7728_v6 = vpop.permute.xlu2 %2840  ;;  %6294 = vmatmul.msk.f32.vlgmr.msra.gmra.mxu2 %vm2501_vm12, %v2466_v27 }
 0x243   :  { %v2845_v2 = vsel %vm594_vm6, %v2839_v26, %v7728_v6 }
 0x244   :  { %v2858_v34 = vmul.f32 %v2845_v2, %v8928_v30  ;;  %v8935_v2 = vld [vmem:[#allocation41_spill] sm:$0xff] }
 0x246   :  { %6293 = vmatmul.msk.f32.vlgmr.msra.gmra.mxu1 %vm2501_vm12, %v2466_v27 }
 0x247   :  { %4050 = vrot.lane.b32.xlu0 %v7557_v47, %s6461_s29 }
 0x249   :  { %4056 = vrot.lane.b32.xlu1 %v7559_v29, %s6461_s29  ;;  %v2829_v57 = vpop.permute.xlu0 %2828 }
 0x24a   :  { %4042 = vrot.lane.b32.xlu2 %v7505_v62, %s6461_s29  ;;  %v2850_v55 = vsel %vm594_vm6, %v2829_v57, %v2831_v4  ;;  %v2449_v60 = vpop.permute.xlu1 %2448  ;;  %v3034_v24 = vpop.permute.xlu2 %3033 }
 0x24b   :  { %v2853_v9 = vmul.f32 %v2850_v55, %v8920_v3  ;;  %v2457_v20 = vsel %vm70_vm5, %v2449_v60, %v7647_v35  ;;  %v2849_v35 = vsel %vm594_vm6, %v2831_v4, %v2833_v19  ;;  %v8927_v19 = vld [vmem:[#allocation28_spill] sm:$0xff] }
 0x24c   :  { %v2458_v39 = vmul.f32 %v2457_v20, %v8921_v50  ;;  %v2854_v58 = vmul.f32 %v2849_v35, %v8926_v37  ;;  %v2855_v13 = vmul.f32 %v2848_v53, %v8927_v19  ;;  %v8932_v53 = vld [vmem:[#allocation33_spill] sm:$0xff] }
 0x24d   :  { %2900 = vmatpush.msra.mxu1 %v2853_v9 }
 0x24e   :  { %6297 = vmatmul.msk.f32.vlgmr.msrb.gmra.mxu1 %vm2501_vm12, %v2466_v27  ;;  %2683 = vmatpush.msra.mxu0 %v2458_v39 }
 0x24f   :  { %4054 = vrot.lane.b32.xlu0 %v7547_v40, %s6461_s29  ;;  %6292 = vmatmul.msk.f32.vlgmr.msra.gmra.mxu0 %vm2501_vm12, %v2466_v27 }
 0x250   :  { %2763 = vmatpush.msrb.mxu0 %v2462_v8 }
 0x251   :  { %v2447_v36 = vpop.permute.xlu0 %2446 }
 0x252   :  { %4052 = vrot.lane.b32.xlu2 %v7545_v23, %s6461_s29  ;;  %v2450_v42 = vsel %vm70_vm5, %v2447_v36, %v2449_v60  ;;  %v2451_v63 = vsel %vm70_vm5, %v7637_v48, %v2447_v36  ;;  %v2837_v10 = vpop.permute.xlu1 %2836  ;;  %v3048_v7 = vpop.permute.xlu2 %3047  ;;  %v3055_v48 = vsel %vm864_vm7, %v3034_v24, %v7703_v46  ;;  %v8930_v60 = vld [vmem:[#allocation36_spill] sm:$0xff] }
 0x253   :  { %v2464_v25 = vmul.f32 %v2451_v63, %v8923_v11  ;;  %v2465_v61 = vmul.f32 %v2450_v42, %v8924_v15  ;;  %v2846_v12 = vsel %vm594_vm6, %v2837_v10, %v2839_v26  ;;  %v3058_v56 = vmul.f32 %v3055_v48, %v8929_v51  ;;  %v8931_v42 = vld [vmem:[#allocation32_spill] sm:$0xff] }
 0x254   :  { %v2857_v22 = vmul.f32 %v2846_v12, %v8925_v5  ;;  %v2847_v39 = vsel %vm594_vm6, %v7676_v28, %v2837_v10  ;;  %v3056_v28 = vsel %vm864_vm7, %v3048_v7, %v3034_v24  ;;  %v8933_v10 = vld [vmem:[#allocation34_spill] sm:$0xff] }
 0x255   :  { %2803 = vmatpush.msrb.mxu2 %v2464_v25  ;;  %2823 = vmatpush.msrb.mxu3 %v2465_v61  ;;  %v2856_v61 = vmul.f32 %v2847_v39, %v8933_v10  ;;  %v3057_v48 = vmul.f32 %v3056_v28, %v8935_v2 }
 0x256   :  { %6298 = vmatmul.msk.f32.vlgmr.msrb.gmra.mxu2 %vm2501_vm12, %v2466_v27  ;;  %6299 = vmatmul.msk.f32.vlgmr.msrb.gmra.mxu3 %vm2501_vm12, %v2466_v27 }
 0x257   :  { %6302 = vmatmul.msk.f32.vlgmr.msra.gmra.mxu1 %vm2501_vm12, %v6300_v14  ;;  %2920 = vmatpush.msra.mxu2 %v2854_v58 }
 0x258   :  { %2940 = vmatpush.msra.mxu3 %v2855_v13  ;;  %2980 = vmatpush.msrb.mxu1 %v2857_v22 }
 0x259   :  { %3000 = vmatpush.msrb.mxu2 %v2858_v34  ;;  %v3038_v4 = vpop.permute.xlu0 %3037  ;;  %6296 = vmatmul.msk.f32.vlgmr.msrb.gmra.mxu0 %vm2501_vm12, %v2466_v27 }
 0x25a   :  { %3105 = vmatpush.msra.mxu1 %v3058_v56  ;;  %v3054_v26 = vsel %vm864_vm7, %v7703_v46, %v3038_v4  ;;  %v3040_v49 = vpop.permute.xlu1 %3039  ;;  %v7788_v55 = vpop.permute.xlu2 %3433  ;;  %v8936_v56 = vld [vmem:[#allocation37_spill] sm:$0xff] }
 0x25b   :  { %v3059_v9 = vmul.f32 %v3054_v26, %v8930_v60  ;;  %v3053_v35 = vsel %vm864_vm7, %v3038_v4, %v3040_v49  ;;  %v8937_v26 = vld [vmem:[#allocation42_spill] sm:$0xff] }
 0x25e   :  { %6303 = vmatmul.msk.f32.vlgmr.msra.gmra.mxu2 %vm2501_vm12, %v6300_v14  ;;  %6304 = vmatmul.msk.f32.vlgmr.msra.gmra.mxu3 %vm2501_vm12, %v6300_v14 }
 0x25f   :  { %6306 = vmatmul.msk.f32.vlgmr.msrb.gmra.mxu1 %vm2501_vm12, %v6300_v14  ;;  %3125 = vmatpush.msra.mxu2 %v3059_v9 }
 0x261   :  { %v2843_v20 = vpop.permute.xlu0 %2842 }
 0x262   :  { %v2844_v46 = vsel %vm594_vm6, %v7728_v6, %v2843_v20  ;;  %v2851_v27 = vsel %vm594_vm6, %v2843_v20, %v2829_v57  ;;  %v7803_v8 = vpop.permute.xlu1 %3431  ;;  %v7805_v36 = vpop.permute.xlu2 %3427  ;;  %v6309_v6 = vld [vmem:[%s8666_s4 + $0x18] sm:$0xff]  ;;  %v8934_v57 = vld [vmem:[#allocation35_spill] sm:$0xff] }
 0x263   :  { %v2852_v63 = vmul.f32 %v2851_v27, %v8931_v42  ;;  %v2859_v25 = vmul.f32 %v2844_v46, %v8932_v53  ;;  %v3060_v12 = vmul.f32 %v3053_v35, %v8934_v57  ;;  %v8938_v20 = vld [vmem:[#allocation3_spill] sm:$0xff]  ;;  %v8939_v46 = vld [vmem:[#allocation4_spill] sm:$0xff] }
 0x264   :  { %v3248_v39 = vmul.f32 %v7502_v52, %v8938_v20  ;;  %v8941_v52 = vld [vmem:[#allocation40_spill] sm:$0xff] }
 0x265   :  { %2880 = vmatpush.msra.mxu0 %v2852_v63  ;;  %3020 = vmatpush.msrb.mxu3 %v2859_v25  ;;  %v8940_v25 = vld [vmem:[#allocation39_spill] sm:$0xff] }
 0x266   :  { %6301 = vmatmul.msk.f32.vlgmr.msra.gmra.mxu0 %vm2501_vm12, %v6300_v14  ;;  %6307 = vmatmul.msk.f32.vlgmr.msrb.gmra.mxu2 %vm2501_vm12, %v6300_v14 }
 0x267   :  { %2960 = vmatpush.msrb.mxu0 %v2856_v61  ;;  %6308 = vmatmul.msk.f32.vlgmr.msrb.gmra.mxu3 %vm2501_vm12, %v6300_v14 }
 0x268   :  { %6311 = vmatmul.msk.f32.vlgmr.msra.gmra.mxu1 %vm2501_vm12, %v6309_v6  ;;  %3145 = vmatpush.msra.mxu3 %v3060_v12 }
 0x269   :  { %3085 = vmatpush.msra.mxu0 %v3057_v48  ;;  %v3044_v24 = vpop.permute.xlu0 %3043 }
 0x26a   :  { %v3046_v22 = vpop.permute.xlu1 %3045  ;;  %v7823_v58 = vpop.permute.xlu2 %3437 }
 0x26b   :  { %v3049_v13 = vsel %vm864_vm7, %v3046_v22, %v3048_v7  ;;  %v3050_v34 = vsel %vm864_vm7, %v3044_v24, %v3046_v22  ;;  %v3249_v7 = vmul.f32 %v7528_v32, %v8939_v46  ;;  %v8942_v32 = vld [vmem:[#allocation8_spill] sm:$0xff] }
 0x26c   :  { %v3063_v4 = vmul.f32 %v3050_v34, %v8936_v56  ;;  %v3064_v9 = vmul.f32 %v3049_v13, %v8937_v26  ;;  %v3246_v48 = vmul.f32 %v7505_v62, %v8942_v32  ;;  %v8945_v34 = vld [vmem:[#allocation7_spill] sm:$0xff] }
 0x26e   :  { %6305 = vmatmul.msk.f32.vlgmr.msrb.gmra.mxu0 %vm2501_vm12, %v6300_v14  ;;  %6312 = vmatmul.msk.f32.vlgmr.msra.gmra.mxu2 %vm2501_vm12, %v6309_v6 }
 0x26f   :  { %6313 = vmatmul.msk.f32.vlgmr.msra.gmra.mxu3 %vm2501_vm12, %v6309_v6  ;;  %3205 = vmatpush.msrb.mxu2 %v3063_v4  ;;  %v3253_v4 = vmul.f32 %v7559_v29, %v8945_v34  ;;  %v6318_v29 = vld [vmem:[%s8666_s4 + $0x20] sm:$0xff] }
 0x270   :  { %3225 = vmatpush.msrb.mxu3 %v3064_v9  ;;  %v8946_v9 = vld [vmem:[#allocation5_spill] sm:$0xff] }
 0x271   :  { %3314 = vmatpush.msra.mxu2 %v3248_v39  ;;  %v3042_v27 = vpop.permute.xlu0 %3041  ;;  %v3251_v39 = vmul.f32 %v7545_v23, %v8946_v9  ;;  %v3447_v23 = vsel %vm1367_vm8, %v7803_v8, %v7788_v55 }
 0x272   :  { %3334 = vmatpush.msra.mxu3 %v3249_v7  ;;  %v3051_v35 = vsel %vm864_vm7, %v3042_v27, %v3044_v24  ;;  %v3052_v14 = vsel %vm864_vm7, %v3040_v49, %v3042_v27  ;;  %v3430_v63 = vpop.permute.xlu1 %3429  ;;  %v7844_v12 = vpop.permute.xlu2 %3640  ;;  %v8943_v24 = vld [vmem:[#allocation2_spill] sm:$0xff]  ;;  %v8947_v27 = vld [vmem:[#allocation44_spill] sm:$0xff] }
 0x273   :  { %v3061_v28 = vmul.f32 %v3052_v14, %v8940_v25  ;;  %v3062_v61 = vmul.f32 %v3051_v35, %v8941_v52  ;;  %v3247_v22 = vmul.f32 %v7485_v31, %v8943_v24  ;;  %v8944_v49 = vld [vmem:[#allocation6_spill] sm:$0xff] }
 0x274   :  { %v3252_v13 = vmul.f32 %v7547_v40, %v8944_v49  ;;  %v3448_v40 = vsel %vm1367_vm8, %v3430_v63, %v7803_v8 }
 0x275   :  { %3165 = vmatpush.msrb.mxu0 %v3061_v28  ;;  %3185 = vmatpush.msrb.mxu1 %v3062_v61  ;;  %v8948_v28 = vld [vmem:[#allocation45_spill] sm:$0xff] }
 0x276   :  { %6310 = vmatmul.msk.f32.vlgmr.msra.gmra.mxu0 %vm2501_vm12, %v6309_v6  ;;  %6315 = vmatmul.msk.f32.vlgmr.msrb.gmra.mxu1 %vm2501_vm12, %v6309_v6  ;;  %v3452_v61 = vmul.f32 %v3448_v40, %v8948_v28 }
 0x277   :  { %6316 = vmatmul.msk.f32.vlgmr.msrb.gmra.mxu2 %vm2501_vm12, %v6309_v6  ;;  %6317 = vmatmul.msk.f32.vlgmr.msrb.gmra.mxu3 %vm2501_vm12, %v6309_v6 }
 0x278   :  { %3274 = vmatpush.msra.mxu0 %v3246_v48  ;;  %3294 = vmatpush.msra.mxu1 %v3247_v22  ;;  %v8949_v48 = vld [vmem:[#allocation9_spill] sm:$0xff] }
 0x279   :  { %3394 = vmatpush.msrb.mxu2 %v3252_v13  ;;  %3414 = vmatpush.msrb.mxu3 %v3253_v4  ;;  %v3436_v62 = vpop.permute.xlu0 %3435  ;;  %v3250_v22 = vmul.f32 %v7557_v47, %v8949_v48  ;;  %v8950_v13 = vld [vmem:[#allocation43_spill] sm:$0xff] }
 0x27a   :  { %3374 = vmatpush.msrb.mxu1 %v3251_v39  ;;  %v3446_v31 = vsel %vm1367_vm8, %v7788_v55, %v3436_v62  ;;  %v3639_v7 = vpop.permute.xlu1 %3638  ;;  %v7874_v14 = vpop.permute.xlu2 %3841  ;;  %v3453_v4 = vmul.f32 %v3447_v23, %v8950_v13  ;;  %v8951_v39 = vld [vmem:[#allocation47_spill] sm:$0xff]  ;;  %v8959_v13 = vld [vmem:[#allocation54_spill] sm:$0xff] }
 0x27b   :  { %v3454_v35 = vmul.f32 %v3446_v31, %v8947_v27 }
 0x27e   :  { %6314 = vmatmul.msk.f32.vlgmr.msrb.gmra.mxu0 %vm2501_vm12, %v6309_v6  ;;  %6320 = vmatmul.msk.f32.vlgmr.msra.gmra.mxu1 %vm2501_vm12, %v6318_v29  ;;  %v3449_v6 = vsel %vm1367_vm8, %v7805_v36, %v3430_v63 }
 0x27f   :  { %6321 = vmatmul.msk.f32.vlgmr.msra.gmra.mxu2 %vm2501_vm12, %v6318_v29  ;;  %6322 = vmatmul.msk.f32.vlgmr.msra.gmra.mxu3 %vm2501_vm12, %v6318_v29  ;;  %v3451_v31 = vmul.f32 %v3449_v6, %v8951_v39 }
 0x280   :  { %3354 = vmatpush.msrb.mxu0 %v3250_v22  ;;  %3499 = vmatpush.msra.mxu1 %v3452_v61  ;;  %v6327_v61 = vld [vmem:[%s8666_s4 + $0x28] sm:$0xff]  ;;  %v3651_v22 = vsel %vm1637_vm9, %v3639_v7, %v7844_v12 }
 0x281   :  { %3519 = vmatpush.msra.mxu2 %v3453_v4  ;;  %3539 = vmatpush.msra.mxu3 %v3454_v35  ;;  %v3637_v55 = vpop.permute.xlu0 %3636  ;;  %v3445_v35 = vsel %vm1367_vm8, %v3436_v62, %v7823_v58  ;;  %v8952_v4 = vld [vmem:[#allocation48_spill] sm:$0xff] }
 0x282   :  { %v7884_v8 = vpop.permute.xlu1 %3632  ;;  %v3645_v47 = vpop.permute.xlu2 %3644  ;;  %v8954_v62 = vld [vmem:[#allocation52_spill] sm:$0xff]  ;;  %v3652_v9 = vsel %vm1637_vm9, %v3637_v55, %v3639_v7 }
 0x283   :  { %v3659_v28 = vmul.f32 %v3651_v22, %v8954_v62 }
 0x286   :  { %6319 = vmatmul.msk.f32.vlgmr.msra.gmra.mxu0 %vm2501_vm12, %v6318_v29  ;;  %6324 = vmatmul.msk.f32.vlgmr.msrb.gmra.mxu1 %vm2501_vm12, %v6318_v29 }
 0x287   :  { %6325 = vmatmul.msk.f32.vlgmr.msrb.gmra.mxu2 %vm2501_vm12, %v6318_v29  ;;  %6326 = vmatmul.msk.f32.vlgmr.msrb.gmra.mxu3 %vm2501_vm12, %v6318_v29 }
 0x288   :  { %3479 = vmatpush.msra.mxu0 %v3451_v31  ;;  %v8953_v31 = vld [vmem:[#allocation49_spill] sm:$0xff] }
 0x289   :  { %v3635_v40 = vpop.permute.xlu0 %3634  ;;  %v3455_v27 = vmul.f32 %v3445_v35, %v8953_v31  ;;  %v8956_v31 = vld [vmem:[#allocation46_spill] sm:$0xff] }
 0x28a   :  { %v3442_v23 = vpop.permute.xlu1 %3441 }
 0x28b   :  { %v3450_v63 = vsel %vm1367_vm8, %v3442_v23, %v7805_v36  ;;  %v7913_v36 = vpop.permute.xlu2 %3839 }
 0x28c   :  { %v3458_v6 = vmul.f32 %v3450_v63, %v8952_v4  ;;  %v3653_v63 = vsel %vm1637_vm9, %v3635_v40, %v3637_v55 }
 0x28d   :  { %v3657_v34 = vmul.f32 %v3653_v63, %v8959_v13  ;;  %v6336_v63 = vld [vmem:[%s8666_s4 + $0x30] sm:$0xff] }
 0x28e   :  { %6323 = vmatmul.msk.f32.vlgmr.msrb.gmra.mxu0 %vm2501_vm12, %v6318_v29  ;;  %6329 = vmatmul.msk.f32.vlgmr.msra.gmra.mxu1 %vm2501_vm12, %v6327_v61 }
 0x28f   :  { %6330 = vmatmul.msk.f32.vlgmr.msra.gmra.mxu2 %vm2501_vm12, %v6327_v61  ;;  %6331 = vmatmul.msk.f32.vlgmr.msra.gmra.mxu3 %vm2501_vm12, %v6327_v61 }
 0x290   :  { %3559 = vmatpush.msrb.mxu0 %v3455_v27  ;;  %3619 = vmatpush.msrb.mxu3 %v3458_v6  ;;  %v3654_v27 = vsel %vm1637_vm9, %v7884_v8, %v3635_v40  ;;  %v8955_v6 = vld [vmem:[#allocation50_spill] sm:$0xff]  ;;  %v8960_v40 = vld [vmem:[#allocation51_spill] sm:$0xff] }
 0x291   :  { %v3440_v39 = vpop.permute.xlu0 %3439 }
 0x292   :  { %3744 = vmatpush.msra.mxu3 %v3659_v28  ;;  %v3443_v29 = vsel %vm1367_vm8, %v3440_v39, %v3442_v23  ;;  %v3444_v35 = vsel %vm1367_vm8, %v7823_v58, %v3440_v39  ;;  %v3643_v22 = vpop.permute.xlu1 %3642  ;;  %v8957_v23 = vld [vmem:[#allocation55_spill] sm:$0xff]  ;;  %v8958_v58 = vld [vmem:[#allocation53_spill] sm:$0xff] }
 0x293   :  { %v3456_v62 = vmul.f32 %v3444_v35, %v8955_v6  ;;  %v3457_v28 = vmul.f32 %v3443_v29, %v8956_v31  ;;  %v3649_v4 = vsel %vm1637_vm9, %v3643_v22, %v3645_v47  ;;  %v3656_v39 = vmul.f32 %v3654_v27, %v8958_v58  ;;  %v8961_v35 = vld [vmem:[#allocation61_spill] sm:$0xff]  ;;  %v8962_v27 = vld [vmem:[#allocation58_spill] sm:$0xff] }
 0x294   :  { %v3661_v48 = vmul.f32 %v3649_v4, %v8957_v23  ;;  %v3658_v29 = vmul.f32 %v3652_v9, %v8960_v40  ;;  %v3858_v4 = vsel %vm1907_vm10, %v7913_v36, %v7874_v14  ;;  %v3852_v9 = vpop.permute.xlu2 %3851 }
 0x295   :  { %3579 = vmatpush.msrb.mxu1 %v3456_v62  ;;  %3599 = vmatpush.msrb.mxu2 %v3457_v28  ;;  %v3650_v62 = vsel %vm1637_vm9, %v7844_v12, %v3643_v22 }
 0x296   :  { %6328 = vmatmul.msk.f32.vlgmr.msra.gmra.mxu0 %vm2501_vm12, %v6327_v61  ;;  %6333 = vmatmul.msk.f32.vlgmr.msrb.gmra.mxu1 %vm2501_vm12, %v6327_v61 }
 0x297   :  { %6334 = vmatmul.msk.f32.vlgmr.msrb.gmra.mxu2 %vm2501_vm12, %v6327_v61  ;;  %6335 = vmatmul.msk.f32.vlgmr.msrb.gmra.mxu3 %vm2501_vm12, %v6327_v61 }
 0x298   :  { %3684 = vmatpush.msra.mxu0 %v3656_v39  ;;  %3704 = vmatpush.msra.mxu1 %v3657_v34  ;;  %v3862_v34 = vmul.f32 %v3858_v4, %v8961_v35  ;;  %v8963_v4 = vld [vmem:[#allocation56_spill] sm:$0xff] }
 0x299   :  { %3724 = vmatpush.msra.mxu2 %v3658_v29  ;;  %v3844_v7 = vpop.permute.xlu0 %3843 }
 0x29a   :  { %3784 = vmatpush.msrb.mxu1 %v3661_v48  ;;  %v3846_v55 = vpop.permute.xlu1 %3845  ;;  %v3660_v48 = vmul.f32 %v3650_v62, %v8962_v27  ;;  %v8966_v27 = vld [vmem:[#allocation59_spill] sm:$0xff] }
 0x29b   :  { %v3856_v29 = vsel %vm1907_vm10, %v3844_v7, %v3846_v55 }
 0x29c   :  { %v4049_v35 = vpop.permute.xlu2 %4048  ;;  %v3864_v58 = vmul.f32 %v3856_v29, %v8966_v27  ;;  %v8968_v29 = vld [vmem:[#allocation64_spill] sm:$0xff] }
 0x29e   :  { %6332 = vmatmul.msk.f32.vlgmr.msrb.gmra.mxu0 %vm2501_vm12, %v6327_v61  ;;  %6338 = vmatmul.msk.f32.vlgmr.msra.gmra.mxu1 %vm2501_vm12, %v6336_v63  ;;  %v3857_v61 = vsel %vm1907_vm10, %v7874_v14, %v3844_v7  ;;  %v4247_v14 = vld [vmem:[%s8667_s5] sm:$0xff] }
 0x29f   :  { %6339 = vmatmul.msk.f32.vlgmr.msra.gmra.mxu2 %vm2501_vm12, %v6336_v63  ;;  %6340 = vmatmul.msk.f32.vlgmr.msra.gmra.mxu3 %vm2501_vm12, %v6336_v63 }
 0x2a0   :  { %3764 = vmatpush.msrb.mxu0 %v3660_v48  ;;  %3909 = vmatpush.msra.mxu1 %v3862_v34  ;;  %v8964_v48 = vld [vmem:[#allocation57_spill] sm:$0xff] }
 0x2a1   :  { %v3647_v12 = vpop.permute.xlu0 %3646  ;;  %4250 = vperm.xlu0 %6453, %v4247_v14   ;;  %v8969_v14 = vld [vmem:[#allocation63_spill] sm:$0xff] }
 0x2a2   :  { %v3648_v22 = vsel %vm1637_vm9, %v3645_v47, %v3647_v12  ;;  %v3655_v28 = vsel %vm1637_vm9, %v3647_v12, %v7884_v8  ;;  %v4047_v39 = vpop.permute.xlu1 %4046  ;;  %v8965_v47 = vld [vmem:[#allocation60_spill] sm:$0xff] }
 0x2a3   :  { %v3662_v62 = vmul.f32 %v3648_v22, %v8963_v4  ;;  %v3663_v34 = vmul.f32 %v3655_v28, %v8964_v48  ;;  %v3863_v23 = vmul.f32 %v3857_v61, %v8965_v47  ;;  %v8967_v28 = vld [vmem:[#allocation62_spill] sm:$0xff]  ;;  %v8974_v47 = vld [vmem:[#allocation67_spill] sm:$0xff] }
 0x2a5   :  { %3804 = vmatpush.msrb.mxu2 %v3662_v62  ;;  %3824 = vmatpush.msrb.mxu3 %v3663_v34 }
 0x2a6   :  { %6337 = vmatmul.msk.f32.vlgmr.msra.gmra.mxu0 %vm2501_vm12, %v6336_v63  ;;  %6342 = vmatmul.msk.f32.vlgmr.msrb.gmra.mxu1 %vm2501_vm12, %v6336_v63 }
 0x2a7   :  { %6343 = vmatmul.msk.f32.vlgmr.msrb.gmra.mxu2 %vm2501_vm12, %v6336_v63  ;;  %6344 = vmatmul.msk.f32.vlgmr.msrb.gmra.mxu3 %vm2501_vm12, %v6336_v63 }
 0x2a8   :  { %3929 = vmatpush.msra.mxu2 %v3863_v23  ;;  %3949 = vmatpush.msra.mxu3 %v3864_v58  ;;  %v6345_v23 = vld [vmem:[%s8666_s4 + $0x38] sm:$0xff]  ;;  %v4062_v58 = vsel %vm2177_vm11, %v4047_v39, %v4049_v35 }
 0x2a9   :  { %v3838_v8 = vpop.permute.xlu0 %3837 }
 0x2aa   :  { %v3859_v7 = vsel %vm1907_vm10, %v3838_v8, %v7913_v36  ;;  %v3860_v12 = vsel %vm1907_vm10, %v3852_v9, %v3838_v8  ;;  %v8970_v8 = vld [vmem:[#allocation68_spill] sm:$0xff] }
 0x2ab   :  { %v3850_v22 = vpop.permute.xlu1 %3849  ;;  %v3861_v61 = vmul.f32 %v3859_v7, %v8967_v28  ;;  %v3868_v62 = vmul.f32 %v3860_v12, %v8968_v29  ;;  %v4068_v7 = vmul.f32 %v4062_v58, %v8970_v8  ;;  %v4043_v12 = vpop.permute.xlu2 %4042  ;;  %v8972_v58 = vld [vmem:[#allocation66_spill] sm:$0xff] }
 0x2ac   :  { %v3853_v34 = vsel %vm1907_vm10, %v3850_v22, %v3852_v9  ;;  %v7996_v29 = vpop.f32.mrf.mxu1 }
 0x2ad   :  { %v3867_v36 = vmul.f32 %v3853_v34, %v8969_v14  ;;  %3889 = vmatpush.msra.mxu0 %v3861_v61  ;;  %4029 = vmatpush.msrb.mxu3 %v3868_v62  ;;  %v8971_v34 = vld [vmem:[#allocation65_spill] sm:$0xff] }
 0x2ae   :  { %6341 = vmatmul.msk.f32.vlgmr.msrb.gmra.mxu0 %vm2501_vm12, %v6336_v63  ;;  %6347 = vmatmul.msk.f32.vlgmr.msra.gmra.mxu1 %vm2501_vm12, %v6345_v23 }
 0x2af   :  { %6348 = vmatmul.msk.f32.vlgmr.msra.gmra.mxu2 %vm2501_vm12, %v6345_v23  ;;  %6349 = vmatmul.msk.f32.vlgmr.msra.gmra.mxu3 %vm2501_vm12, %v6345_v23 }
 0x2b0   :  { %4009 = vmatpush.msrb.mxu2 %v3867_v36 }
 0x2b1   :  { %v3848_v9 = vpop.permute.xlu0 %3847 }
 0x2b2   :  { %4134 = vmatpush.msra.mxu2 %v4068_v7  ;;  %v3854_v61 = vsel %vm1907_vm10, %v3848_v9, %v3850_v22  ;;  %v3855_v63 = vsel %vm1907_vm10, %v3846_v55, %v3848_v9  ;;  %v8973_v7 = vld [vmem:[#allocation71_spill] sm:$0xff]  ;;  %v8975_v9 = vld [vmem:[#allocation69_spill] sm:$0xff] }
 0x2b3   :  { %v4045_v62 = vpop.permute.xlu1 %4044  ;;  %v3865_v27 = vmul.f32 %v3855_v63, %v8971_v34  ;;  %v3866_v8 = vmul.f32 %v3854_v61, %v8972_v58  ;;  %v4053_v55 = vpop.permute.xlu2 %4052 }
 0x2b4   :  { %v4063_v14 = vsel %vm2177_vm11, %v4045_v62, %v4047_v39  ;;  %v4064_v36 = vsel %vm2177_vm11, %v4043_v12, %v4045_v62 }
 0x2b5   :  { %v4066_v28 = vmul.f32 %v4064_v36, %v8973_v7  ;;  %v4067_v48 = vmul.f32 %v4063_v14, %v8974_v47  ;;  %3969 = vmatpush.msrb.mxu0 %v3865_v27  ;;  %3989 = vmatpush.msrb.mxu1 %v3866_v8  ;;  %v8018_v8 = vpop.f32.mrf.mxu0  ;;  %v8976_v36 = vld [vmem:[#allocation73_spill] sm:$0xff]  ;;  %v8977_v7 = vld [vmem:[#allocation72_spill] sm:$0xff] }
 0x2b6   :  { %6346 = vmatmul.msk.f32.vlgmr.msra.gmra.mxu0 %vm2501_vm12, %v6345_v23  ;;  %6351 = vmatmul.msk.f32.vlgmr.msrb.gmra.mxu1 %vm2501_vm12, %v6345_v23 }
 0x2b7   :  { %6352 = vmatmul.msk.f32.vlgmr.msrb.gmra.mxu2 %vm2501_vm12, %v6345_v23  ;;  %6353 = vmatmul.msk.f32.vlgmr.msrb.gmra.mxu3 %vm2501_vm12, %v6345_v23 }
 0x2b8   :  { %4094 = vmatpush.msra.mxu0 %v4066_v28  ;;  %4114 = vmatpush.msra.mxu1 %v4067_v48  ;;  %v6354_v48 = vld [vmem:[%s8666_s4 + $0x40] sm:$0xff]  ;;  %v8028_v28 = vpop.f32.mrf.mxu2 }
 0x2b9   :  { %v4051_v39 = vpop.permute.xlu0 %4050 }
 0x2ba   :  { %v4060_v22 = vsel %vm2177_vm11, %v4051_v39, %v4053_v55  ;;  %v4061_v14 = vsel %vm2177_vm11, %v4049_v35, %v4051_v39  ;;  %v8032_v39 = vpop.f32.mrf.mxu3 }
 0x2bb   :  { %v4057_v27 = vpop.permute.xlu1 %4056  ;;  %v4069_v61 = vmul.f32 %v4061_v14, %v8975_v9  ;;  %v8023_v62 = vpop.f32.mrf.mxu1  ;;  %v4070_v47 = vmul.f32 %v4060_v22, %v8976_v36 }
 0x2bc   :  { %v4065_v63 = vsel %vm2177_vm11, %v4057_v27, %v4043_v12 }
 0x2bd   :  { %v4073_v35 = vmul.f32 %v4065_v63, %v8977_v7  ;;  %4154 = vmatpush.msra.mxu3 %v4069_v61  ;;  %v8978_v63 = vld [vmem:[#allocation74_spill] sm:$0xff]  ;;  %v8044_v9 = vpop.f32.mrf.mxu0 }
 0x2be   :  { %6350 = vmatmul.msk.f32.vlgmr.msrb.gmra.mxu0 %vm2501_vm12, %v6345_v23  ;;  %6356 = vmatmul.msk.f32.vlgmr.msra.gmra.mxu1 %vm2501_vm12, %v6354_v48  ;;  %v8979_v61 = vld [vmem:[#allocation70_spill] sm:$0xff] }
 0x2bf   :  { %6357 = vmatmul.msk.f32.vlgmr.msra.gmra.mxu2 %vm2501_vm12, %v6354_v48  ;;  %6358 = vmatmul.msk.f32.vlgmr.msra.gmra.mxu3 %vm2501_vm12, %v6354_v48 }
 0x2c0   :  { %4174 = vmatpush.msrb.mxu0 %v4070_v47  ;;  %4234 = vmatpush.msrb.mxu3 %v4073_v35  ;;  %v8046_v34 = vpop.f32.mrf.mxu2 }
 0x2c1   :  { %v4055_v12 = vpop.permute.xlu0 %4054 }
 0x2c2   :  { %v4058_v14 = vsel %vm2177_vm11, %v4055_v12, %v4057_v27  ;;  %v4059_v22 = vsel %vm2177_vm11, %v4053_v55, %v4055_v12  ;;  %v8050_v47 = vpop.f32.mrf.mxu3 }
 0x2c3   :  { %v4071_v7 = vmul.f32 %v4059_v22, %v8978_v63  ;;  %v4072_v36 = vmul.f32 %v4058_v14, %v8979_v61  ;;  %v2705_v23 = vpop.f32.mrf.mxu1  ;;  %8980 = vst [vmem:[#allocation82_spill] sm:$0xff] %v8050_v47 }
 0x2c4   :  { %v2706_v16 = vadd.f32 %v2705_v23, %v7996_v29 }
 0x2c5   :  { %4194 = vmatpush.msrb.mxu1 %v4071_v7  ;;  %4214 = vmatpush.msrb.mxu2 %v4072_v36 }
 0x2c6   :  { %6355 = vmatmul.msk.f32.vlgmr.msra.gmra.mxu0 %vm2501_vm12, %v6354_v48  ;;  %6360 = vmatmul.msk.f32.vlgmr.msrb.gmra.mxu1 %vm2501_vm12, %v6354_v48 }
 0x2c7   :  { %6361 = vmatmul.msk.f32.vlgmr.msrb.gmra.mxu2 %vm2501_vm12, %v6354_v48  ;;  %6362 = vmatmul.msk.f32.vlgmr.msrb.gmra.mxu3 %vm2501_vm12, %v6354_v48 }
 0x2c8   :  { %v2725_v35 = vpop.f32.mrf.mxu2 }
 0x2ca   :  { %v2745_v7 = vpop.f32.mrf.mxu3 }
 0x2cb   :  { %v2785_v55 = vpop.f32.mrf.mxu1 }
 0x2cc   :  { %v8055_v27 = vpop.f32.mrf.mxu0 }
 0x2ce   :  { %6359 = vmatmul.msk.f32.vlgmr.msrb.gmra.mxu0 %vm2501_vm12, %v6354_v48 }
 0x2d4   :  { %v2902_v36 = vpop.f32.mrf.mxu1 }
 0x2d5   :  { %v3026_v33 = vadd.f32 %v2902_v36, %v2706_v16 }
 0x2d6   :  { %v8057_v12 = vpop.f32.mrf.mxu0 }
 0x2d9   :  { %v8059_v14 = vpop.f32.mrf.mxu2  ;;  %v8061_v22 = vpop.f32.mrf.mxu3 }
 0x2da   :  { %8981 = vst [vmem:[#allocation75_spill] sm:$0xff] %v8061_v22  ;;  %v2726_v22 = vadd.f32 %v2725_v35, %v8028_v28 }
 0x2dc   :  { %v2982_v61 = vpop.f32.mrf.mxu1 }
 0x2e1   :  { %v2922_v63 = vpop.f32.mrf.mxu2  ;;  %v2942_v58 = vpop.f32.mrf.mxu3 }
 0x2e3   :  { %v8063_v4 = vpop.f32.mrf.mxu0 }
 0x2e5   :  { %v3107_v48 = vpop.f32.mrf.mxu1 }
 0x2e6   :  { %v3231_v59 = vadd.f32 %v3107_v48, %v3026_v33  ;;  %v8990_v48 = vld [vmem:[#allocation75_spill] sm:$0xff] }
 0x2e9   :  { %v8065_v13 = vpop.f32.mrf.mxu2 }
 0x2ea   :  { %v8067_v40 = vpop.f32.mrf.mxu3 }
 0x2eb   :  { %8982 = vst [vmem:[#allocation77_spill] sm:$0xff] %v8067_v40  ;;  %v8069_v6 = vpop.f32.mrf.mxu0 }
 0x2f1   :  { %v3127_v31 = vpop.f32.mrf.mxu2 }
 0x2f2   :  { %v3147_v49 = vpop.f32.mrf.mxu3 }
 0x2f3   :  { %v8071_v46 = vpop.f32.mrf.mxu0  ;;  %v3187_v20 = vpop.f32.mrf.mxu1 }
 0x2fa   :  { %v8073_v24 = vpop.f32.mrf.mxu2  ;;  %v8075_v32 = vpop.f32.mrf.mxu3 }
 0x2fb   :  { %8983 = vst [vmem:[#allocation76_spill] sm:$0xff] %v8075_v32  ;;  %v8077_v26 = vpop.f32.mrf.mxu0  ;;  %v3296_v56 = vpop.f32.mrf.mxu1 }
 0x2fc   :  { %v3420_v41 = vadd.f32 %v3296_v56, %v3231_v59  ;;  %v3027_v59 = vadd.f32 %v2922_v63, %v2726_v22  ;;  %v8989_v22 = vld [vmem:[#allocation82_spill] sm:$0xff] }
 0x302   :  { %v3316_v52 = vpop.f32.mrf.mxu2  ;;  %v3336_v25 = vpop.f32.mrf.mxu3 }
 0x303   :  { %v8079_v2 = vpop.f32.mrf.mxu0  ;;  %v3376_v51 = vpop.f32.mrf.mxu1 }
 0x30a   :  { %v8081_v5 = vpop.f32.mrf.mxu2  ;;  %v8083_v10 = vpop.f32.mrf.mxu3 }
 0x30b   :  { %8984 = vst [vmem:[#allocation79_spill] sm:$0xff] %v8083_v10  ;;  %v8085_v57 = vpop.f32.mrf.mxu0  ;;  %v3501_v60 = vpop.f32.mrf.mxu1 }
 0x30c   :  { %v3625_v10 = vadd.f32 %v3501_v60, %v3420_v41  ;;  %v3232_v60 = vadd.f32 %v3127_v31, %v3027_v59 }
 0x312   :  { %v3521_v53 = vpop.f32.mrf.mxu2  ;;  %v3541_v30 = vpop.f32.mrf.mxu3 }
 0x313   :  { %v8087_v42 = vpop.f32.mrf.mxu0  ;;  %v3581_v19 = vpop.f32.mrf.mxu1 }
 0x314   :  { %v8109_v16 = vpop.permute.xlu0 %4250 }
 0x31a   :  { %v8089_v37 = vpop.f32.mrf.mxu2  ;;  %v8091_v3 = vpop.f32.mrf.mxu3 }
 0x31b   :  { %8985 = vst [vmem:[#allocation78_spill] sm:$0xff] %v8091_v3  ;;  %v8093_v38 = vpop.f32.mrf.mxu0  ;;  %v3706_v45 = vpop.f32.mrf.mxu1  ;;  %v2786_v3 = vadd.f32 %v2785_v55, %v8023_v62 }
 0x31c   :  { %8986 = vst [vmem:[#allocation81_spill] sm:$0xff] %v8093_v38  ;;  %v3830_v38 = vadd.f32 %v3706_v45, %v3625_v10  ;;  %v3421_v10 = vadd.f32 %v3316_v52, %v3232_v60  ;;  %v8994_v60 = vld [vmem:[#allocation76_spill] sm:$0xff] }
 0x31d   :  { %v3030_v40 = vadd.f32 %v2982_v61, %v2786_v3 }
 0x322   :  { %v3726_v15 = vpop.f32.mrf.mxu2  ;;  %v3746_v50 = vpop.f32.mrf.mxu3 }
 0x323   :  { %v8095_v11 = vpop.f32.mrf.mxu0  ;;  %v3786_v54 = vpop.f32.mrf.mxu1  ;;  %v8991_v59 = vld [vmem:[#allocation81_spill] sm:$0xff] }
 0x32a   :  { %v8097_v43 = vpop.f32.mrf.mxu2  ;;  %v8099_v18 = vpop.f32.mrf.mxu3 }
 0x32b   :  { %8987 = vst [vmem:[#allocation80_spill] sm:$0xff] %v8099_v18  ;;  %v3911_v17 = vpop.f32.mrf.mxu1  ;;  %v8101_v1 = vpop.f32.mrf.mxu0  ;;  %v2746_v18 = vadd.f32 %v2745_v7, %v8032_v39 }
 0x32c   :  { %8988 = vst [vmem:[#allocation83_spill] sm:$0xff] %v8101_v1  ;;  %v3235_v1 = vadd.f32 %v3187_v20, %v3030_v40  ;;  %v4035_v47 = vadd.f32 %v3911_v17, %v3830_v38  ;;  %v2806_v38 = vadd.f32 %v8059_v14, %v8046_v34  ;;  %v3626_v40 = vadd.f32 %v3521_v53, %v3421_v10 }
 0x32d   :  { %v3028_v56 = vadd.f32 %v2942_v58, %v2746_v18 }
 0x32e   :  { %v3424_v62 = vadd.f32 %v3376_v51, %v3235_v1  ;;  %v2686_v1 = vadd.f32 %v8055_v27, %v8018_v8  ;;  %v3031_v51 = vadd.f32 %v8065_v13, %v2806_v38 }
 0x32f   :  { %v3233_v55 = vadd.f32 %v3147_v49, %v3028_v56 }
 0x330   :  { %v3629_v3 = vadd.f32 %v3581_v19, %v3424_v62  ;;  %v3025_v49 = vadd.f32 %v8063_v4, %v2686_v1  ;;  %v3236_v53 = vadd.f32 %v8073_v24, %v3031_v51 }
 0x331   :  { %v3422_v39 = vadd.f32 %v3336_v25, %v3233_v55 }
 0x332   :  { %v3931_v21 = vpop.f32.mrf.mxu2  ;;  %v3951_v44 = vpop.f32.mrf.mxu3  ;;  %v3834_v28 = vadd.f32 %v3786_v54, %v3629_v3  ;;  %v3831_v54 = vadd.f32 %v3726_v15, %v3626_v40  ;;  %v3230_v58 = vadd.f32 %v8071_v46, %v3025_v49  ;;  %v3425_v8 = vadd.f32 %v8081_v5, %v3236_v53  ;;  %v8996_v40 = vld [vmem:[#allocation78_spill] sm:$0xff] }
 0x333   :  { %v3991_v0 = vpop.f32.mrf.mxu1  ;;  %v8105_v32 = vpop.f32.mrf.mxu0  ;;  %v3627_v61 = vadd.f32 %v3541_v30, %v3422_v39  ;;  %v2766_v15 = vadd.f32 %v8057_v12, %v8044_v9 }
 0x334   :  { %v4039_v63 = vadd.f32 %v3991_v0, %v3834_v28  ;;  %v4036_v30 = vadd.f32 %v3931_v21, %v3831_v54  ;;  %v3630_v13 = vadd.f32 %v8089_v37, %v3425_v8 }
 0x335   :  { %v3832_v25 = vadd.f32 %v3746_v50, %v3627_v61  ;;  %v3419_v50 = vadd.f32 %v8079_v2, %v3230_v58  ;;  %v3029_v5 = vadd.f32 %v8069_v6, %v2766_v15  ;;  %v6363_v58 = vld [vmem:[%s8668_s6 + $0x2] sm:$0x3]  ;;  %v9000_v15 = vld [vmem:[#allocation11_spill] sm:$0xff] }
 0x336   :  { %v3835_v2 = vadd.f32 %v8097_v43, %v3630_v13 }
 0x337   :  { %v4037_v0 = vadd.f32 %v3951_v44, %v3832_v25  ;;  %v3624_v44 = vadd.f32 %v8087_v42, %v3419_v50  ;;  %v3234_v9 = vadd.f32 %v8077_v26, %v3029_v5  ;;  %v8993_v26 = vld [vmem:[#allocation83_spill] sm:$0xff] }
 0x339   :  { %v3829_v24 = vadd.f32 %v8095_v11, %v3624_v44  ;;  %v3423_v36 = vadd.f32 %v8085_v57, %v3234_v9  ;;  %v8992_v11 = vld [vmem:[#allocation77_spill] sm:$0xff] }
 0x33a   :  { %v4011_v29 = vpop.f32.mrf.mxu2  ;;  %v8111_v33 = vpop.f32.mrf.mxu3 }
 0x33b   :  { %v4116_v23 = vpop.f32.mrf.mxu1  ;;  %v3971_v17 = vpop.f32.mrf.mxu0  ;;  %v4040_v7 = vadd.f32 %v4011_v29, %v3835_v2  ;;  %v4034_v42 = vadd.f32 %v8105_v32, %v3829_v24  ;;  %v3628_v56 = vadd.f32 %v8991_v59, %v3423_v36 }
 0x33c   :  { %v4240_v41 = vadd.f32 %v4116_v23, %v4035_v47  ;;  %v2826_v23 = vadd.f32 %v8990_v48, %v8989_v22 }
 0x33d   :  { %v3833_v32 = vadd.f32 %v8993_v26, %v3628_v56  ;;  %v9004_v26 = vld [vmem:[#allocation16_spill] sm:$0xff] }
 0x33e   :  { %v4254_v45 = vadd.f32 %v8109_v16, %v4240_v41  ;;  %v3032_v57 = vadd.f32 %v8992_v11, %v2826_v23  ;;  %v9003_v11 = vld [vmem:[#allocation18_spill] sm:$0xff] }
 0x33f   :  { %v4038_v3 = vadd.f32 %v3971_v17, %v3833_v32 }
 0x340   :  { %v8114_v20 = vmax.f32 %v4254_v45, 0.0  ;;  %v3237_v55 = vadd.f32 %v8994_v60, %v3032_v57  ;;  %v8995_v45 = vld [vmem:[#allocation79_spill] sm:$0xff] }
 0x342   :  { %4304 = vrot.lane.b32.xlu1 %v8114_v20, %s6455_s0  ;;  %v4136_v18 = vpop.f32.mrf.mxu2  ;;  %v4156_v31 = vpop.f32.mrf.mxu3  ;;  %v3426_v10 = vadd.f32 %v8995_v45, %v3237_v55  ;;  %v9006_v55 = vld [vmem:[#allocation17_spill] sm:$0xff] }
 0x343   :  { %v4196_v19 = vpop.f32.mrf.mxu1  ;;  %v4241_v47 = vadd.f32 %v4136_v18, %v4036_v30  ;;  %v4242_v27 = vadd.f32 %v4156_v31, %v4037_v0  ;;  %v4096_v21 = vpop.f32.mrf.mxu0  ;;  %v8999_v0 = vld [vmem:[#allocation12_spill] sm:$0xff] }
 0x344   :  { %v4244_v52 = vadd.f32 %v4196_v19, %v4039_v63  ;;  %v4239_v43 = vadd.f32 %v4096_v21, %v4034_v42  ;;  %v3631_v61 = vadd.f32 %v8996_v40, %v3426_v10  ;;  %v8997_v63 = vld [vmem:[#allocation80_spill] sm:$0xff] }
 0x345   :  { %v4255_v46 = vadd.f32 %v8109_v16, %v4241_v47  ;;  %v4256_v37 = vadd.f32 %v8109_v16, %v4242_v27 }
 0x346   :  { %v4258_v34 = vadd.f32 %v8109_v16, %v4244_v52  ;;  %v4253_v62 = vadd.f32 %v8109_v16, %v4239_v43  ;;  %v3836_v17 = vadd.f32 %v8997_v63, %v3631_v61  ;;  %v9008_v61 = vld [vmem:[#allocation19_spill] sm:$0xff] }
 0x347   :  { %v8149_v12 = vmax.f32 %v4255_v46, 0.0  ;;  %v8151_v14 = vmax.f32 %v4256_v37, 0.0  ;;  %v9001_v37 = vld [vmem:[#allocation15_spill] sm:$0xff] }
 0x348   :  { %v8128_v35 = vmax.f32 %v4258_v34, 0.0  ;;  %v8170_v38 = vmax.f32 %v4253_v62, 0.0  ;;  %v4041_v19 = vadd.f32 %v8111_v33, %v3836_v17  ;;  %v9009_v17 = vld [vmem:[#allocation22_spill] sm:$0xff] }
 0x34a   :  { %4279 = vrot.lane.b32.xlu2 %v8128_v35, %s6454_s9  ;;  %4312 = vrot.lane.b32.xlu0 %v8128_v35, %s6455_s0  ;;  %v4216_v4 = vpop.f32.mrf.mxu2  ;;  %v4236_v18 = vpop.f32.mrf.mxu3 }
 0x34b   :  { %4271 = vrot.lane.b32.xlu1 %v8114_v20, %s6454_s9  ;;  %v4245_v6 = vadd.f32 %v4216_v4, %v4040_v7  ;;  %v4176_v41 = vpop.f32.mrf.mxu0  ;;  %v4246_v51 = vadd.f32 %v4236_v18, %v4041_v19  ;;  %v9002_v4 = vld [vmem:[#allocation13_spill] sm:$0xff]  ;;  %v9010_v18 = vld [vmem:[#allocation23_spill] sm:$0xff] }
 0x34c   :  { %v4243_v28 = vadd.f32 %v4176_v41, %v4038_v3  ;;  %v9005_v41 = vld [vmem:[#allocation14_spill] sm:$0xff] }
 0x34d   :  { %v4259_v29 = vadd.f32 %v8109_v16, %v4245_v6  ;;  %v4260_v25 = vadd.f32 %v8109_v16, %v4246_v51 }
 0x34e   :  { %v4257_v1 = vadd.f32 %v8109_v16, %v4243_v28  ;;  %v9007_v28 = vld [vmem:[#allocation21_spill] sm:$0xff] }
 0x34f   :  { %v8168_v39 = vmax.f32 %v4259_v29, 0.0  ;;  %v8191_v52 = vmax.f32 %v4260_v25, 0.0 }
 0x350   :  { %v8182_v54 = vmax.f32 %v4257_v1, 0.0 }
 0x352   :  { %4275 = vrot.lane.b32.xlu0 %v8151_v14, %s6454_s9  ;;  %4306 = vrot.lane.b32.xlu2 %v8149_v12, %s6455_s0 }
 0x353   :  { %4308 = vrot.lane.b32.xlu1 %v8151_v14, %s6455_s0 }
 0x35a   :  { %4281 = vrot.lane.b32.xlu0 %v8168_v39, %s6454_s9  ;;  %4273 = vrot.lane.b32.xlu2 %v8149_v12, %s6454_s9 }
 0x35b   :  { %4269 = vrot.lane.b32.xlu1 %v8170_v38, %s6454_s9 }
 0x362   :  { %4302 = vrot.lane.b32.xlu2 %v8170_v38, %s6455_s0  ;;  %4310 = vrot.lane.b32.xlu0 %v8182_v54, %s6455_s0 }
 0x363   :  { %4314 = vrot.lane.b32.xlu1 %v8168_v39, %s6455_s0 }
 0x36a   :  { %4316 = vrot.lane.b32.xlu2 %v8191_v52, %s6455_s0  ;;  %4664 = vrot.lane.b32.xlu0 %v8114_v20, %s6456_s14 }
 0x36b   :  { %4283 = vrot.lane.b32.xlu1 %v8191_v52, %s6454_s9 }
 0x372   :  { %4668 = vrot.lane.b32.xlu2 %v8151_v14, %s6456_s14  ;;  %4662 = vrot.lane.b32.xlu0 %v8170_v38, %s6456_s14 }
 0x373   :  { %4666 = vrot.lane.b32.xlu1 %v8149_v12, %s6456_s14 }
 0x37a   :  { %4674 = vrot.lane.b32.xlu2 %v8168_v39, %s6456_s14  ;;  %4676 = vrot.lane.b32.xlu0 %v8191_v52, %s6456_s14 }
 0x37b   :  { %4672 = vrot.lane.b32.xlu1 %v8128_v35, %s6456_s14 }
 0x382   :  { %4277 = vrot.lane.b32.xlu2 %v8182_v54, %s6454_s9  ;;  %4871 = vrot.lane.b32.xlu0 %v8149_v12, %s6457_s15 }
 0x383   :  { %4873 = vrot.lane.b32.xlu1 %v8151_v14, %s6457_s15 }
 0x38a   :  { %4869 = vrot.lane.b32.xlu2 %v8114_v20, %s6457_s15  ;;  %4877 = vrot.lane.b32.xlu0 %v8128_v35, %s6457_s15 }
 0x38b   :  { %4670 = vrot.lane.b32.xlu1 %v8182_v54, %s6456_s14 }
 0x392   :  { %4867 = vrot.lane.b32.xlu2 %v8170_v38, %s6457_s15  ;;  %4875 = vrot.lane.b32.xlu0 %v8182_v54, %s6457_s15 }
 0x393   :  { %4879 = vrot.lane.b32.xlu1 %v8168_v39, %s6457_s15 }
 0x39a   :  { %4881 = vrot.lane.b32.xlu2 %v8191_v52, %s6457_s15  ;;  %5265 = vrot.lane.b32.xlu0 %v8168_v39, %s6458_s16 }
 0x39b   :  { %5257 = vrot.lane.b32.xlu1 %v8149_v12, %s6458_s16 }
 0x3a2   :  { %5259 = vrot.lane.b32.xlu2 %v8151_v14, %s6458_s16  ;;  %5462 = vrot.lane.b32.xlu0 %v8149_v12, %s6459_s17 }
 0x3a3   :  { %5255 = vrot.lane.b32.xlu1 %v8114_v20, %s6458_s16 }
 0x3a4   :  { %v8241_v16 = vpop.permute.xlu2 %4279 }
 0x3aa   :  { %5253 = vrot.lane.b32.xlu2 %v8170_v38, %s6458_s16  ;;  %5261 = vrot.lane.b32.xlu0 %v8182_v54, %s6458_s16 }
 0x3ab   :  { %5267 = vrot.lane.b32.xlu1 %v8191_v52, %s6458_s16 }
 0x3ac   :  { %v4307_v33 = vpop.permute.xlu2 %4306 }
 0x3b2   :  { %5263 = vrot.lane.b32.xlu2 %v8128_v35, %s6458_s16  ;;  %5460 = vrot.lane.b32.xlu0 %v8114_v20, %s6459_s17 }
 0x3b3   :  { %5464 = vrot.lane.b32.xlu1 %v8151_v14, %s6459_s17 }
 0x3b4   :  { %v4274_v49 = vpop.permute.xlu2 %4273  ;;  %v4305_v31 = vpop.permute.xlu1 %4304 }
 0x3b5   :  { %v4323_v30 = vsel %vm143_vm3, %v4305_v31, %v4307_v33 }
 0x3b6   :  { %v4328_v34 = vmul.f32 %v4323_v30, %v8999_v0 }
 0x3b8   :  { %4394 = vmatpush.msra.mxu2 %v4328_v34  ;;  %v9011_v34 = vld [vmem:[#allocation20_spill] sm:$0xff] }
 0x3b9   :  { %6366 = vmatmul.msk.f32.vlgmr.msra.gmra.mxu2 %vm2501_vm12, %v6363_v58 }
 0x3ba   :  { %5470 = vrot.lane.b32.xlu2 %v8168_v39, %s6459_s17  ;;  %5472 = vrot.lane.b32.xlu0 %v8191_v52, %s6459_s17 }
 0x3bb   :  { %5458 = vrot.lane.b32.xlu1 %v8170_v38, %s6459_s17 }
 0x3bc   :  { %v4313_v8 = vpop.permute.xlu0 %4312  ;;  %v4303_v47 = vpop.permute.xlu2 %4302 }
 0x3bd   :  { %v4272_v27 = vpop.permute.xlu1 %4271  ;;  %v4324_v50 = vsel %vm143_vm3, %v4303_v47, %v4305_v31 }
 0x3be   :  { %v4327_v13 = vmul.f32 %v4324_v50, %v9000_v15  ;;  %v4290_v29 = vsel %vm70_vm5, %v4272_v27, %v4274_v49  ;;  %v4301_v50 = vld [vmem:[%s8668_s6] sm:$0x3] }
 0x3bf   :  { %v4295_v40 = vmul.f32 %v4290_v29, %v9007_v28  ;;  %v9014_v15 = vld [vmem:[#allocation25_spill] sm:$0xff]  ;;  %v9019_v29 = vld [vmem:[#allocation31_spill] sm:$0xff] }
 0x3c0   :  { %4374 = vmatpush.msra.mxu1 %v4327_v13 }
 0x3c1   :  { %6365 = vmatmul.msk.f32.vlgmr.msra.gmra.mxu1 %vm2501_vm12, %v6363_v58 }
 0x3c2   :  { %5466 = vrot.lane.b32.xlu2 %v8182_v54, %s6459_s17  ;;  %5669 = vrot.lane.b32.xlu0 %v8151_v14, %s6460_s26 }
 0x3c3   :  { %5468 = vrot.lane.b32.xlu1 %v8128_v35, %s6459_s17 }
 0x3c4   :  { %v4276_v44 = vpop.permute.xlu0 %4275  ;;  %v4317_v21 = vpop.permute.xlu2 %4316 }
 0x3c5   :  { %v4309_v5 = vpop.permute.xlu1 %4308  ;;  %v4325_v2 = vsel %vm143_vm3, %v4317_v21, %v4303_v47  ;;  %v4289_v45 = vsel %vm70_vm5, %v4274_v49, %v4276_v44  ;;  %v9013_v47 = vld [vmem:[#allocation26_spill] sm:$0xff] }
 0x3c6   :  { %v4322_v46 = vsel %vm143_vm3, %v4307_v33, %v4309_v5  ;;  %v4326_v24 = vmul.f32 %v4325_v2, %v9001_v37  ;;  %v4296_v1 = vmul.f32 %v4289_v45, %v9009_v17 }
 0x3c7   :  { %v4329_v9 = vmul.f32 %v4322_v46, %v9002_v4 }
 0x3c8   :  { %4354 = vmatpush.msra.mxu0 %v4326_v24  ;;  %v9015_v24 = vld [vmem:[#allocation30_spill] sm:$0xff] }
 0x3c9   :  { %4414 = vmatpush.msra.mxu3 %v4329_v9  ;;  %6364 = vmatmul.msk.f32.vlgmr.msra.gmra.mxu0 %vm2501_vm12, %v6363_v58  ;;  %v9016_v9 = vld [vmem:[#allocation27_spill] sm:$0xff] }
 0x3ca   :  { %5667 = vrot.lane.b32.xlu2 %v8149_v12, %s6460_s26  ;;  %5663 = vrot.lane.b32.xlu0 %v8170_v38, %s6460_s26 }
 0x3cb   :  { %5675 = vrot.lane.b32.xlu1 %v8168_v39, %s6460_s26  ;;  %6367 = vmatmul.msk.f32.vlgmr.msra.gmra.mxu3 %vm2501_vm12, %v6363_v58 }
 0x3cc   :  { %v4282_v7 = vpop.permute.xlu0 %4281  ;;  %v8292_v42 = vpop.permute.xlu2 %4668 }
 0x3cd   :  { %v4270_v36 = vpop.permute.xlu1 %4269  ;;  %v4286_v10 = vsel %vm70_vm5, %v8241_v16, %v4282_v7 }
 0x3ce   :  { %v4291_v62 = vsel %vm70_vm5, %v4270_v36, %v4272_v27  ;;  %v4299_v19 = vmul.f32 %v4286_v10, %v9010_v18 }
 0x3cf   :  { %v4294_v63 = vmul.f32 %v4291_v62, %v9008_v61 }
 0x3d2   :  { %5665 = vrot.lane.b32.xlu2 %v8114_v20, %s6460_s26  ;;  %5673 = vrot.lane.b32.xlu0 %v8128_v35, %s6460_s26 }
 0x3d3   :  { %5671 = vrot.lane.b32.xlu1 %v8182_v54, %s6460_s26 }
 0x3d4   :  { %v8300_v6 = vpop.permute.xlu2 %4674  ;;  %v4311_v43 = vpop.permute.xlu0 %4310 }
 0x3d5   :  { %v4315_v22 = vpop.permute.xlu1 %4314  ;;  %v4320_v48 = vsel %vm143_vm3, %v4311_v43, %v4313_v8  ;;  %v4321_v23 = vsel %vm143_vm3, %v4309_v5, %v4311_v43 }
 0x3d6   :  { %v4318_v59 = vsel %vm143_vm3, %v4315_v22, %v4317_v21  ;;  %v4319_v56 = vsel %vm143_vm3, %v4313_v8, %v4315_v22  ;;  %v4330_v57 = vmul.f32 %v4321_v23, %v9003_v11  ;;  %v4331_v32 = vmul.f32 %v4320_v48, %v9004_v26  ;;  %v6073_v22 = vld [vmem:[%s8669_s7] sm:$0x3]  ;;  %v9018_v26 = vld [vmem:[#allocation32_spill] sm:$0xff] }
 0x3d7   :  { %v4332_v60 = vmul.f32 %v4319_v56, %v9005_v41  ;;  %v4333_v3 = vmul.f32 %v4318_v59, %v9006_v55  ;;  %v9020_v41 = vld [vmem:[#allocation33_spill] sm:$0xff] }
 0x3d8   :  { %4434 = vmatpush.msrb.mxu0 %v4330_v57  ;;  %4454 = vmatpush.msrb.mxu1 %v4331_v32  ;;  %v6380_v55 = vld [vmem:[%s8668_s6 + $0x4] sm:$0x3] }
 0x3d9   :  { %4474 = vmatpush.msrb.mxu2 %v4332_v60  ;;  %4494 = vmatpush.msrb.mxu3 %v4333_v3 }
 0x3da   :  { %6368 = vmatmul.msk.f32.vlgmr.msrb.gmra.mxu0 %vm2501_vm12, %v6363_v58  ;;  %6369 = vmatmul.msk.f32.vlgmr.msrb.gmra.mxu1 %vm2501_vm12, %v6363_v58 }
 0x3db   :  { %6370 = vmatmul.msk.f32.vlgmr.msrb.gmra.mxu2 %vm2501_vm12, %v6363_v58  ;;  %6371 = vmatmul.msk.f32.vlgmr.msrb.gmra.mxu3 %vm2501_vm12, %v6363_v58  ;;  %v9012_v58 = vld [vmem:[#allocation24_spill] sm:$0xff] }
 0x3dc   :  { %4537 = vmatpush.msra.mxu1 %v4294_v63  ;;  %4557 = vmatpush.msra.mxu2 %v4295_v40  ;;  %v4278_v51 = vpop.permute.xlu2 %4277  ;;  %v4665_v25 = vpop.permute.xlu0 %4664  ;;  %v9021_v40 = vld [vmem:[#allocation36_spill] sm:$0xff]  ;;  %v9022_v63 = vld [vmem:[#allocation35_spill] sm:$0xff] }
 0x3dd   :  { %4577 = vmatpush.msra.mxu3 %v4296_v1  ;;  %v4284_v33 = vpop.permute.xlu1 %4283  ;;  %v4287_v49 = vsel %vm70_vm5, %v4278_v51, %v8241_v16  ;;  %v4288_v31 = vsel %vm70_vm5, %v4276_v44, %v4278_v51  ;;  %5872 = vrot.lane.b32.xlu1 %v8149_v12, %s6461_s29 }
 0x3de   :  { %4637 = vmatpush.msrb.mxu2 %v4299_v19  ;;  %5677 = vrot.lane.b32.xlu2 %v8191_v52, %s6460_s26  ;;  %v4285_v30 = vsel %vm70_vm5, %v4282_v7, %v4284_v33  ;;  %v4292_v0 = vsel %vm70_vm5, %v4284_v33, %v4270_v36  ;;  %v4298_v27 = vmul.f32 %v4287_v49, %v9013_v47  ;;  %v9017_v36 = vld [vmem:[#allocation28_spill] sm:$0xff] }
 0x3df   :  { %5876 = vrot.lane.b32.xlu0 %v8182_v54, %s6461_s29  ;;  %v4293_v16 = vmul.f32 %v4292_v0, %v9011_v34  ;;  %v4300_v8 = vmul.f32 %v4285_v30, %v9012_v58  ;;  %v4297_v13 = vmul.f32 %v4288_v31, %v9014_v15  ;;  %v9023_v31 = vld [vmem:[#allocation34_spill] sm:$0xff]  ;;  %v9024_v0 = vld [vmem:[#allocation29_spill] sm:$0xff] }
 0x3e0   :  { %4617 = vmatpush.msrb.mxu1 %v4298_v27  ;;  %v6389_v27 = vld [vmem:[%s8668_s6 + $0x6] sm:$0x3] }
 0x3e1   :  { %4517 = vmatpush.msra.mxu0 %v4293_v16  ;;  %4657 = vmatpush.msrb.mxu3 %v4300_v8  ;;  %v9025_v16 = vld [vmem:[#allocation38_spill] sm:$0xff]  ;;  %v9026_v8 = vld [vmem:[#allocation41_spill] sm:$0xff] }
 0x3e2   :  { %6372 = vmatmul.msk.f32.vlgmr.msra.gmra.mxu0 %vm2501_vm12, %v4301_v50  ;;  %6373 = vmatmul.msk.f32.vlgmr.msra.gmra.mxu1 %vm2501_vm12, %v4301_v50 }
 0x3e3   :  { %6374 = vmatmul.msk.f32.vlgmr.msra.gmra.mxu2 %vm2501_vm12, %v4301_v50  ;;  %6375 = vmatmul.msk.f32.vlgmr.msra.gmra.mxu3 %vm2501_vm12, %v4301_v50 }
 0x3e4   :  { %4597 = vmatpush.msrb.mxu0 %v4297_v13  ;;  %v4870_v44 = vpop.permute.xlu2 %4869  ;;  %v4663_v21 = vpop.permute.xlu0 %4662 }
 0x3e5   :  { %v4667_v5 = vpop.permute.xlu1 %4666  ;;  %v4684_v2 = vsel %vm594_vm6, %v4663_v21, %v4665_v25  ;;  %5870 = vrot.lane.b32.xlu1 %v8114_v20, %s6461_s29 }
 0x3e6   :  { %5874 = vrot.lane.b32.xlu2 %v8151_v14, %s6461_s29  ;;  %v4682_v46 = vsel %vm594_vm6, %v4667_v5, %v8292_v42  ;;  %v4683_v37 = vsel %vm594_vm6, %v4665_v25, %v4667_v5  ;;  %v4687_v4 = vmul.f32 %v4684_v2, %v9015_v24  ;;  %v9027_v2 = vld [vmem:[#allocation39_spill] sm:$0xff] }
 0x3e7   :  { %5880 = vrot.lane.b32.xlu0 %v8168_v39, %s6461_s29  ;;  %v4688_v7 = vmul.f32 %v4683_v37, %v9016_v9  ;;  %v4689_v43 = vmul.f32 %v4682_v46, %v9017_v36  ;;  %v9028_v37 = vld [vmem:[#allocation40_spill] sm:$0xff] }
 0x3e8   :  { %4734 = vmatpush.msra.mxu1 %v4687_v4  ;;  %v9029_v4 = vld [vmem:[#allocation37_spill] sm:$0xff] }
 0x3e9   :  { %4754 = vmatpush.msra.mxu2 %v4688_v7  ;;  %4774 = vmatpush.msra.mxu3 %v4689_v43  ;;  %v9030_v7 = vld [vmem:[#allocation42_spill] sm:$0xff]  ;;  %v9031_v43 = vld [vmem:[#allocation8_spill] sm:$0xff] }
 0x3ea   :  { %6376 = vmatmul.msk.f32.vlgmr.msrb.gmra.mxu0 %vm2501_vm12, %v4301_v50  ;;  %6377 = vmatmul.msk.f32.vlgmr.msrb.gmra.mxu1 %vm2501_vm12, %v4301_v50 }
 0x3eb   :  { %6378 = vmatmul.msk.f32.vlgmr.msrb.gmra.mxu2 %vm2501_vm12, %v4301_v50  ;;  %6379 = vmatmul.msk.f32.vlgmr.msrb.gmra.mxu3 %vm2501_vm12, %v4301_v50 }
 0x3ec   :  { %v4868_v48 = vpop.permute.xlu2 %4867  ;;  %v4677_v23 = vpop.permute.xlu0 %4676 }
 0x3ed   :  { %v4673_v59 = vpop.permute.xlu1 %4672  ;;  %v4678_v56 = vsel %vm594_vm6, %v8300_v6, %v4677_v23  ;;  %v4685_v11 = vsel %vm594_vm6, %v4677_v23, %v4663_v21  ;;  %5882 = vrot.lane.b32.xlu1 %v8191_v52, %s6461_s29  ;;  %v4889_v51 = vsel %vm864_vm7, %v4868_v48, %v4870_v44 }
 0x3ee   :  { %5868 = vrot.lane.b32.xlu2 %v8170_v38, %s6461_s29  ;;  %v4679_v57 = vsel %vm594_vm6, %v4673_v59, %v8300_v6  ;;  %v4686_v32 = vmul.f32 %v4685_v11, %v9018_v26  ;;  %v4693_v60 = vmul.f32 %v4678_v56, %v9020_v41  ;;  %v4892_v58 = vmul.f32 %v4889_v51, %v9025_v16  ;;  %v9034_v11 = vld [vmem:[#allocation4_spill] sm:$0xff]  ;;  %v9043_v16 = vld [vmem:[#allocation46_spill] sm:$0xff] }
 0x3ef   :  { %6076 = vperm.xlu0 %6453, %v6073_v22   ;;  %v4692_v62 = vmul.f32 %v4679_v57, %v9019_v29  ;;  %v5072_v22 = vmul.f32 %v8170_v38, %v9031_v43  ;;  %v5075_v57 = vmul.f32 %v8151_v14, %v9034_v11  ;;  %v9035_v38 = vld [vmem:[#allocation6_spill] sm:$0xff]  ;;  %v9037_v14 = vld [vmem:[#allocation43_spill] sm:$0xff]  ;;  %v9050_v11 = vld [vmem:[#allocation56_spill] sm:$0xff] }
 0x3f0   :  { %4714 = vmatpush.msra.mxu0 %v4686_v32  ;;  %4854 = vmatpush.msrb.mxu3 %v4693_v60  ;;  %v5078_v26 = vmul.f32 %v8168_v39, %v9035_v38  ;;  %v6398_v39 = vld [vmem:[%s8668_s6 + $0x8] sm:$0x3]  ;;  %v9051_v38 = vld [vmem:[#allocation53_spill] sm:$0xff] }
 0x3f1   :  { %4834 = vmatpush.msrb.mxu2 %v4692_v62 }
 0x3f2   :  { %6381 = vmatmul.msk.f32.vlgmr.msra.gmra.mxu0 %vm2501_vm12, %v6380_v55  ;;  %6382 = vmatmul.msk.f32.vlgmr.msra.gmra.mxu1 %vm2501_vm12, %v6380_v55 }
 0x3f3   :  { %6383 = vmatmul.msk.f32.vlgmr.msra.gmra.mxu2 %vm2501_vm12, %v6380_v55  ;;  %6384 = vmatmul.msk.f32.vlgmr.msra.gmra.mxu3 %vm2501_vm12, %v6380_v55 }
 0x3f4   :  { %v4882_v6 = vpop.permute.xlu2 %4881  ;;  %v4872_v3 = vpop.permute.xlu0 %4871 }
 0x3f5   :  { %v4874_v45 = vpop.permute.xlu1 %4873  ;;  %v4888_v10 = vsel %vm864_vm7, %v4870_v44, %v4872_v3  ;;  %v4890_v25 = vsel %vm864_vm7, %v4882_v6, %v4868_v48  ;;  %v9032_v48 = vld [vmem:[#allocation2_spill] sm:$0xff] }
 0x3f6   :  { %5878 = vrot.lane.b32.xlu2 %v8128_v35, %s6461_s29  ;;  %v4887_v28 = vsel %vm864_vm7, %v4872_v3, %v4874_v45  ;;  %v4893_v61 = vmul.f32 %v4888_v10, %v9021_v40  ;;  %v4891_v47 = vmul.f32 %v4890_v25, %v9026_v8  ;;  %v5073_v23 = vmul.f32 %v8114_v20, %v9032_v48  ;;  %v9036_v20 = vld [vmem:[#allocation7_spill] sm:$0xff]  ;;  %v9044_v8 = vld [vmem:[#allocation48_spill] sm:$0xff] }
 0x3f7   :  { %v4894_v17 = vmul.f32 %v4887_v28, %v9022_v63  ;;  %v5079_v32 = vmul.f32 %v8191_v52, %v9036_v20  ;;  %v9040_v40 = vld [vmem:[#allocation47_spill] sm:$0xff]  ;;  %v9041_v63 = vld [vmem:[#allocation45_spill] sm:$0xff] }
 0x3f8   :  { %4959 = vmatpush.msra.mxu2 %v4893_v61  ;;  %v9052_v20 = vld [vmem:[#allocation57_spill] sm:$0xff] }
 0x3f9   :  { %4979 = vmatpush.msra.mxu3 %v4894_v17 }
 0x3fb   :  { %6387 = vmatmul.msk.f32.vlgmr.msrb.gmra.mxu2 %vm2501_vm12, %v6380_v55  ;;  %6388 = vmatmul.msk.f32.vlgmr.msrb.gmra.mxu3 %vm2501_vm12, %v6380_v55 }
 0x3fc   :  { %v8412_v1 = vpop.permute.xlu2 %5259  ;;  %v4878_v18 = vpop.permute.xlu0 %4877 }
 0x3fd   :  { %v4671_v19 = vpop.permute.xlu1 %4670 }
 0x3fe   :  { %v4680_v33 = vsel %vm594_vm6, %v4671_v19, %v4673_v59  ;;  %v4681_v49 = vsel %vm594_vm6, %v8292_v42, %v4671_v19  ;;  %v9033_v59 = vld [vmem:[#allocation3_spill] sm:$0xff] }
 0x3ff   :  { %v4690_v30 = vmul.f32 %v4681_v49, %v9023_v31  ;;  %v4691_v34 = vmul.f32 %v4680_v33, %v9024_v0  ;;  %v5074_v56 = vmul.f32 %v8149_v12, %v9033_v59  ;;  %v9042_v0 = vld [vmem:[#allocation44_spill] sm:$0xff] }
 0x401   :  { %4794 = vmatpush.msrb.mxu0 %v4690_v30  ;;  %4814 = vmatpush.msrb.mxu1 %v4691_v34 }
 0x402   :  { %6385 = vmatmul.msk.f32.vlgmr.msrb.gmra.mxu0 %vm2501_vm12, %v6380_v55  ;;  %6386 = vmatmul.msk.f32.vlgmr.msrb.gmra.mxu1 %vm2501_vm12, %v6380_v55  ;;  %v9038_v55 = vld [vmem:[#allocation9_spill] sm:$0xff] }
 0x403   :  { %4919 = vmatpush.msra.mxu0 %v4891_v47  ;;  %4939 = vmatpush.msra.mxu1 %v4892_v58  ;;  %v5076_v52 = vmul.f32 %v8182_v54, %v9038_v55  ;;  %v9053_v55 = vld [vmem:[#allocation60_spill] sm:$0xff] }
 0x404   :  { %6392 = vmatmul.msk.f32.vlgmr.msra.gmra.mxu2 %vm2501_vm12, %v6389_v27  ;;  %6393 = vmatmul.msk.f32.vlgmr.msra.gmra.mxu3 %vm2501_vm12, %v6389_v27  ;;  %v8434_v42 = vpop.permute.xlu2 %5253  ;;  %v4876_v50 = vpop.permute.xlu0 %4875 }
 0x405   :  { %v4880_v15 = vpop.permute.xlu1 %4879  ;;  %v4885_v13 = vsel %vm864_vm7, %v4876_v50, %v4878_v18  ;;  %v4886_v44 = vsel %vm864_vm7, %v4874_v45, %v4876_v50 }
 0x406   :  { %v4883_v21 = vsel %vm864_vm7, %v4880_v15, %v4882_v6  ;;  %v4884_v5 = vsel %vm864_vm7, %v4878_v18, %v4880_v15  ;;  %v4895_v46 = vmul.f32 %v4886_v44, %v9027_v2  ;;  %v4896_v24 = vmul.f32 %v4885_v13, %v9028_v37  ;;  %v9039_v6 = vld [vmem:[#allocation5_spill] sm:$0xff]  ;;  %v6407_v13 = vld [vmem:[%s8668_s6 + $0xa] sm:$0x3]  ;;  %v9047_v37 = vld [vmem:[#allocation51_spill] sm:$0xff] }
 0x407   :  { %v4897_v9 = vmul.f32 %v4884_v5, %v9029_v4  ;;  %v4898_v36 = vmul.f32 %v4883_v21, %v9030_v7  ;;  %v5077_v3 = vmul.f32 %v8128_v35, %v9039_v6  ;;  %v9048_v4 = vld [vmem:[#allocation52_spill] sm:$0xff]  ;;  %v9049_v7 = vld [vmem:[#allocation54_spill] sm:$0xff] }
 0x408   :  { %4999 = vmatpush.msrb.mxu0 %v4895_v46  ;;  %5019 = vmatpush.msrb.mxu1 %v4896_v24  ;;  %v9054_v6 = vld [vmem:[#allocation58_spill] sm:$0xff] }
 0x409   :  { %5039 = vmatpush.msrb.mxu2 %v4897_v9  ;;  %5059 = vmatpush.msrb.mxu3 %v4898_v36 }
 0x40a   :  { %6390 = vmatmul.msk.f32.vlgmr.msra.gmra.mxu0 %vm2501_vm12, %v6389_v27  ;;  %6391 = vmatmul.msk.f32.vlgmr.msra.gmra.mxu1 %vm2501_vm12, %v6389_v27 }
 0x40b   :  { %5100 = vmatpush.msra.mxu0 %v5072_v22  ;;  %5120 = vmatpush.msra.mxu1 %v5073_v23 }
 0x40c   :  { %6396 = vmatmul.msk.f32.vlgmr.msrb.gmra.mxu2 %vm2501_vm12, %v6389_v27  ;;  %6397 = vmatmul.msk.f32.vlgmr.msrb.gmra.mxu3 %vm2501_vm12, %v6389_v27  ;;  %v5264_v29 = vpop.permute.xlu2 %5263  ;;  %v5266_v62 = vpop.permute.xlu0 %5265 }
 0x40d   :  { %5140 = vmatpush.msra.mxu2 %v5074_v56  ;;  %5160 = vmatpush.msra.mxu3 %v5075_v57  ;;  %v5258_v41 = vpop.permute.xlu1 %5257  ;;  %v5270_v49 = vsel %vm1367_vm8, %v5264_v29, %v5266_v62 }
 0x40e   :  { %v5273_v12 = vsel %vm1367_vm8, %v5258_v41, %v8412_v1 }
 0x40f   :  { %5220 = vmatpush.msrb.mxu2 %v5078_v26  ;;  %5240 = vmatpush.msrb.mxu3 %v5079_v32  ;;  %v5279_v60 = vmul.f32 %v5273_v12, %v9037_v14 }
 0x412   :  { %6394 = vmatmul.msk.f32.vlgmr.msrb.gmra.mxu0 %vm2501_vm12, %v6389_v27  ;;  %6395 = vmatmul.msk.f32.vlgmr.msrb.gmra.mxu1 %vm2501_vm12, %v6389_v27  ;;  %v9045_v27 = vld [vmem:[#allocation49_spill] sm:$0xff] }
 0x413   :  { %5180 = vmatpush.msrb.mxu0 %v5076_v52  ;;  %5200 = vmatpush.msrb.mxu1 %v5077_v3 }
 0x414   :  { %6401 = vmatmul.msk.f32.vlgmr.msra.gmra.mxu2 %vm2501_vm12, %v6398_v39  ;;  %6402 = vmatmul.msk.f32.vlgmr.msra.gmra.mxu3 %vm2501_vm12, %v6398_v39  ;;  %v8479_v45 = vpop.permute.xlu2 %5470  ;;  %v5463_v10 = vpop.permute.xlu0 %5462 }
 0x415   :  { %5345 = vmatpush.msra.mxu2 %v5279_v60  ;;  %v5256_v28 = vpop.permute.xlu1 %5255 }
 0x416   :  { %v5274_v54 = vsel %vm1367_vm8, %v5256_v28, %v5258_v41  ;;  %v5275_v35 = vsel %vm1367_vm8, %v8434_v42, %v5256_v28 }
 0x417   :  { %v5277_v61 = vmul.f32 %v5275_v35, %v9040_v40  ;;  %v5278_v17 = vmul.f32 %v5274_v54, %v9041_v63  ;;  %v9056_v35 = vld [vmem:[#allocation61_spill] sm:$0xff] }
 0x41a   :  { %6399 = vmatmul.msk.f32.vlgmr.msra.gmra.mxu0 %vm2501_vm12, %v6398_v39  ;;  %6400 = vmatmul.msk.f32.vlgmr.msra.gmra.mxu1 %vm2501_vm12, %v6398_v39 }
 0x41b   :  { %5305 = vmatpush.msra.mxu0 %v5277_v61  ;;  %5325 = vmatpush.msra.mxu1 %v5278_v17 }
 0x41c   :  { %6405 = vmatmul.msk.f32.vlgmr.msrb.gmra.mxu2 %vm2501_vm12, %v6398_v39  ;;  %6406 = vmatmul.msk.f32.vlgmr.msrb.gmra.mxu3 %vm2501_vm12, %v6398_v39  ;;  %v5467_v18 = vpop.permute.xlu2 %5466  ;;  %v5262_v19 = vpop.permute.xlu0 %5261 }
 0x41d   :  { %v5268_v51 = vpop.permute.xlu1 %5267  ;;  %v5271_v25 = vsel %vm1367_vm8, %v5262_v19, %v5264_v29  ;;  %v5272_v33 = vsel %vm1367_vm8, %v8412_v1, %v5262_v19  ;;  %v9046_v1 = vld [vmem:[#allocation50_spill] sm:$0xff] }
 0x41e   :  { %v5269_v31 = vsel %vm1367_vm8, %v5266_v62, %v5268_v51  ;;  %v5276_v30 = vsel %vm1367_vm8, %v5268_v51, %v8434_v42  ;;  %v5280_v34 = vmul.f32 %v5272_v33, %v9042_v0  ;;  %v5281_v50 = vmul.f32 %v5271_v25, %v9045_v27  ;;  %v6416_v29 = vld [vmem:[%s8668_s6 + $0xc] sm:$0x3]  ;;  %v9058_v51 = vld [vmem:[#allocation63_spill] sm:$0xff]  ;;  %v6425_v33 = vld [vmem:[%s8668_s6 + $0xe] sm:$0x3] }
 0x41f   :  { %v5283_v58 = vmul.f32 %v5269_v31, %v9043_v16  ;;  %v5284_v47 = vmul.f32 %v5276_v30, %v9044_v8  ;;  %v5282_v15 = vmul.f32 %v5270_v49, %v9046_v1  ;;  %v9060_v27 = vld [vmem:[#allocation59_spill] sm:$0xff]  ;;  %v9061_v1 = vld [vmem:[#allocation65_spill] sm:$0xff] }
 0x420   :  { %5365 = vmatpush.msra.mxu3 %v5280_v34 }
 0x421   :  { %5425 = vmatpush.msrb.mxu2 %v5283_v58  ;;  %v9059_v58 = vld [vmem:[#allocation66_spill] sm:$0xff] }
 0x422   :  { %5445 = vmatpush.msrb.mxu3 %v5284_v47  ;;  %6403 = vmatmul.msk.f32.vlgmr.msrb.gmra.mxu0 %vm2501_vm12, %v6398_v39 }
 0x423   :  { %6404 = vmatmul.msk.f32.vlgmr.msrb.gmra.mxu1 %vm2501_vm12, %v6398_v39  ;;  %5385 = vmatpush.msrb.mxu0 %v5281_v50 }
 0x424   :  { %5405 = vmatpush.msrb.mxu1 %v5282_v15  ;;  %6410 = vmatmul.msk.f32.vlgmr.msra.gmra.mxu2 %vm2501_vm12, %v6407_v13  ;;  %v5668_v42 = vpop.permute.xlu2 %5667  ;;  %v5461_v44 = vpop.permute.xlu0 %5460 }
 0x425   :  { %6411 = vmatmul.msk.f32.vlgmr.msra.gmra.mxu3 %vm2501_vm12, %v6407_v13  ;;  %v5465_v21 = vpop.permute.xlu1 %5464  ;;  %v5479_v5 = vsel %vm1637_vm9, %v5461_v44, %v5463_v10 }
 0x426   :  { %v5477_v2 = vsel %vm1637_vm9, %v5465_v21, %v5467_v18  ;;  %v5478_v46 = vsel %vm1637_vm9, %v5463_v10, %v5465_v21  ;;  %v5483_v36 = vmul.f32 %v5479_v5, %v9049_v7  ;;  %v9055_v10 = vld [vmem:[#allocation55_spill] sm:$0xff] }
 0x427   :  { %v5484_v24 = vmul.f32 %v5478_v46, %v9047_v37  ;;  %v5485_v9 = vmul.f32 %v5477_v2, %v9048_v4  ;;  %v6434_v7 = vld [vmem:[%s8668_s6 + $0x10] sm:$0x3] }
 0x429   :  { %5550 = vmatpush.msra.mxu2 %v5484_v24  ;;  %5570 = vmatpush.msra.mxu3 %v5485_v9  ;;  %v9063_v24 = vld [vmem:[#allocation68_spill] sm:$0xff] }
 0x42a   :  { %6408 = vmatmul.msk.f32.vlgmr.msra.gmra.mxu0 %vm2501_vm12, %v6407_v13 }
 0x42b   :  { %6409 = vmatmul.msk.f32.vlgmr.msra.gmra.mxu1 %vm2501_vm12, %v6407_v13 }
 0x42c   :  { %5530 = vmatpush.msra.mxu1 %v5483_v36  ;;  %6414 = vmatmul.msk.f32.vlgmr.msrb.gmra.mxu2 %vm2501_vm12, %v6407_v13  ;;  %v5473_v43 = vpop.permute.xlu0 %5472  ;;  %v5666_v59 = vpop.permute.xlu2 %5665  ;;  %v9064_v36 = vld [vmem:[#allocation69_spill] sm:$0xff] }
 0x42d   :  { %6415 = vmatmul.msk.f32.vlgmr.msrb.gmra.mxu3 %vm2501_vm12, %v6407_v13  ;;  %v5459_v22 = vpop.permute.xlu1 %5458  ;;  %v5474_v48 = vsel %vm1637_vm9, %v8479_v45, %v5473_v43  ;;  %v5684_v14 = vsel %vm1907_vm10, %v5666_v59, %v5668_v42 }
 0x42e   :  { %v5480_v23 = vsel %vm1637_vm9, %v5459_v22, %v5461_v44  ;;  %v5481_v56 = vsel %vm1637_vm9, %v5473_v43, %v5459_v22  ;;  %v5488_v57 = vmul.f32 %v5474_v48, %v9050_v11  ;;  %v5688_v40 = vmul.f32 %v5684_v14, %v9056_v35  ;;  %v9067_v14 = vld [vmem:[#allocation74_spill] sm:$0xff] }
 0x42f   :  { %v5482_v26 = vmul.f32 %v5480_v23, %v9051_v38  ;;  %v5489_v32 = vmul.f32 %v5481_v56, %v9052_v20 }
 0x430   :  { %5630 = vmatpush.msrb.mxu2 %v5488_v57 }
 0x431   :  { %5510 = vmatpush.msra.mxu0 %v5482_v26  ;;  %5650 = vmatpush.msrb.mxu3 %v5489_v32  ;;  %v9065_v32 = vld [vmem:[#allocation71_spill] sm:$0xff] }
 0x432   :  { %6412 = vmatmul.msk.f32.vlgmr.msrb.gmra.mxu0 %vm2501_vm12, %v6407_v13 }
 0x433   :  { %6413 = vmatmul.msk.f32.vlgmr.msrb.gmra.mxu1 %vm2501_vm12, %v6407_v13  ;;  %v9062_v13 = vld [vmem:[#allocation64_spill] sm:$0xff] }
 0x434   :  { %6419 = vmatmul.msk.f32.vlgmr.msra.gmra.mxu2 %vm2501_vm12, %v6416_v29  ;;  %v5670_v62 = vpop.permute.xlu0 %5669 }
 0x435   :  { %6420 = vmatmul.msk.f32.vlgmr.msra.gmra.mxu3 %vm2501_vm12, %v6416_v29  ;;  %v5469_v41 = vpop.permute.xlu1 %5468  ;;  %v5683_v12 = vsel %vm1907_vm10, %v5668_v42, %v5670_v62 }
 0x436   :  { %v5475_v60 = vsel %vm1637_vm9, %v5469_v41, %v8479_v45  ;;  %v5476_v39 = vsel %vm1637_vm9, %v5467_v18, %v5469_v41  ;;  %v5689_v52 = vmul.f32 %v5683_v12, %v9053_v55  ;;  %v9057_v18 = vld [vmem:[#allocation62_spill] sm:$0xff] }
 0x437   :  { %v5486_v3 = vmul.f32 %v5476_v39, %v9054_v6  ;;  %v5487_v28 = vmul.f32 %v5475_v60, %v9055_v10  ;;  %v9068_v39 = vld [vmem:[#allocation73_spill] sm:$0xff] }
 0x438   :  { %v5678_v54 = vpop.permute.xlu2 %5677  ;;  %5755 = vmatpush.msra.mxu2 %v5689_v52 }
 0x439   :  { %5590 = vmatpush.msrb.mxu0 %v5486_v3  ;;  %5610 = vmatpush.msrb.mxu1 %v5487_v28 }
 0x43a   :  { %6417 = vmatmul.msk.f32.vlgmr.msra.gmra.mxu0 %vm2501_vm12, %v6416_v29 }
 0x43b   :  { %6418 = vmatmul.msk.f32.vlgmr.msra.gmra.mxu1 %vm2501_vm12, %v6416_v29 }
 0x43c   :  { %5735 = vmatpush.msra.mxu1 %v5688_v40  ;;  %6423 = vmatmul.msk.f32.vlgmr.msrb.gmra.mxu2 %vm2501_vm12, %v6416_v29  ;;  %v5664_v45 = vpop.permute.xlu0 %5663  ;;  %v4396_v22 = vpop.f32.mrf.mxu2 }
 0x43d   :  { %6424 = vmatmul.msk.f32.vlgmr.msrb.gmra.mxu3 %vm2501_vm12, %v6416_v29  ;;  %v5676_v61 = vpop.permute.xlu1 %5675  ;;  %v5685_v63 = vsel %vm1907_vm10, %v5664_v45, %v5666_v59  ;;  %v5686_v47 = vsel %vm1907_vm10, %v5678_v54, %v5664_v45 }
 0x43e   :  { %v5679_v17 = vsel %vm1907_vm10, %v5676_v61, %v5678_v54  ;;  %v5687_v19 = vmul.f32 %v5685_v63, %v9057_v18  ;;  %v5694_v42 = vmul.f32 %v5686_v47, %v9062_v13  ;;  %v4376_v5 = vpop.f32.mrf.mxu1 }
 0x43f   :  { %v5693_v25 = vmul.f32 %v5679_v17, %v9058_v51  ;;  %v9070_v17 = vld [vmem:[#allocation72_spill] sm:$0xff] }
 0x440   :  { %5715 = vmatpush.msra.mxu0 %v5687_v19  ;;  %v5875_v49 = vpop.permute.xlu2 %5874 }
 0x441   :  { %5835 = vmatpush.msrb.mxu2 %v5693_v25 }
 0x442   :  { %6421 = vmatmul.msk.f32.vlgmr.msrb.gmra.mxu0 %vm2501_vm12, %v6416_v29 }
 0x443   :  { %6422 = vmatmul.msk.f32.vlgmr.msrb.gmra.mxu1 %vm2501_vm12, %v6416_v29 }
 0x444   :  { %6428 = vmatmul.msk.f32.vlgmr.msra.gmra.mxu2 %vm2501_vm12, %v6425_v33  ;;  %v5674_v31 = vpop.permute.xlu0 %5673 }
 0x445   :  { %v5672_v30 = vpop.permute.xlu1 %5671  ;;  %v5680_v0 = vsel %vm1907_vm10, %v5674_v31, %v5676_v61  ;;  %v9069_v61 = vld [vmem:[#allocation70_spill] sm:$0xff] }
 0x446   :  { %v5682_v34 = vsel %vm1907_vm10, %v5670_v62, %v5672_v30  ;;  %v5681_v16 = vsel %vm1907_vm10, %v5672_v30, %v5674_v31  ;;  %v5692_v8 = vmul.f32 %v5680_v0, %v9059_v58  ;;  %v4356_v21 = vpop.f32.mrf.mxu0  ;;  %v9066_v62 = vld [vmem:[#allocation67_spill] sm:$0xff] }
 0x447   :  { %v5690_v50 = vmul.f32 %v5682_v34, %v9060_v27  ;;  %v5691_v15 = vmul.f32 %v5681_v16, %v9061_v1 }
 0x448   :  { %5815 = vmatpush.msrb.mxu1 %v5692_v8  ;;  %v5869_v44 = vpop.permute.xlu2 %5868 }
 0x449   :  { %5775 = vmatpush.msra.mxu3 %v5690_v50  ;;  %5795 = vmatpush.msrb.mxu0 %v5691_v15 }
 0x44a   :  { %6426 = vmatmul.msk.f32.vlgmr.msra.gmra.mxu0 %vm2501_vm12, %v6425_v33  ;;  %6429 = vmatmul.msk.f32.vlgmr.msra.gmra.mxu3 %vm2501_vm12, %v6425_v33 }
 0x44b   :  { %6427 = vmatmul.msk.f32.vlgmr.msra.gmra.mxu1 %vm2501_vm12, %v6425_v33  ;;  %5855 = vmatpush.msrb.mxu3 %v5694_v42 }
 0x44c   :  { %6432 = vmatmul.msk.f32.vlgmr.msrb.gmra.mxu2 %vm2501_vm12, %v6425_v33 }
 0x44e   :  { %v4416_v48 = vpop.f32.mrf.mxu3 }
 0x44f   :  { %v5873_v2 = vpop.permute.xlu1 %5872 }
 0x450   :  { %v5888_v46 = vsel %vm2177_vm11, %v5873_v2, %v5875_v49  ;;  %v5879_v23 = vpop.permute.xlu2 %5878 }
 0x451   :  { %v5877_v37 = vpop.permute.xlu0 %5876  ;;  %v5894_v4 = vmul.f32 %v5888_v46, %v9063_v24 }
 0x452   :  { %v5887_v9 = vsel %vm2177_vm11, %v5875_v49, %v5877_v37  ;;  %6430 = vmatmul.msk.f32.vlgmr.msrb.gmra.mxu0 %vm2501_vm12, %v6425_v33  ;;  %6433 = vmatmul.msk.f32.vlgmr.msrb.gmra.mxu3 %vm2501_vm12, %v6425_v33  ;;  %v5886_v57 = vsel %vm2177_vm11, %v5877_v37, %v5879_v23 }
 0x453   :  { %6431 = vmatmul.msk.f32.vlgmr.msrb.gmra.mxu1 %vm2501_vm12, %v6425_v33  ;;  %v5895_v43 = vmul.f32 %v5887_v9, %v9064_v36  ;;  %5960 = vmatpush.msra.mxu2 %v5894_v4  ;;  %v5896_v55 = vmul.f32 %v5886_v57, %v9068_v39 }
 0x454   :  { %6437 = vmatmul.msk.f32.vlgmr.msra.gmra.mxu2 %vm2501_vm12, %v6434_v7 }
 0x455   :  { %5980 = vmatpush.msra.mxu3 %v5895_v43 }
 0x457   :  { %v4436_v59 = vpop.f32.mrf.mxu0  ;;  %v4456_v56 = vpop.f32.mrf.mxu1 }
 0x458   :  { %v5871_v11 = vpop.permute.xlu1 %5870 }
 0x459   :  { %v5889_v38 = vsel %vm2177_vm11, %v5871_v11, %v5873_v2  ;;  %v5890_v26 = vsel %vm2177_vm11, %v5869_v44, %v5871_v11  ;;  %v5881_v20 = vpop.permute.xlu0 %5880 }
 0x45a   :  { %v5892_v29 = vmul.f32 %v5890_v26, %v9065_v32  ;;  %v5893_v41 = vmul.f32 %v5889_v38, %v9066_v62  ;;  %v5885_v12 = vsel %vm2177_vm11, %v5879_v23, %v5881_v20  ;;  %6438 = vmatmul.msk.f32.vlgmr.msra.gmra.mxu3 %vm2501_vm12, %v6434_v7 }
 0x45b   :  { %v5897_v60 = vmul.f32 %v5885_v12, %v9067_v14 }
 0x45c   :  { %5920 = vmatpush.msra.mxu0 %v5892_v29  ;;  %5940 = vmatpush.msra.mxu1 %v5893_v41 }
 0x45d   :  { %6435 = vmatmul.msk.f32.vlgmr.msra.gmra.mxu0 %vm2501_vm12, %v6434_v7  ;;  %6436 = vmatmul.msk.f32.vlgmr.msra.gmra.mxu1 %vm2501_vm12, %v6434_v7 }
 0x45e   :  { %6000 = vmatpush.msrb.mxu0 %v5896_v55  ;;  %6020 = vmatpush.msrb.mxu1 %v5897_v60  ;;  %v4476_v52 = vpop.f32.mrf.mxu2  ;;  %v4496_v6 = vpop.f32.mrf.mxu3 }
 0x45f   :  { %v4519_v3 = vpop.f32.mrf.mxu0  ;;  %v4539_v54 = vpop.f32.mrf.mxu1 }
 0x460   :  { %v5883_v10 = vpop.permute.xlu1 %5882  ;;  %v4520_v28 = vadd.f32 %v4519_v3, %v4356_v21  ;;  %v4540_v45 = vadd.f32 %v4539_v54, %v4376_v5 }
 0x461   :  { %v5884_v35 = vsel %vm2177_vm11, %v5881_v20, %v5883_v10  ;;  %v5891_v40 = vsel %vm2177_vm11, %v5883_v10, %v5869_v44 }
 0x462   :  { %v5898_v63 = vmul.f32 %v5884_v35, %v9069_v61  ;;  %v5899_v18 = vmul.f32 %v5891_v40, %v9070_v17 }
 0x464   :  { %6040 = vmatpush.msrb.mxu2 %v5898_v63  ;;  %6060 = vmatpush.msrb.mxu3 %v5899_v18 }
 0x465   :  { %6439 = vmatmul.msk.f32.vlgmr.msrb.gmra.mxu0 %vm2501_vm12, %v6434_v7  ;;  %6440 = vmatmul.msk.f32.vlgmr.msrb.gmra.mxu1 %vm2501_vm12, %v6434_v7 }
 0x466   :  { %6441 = vmatmul.msk.f32.vlgmr.msrb.gmra.mxu2 %vm2501_vm12, %v6434_v7  ;;  %6442 = vmatmul.msk.f32.vlgmr.msrb.gmra.mxu3 %vm2501_vm12, %v6434_v7  ;;  %v4559_v19 = vpop.f32.mrf.mxu2  ;;  %v4579_v25 = vpop.f32.mrf.mxu3 }
 0x467   :  { %v4560_v51 = vadd.f32 %v4559_v19, %v4396_v22  ;;  %v4599_v53 = vpop.f32.mrf.mxu0  ;;  %v4580_v33 = vadd.f32 %v4579_v25, %v4416_v48  ;;  %v4619_v31 = vpop.f32.mrf.mxu1 }
 0x468   :  { %v4600_v49 = vadd.f32 %v4599_v53, %v4436_v59  ;;  %v4620_v30 = vadd.f32 %v4619_v31, %v4456_v56 }
 0x46e   :  { %v4639_v0 = vpop.f32.mrf.mxu2  ;;  %v4659_v16 = vpop.f32.mrf.mxu3 }
 0x46f   :  { %v4640_v34 = vadd.f32 %v4639_v0, %v4476_v52  ;;  %v4716_v58 = vpop.f32.mrf.mxu0  ;;  %v4660_v8 = vadd.f32 %v4659_v16, %v4496_v6  ;;  %v4736_v27 = vpop.f32.mrf.mxu1 }
 0x470   :  { %v4859_v47 = vadd.f32 %v4716_v58, %v4520_v28  ;;  %v4860_v50 = vadd.f32 %v4736_v27, %v4540_v45 }
 0x476   :  { %v4756_v1 = vpop.f32.mrf.mxu2  ;;  %v4776_v13 = vpop.f32.mrf.mxu3 }
 0x477   :  { %v4861_v15 = vadd.f32 %v4756_v1, %v4560_v51  ;;  %v4862_v42 = vadd.f32 %v4776_v13, %v4580_v33 }
 0x47e   :  { %v4836_v44 = vpop.f32.mrf.mxu2  ;;  %v4856_v5 = vpop.f32.mrf.mxu3 }
 0x47f   :  { %v4865_v21 = vadd.f32 %v4836_v44, %v4640_v34  ;;  %v4796_v2 = vpop.f32.mrf.mxu0  ;;  %v4866_v46 = vadd.f32 %v4856_v5, %v4660_v8  ;;  %v4816_v24 = vpop.f32.mrf.mxu1 }
 0x480   :  { %v4863_v37 = vadd.f32 %v4796_v2, %v4600_v49  ;;  %v4864_v4 = vadd.f32 %v4816_v24, %v4620_v30 }
 0x487   :  { %v4961_v9 = vpop.f32.mrf.mxu2  ;;  %v4981_v7 = vpop.f32.mrf.mxu3 }
 0x488   :  { %v5066_v36 = vadd.f32 %v4961_v9, %v4861_v15  ;;  %v5067_v43 = vadd.f32 %v4981_v7, %v4862_v42  ;;  %v4921_v22 = vpop.f32.mrf.mxu0  ;;  %v4941_v48 = vpop.f32.mrf.mxu1 }
 0x489   :  { %v5064_v23 = vadd.f32 %v4921_v22, %v4859_v47  ;;  %v5065_v59 = vadd.f32 %v4941_v48, %v4860_v50 }
 0x48f   :  { %v5041_v56 = vpop.f32.mrf.mxu2  ;;  %v5061_v11 = vpop.f32.mrf.mxu3 }
 0x490   :  { %v8629_v57 = vadd.f32 %v5041_v56, %v4865_v21  ;;  %v8631_v38 = vadd.f32 %v5061_v11, %v4866_v46  ;;  %v5001_v26 = vpop.f32.mrf.mxu0  ;;  %v5021_v20 = vpop.f32.mrf.mxu1 }
 0x491   :  { %v5068_v32 = vadd.f32 %v5001_v26, %v4863_v37  ;;  %v5069_v29 = vadd.f32 %v5021_v20, %v4864_v4  ;;  %v6077_v56 = vpop.permute.xlu0 %6076 }
 0x497   :  { %v5142_v62 = vpop.f32.mrf.mxu2  ;;  %v5162_v41 = vpop.f32.mrf.mxu3 }
 0x498   :  { %v5102_v12 = vpop.f32.mrf.mxu0  ;;  %v5122_v14 = vpop.f32.mrf.mxu1  ;;  %v5247_v58 = vadd.f32 %v5142_v62, %v5066_v36  ;;  %v5248_v13 = vadd.f32 %v5162_v41, %v5067_v43 }
 0x499   :  { %v5245_v8 = vadd.f32 %v5102_v12, %v5064_v23  ;;  %v5246_v47 = vadd.f32 %v5122_v14, %v5065_v59 }
 0x49f   :  { %v8633_v60 = vpop.f32.mrf.mxu2  ;;  %v8635_v39 = vpop.f32.mrf.mxu3 }
 0x4a0   :  { %v5182_v55 = vpop.f32.mrf.mxu0  ;;  %v5202_v52 = vpop.f32.mrf.mxu1 }
 0x4a1   :  { %v5249_v4 = vadd.f32 %v5182_v55, %v5068_v32  ;;  %v5250_v9 = vadd.f32 %v5202_v52, %v5069_v29 }
 0x4a7   :  { %v5347_v6 = vpop.f32.mrf.mxu2 }
 0x4a8   :  { %v5367_v3 = vpop.f32.mrf.mxu3  ;;  %v5307_v10 = vpop.f32.mrf.mxu0  ;;  %v5452_v27 = vadd.f32 %v5347_v6, %v5247_v58 }
 0x4a9   :  { %v5327_v28 = vpop.f32.mrf.mxu1  ;;  %v5450_v50 = vadd.f32 %v5307_v10, %v5245_v8  ;;  %v5453_v2 = vadd.f32 %v5367_v3, %v5248_v13 }
 0x4aa   :  { %v5451_v1 = vadd.f32 %v5327_v28, %v5246_v47  ;;  %v5251_v28 = vadd.f32 %v8633_v60, %v8629_v57 }
 0x4af   :  { %v8637_v54 = vpop.f32.mrf.mxu2 }
 0x4b0   :  { %v5387_v35 = vpop.f32.mrf.mxu0  ;;  %v8639_v45 = vpop.f32.mrf.mxu3 }
 0x4b1   :  { %v5407_v40 = vpop.f32.mrf.mxu1  ;;  %v5454_v11 = vadd.f32 %v5387_v35, %v5249_v4  ;;  %v5252_v35 = vadd.f32 %v8635_v39, %v8631_v38 }
 0x4b2   :  { %v5455_v26 = vadd.f32 %v5407_v40, %v5250_v9 }
 0x4b7   :  { %v5552_v61 = vpop.f32.mrf.mxu2 }
 0x4b8   :  { %v5512_v63 = vpop.f32.mrf.mxu0  ;;  %v5572_v18 = vpop.f32.mrf.mxu3  ;;  %v5657_v42 = vadd.f32 %v5552_v61, %v5452_v27 }
 0x4b9   :  { %v5532_v17 = vpop.f32.mrf.mxu1  ;;  %v5655_v44 = vadd.f32 %v5512_v63, %v5450_v50  ;;  %v5658_v36 = vadd.f32 %v5572_v18, %v5453_v2 }
 0x4ba   :  { %v5656_v21 = vadd.f32 %v5532_v17, %v5451_v1 }
 0x4bf   :  { %v8641_v19 = vpop.f32.mrf.mxu2 }
 0x4c0   :  { %v5592_v51 = vpop.f32.mrf.mxu0  ;;  %v5652_v53 = vpop.f32.mrf.mxu3 }
 0x4c1   :  { %v5612_v25 = vpop.f32.mrf.mxu1  ;;  %v5659_v62 = vadd.f32 %v5592_v51, %v5454_v11 }
 0x4c2   :  { %v5660_v41 = vadd.f32 %v5612_v25, %v5455_v26  ;;  %v5456_v25 = vadd.f32 %v8637_v54, %v5251_v28 }
 0x4c7   :  { %v5757_v33 = vpop.f32.mrf.mxu2 }
 0x4c8   :  { %v5717_v49 = vpop.f32.mrf.mxu0  ;;  %v5862_v46 = vadd.f32 %v5757_v33, %v5657_v42  ;;  %v5457_v33 = vadd.f32 %v8639_v45, %v5252_v35 }
 0x4c9   :  { %v5737_v31 = vpop.f32.mrf.mxu1  ;;  %v5860_v37 = vadd.f32 %v5717_v49, %v5655_v44 }
 0x4ca   :  { %v5861_v24 = vadd.f32 %v5737_v31, %v5656_v21 }
 0x4cd   :  { %v5777_v30 = vpop.f32.mrf.mxu3 }
 0x4ce   :  { %v5863_v43 = vadd.f32 %v5777_v30, %v5658_v36  ;;  %v5661_v30 = vadd.f32 %v8641_v19, %v5456_v25 }
 0x4cf   :  { %v5837_v0 = vpop.f32.mrf.mxu2 }
 0x4d0   :  { %v5797_v34 = vpop.f32.mrf.mxu0  ;;  %v5866_v39 = vadd.f32 %v5837_v0, %v5661_v30 }
 0x4d1   :  { %v5817_v16 = vpop.f32.mrf.mxu1  ;;  %v5864_v32 = vadd.f32 %v5797_v34, %v5659_v62  ;;  %v5662_v34 = vadd.f32 %v5652_v53, %v5457_v33 }
 0x4d2   :  { %v5865_v29 = vadd.f32 %v5817_v16, %v5660_v41 }
 0x4d5   :  { %v5857_v15 = vpop.f32.mrf.mxu3 }
 0x4d6   :  { %v5867_v16 = vadd.f32 %v5857_v15, %v5662_v34 }
 0x4d7   :  { %v5962_v5 = vpop.f32.mrf.mxu2 }
 0x4d8   :  { %v6067_v48 = vadd.f32 %v5962_v5, %v5862_v46 }
 0x4da   :  { %v5922_v7 = vpop.f32.mrf.mxu0  ;;  %v5942_v22 = vpop.f32.mrf.mxu1  ;;  %v6081_v14 = vadd.f32 %v6077_v56, %v6067_v48 }
 0x4db   :  { %v6065_v23 = vadd.f32 %v5922_v7, %v5860_v37  ;;  %v6066_v59 = vadd.f32 %v5942_v22, %v5861_v24 }
 0x4dc   :  { %v6096_v63 = vrot.slane %v6081_v14, 4 }
 0x4dd   :  { %v6080_v20 = vadd.f32 %v6077_v56, %v6066_v59  ;;  %v5982_v12 = vpop.f32.mrf.mxu3  ;;  %v6079_v6 = vadd.f32 %v6077_v56, %v6065_v23 }
 0x4de   :  { %v6068_v10 = vadd.f32 %v5982_v12, %v5863_v43 }
 0x4df   :  { %v6095_v3 = vrot.slane %v6080_v20, 6 }
 0x4e0   :  { %v6082_v52 = vadd.f32 %v6077_v56, %v6068_v10 }
 0x4e1   :  { %v6101_v55 = vsel %vm187_vm0, %v6079_v6, %v6095_v3 }
 0x4e2   :  { %v6002_v40 = vpop.f32.mrf.mxu0  ;;  %v6022_v61 = vpop.f32.mrf.mxu1  ;;  %v6097_v17 = vrot.slane %v6082_v52, 2 }
 0x4e3   :  { %v6069_v18 = vadd.f32 %v6002_v40, %v5864_v32  ;;  %v6070_v51 = vadd.f32 %v6022_v61, %v5865_v29 }
 0x4e4   :  { %v6102_v49 = vsel %vm1119_vm1, %v6096_v63, %v6097_v17 }
 0x4e5   :  { %v6084_v31 = vadd.f32 %v6077_v56, %v6070_v51  ;;  %v6103_v57 = vsel %vm1121_vm2, %v6101_v55, %v6102_v49  ;;  %v6083_v38 = vadd.f32 %v6077_v56, %v6069_v18 }
 0x4e6   :  { %6109 = vst [vmem:[%s8670_s8] sm:$0xff] %v6103_v57 }
 0x4e7   :  { %v6098_v60 = vrot.slane %v6084_v31, 6 }
 0x4e9   :  { %v6104_v54 = vsel %vm187_vm0, %v6083_v38, %v6098_v60  ;;  %v6042_v58 = vpop.f32.mrf.mxu2  ;;  %v6062_v45 = vpop.f32.mrf.mxu3 }
 0x4ea   :  { %v6071_v8 = vadd.f32 %v6042_v58, %v5866_v39  ;;  %v6072_v47 = vadd.f32 %v6062_v45, %v5867_v16 }
 0x4ec   :  { %v6085_v27 = vadd.f32 %v6077_v56, %v6071_v8  ;;  %v6086_v50 = vadd.f32 %v6077_v56, %v6072_v47 }
 0x4ee   :  { %v6099_v19 = vrot.slane %v6085_v27, 4  ;;  %v6100_v53 = vrot.slane %v6086_v50, 2 }
 0x4f0   :  { %v6105_v1 = vsel %vm1119_vm1, %v6099_v19, %v6100_v53 }
 0x4f1   :  { %v6106_v13 = vsel %vm1121_vm2, %v6104_v54, %v6105_v1 }
 0x4f2   :  { %6110 = vst [vmem:[%s8670_s8 + $0x8] sm:$0xff] %v6106_v13 }

</bundles_post_ra>
